<compile_context>
chip_gen: v7x
topology: tpu7x:2x2x1
jax: 0.10.0
libtpu: 0.0.40
codegen_flags: <defaults>
</compile_context>

<pallas_src>
import jax
import jax.numpy as jnp
from jax.experimental import pallas as pl
from jax.experimental.pallas import tpu as pltpu

HIDDEN = (2048, 512, 128, 32)
LANE = 128


def _round_up(x, m):
    return ((x + m - 1) // m) * m


def mlp_kernel(x_ref,
               w1_ref, b1_ref,
               w2_ref, b2_ref,
               w3_ref, b3_ref,
               w4_ref, b4_ref,
               w5_ref, b5_ref,
               out_ref):
    # In-kernel bf16 cast of the f32 input tile (VPU work, hidden under MXU).
    xb = x_ref[...].astype(jnp.bfloat16)
    # Layer 1: Linear(128pad, 2048) + ReLU   (bf16 x bf16 -> f32 accumulate)
    h = jnp.dot(xb, w1_ref[...], preferred_element_type=jnp.float32) + b1_ref[...]
    h = jnp.maximum(h, 0.0).astype(jnp.bfloat16)
    # Layer 2: Linear(2048, 512) + ReLU
    h = jnp.dot(h, w2_ref[...], preferred_element_type=jnp.float32) + b2_ref[...]
    h = jnp.maximum(h, 0.0).astype(jnp.bfloat16)
    # Layer 3: Linear(512, 128) + ReLU
    h = jnp.dot(h, w3_ref[...], preferred_element_type=jnp.float32) + b3_ref[...]
    h = jnp.maximum(h, 0.0).astype(jnp.bfloat16)
    # Layer 4: Linear(128, 32) + ReLU
    h = jnp.dot(h, w4_ref[...], preferred_element_type=jnp.float32) + b4_ref[...]
    h = jnp.maximum(h, 0.0).astype(jnp.bfloat16)
    # Layer 5: Linear(32, 128pad).  Padded class lanes carry a -1e30 bias so
    # they contribute ~0 to the softmax normalization.
    logits = jnp.dot(h, w5_ref[...], preferred_element_type=jnp.float32) + b5_ref[...]
    # Softmax over the (lane-dense) class axis, max-shifted; approx reciprocal
    # on the EUP slot.
    m = jnp.max(logits, axis=-1, keepdims=True)
    e = jnp.exp(logits - m)
    denom = jnp.sum(e, axis=-1, keepdims=True)
    out_ref[...] = (e * pl.reciprocal(denom, approx=True)).astype(out_ref.dtype)


def init_params(key, in_features=100, num_classes=2):
    """Deterministic init mirroring PyTorch nn.Linear default U(-k, k), k=1/sqrt(fan_in)."""
    dims = [in_features, *HIDDEN, num_classes]
    params = []
    for i in range(len(dims) - 1):
        fan_in, fan_out = dims[i], dims[i + 1]
        key, kw, kb = jax.random.split(key, 3)
        bound = 1.0 / jnp.sqrt(jnp.float32(fan_in))
        # Stored as (in, out) — transposed relative to PyTorch's (out, in).
        w = jax.random.uniform(kw, (fan_in, fan_out), jnp.float32, -bound, bound)
        b = jax.random.uniform(kb, (1, fan_out), jnp.float32, -bound, bound)
        params.append((w, b))
    return params


def prepare_params(params, in_pad=LANE, class_pad=LANE):
    """One-time host prep:
       * layer-1 K zero-padded to `in_pad` (lane-aligned)
       * final-layer N zero-padded to `class_pad` (lane-dense output store);
         padded class lanes get bias -1e30 so softmax gives them ~0
       * weights cast to bf16, biases kept f32."""
    prepared = []
    n = len(params)
    for i, (w, b) in enumerate(params):
        if i == 0 and w.shape[0] < in_pad:
            w = jnp.pad(w, ((0, in_pad - w.shape[0]), (0, 0)))
        if i == n - 1 and w.shape[1] < class_pad:
            pad_n = class_pad - w.shape[1]
            w = jnp.pad(w, ((0, 0), (0, pad_n)))
            b = jnp.pad(b, ((0, 0), (0, pad_n)), constant_values=-1e30)
        prepared.append((w.astype(jnp.bfloat16), b.astype(jnp.float32)))
    return prepared


def mlp_forward(x, qparams, num_classes, *, tm=1024):
    """x: (B, in_features) f32.  qparams: output of prepare_params.
    Returns (B, num_classes) f32 softmax probabilities."""
    B, K = x.shape
    K_pad = qparams[0][0].shape[0]
    out_pad = qparams[-1][0].shape[1]            # lane-dense class dim (128)

    # Feature pad to the lane-aligned layer-1 K (exact, zeros). x stays f32 —
    # the bf16 cast happens inside the kernel.
    if K < K_pad:
        x = jnp.pad(x, ((0, 0), (0, K_pad - K)))

    # Batch tile. Guarantee >=2 grid steps when the batch is large enough so
    # the "parallel" batch axis actually spans both TensorCores on v7x.
    tm_eff = min(tm, _round_up(B, 16))
    if B > 512 and _round_up(B, tm_eff) // tm_eff < 2:
        tm_eff = _round_up((B + 1) // 2, 16)
    B_pad = _round_up(B, tm_eff)
    if B_pad != B:
        x = jnp.pad(x, ((0, B_pad - B), (0, 0)))

    grid = (B_pad // tm_eff,)

    # VMEM budget scales with the tile: double-buffered x/out tiles + resident
    # bf16 weights + per-tile f32/bf16 intermediates.  ~40 MiB at tm=1024,
    # which fits v7x's 64 MiB physical VMEM; do not push tm to 2048 on v7x.
    vmem_limit = int(min(64 << 20, (16 << 20) + tm_eff * 24 * 1024))

    flat = []
    const_shapes = []
    for w, b in qparams:
        flat += [w, b]
        const_shapes += [w.shape, b.shape]

    def build_specs(weight_pipeline_mode):
        in_specs = [pl.BlockSpec((tm_eff, K_pad), lambda i: (i, 0))]
        for shape in const_shapes:
            # Constant index_map -> weights/biases stay VMEM-resident.
            if weight_pipeline_mode is None:
                in_specs.append(pl.BlockSpec(shape, lambda i: (0, 0)))
            else:
                in_specs.append(pl.BlockSpec(shape, lambda i: (0, 0),
                                             pipeline_mode=weight_pipeline_mode))
        return in_specs

    out_specs = pl.BlockSpec((tm_eff, out_pad), lambda i: (i, 0))

    flops = 2 * B_pad * sum(w.shape[0] * w.shape[1] for w, _ in qparams)
    bytes_accessed = (
        x.size * 4                                    # f32 input tiles
        + sum(w.size * 2 + b.size * 4 for w, b in qparams)
        + B_pad * out_pad * 4                         # f32 lane-dense output
    )
    cost = pl.CostEstimate(flops=flops,
                           transcendentals=B_pad * (out_pad + 1),
                           bytes_accessed=bytes_accessed)

    def run(weight_pipeline_mode):
        return pl.pallas_call(
            mlp_kernel,
            out_shape=jax.ShapeDtypeStruct((B_pad, out_pad), jnp.float32),
            grid=grid,
            in_specs=build_specs(weight_pipeline_mode),
            out_specs=out_specs,
            compiler_params=pltpu.CompilerParams(
                dimension_semantics=("parallel",),    # megacore sharding on v7x
                vmem_limit_bytes=vmem_limit,
            ),
            cost_estimate=cost,
        )(x, *flat)

    try:
        # Single-buffer the constant weight/bias blocks (double-buffering a
        # constant block is pure VMEM waste; ~2.7 MiB reclaimed).
        out = run(pl.Buffered(1))
    except Exception:
        # Graceful fallback if this runtime rejects single buffering: default
        # double buffering is still correct, just slightly more VMEM.
        out = run(None)

    return out[:B, :num_classes]


if __name__ == "__main__":
    in_features = 100
    num_classes = 2
    batch = 8

    key = jax.random.PRNGKey(0)
    key, kx = jax.random.split(key)
    x = jax.random.normal(kx, (batch, in_features), dtype=jnp.float32)

    params = init_params(key, in_features=in_features, num_classes=num_classes)
    qparams = prepare_params(params,
                             in_pad=_round_up(in_features, LANE),
                             class_pad=LANE)

    out = jax.block_until_ready(mlp_forward(x, qparams, num_classes))

    # Sanity: shape and softmax rows summing to ~1 (approx reciprocal -> loose tol).
    assert out.shape == (batch, num_classes), out.shape
    row_sums = jnp.sum(out, axis=1)
    assert bool(jnp.all(jnp.abs(row_sums - 1.0) < 5e-3)), row_sums

    # Quantization-matched pure-JAX reference (same bf16 weights/activations,
    # f32 accumulation, same lane-dense softmax); differs from the kernel only
    # by the approx reciprocal used in the epilogue.
    def ref_quant(x, qparams):
        K_pad = qparams[0][0].shape[0]
        h = jnp.pad(x, ((0, 0), (0, K_pad - x.shape[1]))).astype(jnp.bfloat16)
        for i, (w, b) in enumerate(qparams):
            h = jnp.dot(h, w, preferred_element_type=jnp.float32) + b
            if i < len(qparams) - 1:
                h = jnp.maximum(h, 0.0).astype(jnp.bfloat16)
        return jax.nn.softmax(h, axis=1)[:, :num_classes]

    ref = ref_quant(x, qparams)
    assert bool(jnp.all(jnp.abs(out - ref) < 5e-3)), jnp.max(jnp.abs(out - ref))

    # Loose check against the original full-f32 module math (bf16 error only).
    def ref_f32(x, params):
        h = x
        for i, (w, b) in enumerate(params):
            h = h @ w + b
            if i < len(params) - 1:
                h = jnp.maximum(h, 0.0)
        return jax.nn.softmax(h, axis=1)

    ref32 = ref_f32(x, params)
    assert bool(jnp.all(jnp.abs(out - ref32) < 5e-2)), jnp.max(jnp.abs(out - ref32))

    print("KERNEL_OK")
</pallas_src>

<mosaic_0001>
module attributes {stable_mosaic.version = 11 : i64} {
  func.func @mlp_kernel(%arg0: i32, %arg1: memref<16x128xf32, #tpu.memory_space<vmem>>, %arg2: memref<128x2048xbf16, #tpu.memory_space<vmem>>, %arg3: memref<1x2048xf32, #tpu.memory_space<vmem>>, %arg4: memref<2048x512xbf16, #tpu.memory_space<vmem>>, %arg5: memref<1x512xf32, #tpu.memory_space<vmem>>, %arg6: memref<512x128xbf16, #tpu.memory_space<vmem>>, %arg7: memref<1x128xf32, #tpu.memory_space<vmem>>, %arg8: memref<128x32xbf16, #tpu.memory_space<vmem>>, %arg9: memref<1x32xf32, #tpu.memory_space<vmem>>, %arg10: memref<32x128xbf16, #tpu.memory_space<vmem>>, %arg11: memref<1x128xf32, #tpu.memory_space<vmem>>, %arg12: memref<16x128xf32, #tpu.memory_space<vmem>>) attributes {dimension_semantics = [#tpu.dimension_semantics<parallel>], iteration_bounds = array<i64: 1>, scalar_prefetch = 0 : i64, scratch_operands = 0 : i64, tpu.core_type = #tpu.core_type<tc>, window_params = [{transform_indices = @transform_0, window_bounds = array<i64: 16, 128>}, {pipeline_mode = #tpu.pipeline_mode<synchronous>, transform_indices = @transform_1, window_bounds = array<i64: 128, 2048>}, {pipeline_mode = #tpu.pipeline_mode<synchronous>, transform_indices = @transform_2, window_bounds = array<i64: 1, 2048>}, {pipeline_mode = #tpu.pipeline_mode<synchronous>, transform_indices = @transform_3, window_bounds = array<i64: 2048, 512>}, {pipeline_mode = #tpu.pipeline_mode<synchronous>, transform_indices = @transform_4, window_bounds = array<i64: 1, 512>}, {pipeline_mode = #tpu.pipeline_mode<synchronous>, transform_indices = @transform_5, window_bounds = array<i64: 512, 128>}, {pipeline_mode = #tpu.pipeline_mode<synchronous>, transform_indices = @transform_6, window_bounds = array<i64: 1, 128>}, {pipeline_mode = #tpu.pipeline_mode<synchronous>, transform_indices = @transform_7, window_bounds = array<i64: 128, 32>}, {pipeline_mode = #tpu.pipeline_mode<synchronous>, transform_indices = @transform_8, window_bounds = array<i64: 1, 32>}, {pipeline_mode = #tpu.pipeline_mode<synchronous>, transform_indices = @transform_9, window_bounds = array<i64: 32, 128>}, {pipeline_mode = #tpu.pipeline_mode<synchronous>, transform_indices = @transform_10, window_bounds = array<i64: 1, 128>}, {transform_indices = @transform_11, window_bounds = array<i64: 16, 128>}]} {
    %c0 = arith.constant 0 : index
    %c0_0 = arith.constant 0 : index
    %0 = vector.load %arg1[%c0, %c0_0] : memref<16x128xf32, #tpu.memory_space<vmem>>, vector<16x128xf32>
    %1 = arith.truncf %0 : vector<16x128xf32> to vector<16x128xbf16>
    %c0_1 = arith.constant 0 : index
    %c0_2 = arith.constant 0 : index
    %2 = vector.load %arg2[%c0_1, %c0_2] : memref<128x2048xbf16, #tpu.memory_space<vmem>>, vector<128x2048xbf16>
    %cst = arith.constant dense<0.000000e+00> : vector<16x2048xf32>
    %3 = tpu.matmul %1, %2, %cst {dimension_numbers = #tpu.dot_dimension_numbers<[1], [0], [0], [1], [0, 0, 1, 1], [], []>} : vector<16x128xbf16>, vector<128x2048xbf16>, vector<16x2048xf32> -> vector<16x2048xf32>
    %c0_3 = arith.constant 0 : index
    %c0_4 = arith.constant 0 : index
    %4 = vector.load %arg3[%c0_3, %c0_4] : memref<1x2048xf32, #tpu.memory_space<vmem>>, vector<1x2048xf32>
    %5 = vector.broadcast %4 : vector<1x2048xf32> to vector<16x2048xf32>
    %6 = arith.addf %3, %5 : vector<16x2048xf32>
    %cst_5 = arith.constant 0.000000e+00 : f32
    %7 = vector.broadcast %cst_5 : f32 to vector<16x2048xf32>
    %8 = arith.maximumf %6, %7 : vector<16x2048xf32>
    %9 = arith.truncf %8 : vector<16x2048xf32> to vector<16x2048xbf16>
    %c0_6 = arith.constant 0 : index
    %c0_7 = arith.constant 0 : index
    %10 = vector.load %arg4[%c0_6, %c0_7] : memref<2048x512xbf16, #tpu.memory_space<vmem>>, vector<2048x512xbf16>
    %cst_8 = arith.constant dense<0.000000e+00> : vector<16x512xf32>
    %11 = tpu.matmul %9, %10, %cst_8 {dimension_numbers = #tpu.dot_dimension_numbers<[1], [0], [0], [1], [0, 0, 1, 1], [], []>} : vector<16x2048xbf16>, vector<2048x512xbf16>, vector<16x512xf32> -> vector<16x512xf32>
    %c0_9 = arith.constant 0 : index
    %c0_10 = arith.constant 0 : index
    %12 = vector.load %arg5[%c0_9, %c0_10] : memref<1x512xf32, #tpu.memory_space<vmem>>, vector<1x512xf32>
    %13 = vector.broadcast %12 : vector<1x512xf32> to vector<16x512xf32>
    %14 = arith.addf %11, %13 : vector<16x512xf32>
    %cst_11 = arith.constant 0.000000e+00 : f32
    %15 = vector.broadcast %cst_11 : f32 to vector<16x512xf32>
    %16 = arith.maximumf %14, %15 : vector<16x512xf32>
    %17 = arith.truncf %16 : vector<16x512xf32> to vector<16x512xbf16>
    %c0_12 = arith.constant 0 : index
    %c0_13 = arith.constant 0 : index
    %18 = vector.load %arg6[%c0_12, %c0_13] : memref<512x128xbf16, #tpu.memory_space<vmem>>, vector<512x128xbf16>
    %cst_14 = arith.constant dense<0.000000e+00> : vector<16x128xf32>
    %19 = tpu.matmul %17, %18, %cst_14 {dimension_numbers = #tpu.dot_dimension_numbers<[1], [0], [0], [1], [0, 0, 1, 1], [], []>} : vector<16x512xbf16>, vector<512x128xbf16>, vector<16x128xf32> -> vector<16x128xf32>
    %c0_15 = arith.constant 0 : index
    %c0_16 = arith.constant 0 : index
    %20 = vector.load %arg7[%c0_15, %c0_16] : memref<1x128xf32, #tpu.memory_space<vmem>>, vector<1x128xf32>
    %21 = vector.broadcast %20 : vector<1x128xf32> to vector<16x128xf32>
    %22 = arith.addf %19, %21 : vector<16x128xf32>
    %cst_17 = arith.constant 0.000000e+00 : f32
    %23 = vector.broadcast %cst_17 : f32 to vector<16x128xf32>
    %24 = arith.maximumf %22, %23 : vector<16x128xf32>
    %25 = arith.truncf %24 : vector<16x128xf32> to vector<16x128xbf16>
    %c0_18 = arith.constant 0 : index
    %c0_19 = arith.constant 0 : index
    %26 = vector.load %arg8[%c0_18, %c0_19] : memref<128x32xbf16, #tpu.memory_space<vmem>>, vector<128x32xbf16>
    %cst_20 = arith.constant dense<0.000000e+00> : vector<16x32xf32>
    %27 = tpu.matmul %25, %26, %cst_20 {dimension_numbers = #tpu.dot_dimension_numbers<[1], [0], [0], [1], [0, 0, 1, 1], [], []>} : vector<16x128xbf16>, vector<128x32xbf16>, vector<16x32xf32> -> vector<16x32xf32>
    %c0_21 = arith.constant 0 : index
    %c0_22 = arith.constant 0 : index
    %28 = vector.load %arg9[%c0_21, %c0_22] : memref<1x32xf32, #tpu.memory_space<vmem>>, vector<1x32xf32>
    %29 = vector.broadcast %28 : vector<1x32xf32> to vector<16x32xf32>
    %30 = arith.addf %27, %29 : vector<16x32xf32>
    %cst_23 = arith.constant 0.000000e+00 : f32
    %31 = vector.broadcast %cst_23 : f32 to vector<16x32xf32>
    %32 = arith.maximumf %30, %31 : vector<16x32xf32>
    %33 = arith.truncf %32 : vector<16x32xf32> to vector<16x32xbf16>
    %c0_24 = arith.constant 0 : index
    %c0_25 = arith.constant 0 : index
    %34 = vector.load %arg10[%c0_24, %c0_25] : memref<32x128xbf16, #tpu.memory_space<vmem>>, vector<32x128xbf16>
    %cst_26 = arith.constant dense<0.000000e+00> : vector<16x128xf32>
    %35 = tpu.matmul %33, %34, %cst_26 {dimension_numbers = #tpu.dot_dimension_numbers<[1], [0], [0], [1], [0, 0, 1, 1], [], []>} : vector<16x32xbf16>, vector<32x128xbf16>, vector<16x128xf32> -> vector<16x128xf32>
    %c0_27 = arith.constant 0 : index
    %c0_28 = arith.constant 0 : index
    %36 = vector.load %arg11[%c0_27, %c0_28] : memref<1x128xf32, #tpu.memory_space<vmem>>, vector<1x128xf32>
    %37 = vector.broadcast %36 : vector<1x128xf32> to vector<16x128xf32>
    %38 = arith.addf %35, %37 : vector<16x128xf32>
    %cst_29 = arith.constant dense<0xFF800000> : vector<16xf32>
    %39 = vector.multi_reduction <maximumf>, %38, %cst_29 [1] : vector<16x128xf32> to vector<16xf32>
    %40 = vector.shape_cast %39 : vector<16xf32> to vector<16x1xf32>
    %41 = vector.broadcast %40 : vector<16x1xf32> to vector<16x128xf32>
    %42 = arith.subf %38, %41 : vector<16x128xf32>
    %43 = math.exp %42 : vector<16x128xf32>
    %cst_30 = arith.constant dense<0.000000e+00> : vector<16xf32>
    %44 = vector.multi_reduction <add>, %43, %cst_30 [1] : vector<16x128xf32> to vector<16xf32>
    %45 = vector.shape_cast %44 : vector<16xf32> to vector<16x1xf32>
    %46 = tpu.reciprocal %45 {approx = true} : vector<16x1xf32> -> vector<16x1xf32>
    %47 = vector.broadcast %46 : vector<16x1xf32> to vector<16x128xf32>
    %48 = arith.mulf %43, %47 : vector<16x128xf32>
    %c0_31 = arith.constant 0 : index
    %c0_32 = arith.constant 0 : index
    %49 = vector.load %arg12[%c0_31, %c0_32] : memref<16x128xf32, #tpu.memory_space<vmem>>, vector<16x128xf32>
    tpu.vector_store %arg12[%c0_31, %c0_32], %48 {strides = array<i32>} : memref<16x128xf32, #tpu.memory_space<vmem>>, vector<16x128xf32>,
    return
  }
  func.func @transform_0(%arg0: i32) -> (i32, i32) {
    %c0_i32 = arith.constant 0 : i32
    %c0_i32_0 = arith.constant 0 : i32
    return %arg0, %c0_i32 : i32, i32
  }
  func.func @transform_1(%arg0: i32) -> (i32, i32) {
    %c0_i32 = arith.constant 0 : i32
    %c0_i32_0 = arith.constant 0 : i32
    %c0_i32_1 = arith.constant 0 : i32
    return %c0_i32, %c0_i32_0 : i32, i32
  }
  func.func @transform_2(%arg0: i32) -> (i32, i32) {
    %c0_i32 = arith.constant 0 : i32
    %c0_i32_0 = arith.constant 0 : i32
    %c0_i32_1 = arith.constant 0 : i32
    return %c0_i32, %c0_i32_0 : i32, i32
  }
  func.func @transform_3(%arg0: i32) -> (i32, i32) {
    %c0_i32 = arith.constant 0 : i32
    %c0_i32_0 = arith.constant 0 : i32
    %c0_i32_1 = arith.constant 0 : i32
    return %c0_i32, %c0_i32_0 : i32, i32
  }
  func.func @transform_4(%arg0: i32) -> (i32, i32) {
    %c0_i32 = arith.constant 0 : i32
    %c0_i32_0 = arith.constant 0 : i32
    %c0_i32_1 = arith.constant 0 : i32
    return %c0_i32, %c0_i32_0 : i32, i32
  }
  func.func @transform_5(%arg0: i32) -> (i32, i32) {
    %c0_i32 = arith.constant 0 : i32
    %c0_i32_0 = arith.constant 0 : i32
    %c0_i32_1 = arith.constant 0 : i32
    return %c0_i32, %c0_i32_0 : i32, i32
  }
  func.func @transform_6(%arg0: i32) -> (i32, i32) {
    %c0_i32 = arith.constant 0 : i32
    %c0_i32_0 = arith.constant 0 : i32
    %c0_i32_1 = arith.constant 0 : i32
    return %c0_i32, %c0_i32_0 : i32, i32
  }
  func.func @transform_7(%arg0: i32) -> (i32, i32) {
    %c0_i32 = arith.constant 0 : i32
    %c0_i32_0 = arith.constant 0 : i32
    %c0_i32_1 = arith.constant 0 : i32
    return %c0_i32, %c0_i32_0 : i32, i32
  }
  func.func @transform_8(%arg0: i32) -> (i32, i32) {
    %c0_i32 = arith.constant 0 : i32
    %c0_i32_0 = arith.constant 0 : i32
    %c0_i32_1 = arith.constant 0 : i32
    return %c0_i32, %c0_i32_0 : i32, i32
  }
  func.func @transform_9(%arg0: i32) -> (i32, i32) {
    %c0_i32 = arith.constant 0 : i32
    %c0_i32_0 = arith.constant 0 : i32
    %c0_i32_1 = arith.constant 0 : i32
    return %c0_i32, %c0_i32_0 : i32, i32
  }
  func.func @transform_10(%arg0: i32) -> (i32, i32) {
    %c0_i32 = arith.constant 0 : i32
    %c0_i32_0 = arith.constant 0 : i32
    %c0_i32_1 = arith.constant 0 : i32
    return %c0_i32, %c0_i32_0 : i32, i32
  }
  func.func @transform_11(%arg0: i32) -> (i32, i32) {
    %c0_i32 = arith.constant 0 : i32
    %c0_i32_0 = arith.constant 0 : i32
    return %arg0, %c0_i32 : i32, i32
  }
}

module attributes {stable_mosaic.version = 11 : i64} {
  func.func @mlp_kernel(%arg0: i32, %arg1: memref<16x128xf32, #tpu.memory_space<vmem>>, %arg2: memref<128x2048xbf16, #tpu.memory_space<vmem>>, %arg3: memref<1x2048xf32, #tpu.memory_space<vmem>>, %arg4: memref<2048x512xbf16, #tpu.memory_space<vmem>>, %arg5: memref<1x512xf32, #tpu.memory_space<vmem>>, %arg6: memref<512x128xbf16, #tpu.memory_space<vmem>>, %arg7: memref<1x128xf32, #tpu.memory_space<vmem>>, %arg8: memref<128x32xbf16, #tpu.memory_space<vmem>>, %arg9: memref<1x32xf32, #tpu.memory_space<vmem>>, %arg10: memref<32x128xbf16, #tpu.memory_space<vmem>>, %arg11: memref<1x128xf32, #tpu.memory_space<vmem>>, %arg12: memref<16x128xf32, #tpu.memory_space<vmem>>) attributes {dimension_semantics = [#tpu.dimension_semantics<parallel>], iteration_bounds = array<i64: 1>, scalar_prefetch = 0 : i64, scratch_operands = 0 : i64, tpu.core_type = #tpu.core_type<tc>, window_params = [{transform_indices = @transform_0, window_bounds = array<i64: 16, 128>}, {pipeline_mode = #tpu.pipeline_mode<synchronous>, transform_indices = @transform_1, window_bounds = array<i64: 128, 2048>}, {pipeline_mode = #tpu.pipeline_mode<synchronous>, transform_indices = @transform_2, window_bounds = array<i64: 1, 2048>}, {pipeline_mode = #tpu.pipeline_mode<synchronous>, transform_indices = @transform_3, window_bounds = array<i64: 2048, 512>}, {pipeline_mode = #tpu.pipeline_mode<synchronous>, transform_indices = @transform_4, window_bounds = array<i64: 1, 512>}, {pipeline_mode = #tpu.pipeline_mode<synchronous>, transform_indices = @transform_5, window_bounds = array<i64: 512, 128>}, {pipeline_mode = #tpu.pipeline_mode<synchronous>, transform_indices = @transform_6, window_bounds = array<i64: 1, 128>}, {pipeline_mode = #tpu.pipeline_mode<synchronous>, transform_indices = @transform_7, window_bounds = array<i64: 128, 32>}, {pipeline_mode = #tpu.pipeline_mode<synchronous>, transform_indices = @transform_8, window_bounds = array<i64: 1, 32>}, {pipeline_mode = #tpu.pipeline_mode<synchronous>, transform_indices = @transform_9, window_bounds = array<i64: 32, 128>}, {pipeline_mode = #tpu.pipeline_mode<synchronous>, transform_indices = @transform_10, window_bounds = array<i64: 1, 128>}, {transform_indices = @transform_11, window_bounds = array<i64: 16, 128>}]} {
    %c0 = arith.constant 0 : index
    %c0_0 = arith.constant 0 : index
    %0 = vector.load %arg1[%c0, %c0_0] : memref<16x128xf32, #tpu.memory_space<vmem>>, vector<16x128xf32>
    %1 = arith.truncf %0 : vector<16x128xf32> to vector<16x128xbf16>
    %c0_1 = arith.constant 0 : index
    %c0_2 = arith.constant 0 : index
    %2 = vector.load %arg2[%c0_1, %c0_2] : memref<128x2048xbf16, #tpu.memory_space<vmem>>, vector<128x2048xbf16>
    %cst = arith.constant dense<0.000000e+00> : vector<16x2048xf32>
    %3 = tpu.matmul %1, %2, %cst {dimension_numbers = #tpu.dot_dimension_numbers<[1], [0], [0], [1], [0, 0, 1, 1], [], []>} : vector<16x128xbf16>, vector<128x2048xbf16>, vector<16x2048xf32> -> vector<16x2048xf32>
    %c0_3 = arith.constant 0 : index
    %c0_4 = arith.constant 0 : index
    %4 = vector.load %arg3[%c0_3, %c0_4] : memref<1x2048xf32, #tpu.memory_space<vmem>>, vector<1x2048xf32>
    %5 = vector.broadcast %4 : vector<1x2048xf32> to vector<16x2048xf32>
    %6 = arith.addf %3, %5 : vector<16x2048xf32>
    %cst_5 = arith.constant 0.000000e+00 : f32
    %7 = vector.broadcast %cst_5 : f32 to vector<16x2048xf32>
    %8 = arith.maximumf %6, %7 : vector<16x2048xf32>
    %9 = arith.truncf %8 : vector<16x2048xf32> to vector<16x2048xbf16>
    %c0_6 = arith.constant 0 : index
    %c0_7 = arith.constant 0 : index
    %10 = vector.load %arg4[%c0_6, %c0_7] : memref<2048x512xbf16, #tpu.memory_space<vmem>>, vector<2048x512xbf16>
    %cst_8 = arith.constant dense<0.000000e+00> : vector<16x512xf32>
    %11 = tpu.matmul %9, %10, %cst_8 {dimension_numbers = #tpu.dot_dimension_numbers<[1], [0], [0], [1], [0, 0, 1, 1], [], []>} : vector<16x2048xbf16>, vector<2048x512xbf16>, vector<16x512xf32> -> vector<16x512xf32>
    %c0_9 = arith.constant 0 : index
    %c0_10 = arith.constant 0 : index
    %12 = vector.load %arg5[%c0_9, %c0_10] : memref<1x512xf32, #tpu.memory_space<vmem>>, vector<1x512xf32>
    %13 = vector.broadcast %12 : vector<1x512xf32> to vector<16x512xf32>
    %14 = arith.addf %11, %13 : vector<16x512xf32>
    %cst_11 = arith.constant 0.000000e+00 : f32
    %15 = vector.broadcast %cst_11 : f32 to vector<16x512xf32>
    %16 = arith.maximumf %14, %15 : vector<16x512xf32>
    %17 = arith.truncf %16 : vector<16x512xf32> to vector<16x512xbf16>
    %c0_12 = arith.constant 0 : index
    %c0_13 = arith.constant 0 : index
    %18 = vector.load %arg6[%c0_12, %c0_13] : memref<512x128xbf16, #tpu.memory_space<vmem>>, vector<512x128xbf16>
    %cst_14 = arith.constant dense<0.000000e+00> : vector<16x128xf32>
    %19 = tpu.matmul %17, %18, %cst_14 {dimension_numbers = #tpu.dot_dimension_numbers<[1], [0], [0], [1], [0, 0, 1, 1], [], []>} : vector<16x512xbf16>, vector<512x128xbf16>, vector<16x128xf32> -> vector<16x128xf32>
    %c0_15 = arith.constant 0 : index
    %c0_16 = arith.constant 0 : index
    %20 = vector.load %arg7[%c0_15, %c0_16] : memref<1x128xf32, #tpu.memory_space<vmem>>, vector<1x128xf32>
    %21 = vector.broadcast %20 : vector<1x128xf32> to vector<16x128xf32>
    %22 = arith.addf %19, %21 : vector<16x128xf32>
    %cst_17 = arith.constant 0.000000e+00 : f32
    %23 = vector.broadcast %cst_17 : f32 to vector<16x128xf32>
    %24 = arith.maximumf %22, %23 : vector<16x128xf32>
    %25 = arith.truncf %24 : vector<16x128xf32> to vector<16x128xbf16>
    %c0_18 = arith.constant 0 : index
    %c0_19 = arith.constant 0 : index
    %26 = vector.load %arg8[%c0_18, %c0_19] : memref<128x32xbf16, #tpu.memory_space<vmem>>, vector<128x32xbf16>
    %cst_20 = arith.constant dense<0.000000e+00> : vector<16x32xf32>
    %27 = tpu.matmul %25, %26, %cst_20 {dimension_numbers = #tpu.dot_dimension_numbers<[1], [0], [0], [1], [0, 0, 1, 1], [], []>} : vector<16x128xbf16>, vector<128x32xbf16>, vector<16x32xf32> -> vector<16x32xf32>
    %c0_21 = arith.constant 0 : index
    %c0_22 = arith.constant 0 : index
    %28 = vector.load %arg9[%c0_21, %c0_22] : memref<1x32xf32, #tpu.memory_space<vmem>>, vector<1x32xf32>
    %29 = vector.broadcast %28 : vector<1x32xf32> to vector<16x32xf32>
    %30 = arith.addf %27, %29 : vector<16x32xf32>
    %cst_23 = arith.constant 0.000000e+00 : f32
    %31 = vector.broadcast %cst_23 : f32 to vector<16x32xf32>
    %32 = arith.maximumf %30, %31 : vector<16x32xf32>
    %33 = arith.truncf %32 : vector<16x32xf32> to vector<16x32xbf16>
    %c0_24 = arith.constant 0 : index
    %c0_25 = arith.constant 0 : index
    %34 = vector.load %arg10[%c0_24, %c0_25] : memref<32x128xbf16, #tpu.memory_space<vmem>>, vector<32x128xbf16>
    %cst_26 = arith.constant dense<0.000000e+00> : vector<16x128xf32>
    %35 = tpu.matmul %33, %34, %cst_26 {dimension_numbers = #tpu.dot_dimension_numbers<[1], [0], [0], [1], [0, 0, 1, 1], [], []>} : vector<16x32xbf16>, vector<32x128xbf16>, vector<16x128xf32> -> vector<16x128xf32>
    %c0_27 = arith.constant 0 : index
    %c0_28 = arith.constant 0 : index
    %36 = vector.load %arg11[%c0_27, %c0_28] : memref<1x128xf32, #tpu.memory_space<vmem>>, vector<1x128xf32>
    %37 = vector.broadcast %36 : vector<1x128xf32> to vector<16x128xf32>
    %38 = arith.addf %35, %37 : vector<16x128xf32>
    %cst_29 = arith.constant dense<0xFF800000> : vector<16xf32>
    %39 = vector.multi_reduction <maximumf>, %38, %cst_29 [1] : vector<16x128xf32> to vector<16xf32>
    %40 = vector.shape_cast %39 : vector<16xf32> to vector<16x1xf32>
    %41 = vector.broadcast %40 : vector<16x1xf32> to vector<16x128xf32>
    %42 = arith.subf %38, %41 : vector<16x128xf32>
    %43 = math.exp %42 : vector<16x128xf32>
    %cst_30 = arith.constant dense<0.000000e+00> : vector<16xf32>
    %44 = vector.multi_reduction <add>, %43, %cst_30 [1] : vector<16x128xf32> to vector<16xf32>
    %45 = vector.shape_cast %44 : vector<16xf32> to vector<16x1xf32>
    %46 = tpu.reciprocal %45 {approx = true} : vector<16x1xf32> -> vector<16x1xf32>
    %47 = vector.broadcast %46 : vector<16x1xf32> to vector<16x128xf32>
    %48 = arith.mulf %43, %47 : vector<16x128xf32>
    %c0_31 = arith.constant 0 : index
    %c0_32 = arith.constant 0 : index
    %49 = vector.load %arg12[%c0_31, %c0_32] : memref<16x128xf32, #tpu.memory_space<vmem>>, vector<16x128xf32>
    tpu.vector_store %arg12[%c0_31, %c0_32], %48 {strides = array<i32>} : memref<16x128xf32, #tpu.memory_space<vmem>>, vector<16x128xf32>,
    return
  }
  func.func @transform_0(%arg0: i32) -> (i32, i32) {
    %c0_i32 = arith.constant 0 : i32
    %c0_i32_0 = arith.constant 0 : i32
    return %arg0, %c0_i32 : i32, i32
  }
  func.func @transform_1(%arg0: i32) -> (i32, i32) {
    %c0_i32 = arith.constant 0 : i32
    %c0_i32_0 = arith.constant 0 : i32
    %c0_i32_1 = arith.constant 0 : i32
    return %c0_i32, %c0_i32_0 : i32, i32
  }
  func.func @transform_2(%arg0: i32) -> (i32, i32) {
    %c0_i32 = arith.constant 0 : i32
    %c0_i32_0 = arith.constant 0 : i32
    %c0_i32_1 = arith.constant 0 : i32
    return %c0_i32, %c0_i32_0 : i32, i32
  }
  func.func @transform_3(%arg0: i32) -> (i32, i32) {
    %c0_i32 = arith.constant 0 : i32
    %c0_i32_0 = arith.constant 0 : i32
    %c0_i32_1 = arith.constant 0 : i32
    return %c0_i32, %c0_i32_0 : i32, i32
  }
  func.func @transform_4(%arg0: i32) -> (i32, i32) {
    %c0_i32 = arith.constant 0 : i32
    %c0_i32_0 = arith.constant 0 : i32
    %c0_i32_1 = arith.constant 0 : i32
    return %c0_i32, %c0_i32_0 : i32, i32
  }
  func.func @transform_5(%arg0: i32) -> (i32, i32) {
    %c0_i32 = arith.constant 0 : i32
    %c0_i32_0 = arith.constant 0 : i32
    %c0_i32_1 = arith.constant 0 : i32
    return %c0_i32, %c0_i32_0 : i32, i32
  }
  func.func @transform_6(%arg0: i32) -> (i32, i32) {
    %c0_i32 = arith.constant 0 : i32
    %c0_i32_0 = arith.constant 0 : i32
    %c0_i32_1 = arith.constant 0 : i32
    return %c0_i32, %c0_i32_0 : i32, i32
  }
  func.func @transform_7(%arg0: i32) -> (i32, i32) {
    %c0_i32 = arith.constant 0 : i32
    %c0_i32_0 = arith.constant 0 : i32
    %c0_i32_1 = arith.constant 0 : i32
    return %c0_i32, %c0_i32_0 : i32, i32
  }
  func.func @transform_8(%arg0: i32) -> (i32, i32) {
    %c0_i32 = arith.constant 0 : i32
    %c0_i32_0 = arith.constant 0 : i32
    %c0_i32_1 = arith.constant 0 : i32
    return %c0_i32, %c0_i32_0 : i32, i32
  }
  func.func @transform_9(%arg0: i32) -> (i32, i32) {
    %c0_i32 = arith.constant 0 : i32
    %c0_i32_0 = arith.constant 0 : i32
    %c0_i32_1 = arith.constant 0 : i32
    return %c0_i32, %c0_i32_0 : i32, i32
  }
  func.func @transform_10(%arg0: i32) -> (i32, i32) {
    %c0_i32 = arith.constant 0 : i32
    %c0_i32_0 = arith.constant 0 : i32
    %c0_i32_1 = arith.constant 0 : i32
    return %c0_i32, %c0_i32_0 : i32, i32
  }
  func.func @transform_11(%arg0: i32) -> (i32, i32) {
    %c0_i32 = arith.constant 0 : i32
    %c0_i32_0 = arith.constant 0 : i32
    return %arg0, %c0_i32 : i32, i32
  }
}

</mosaic_0001>

<bundles_post_ra>
// kernel: tpu_custom_call.1
= control target key start
LH: loop header
LB: loop body
LE: loop exit
PB: predicated region body
PF: predicated region fallthrough
CT: control target
= control target key end

     0   :  { %16 = vsyncpa [#allocation3], 0  ;;  %s8114_s0 = inlined_call_operand.hbm [shape: f32[16,128], index: 0, kind: input, shape index: {}]   ;;  %s8115_s1 = inlined_call_operand.hbm [shape: bf16[128,2048], index: 1, kind: input, shape index: {}]   ;;  %s8116_s2 = inlined_call_operand.hbm [shape: f32[1,2048], index: 2, kind: input, shape index: {}]   ;;  %s8117_s3 = inlined_call_operand.hbm [shape: bf16[2048,512], index: 3, kind: input, shape index: {}]   ;;  %s8118_s4 = inlined_call_operand.hbm [shape: f32[1,512], index: 4, kind: input, shape index: {}]   ;;  %s8119_s5 = inlined_call_operand.hbm [shape: bf16[512,128], index: 5, kind: input, shape index: {}]   ;;  %s8120_s6 = inlined_call_operand.hbm [shape: f32[1,128], index: 6, kind: input, shape index: {}]   ;;  %s8121_s7 = inlined_call_operand.vmem [shape: bf16[128,32], index: 7, kind: input, shape index: {}]   ;;  %s8122_s8 = inlined_call_operand.hbm [shape: f32[1,32], index: 8, kind: input, shape index: {}]   ;;  %s8123_s9 = inlined_call_operand.hbm [shape: bf16[32,128], index: 9, kind: input, shape index: {}]   ;;  %s8124_s10 = inlined_call_operand.hbm [shape: f32[1,128], index: 10, kind: input, shape index: {}]   ;;  %s8125_s11 = inlined_call_operand.hbm [shape: f32[16,128], index: 11, kind: output, shape index: {}]  }
   0x1   :  { %17 = vsyncpa [#allocation6], 0 }
   0x2   :  { %18 = vsyncpa [#allocation9], 0 }
   0x3   :  { %19 = vsyncpa [#allocation12], 0 }
   0x4   :  { %20 = vsyncpa [#allocation15], 0 }
   0x5   :  { %21 = vsyncpa [#allocation18], 0 }
   0x6   :  { %22 = vsyncpa [#allocation4], 0  ;;  %s7709_s17 = smov [#allocation5]   ;;  %s7453_s21 = scalar_lea.hbm %s8115_s1, 16384 }
   0x7   :  { %s40_s18 = sshll.u32 %s7709_s17, 4  ;;  %p7454_p0 = scmp.ne.s32.totalorder %s8115_s1, %s7453_s21  ;;  %s41_s18 = int_to_ptr.vmem [resolvable:$true] %s40_s18 }
   0x8   :  { %p7457_p1 = scmp.lt.u32.totalorder %s7453_s21, %s8115_s1 }
   0xa   :  { %p7459_p2 = pnand %p7457_p1, %p7454_p0 }
   0xc   :  { %7462 = shalt.err (!%p7459_p2)
}
   0xd   :  { %s7463_s26 = scalar_lea.vmem %s41_s18, 16384  ;;  %p7468_p4 = scmp.lt.s32.totalorder %s41_s18, %s41_s18 }
   0xe   :  { %p7464_p3 = scmp.ne.s32.totalorder %s41_s18, %s7463_s26  ;;  %p7469_p5 = scmp.lt.s32.totalorder %s7463_s26, %s7463_s26 }
  0x10   :  { %p7470_p6 = por %p7469_p5, %p7468_p4 }
  0x12   :  { %p7471_p7 = pnand %p7470_p6, %p7464_p3 }
  0x14   :  { %7474 = shalt.err (!%p7471_p7)
}
  0x15   :  { %s7710_s27 = smov 1024   ;;  %s7711_s28 = smov 64  }
  0x16   :  { %46 = dma.hbm_to_vmem [thread:$0]  %s8115_s1, 16384, %s41_s18, [#allocation6], %s7710_s27, %s7710_s27, %s7711_s28  }
  0x17   :  { %s7712_s12 = smov [#allocation8]   ;;  %s7475_s16 = scalar_lea.hbm %s8117_s3, 65536 }
  0x18   :  { %s62_s13 = sshll.u32 %s7712_s12, 4  ;;  %p7476_p8 = scmp.ne.s32.totalorder %s8117_s3, %s7475_s16  ;;  %s63_s13 = int_to_ptr.vmem [resolvable:$true] %s62_s13 }
  0x19   :  { %p7479_p9 = scmp.lt.u32.totalorder %s7475_s16, %s8117_s3 }
  0x1b   :  { %p7481_p10 = pnand %p7479_p9, %p7476_p8 }
  0x1d   :  { %7484 = shalt.err (!%p7481_p10)
}
  0x1e   :  { %s7485_s22 = scalar_lea.vmem %s63_s13, 65536  ;;  %p7490_p12 = scmp.lt.s32.totalorder %s63_s13, %s63_s13 }
  0x1f   :  { %p7486_p11 = scmp.ne.s32.totalorder %s63_s13, %s7485_s22  ;;  %p7491_p13 = scmp.lt.s32.totalorder %s7485_s22, %s7485_s22 }
  0x21   :  { %p7492_p0 = por %p7491_p13, %p7490_p12 }
  0x23   :  { %p7493_p1 = pnand %p7492_p0, %p7486_p11 }
  0x25   :  { %7496 = shalt.err (!%p7493_p1)
}
  0x26   :  { %s7713_s1 = smov 256   ;;  %s7714_s18 = smov 16  }
  0x27   :  { %68 = dma.hbm_to_vmem [thread:$0]  %s8117_s3, 65536, %s63_s13, [#allocation9], %s7713_s1, %s7713_s1, %s7714_s18  }
  0x28   :  { %s7715_s25 = smov [#allocation11]   ;;  %s7716_s27 = smov [#allocation14]  }
  0x29   :  { %s84_s26 = sshll.u32 %s7715_s25, 4  ;;  %s109_s29 = sshll.u32 %s7716_s27, 4  ;;  %s85_s26 = int_to_ptr.vmem [resolvable:$true] %s84_s26  ;;  %s110_s29 = int_to_ptr.vmem [resolvable:$true] %s109_s29 }
  0x2a   :  { %s7497_s14 = scalar_lea.hbm %s8119_s5, 4096 }
  0x2b   :  { %p7498_p2 = scmp.ne.s32.totalorder %s8119_s5, %s7497_s14  ;;  %p7501_p3 = scmp.lt.u32.totalorder %s7497_s14, %s8119_s5 }
  0x2d   :  { %p7503_p4 = pnand %p7501_p3, %p7498_p2 }
  0x2f   :  { %7506 = shalt.err (!%p7503_p4)
}
  0x30   :  { %s7507_s3 = scalar_lea.vmem %s85_s26, 4096  ;;  %p7512_p6 = scmp.lt.s32.totalorder %s85_s26, %s85_s26 }
  0x31   :  { %p7508_p5 = scmp.ne.s32.totalorder %s85_s26, %s7507_s3  ;;  %p7513_p7 = scmp.lt.s32.totalorder %s7507_s3, %s7507_s3 }
  0x33   :  { %p7514_p8 = por %p7513_p7, %p7512_p6 }
  0x35   :  { %p7515_p9 = pnand %p7514_p8, %p7508_p5 }
  0x37   :  { %7518 = shalt.err (!%p7515_p9)
}
  0x38   :  { %s7717_s13 = smov 4   ;;  %s7519_s18 = scalar_lea.hbm %s8122_s8, 16 }
  0x39   :  { %90 = dma.hbm_to_vmem [thread:$0]  %s8119_s5, 4096, %s85_s26, [#allocation12], %s7711_s28, %s7711_s28, %s7717_s13  }
  0x3a   :  { %p7520_p10 = scmp.ne.s32.totalorder %s8122_s8, %s7519_s18  ;;  %p7523_p11 = scmp.lt.u32.totalorder %s7519_s18, %s8122_s8 }
  0x3c   :  { %p7525_p12 = pnand %p7523_p11, %p7520_p10 }
  0x3e   :  { %7528 = shalt.err (!%p7525_p12)
}
  0x3f   :  { %s7529_s30 = scalar_lea.vmem %s110_s29, 16  ;;  %s7533_s12 = scalar_lea.vmem %s110_s29, 32 }
  0x40   :  { %p7530_p13 = scmp.ne.s32.totalorder %s110_s29, %s7529_s30  ;;  %p7534_p0 = scmp.lt.s32.totalorder %s110_s29, %s110_s29 }
  0x41   :  { %p7535_p1 = scmp.lt.s32.totalorder %s7533_s12, %s7529_s30 }
  0x43   :  { %p7536_p2 = por %p7535_p1, %p7534_p0 }
  0x45   :  { %p7537_p3 = pnand %p7536_p2, %p7530_p13 }
  0x47   :  { %7540 = shalt.err (!%p7537_p3)
}
  0x48   :  { %112 = dma.hbm_to_vmem [thread:$0]  %s8122_s8, 16, %s110_s29, [#allocation15]  }
  0x49   :  { %s7718_s14 = smov [#allocation2]   ;;  %s7541_s19 = scalar_lea.hbm %s8114_s0, 256 }
  0x4a   :  { %s28_s15 = sshll.u32 %s7718_s14, 4  ;;  %p7542_p4 = scmp.ne.s32.totalorder %s8114_s0, %s7541_s19  ;;  %s29_s15 = int_to_ptr.vmem [resolvable:$true] %s28_s15 }
  0x4b   :  { %p7545_p5 = scmp.lt.u32.totalorder %s7541_s19, %s8114_s0 }
  0x4d   :  { %p7547_p6 = pnand %p7545_p5, %p7542_p4 }
  0x4f   :  { %7550 = shalt.err (!%p7547_p6)
}
  0x50   :  { %s7551_s1 = scalar_lea.vmem %s29_s15, 256  ;;  %p7556_p8 = scmp.lt.s32.totalorder %s29_s15, %s29_s15 }
  0x51   :  { %p7552_p7 = scmp.ne.s32.totalorder %s29_s15, %s7551_s1  ;;  %p7557_p9 = scmp.lt.s32.totalorder %s7551_s1, %s7551_s1 }
  0x53   :  { %p7558_p10 = por %p7557_p9, %p7556_p8 }
  0x55   :  { %p7559_p11 = pnand %p7558_p10, %p7552_p7 }
  0x57   :  { %7562 = shalt.err (!%p7559_p11)
}
  0x58   :  { %s7719_s8 = smov 128   ;;  %s7720_s29 = smov 8  }
  0x59   :  { %34 = dma.hbm_to_vmem [thread:$0]  %s8114_s0, 256, %s29_s15, [#allocation3], %s7719_s8, %s7719_s8, %s7720_s29  }
  0x5a   :  { %s7721_s24 = smov [#allocation7]   ;;  %s7722_s27 = smov [#allocation10]  }
  0x5b   :  { %s53_s25 = sshll.u32 %s7721_s24, 4  ;;  %s75_s30 = sshll.u32 %s7722_s27, 4  ;;  %s54_s25 = int_to_ptr.vmem [resolvable:$true] %s53_s25  ;;  %s76_s30 = int_to_ptr.vmem [resolvable:$true] %s75_s30 }
  0x5c   :  { %s7563_s26 = scalar_lea.hbm %s8116_s2, 256 }
  0x5d   :  { %p7564_p12 = scmp.ne.s32.totalorder %s8116_s2, %s7563_s26  ;;  %p7567_p13 = scmp.lt.u32.totalorder %s7563_s26, %s8116_s2 }
  0x5f   :  { %p7569_p0 = pnand %p7567_p13, %p7564_p12 }
  0x61   :  { %7572 = shalt.err (!%p7569_p0)
}
  0x62   :  { %s7573_s0 = scalar_lea.vmem %s54_s25, 256  ;;  %p7578_p2 = scmp.lt.s32.totalorder %s54_s25, %s54_s25 }
  0x63   :  { %p7574_p1 = scmp.ne.s32.totalorder %s54_s25, %s7573_s0  ;;  %p7579_p3 = scmp.lt.s32.totalorder %s7573_s0, %s7573_s0 }
  0x65   :  { %p7580_p4 = por %p7579_p3, %p7578_p2 }
  0x67   :  { %p7581_p5 = pnand %p7580_p4, %p7574_p1 }
  0x69   :  { %7584 = shalt.err (!%p7581_p5)
}
  0x6a   :  { %56 = dma.hbm_to_vmem [thread:$0]  %s8116_s2, 256, %s54_s25, [#allocation6]  }
  0x6b   :  { %s7585_s22 = scalar_lea.hbm %s8118_s4, 64 }
  0x6c   :  { %p7586_p6 = scmp.ne.s32.totalorder %s8118_s4, %s7585_s22  ;;  %p7589_p7 = scmp.lt.u32.totalorder %s7585_s22, %s8118_s4 }
  0x6e   :  { %p7591_p8 = pnand %p7589_p7, %p7586_p6 }
  0x70   :  { %7594 = shalt.err (!%p7591_p8)
}
  0x71   :  { %s7595_s27 = scalar_lea.vmem %s76_s30, 64  ;;  %p7600_p10 = scmp.lt.s32.totalorder %s76_s30, %s76_s30 }
  0x72   :  { %p7596_p9 = scmp.ne.s32.totalorder %s76_s30, %s7595_s27  ;;  %p7601_p11 = scmp.lt.s32.totalorder %s7595_s27, %s7595_s27 }
  0x74   :  { %p7602_p12 = por %p7601_p11, %p7600_p10 }
  0x76   :  { %p7603_p13 = pnand %p7602_p12, %p7596_p9 }
  0x78   :  { %7606 = shalt.err (!%p7603_p13)
}
  0x79   :  { %78 = dma.hbm_to_vmem [thread:$0]  %s8118_s4, 64, %s76_s30, [#allocation9]  }
  0x7a   :  { %s7723_s12 = smov [#allocation13]   ;;  %s7724_s26 = smov [#allocation16]  }
  0x7b   :  { %s97_s5 = sshll.u32 %s7723_s12, 4  ;;  %s118_s14 = sshll.u32 %s7724_s26, 4  ;;  %s98_s5 = int_to_ptr.vmem [resolvable:$true] %s97_s5  ;;  %s7881_s14 = int_to_ptr.vmem [resolvable:$true] %s118_s14 }
  0x7c   :  { %s7607_s19 = scalar_lea.hbm %s8120_s6, 16 }
  0x7d   :  { %p7608_p0 = scmp.ne.s32.totalorder %s8120_s6, %s7607_s19  ;;  %p7611_p1 = scmp.lt.u32.totalorder %s7607_s19, %s8120_s6 }
  0x7f   :  { %p7613_p2 = pnand %p7611_p1, %p7608_p0 }
  0x81   :  { %7616 = shalt.err (!%p7613_p2)
}
  0x82   :  { %s7617_s4 = scalar_lea.vmem %s98_s5, 16  ;;  %s7621_s30 = scalar_lea.vmem %s98_s5, 32 }
  0x83   :  { %p7618_p3 = scmp.ne.s32.totalorder %s98_s5, %s7617_s4  ;;  %p7622_p4 = scmp.lt.s32.totalorder %s98_s5, %s98_s5 }
  0x84   :  { %p7623_p5 = scmp.lt.s32.totalorder %s7621_s30, %s7617_s4 }
  0x86   :  { %p7624_p6 = por %p7623_p5, %p7622_p4 }
  0x88   :  { %p7625_p7 = pnand %p7624_p6, %p7618_p3 }
  0x8a   :  { %7628 = shalt.err (!%p7625_p7)
}
  0x8b   :  { %100 = dma.hbm_to_vmem [thread:$0]  %s8120_s6, 16, %s98_s5, [#allocation12]  }
  0x8c   :  { %s7629_s23 = scalar_lea.hbm %s8123_s9, 256 }
  0x8d   :  { %p7630_p8 = scmp.ne.s32.totalorder %s8123_s9, %s7629_s23  ;;  %p7633_p9 = scmp.lt.u32.totalorder %s7629_s23, %s8123_s9 }
  0x8f   :  { %p7635_p10 = pnand %p7633_p9, %p7630_p8 }
  0x91   :  { %7638 = shalt.err (!%p7635_p10)
}
  0x92   :  { %s7639_s12 = scalar_lea.vmem %s7881_s14, 256  ;;  %p7644_p12 = scmp.lt.s32.totalorder %s7881_s14, %s7881_s14 }
  0x93   :  { %p7640_p11 = scmp.ne.s32.totalorder %s7881_s14, %s7639_s12  ;;  %p7645_p13 = scmp.lt.s32.totalorder %s7639_s12, %s7639_s12 }
  0x95   :  { %p7646_p0 = por %p7645_p13, %p7644_p12 }
  0x97   :  { %p7647_p1 = pnand %p7646_p0, %p7640_p11 }
  0x99   :  { %7650 = shalt.err (!%p7647_p1)
}
  0x9a   :  { %124 = dma.hbm_to_vmem [thread:$0]  %s8123_s9, 256, %s7881_s14, [#allocation15], %s7711_s28, %s7711_s28, %s7717_s13  }
  0x9b   :  { %s7725_s26 = smov [#allocation17]   ;;  %s7651_s0 = scalar_lea.hbm %s8124_s10, 16 }
  0x9c   :  { %s131_s16 = sshll.u32 %s7725_s26, 4  ;;  %p7652_p2 = scmp.ne.s32.totalorder %s8124_s10, %s7651_s0  ;;  %s132_s16 = int_to_ptr.vmem [resolvable:$true] %s131_s16 }
  0x9d   :  { %p7655_p3 = scmp.lt.u32.totalorder %s7651_s0, %s8124_s10 }
  0x9f   :  { %p7657_p4 = pnand %p7655_p3, %p7652_p2 }
  0xa1   :  { %7660 = shalt.err (!%p7657_p4)
}
  0xa2   :  { %s7661_s30 = scalar_lea.vmem %s132_s16, 16  ;;  %s7665_s9 = scalar_lea.vmem %s132_s16, 32 }
  0xa3   :  { %p7662_p5 = scmp.ne.s32.totalorder %s132_s16, %s7661_s30  ;;  %p7666_p6 = scmp.lt.s32.totalorder %s132_s16, %s132_s16 }
  0xa4   :  { %p7667_p7 = scmp.lt.s32.totalorder %s7665_s9, %s7661_s30 }
  0xa6   :  { %p7668_p8 = por %p7667_p7, %p7666_p6 }
  0xa8   :  { %p7669_p9 = pnand %p7668_p8, %p7662_p5 }
  0xaa   :  { %7672 = shalt.err (!%p7669_p9)
}
  0xab   :  { %134 = dma.hbm_to_vmem [thread:$0]  %s8124_s10, 16, %s132_s16, [#allocation18]  }
  0xac   :  { %7695 = dma.done.wait [#allocation3], 256  }
  0xad   :  { %7696 = vsyncadd [#allocation3], 4294967040 }
  0xae   :  { %7697 = dma.done.wait [#allocation6], 16640  }
  0xaf   :  { %7698 = vsyncadd [#allocation6], 4294950656 }
  0xb0   :  { %7699 = dma.done.wait [#allocation9], 65600  }
  0xb1   :  { %7700 = vsyncadd [#allocation9], 4294901696 }
  0xb2   :  { %7701 = dma.done.wait [#allocation12], 4112  }
  0xb3   :  { %7702 = vsyncadd [#allocation12], 4294963184 }
  0xb4   :  { %7703 = dma.done.wait [#allocation15], 272  }
  0xb5   :  { %7704 = vsyncadd [#allocation15], 4294967024 }
  0xb6   :  { %7705 = dma.done.wait [#allocation18], 16  }
  0xb7   :  { %7706 = vsyncadd [#allocation18], 4294967280  ;;  %v7726_v0 = vmov 0   ;;  %v169_v1 = vld [vmem:[#allocation5] sm:$0xff]  ;;  %v170_v14 = vld [vmem:[#allocation5 + $0x8] sm:$0xff]  ;;  %vm7728_vm0 = vmmov 0  }
  0xb8   :  { %1053 = vmatprep.mubr.bf16.mxu0 %v7726_v0  ;;  %1096 = vmatprep.mubr.bf16.mxu1 %v7726_v0  ;;  %v177_v2 = vld [vmem:[#allocation5 + $0x40] sm:$0xff]  ;;  %v178_v15 = vld [vmem:[#allocation5 + $0x48] sm:$0xff]  ;;  %v171_v58 = vld [vmem:[#allocation5 + $0x10] sm:$0xff]  ;;  %vm5693_vm1 = vcmask 261120  }
  0xb9   :  { %v185_v3 = vld [vmem:[#allocation5 + $0x80] sm:$0xff]  ;;  %v5781_v4 = vcombine.high %v169_v1, %v177_v2  ;;  %v5780_v5 = vcombine.low %v169_v1, %v177_v2  ;;  %v186_v16 = vld [vmem:[#allocation5 + $0x88] sm:$0xff]  ;;  %v5783_v17 = vcombine.high %v170_v14, %v178_v15  ;;  %v5782_v18 = vcombine.low %v170_v14, %v178_v15  ;;  %v179_v59 = vld [vmem:[#allocation5 + $0x50] sm:$0xff] }
  0xba   :  { %v193_v6 = vld [vmem:[#allocation5 + $0xc0] sm:$0xff]  ;;  %v194_v19 = vld [vmem:[#allocation5 + $0xc8] sm:$0xff]  ;;  %v166_v60 = vld [vmem:[#allocation2] sm:$0xff] }
  0xbb   :  { %v5797_v7 = vcombine.high %v185_v3, %v193_v6  ;;  %v201_v8 = vld [vmem:[#allocation5 + $0x100] sm:$0xff]  ;;  %1021 = vmatprep.subr.bf16.mxu0 %v5781_v4  ;;  %v5796_v10 = vcombine.low %v185_v3, %v193_v6  ;;  %v5799_v21 = vcombine.high %v186_v16, %v194_v19  ;;  %v202_v22 = vld [vmem:[#allocation5 + $0x108] sm:$0xff]  ;;  %1064 = vmatprep.subr.bf16.mxu1 %v5783_v17  ;;  %v167_v63 = vld [vmem:[#allocation2 + $0x8] sm:$0xff] }
  0xbc   :  { %v209_v9 = vld [vmem:[#allocation5 + $0x140] sm:$0xff]  ;;  %1022 = vmatpush1.bf16.msra.mxu0 %v5780_v5  ;;  %v210_v23 = vld [vmem:[#allocation5 + $0x148] sm:$0xff]  ;;  %1065 = vmatpush1.bf16.msra.mxu1 %v5782_v18  ;;  %v5798_v27 = vcombine.low %v186_v16, %v194_v19  ;;  %v5785_v3 = vcombine.high %v171_v58, %v179_v59  ;;  %v187_v5 = vld [vmem:[#allocation5 + $0x90] sm:$0xff] }
  0xbd   :  { %1023 = vmatprep.subr.bf16.mxu0 %v5797_v7  ;;  %v5813_v11 = vcombine.high %v201_v8, %v209_v9  ;;  %v217_v12 = vld [vmem:[#allocation5 + $0x180] sm:$0xff]  ;;  %v5812_v20 = vcombine.low %v201_v8, %v209_v9  ;;  %1066 = vmatprep.subr.bf16.mxu1 %v5799_v21  ;;  %v5815_v28 = vcombine.high %v202_v22, %v210_v23  ;;  %v218_v30 = vld [vmem:[#allocation5 + $0x188] sm:$0xff]  ;;  %v195_v6 = vld [vmem:[#allocation5 + $0xd0] sm:$0xff] }
  0xbe   :  { %v225_v13 = vld [vmem:[#allocation5 + $0x1c0] sm:$0xff]  ;;  %v226_v31 = vld [vmem:[#allocation5 + $0x1c8] sm:$0xff]  ;;  %v5814_v35 = vcombine.low %v202_v22, %v210_v23  ;;  %v7929_v7 = vpack.c.bf16 %v167_v63, %v166_v60  ;;  %v5784_v9 = vcombine.low %v171_v58, %v179_v59  ;;  %v203_v14 = vld [vmem:[#allocation5 + $0x110] sm:$0xff]  ;;  %v5800_v17 = vcombine.low %v187_v5, %v195_v6 }
  0xbf   :  { %v5829_v24 = vcombine.high %v217_v12, %v225_v13  ;;  %v233_v25 = vld [vmem:[#allocation5 + $0x200] sm:$0xff]  ;;  %v5828_v29 = vcombine.low %v217_v12, %v225_v13  ;;  %v5831_v36 = vcombine.high %v218_v30, %v226_v31  ;;  %v234_v38 = vld [vmem:[#allocation5 + $0x208] sm:$0xff]  ;;  %v5830_v43 = vcombine.low %v218_v30, %v226_v31  ;;  %v211_v15 = vld [vmem:[#allocation5 + $0x150] sm:$0xff] }
  0xc0   :  { %1024 = vmatpush1.bf16.msra.mxu0 %v5796_v10  ;;  %v241_v26 = vld [vmem:[#allocation5 + $0x240] sm:$0xff]  ;;  %1067 = vmatpush1.bf16.msra.mxu1 %v5798_v27  ;;  %v242_v39 = vld [vmem:[#allocation5 + $0x248] sm:$0xff]  ;;  %v172_v10 = vld [vmem:[#allocation5 + $0x18] sm:$0xff]  ;;  %v5801_v12 = vcombine.high %v187_v5, %v195_v6 }
  0xc1   :  { %1025 = vmatprep.subr.bf16.mxu0 %v5813_v11  ;;  %v5845_v32 = vcombine.high %v233_v25, %v241_v26  ;;  %v249_v33 = vld [vmem:[#allocation5 + $0x280] sm:$0xff]  ;;  %1068 = vmatprep.subr.bf16.mxu1 %v5815_v28  ;;  %v5844_v37 = vcombine.low %v233_v25, %v241_v26  ;;  %v5847_v44 = vcombine.high %v234_v38, %v242_v39  ;;  %v250_v46 = vld [vmem:[#allocation5 + $0x288] sm:$0xff]  ;;  %v180_v11 = vld [vmem:[#allocation5 + $0x58] sm:$0xff] }
  0xc2   :  { %v257_v34 = vld [vmem:[#allocation5 + $0x2c0] sm:$0xff]  ;;  %v258_v47 = vld [vmem:[#allocation5 + $0x2c8] sm:$0xff]  ;;  %v5846_v51 = vcombine.low %v234_v38, %v242_v39  ;;  %v5787_v16 = vcombine.high %v172_v10, %v180_v11  ;;  %v188_v18 = vld [vmem:[#allocation5 + $0x98] sm:$0xff]  ;;  %v5786_v21 = vcombine.low %v172_v10, %v180_v11  ;;  %v5816_v25 = vcombine.low %v203_v14, %v211_v15 }
  0xc3   :  { %v5861_v40 = vcombine.high %v249_v33, %v257_v34  ;;  %v265_v41 = vld [vmem:[#allocation5 + $0x300] sm:$0xff]  ;;  %v5860_v45 = vcombine.low %v249_v33, %v257_v34  ;;  %v5863_v52 = vcombine.high %v250_v46, %v258_v47  ;;  %v266_v54 = vld [vmem:[#allocation5 + $0x308] sm:$0xff]  ;;  %v5862_v57 = vcombine.low %v250_v46, %v258_v47  ;;  %v196_v19 = vld [vmem:[#allocation5 + $0xd8] sm:$0xff] }
  0xc4   :  { %1026 = vmatpush1.bf16.msra.mxu0 %v5812_v20  ;;  %v273_v42 = vld [vmem:[#allocation5 + $0x340] sm:$0xff]  ;;  %1069 = vmatpush1.bf16.msra.mxu1 %v5814_v35  ;;  %v274_v55 = vld [vmem:[#allocation5 + $0x348] sm:$0xff]  ;;  %v5817_v20 = vcombine.high %v203_v14, %v211_v15  ;;  %v219_v22 = vld [vmem:[#allocation5 + $0x190] sm:$0xff] }
  0xc5   :  { %1027 = vmatprep.subr.bf16.mxu0 %v5829_v24  ;;  %1070 = vmatprep.subr.bf16.mxu1 %v5831_v36  ;;  %v5877_v48 = vcombine.high %v265_v41, %v273_v42  ;;  %v281_v49 = vld [vmem:[#allocation5 + $0x380] sm:$0xff]  ;;  %v5876_v53 = vcombine.low %v265_v41, %v273_v42  ;;  %v5879_v61 = vcombine.high %v266_v54, %v274_v55  ;;  %v282_v1 = vld [vmem:[#allocation5 + $0x388] sm:$0xff]  ;;  %v227_v23 = vld [vmem:[#allocation5 + $0x1d0] sm:$0xff] }
  0xc6   :  { %v289_v50 = vld [vmem:[#allocation5 + $0x3c0] sm:$0xff]  ;;  %v290_v2 = vld [vmem:[#allocation5 + $0x3c8] sm:$0xff]  ;;  %v5878_v4 = vcombine.low %v266_v54, %v274_v55  ;;  %v5803_v24 = vcombine.high %v188_v18, %v196_v19  ;;  %v204_v26 = vld [vmem:[#allocation5 + $0x118] sm:$0xff]  ;;  %v5833_v28 = vcombine.high %v219_v22, %v227_v23  ;;  %v5832_v33 = vcombine.low %v219_v22, %v227_v23 }
  0xc7   :  { %v5893_v56 = vcombine.high %v281_v49, %v289_v50  ;;  %v5892_v62 = vcombine.low %v281_v49, %v289_v50  ;;  %v5895_v8 = vcombine.high %v282_v1, %v290_v2  ;;  %v5894_v13 = vcombine.low %v282_v1, %v290_v2  ;;  %v212_v27 = vld [vmem:[#allocation5 + $0x158] sm:$0xff]  ;;  %v235_v30 = vld [vmem:[#allocation5 + $0x210] sm:$0xff]  ;;  %v181_v63 = vld [vmem:[#allocation5 + $0x60] sm:$0xff] }
  0xc8   :  { %1028 = vmatpush1.bf16.msra.mxu0 %v5828_v29  ;;  %1071 = vmatpush1.bf16.msra.mxu1 %v5830_v43  ;;  %v5802_v29 = vcombine.low %v188_v18, %v196_v19  ;;  %v243_v31 = vld [vmem:[#allocation5 + $0x250] sm:$0xff]  ;;  %v220_v34 = vld [vmem:[#allocation5 + $0x198] sm:$0xff]  ;;  %v5818_v38 = vcombine.low %v204_v26, %v212_v27  ;;  %v189_v6 = vld [vmem:[#allocation5 + $0xa0] sm:$0xff] }
  0xc9   :  { %1029 = vmatprep.subr.bf16.mxu0 %v5845_v32  ;;  %1072 = vmatprep.subr.bf16.mxu1 %v5847_v44  ;;  %v5819_v32 = vcombine.high %v204_v26, %v212_v27  ;;  %v228_v35 = vld [vmem:[#allocation5 + $0x1d8] sm:$0xff]  ;;  %v5849_v36 = vcombine.high %v235_v30, %v243_v31  ;;  %v259_v39 = vld [vmem:[#allocation5 + $0x2d0] sm:$0xff]  ;;  %v5848_v41 = vcombine.low %v235_v30, %v243_v31  ;;  %v205_v15 = vld [vmem:[#allocation5 + $0x120] sm:$0xff] }
  0xca   :  { %v236_v42 = vld [vmem:[#allocation5 + $0x218] sm:$0xff]  ;;  %v5834_v46 = vcombine.low %v220_v34, %v228_v35  ;;  %v275_v47 = vld [vmem:[#allocation5 + $0x350] sm:$0xff]  ;;  %v221_v23 = vld [vmem:[#allocation5 + $0x1a0] sm:$0xff] }
  0xcb   :  { %v244_v43 = vld [vmem:[#allocation5 + $0x258] sm:$0xff]  ;;  %v291_v55 = vld [vmem:[#allocation5 + $0x3d0] sm:$0xff]  ;;  %v237_v31 = vld [vmem:[#allocation5 + $0x220] sm:$0xff] }
  0xcc   :  { %1030 = vmatpush1.bf16.msra.mxu0 %v5844_v37  ;;  %1073 = vmatpush1.bf16.msra.mxu1 %v5846_v51  ;;  %v251_v37 = vld [vmem:[#allocation5 + $0x290] sm:$0xff]  ;;  %v252_v50 = vld [vmem:[#allocation5 + $0x298] sm:$0xff]  ;;  %v5850_v54 = vcombine.low %v236_v42, %v244_v43 }
  0xcd   :  { %1031 = vmatprep.subr.bf16.mxu0 %v5861_v40  ;;  %1074 = vmatprep.subr.bf16.mxu1 %v5863_v52  ;;  %v5835_v40 = vcombine.high %v220_v34, %v228_v35  ;;  %v5865_v44 = vcombine.high %v251_v37, %v259_v39  ;;  %v5864_v49 = vcombine.low %v251_v37, %v259_v39  ;;  %v260_v51 = vld [vmem:[#allocation5 + $0x2d8] sm:$0xff]  ;;  %v230_v37 = vld [vmem:[#allocation5 + $0x1e8] sm:$0xff]  ;;  %v253_v39 = vld [vmem:[#allocation5 + $0x2a0] sm:$0xff] }
  0xce   :  { %v268_v58 = vld [vmem:[#allocation5 + $0x318] sm:$0xff] }
  0xcf   :  { %v276_v59 = vld [vmem:[#allocation5 + $0x358] sm:$0xff] }
  0xd0   :  { %1032 = vmatpush1.bf16.msra.mxu0 %v5860_v45  ;;  %1075 = vmatpush1.bf16.msra.mxu1 %v5862_v57  ;;  %v267_v45 = vld [vmem:[#allocation5 + $0x310] sm:$0xff]  ;;  %v5883_v1 = vcombine.high %v268_v58, %v276_v59 }
  0xd1   :  { %1033 = vmatprep.subr.bf16.mxu0 %v5877_v48  ;;  %1076 = vmatprep.subr.bf16.mxu1 %v5879_v61  ;;  %v5851_v48 = vcombine.high %v236_v42, %v244_v43  ;;  %v5881_v52 = vcombine.high %v267_v45, %v275_v47  ;;  %v5880_v57 = vcombine.low %v267_v45, %v275_v47  ;;  %v173_v61 = vld [vmem:[#allocation5 + $0x20] sm:$0xff]  ;;  %v238_v43 = vld [vmem:[#allocation5 + $0x228] sm:$0xff] }
  0xd2   :  { %v5789_v5 = vcombine.high %v173_v61, %v181_v63  ;;  %v5788_v11 = vcombine.low %v173_v61, %v181_v63  ;;  %v246_v45 = vld [vmem:[#allocation5 + $0x268] sm:$0xff]  ;;  %v277_v47 = vld [vmem:[#allocation5 + $0x360] sm:$0xff]  ;;  %v183_v63 = vld [vmem:[#allocation5 + $0x70] sm:$0xff] }
  0xd4   :  { %1034 = vmatpush1.bf16.msra.mxu0 %v5876_v53  ;;  %1077 = vmatpush1.bf16.msra.mxu1 %v5878_v4  ;;  %v283_v53 = vld [vmem:[#allocation5 + $0x390] sm:$0xff]  ;;  %v292_v4 = vld [vmem:[#allocation5 + $0x3d8] sm:$0xff] }
  0xd5   :  { %1035 = vmatprep.subr.bf16.mxu0 %v5893_v56  ;;  %1078 = vmatprep.subr.bf16.mxu1 %v5895_v8  ;;  %v5867_v56 = vcombine.high %v252_v50, %v260_v51  ;;  %v5897_v60 = vcombine.high %v283_v53, %v291_v55  ;;  %v5896_v2 = vcombine.low %v283_v53, %v291_v55  ;;  %v293_v55 = vld [vmem:[#allocation5 + $0x3e0] sm:$0xff] }
  0xd6   :  { %v5882_v8 = vcombine.low %v268_v58, %v276_v59  ;;  %v270_v58 = vld [vmem:[#allocation5 + $0x328] sm:$0xff] }
  0xd7   :  { %v278_v59 = vld [vmem:[#allocation5 + $0x368] sm:$0xff] }
  0xd8   :  { %1036 = vmatpush1.bf16.msra.mxu0 %v5892_v62  ;;  %1079 = vmatpush1.bf16.msra.mxu1 %v5894_v13  ;;  %v5866_v62 = vcombine.low %v252_v50, %v260_v51  ;;  %v182_v13 = vld [vmem:[#allocation5 + $0x68] sm:$0xff] }
  0xd9   :  { %1107 = vmatprep.subr.bf16.mxu0 %v5785_v3  ;;  %1150 = vmatprep.subr.bf16.mxu1 %v5787_v16  ;;  %v284_v3 = vld [vmem:[#allocation5 + $0x398] sm:$0xff]  ;;  %v254_v50 = vld [vmem:[#allocation5 + $0x2a8] sm:$0xff] }
  0xda   :  { %v5899_v10 = vcombine.high %v284_v3, %v292_v4  ;;  %v5898_v16 = vcombine.low %v284_v3, %v292_v4  ;;  %v262_v51 = vld [vmem:[#allocation5 + $0x2e8] sm:$0xff] }
  0xdb   :  { %1054 = vmatmul.mubr.bf16.vlgmr.msra.gmra.mrb[0].mxu0 %v7929_v7  ;;  %1097 = vmatmul.mubr.bf16.vlgmr.msra.gmra.mrb[0].mxu1 %v7929_v7  ;;  %v286_v3 = vld [vmem:[#allocation5 + $0x3a8] sm:$0xff] }
  0xdc   :  { %1108 = vmatpush1.bf16.msra.mxu0 %v5784_v9  ;;  %1139 = vmatprep.mubr.bf16.mxu0 %v7726_v0  ;;  %v197_v9 = vld [vmem:[#allocation5 + $0xe0] sm:$0xff]  ;;  %v294_v4 = vld [vmem:[#allocation5 + $0x3e8] sm:$0xff] }
  0xdd   :  { %1109 = vmatprep.subr.bf16.mxu0 %v5801_v12  ;;  %1151 = vmatpush1.bf16.msra.mxu1 %v5786_v21  ;;  %v174_v12 = vld [vmem:[#allocation5 + $0x28] sm:$0xff]  ;;  %v5805_v14 = vcombine.high %v189_v6, %v197_v9  ;;  %v5804_v19 = vcombine.low %v189_v6, %v197_v9  ;;  %v199_v9 = vld [vmem:[#allocation5 + $0xf0] sm:$0xff] }
  0xde   :  { %1182 = vmatprep.mubr.bf16.mxu1 %v7726_v0  ;;  %1152 = vmatprep.subr.bf16.mxu1 %v5803_v24  ;;  %v5791_v18 = vcombine.high %v174_v12, %v182_v13  ;;  %v198_v21 = vld [vmem:[#allocation5 + $0xe8] sm:$0xff]  ;;  %v5790_v24 = vcombine.low %v174_v12, %v182_v13  ;;  %v176_v12 = vld [vmem:[#allocation5 + $0x38] sm:$0xff] }
  0xdf   :  { %v184_v13 = vld [vmem:[#allocation5 + $0x78] sm:$0xff] }
  0xe0   :  { %1110 = vmatpush1.bf16.msra.mxu0 %v5800_v17  ;;  %v213_v17 = vld [vmem:[#allocation5 + $0x160] sm:$0xff] }
  0xe1   :  { %1111 = vmatprep.subr.bf16.mxu0 %v5817_v20  ;;  %1153 = vmatpush1.bf16.msra.mxu1 %v5802_v29  ;;  %v190_v20 = vld [vmem:[#allocation5 + $0xa8] sm:$0xff]  ;;  %v5821_v22 = vcombine.high %v205_v15, %v213_v17  ;;  %v5820_v27 = vcombine.low %v205_v15, %v213_v17  ;;  %v215_v17 = vld [vmem:[#allocation5 + $0x170] sm:$0xff] }
  0xe2   :  { %1154 = vmatprep.subr.bf16.mxu1 %v5819_v32  ;;  %v5807_v26 = vcombine.high %v190_v20, %v198_v21  ;;  %v214_v29 = vld [vmem:[#allocation5 + $0x168] sm:$0xff]  ;;  %v5806_v32 = vcombine.low %v190_v20, %v198_v21  ;;  %v192_v20 = vld [vmem:[#allocation5 + $0xb8] sm:$0xff] }
  0xe3   :  { %v200_v21 = vld [vmem:[#allocation5 + $0xf8] sm:$0xff] }
  0xe4   :  { %1112 = vmatpush1.bf16.msra.mxu0 %v5816_v25  ;;  %v229_v25 = vld [vmem:[#allocation5 + $0x1e0] sm:$0xff] }
  0xe5   :  { %1113 = vmatprep.subr.bf16.mxu0 %v5833_v28  ;;  %1155 = vmatpush1.bf16.msra.mxu1 %v5818_v38  ;;  %v206_v28 = vld [vmem:[#allocation5 + $0x128] sm:$0xff]  ;;  %v5837_v30 = vcombine.high %v221_v23, %v229_v25  ;;  %v5836_v35 = vcombine.low %v221_v23, %v229_v25  ;;  %v231_v25 = vld [vmem:[#allocation5 + $0x1f0] sm:$0xff] }
  0xe6   :  { %1156 = vmatprep.subr.bf16.mxu1 %v5835_v40  ;;  %v5823_v34 = vcombine.high %v206_v28, %v214_v29  ;;  %v5822_v40 = vcombine.low %v206_v28, %v214_v29  ;;  %v208_v28 = vld [vmem:[#allocation5 + $0x138] sm:$0xff] }
  0xe7   :  { %v216_v29 = vld [vmem:[#allocation5 + $0x178] sm:$0xff] }
  0xe8   :  { %1114 = vmatpush1.bf16.msra.mxu0 %v5832_v33  ;;  %v245_v33 = vld [vmem:[#allocation5 + $0x260] sm:$0xff] }
  0xe9   :  { %1115 = vmatprep.subr.bf16.mxu0 %v5849_v36  ;;  %1157 = vmatpush1.bf16.msra.mxu1 %v5834_v46  ;;  %v222_v36 = vld [vmem:[#allocation5 + $0x1a8] sm:$0xff]  ;;  %v5853_v38 = vcombine.high %v237_v31, %v245_v33  ;;  %v269_v46 = vld [vmem:[#allocation5 + $0x320] sm:$0xff] }
  0xea   :  { %1158 = vmatprep.subr.bf16.mxu1 %v5851_v48  ;;  %v5839_v42 = vcombine.high %v222_v36, %v230_v37  ;;  %v5884_v61 = vcombine.low %v269_v46, %v277_v47 }
  0xec   :  { %1116 = vmatpush1.bf16.msra.mxu0 %v5848_v41  ;;  %v261_v41 = vld [vmem:[#allocation5 + $0x2e0] sm:$0xff] }
  0xed   :  { %1117 = vmatprep.subr.bf16.mxu0 %v5865_v44  ;;  %1159 = vmatpush1.bf16.msra.mxu1 %v5850_v54  ;;  %v5852_v44 = vcombine.low %v237_v31, %v245_v33  ;;  %v5869_v48 = vcombine.high %v253_v39, %v261_v41  ;;  %v5868_v53 = vcombine.low %v253_v39, %v261_v41  ;;  %v285_v54 = vld [vmem:[#allocation5 + $0x3a0] sm:$0xff]  ;;  %v247_v33 = vld [vmem:[#allocation5 + $0x270] sm:$0xff] }
  0xee   :  { %1160 = vmatprep.subr.bf16.mxu1 %v5867_v56  ;;  %v5885_v56 = vcombine.high %v269_v46, %v277_v47  ;;  %v5900_v6 = vcombine.low %v285_v54, %v293_v55  ;;  %v263_v41 = vld [vmem:[#allocation5 + $0x2f0] sm:$0xff] }
  0xf0   :  { %1118 = vmatpush1.bf16.msra.mxu0 %v5864_v49  ;;  %v5838_v49 = vcombine.low %v222_v36, %v230_v37  ;;  %v224_v36 = vld [vmem:[#allocation5 + $0x1b8] sm:$0xff] }
  0xf1   :  { %1119 = vmatprep.subr.bf16.mxu0 %v5881_v52  ;;  %1161 = vmatpush1.bf16.msra.mxu1 %v5866_v62  ;;  %v5855_v52 = vcombine.high %v238_v43, %v246_v45  ;;  %v175_v62 = vld [vmem:[#allocation5 + $0x30] sm:$0xff]  ;;  %v232_v37 = vld [vmem:[#allocation5 + $0x1f8] sm:$0xff] }
  0xf2   :  { %1162 = vmatprep.subr.bf16.mxu1 %v5883_v1  ;;  %v5901_v1 = vcombine.high %v285_v54, %v293_v55  ;;  %v5792_v15 = vcombine.low %v175_v62, %v183_v63  ;;  %v5843_v46 = vcombine.high %v224_v36, %v232_v37 }
  0xf4   :  { %1120 = vmatpush1.bf16.msra.mxu0 %v5880_v57  ;;  %v5854_v57 = vcombine.low %v238_v43, %v246_v45  ;;  %v5826_v43 = vcombine.low %v208_v28, %v216_v29  ;;  %v248_v45 = vld [vmem:[#allocation5 + $0x278] sm:$0xff] }
  0xf5   :  { %1121 = vmatprep.subr.bf16.mxu0 %v5897_v60  ;;  %1163 = vmatpush1.bf16.msra.mxu1 %v5882_v8  ;;  %v5871_v60 = vcombine.high %v254_v50, %v262_v51  ;;  %v191_v8 = vld [vmem:[#allocation5 + $0xb0] sm:$0xff] }
  0xf6   :  { %1164 = vmatprep.subr.bf16.mxu1 %v5899_v10  ;;  %v5793_v10 = vcombine.high %v175_v62, %v183_v63  ;;  %v5808_v23 = vcombine.low %v191_v8, %v199_v9 }
  0xf8   :  { %1122 = vmatpush1.bf16.msra.mxu0 %v5896_v2  ;;  %v5870_v2 = vcombine.low %v254_v50, %v262_v51  ;;  %v5842_v50 = vcombine.low %v224_v36, %v232_v37  ;;  %v256_v51 = vld [vmem:[#allocation5 + $0x2b8] sm:$0xff]  ;;  %v6677_v37 = vld [vmem:[#allocation8 + $0xe0] ss:$16 sps:$4 sm:$0xff]  }
  0xf9   :  { %1193 = vmatprep.subr.bf16.mxu0 %v5789_v5  ;;  %1165 = vmatpush1.bf16.msra.mxu1 %v5898_v16  ;;  %v5887_v5 = vcombine.high %v270_v58, %v278_v59  ;;  %v207_v16 = vld [vmem:[#allocation5 + $0x130] sm:$0xff]  ;;  %v6676_v36 = vld [vmem:[#allocation8 + $0xcc] ss:$16 sps:$4 sm:$0xff]  }
  0xfa   :  { %1236 = vmatprep.subr.bf16.mxu1 %v5791_v18  ;;  %v5809_v18 = vcombine.high %v191_v8, %v199_v9  ;;  %v5824_v31 = vcombine.low %v207_v16, %v215_v17 }
  0xfb   :  { %1140 = vmatmul.mubr.bf16.vlgmr.msra.gmra.mrb[4].mxu0 %v7929_v7 }
  0xfc   :  { %1194 = vmatpush1.bf16.msra.mxu0 %v5788_v11  ;;  %1225 = vmatprep.mubr.bf16.mxu0 %v7726_v0  ;;  %v5886_v11 = vcombine.low %v270_v58, %v278_v59  ;;  %v295_v58 = vld [vmem:[#allocation5 + $0x3f0] sm:$0xff] }
  0xfd   :  { %1195 = vmatprep.subr.bf16.mxu0 %v5805_v14  ;;  %1183 = vmatmul.mubr.bf16.vlgmr.msra.gmra.mrb[4].mxu1 %v7929_v7  ;;  %v5903_v14 = vcombine.high %v286_v3, %v294_v4 }
  0xfe   :  { %1237 = vmatpush1.bf16.msra.mxu1 %v5790_v24  ;;  %1268 = vmatprep.mubr.bf16.mxu1 %v7726_v0  ;;  %v223_v24 = vld [vmem:[#allocation5 + $0x1b0] sm:$0xff] }
  0xff   :  { %1238 = vmatprep.subr.bf16.mxu1 %v5807_v26  ;;  %v5825_v26 = vcombine.high %v207_v16, %v215_v17  ;;  %v5840_v39 = vcombine.low %v223_v24, %v231_v25  ;;  %v6638_v16 = vld [vmem:[#allocation8 + $0x8] ss:$16 sps:$4 sm:$0xff]   ;;  %v6646_v17 = vld [vmem:[#allocation8 + $0x2c] ss:$16 sps:$4 sm:$0xff]  }
 0x100   :  { %1196 = vmatpush1.bf16.msra.mxu0 %v5804_v19  ;;  %v5902_v19 = vcombine.low %v286_v3, %v294_v4  ;;  %v296_v4 = vld [vmem:[#allocation5 + $0x3f8] sm:$0xff] }
 0x101   :  { %1197 = vmatprep.subr.bf16.mxu0 %v5821_v22  ;;  %v5795_v22 = vcombine.high %v176_v12, %v184_v13 }
 0x102   :  { %1239 = vmatpush1.bf16.msra.mxu1 %v5806_v32  ;;  %v239_v32 = vld [vmem:[#allocation5 + $0x230] sm:$0xff] }
 0x103   :  { %1240 = vmatprep.subr.bf16.mxu1 %v5823_v34  ;;  %v5841_v34 = vcombine.high %v223_v24, %v231_v25  ;;  %v5856_v47 = vcombine.low %v239_v32, %v247_v33  ;;  %v6650_v24 = vld [vmem:[#allocation8 + $0x48] ss:$16 sps:$4 sm:$0xff]   ;;  %v6658_v25 = vld [vmem:[#allocation8 + $0x6c] ss:$16 sps:$4 sm:$0xff]  }
 0x104   :  { %1198 = vmatpush1.bf16.msra.mxu0 %v5820_v27  ;;  %v5794_v27 = vcombine.low %v176_v12, %v184_v13  ;;  %v6640_v13 = vld [vmem:[#allocation8 + $0xc] ss:$16 sps:$4 sm:$0xff]  }
 0x105   :  { %1199 = vmatprep.subr.bf16.mxu0 %v5837_v30  ;;  %v5811_v30 = vcombine.high %v192_v20, %v200_v21 }
 0x106   :  { %1241 = vmatpush1.bf16.msra.mxu1 %v5822_v40  ;;  %v255_v40 = vld [vmem:[#allocation5 + $0x2b0] sm:$0xff] }
 0x107   :  { %1242 = vmatprep.subr.bf16.mxu1 %v5839_v42  ;;  %v5857_v42 = vcombine.high %v239_v32, %v247_v33  ;;  %v5872_v54 = vcombine.low %v255_v40, %v263_v41  ;;  %v6670_v32 = vld [vmem:[#allocation8 + $0xac] ss:$16 sps:$4 sm:$0xff]   ;;  %v6671_v33 = vld [vmem:[#allocation8 + $0xc0] ss:$16 sps:$4 sm:$0xff]  }
 0x108   :  { %1200 = vmatpush1.bf16.msra.mxu0 %v5836_v35  ;;  %v5810_v35 = vcombine.low %v192_v20, %v200_v21  ;;  %v6644_v20 = vld [vmem:[#allocation8 + $0x28] ss:$16 sps:$4 sm:$0xff]   ;;  %v6652_v21 = vld [vmem:[#allocation8 + $0x4c] ss:$16 sps:$4 sm:$0xff]  }
 0x109   :  { %1201 = vmatprep.subr.bf16.mxu0 %v5853_v38  ;;  %v5827_v38 = vcombine.high %v208_v28, %v216_v29  ;;  %v6656_v28 = vld [vmem:[#allocation8 + $0x68] ss:$16 sps:$4 sm:$0xff]   ;;  %v6665_v29 = vld [vmem:[#allocation8 + $0xa0] ss:$16 sps:$4 sm:$0xff]  }
 0x10a   :  { %1243 = vmatpush1.bf16.msra.mxu1 %v5838_v49  ;;  %v279_v49 = vld [vmem:[#allocation5 + $0x370] sm:$0xff] }
 0x10b   :  { %1244 = vmatprep.subr.bf16.mxu1 %v5855_v52  ;;  %v264_v52 = vld [vmem:[#allocation5 + $0x2f8] sm:$0xff] }
 0x10c   :  { %1202 = vmatpush1.bf16.msra.mxu0 %v5852_v44  ;;  %v240_v44 = vld [vmem:[#allocation5 + $0x238] sm:$0xff]  ;;  %v5875_v59 = vcombine.high %v256_v51, %v264_v52 }
 0x10d   :  { %1203 = vmatprep.subr.bf16.mxu0 %v5869_v48  ;;  %v271_v48 = vld [vmem:[#allocation5 + $0x330] sm:$0xff] }
 0x10e   :  { %1245 = vmatpush1.bf16.msra.mxu1 %v5854_v57  ;;  %v5889_v55 = vcombine.high %v271_v48, %v279_v49  ;;  %v287_v57 = vld [vmem:[#allocation5 + $0x3b0] sm:$0xff]  ;;  %v5888_v62 = vcombine.low %v271_v48, %v279_v49  ;;  %v6694_v48 = vld [vmem:[#allocation8 + $0x12c] ss:$16 sps:$4 sm:$0xff]  }
 0x10f   :  { %1246 = vmatprep.subr.bf16.mxu1 %v5871_v60  ;;  %v272_v60 = vld [vmem:[#allocation5 + $0x338] sm:$0xff]  ;;  %v5905_v63 = vcombine.high %v287_v57, %v295_v58  ;;  %v6695_v49 = vld [vmem:[#allocation8 + $0x140] ss:$16 sps:$4 sm:$0xff]  }
 0x110   :  { %1204 = vmatpush1.bf16.msra.mxu0 %v5868_v53  ;;  %v5859_v53 = vcombine.high %v240_v44, %v248_v45 }
 0x111   :  { %1205 = vmatprep.subr.bf16.mxu0 %v5885_v56  ;;  %v5858_v56 = vcombine.low %v240_v44, %v248_v45  ;;  %v6688_v44 = vld [vmem:[#allocation8 + $0x10c] ss:$16 sps:$4 sm:$0xff]   ;;  %v6689_v45 = vld [vmem:[#allocation8 + $0x120] ss:$16 sps:$4 sm:$0xff]  }
 0x112   :  { %1247 = vmatpush1.bf16.msra.mxu1 %v5870_v2  ;;  %v288_v2 = vld [vmem:[#allocation5 + $0x3b8] sm:$0xff] }
 0x113   :  { %1248 = vmatprep.subr.bf16.mxu1 %v5887_v5  ;;  %v6637_v5 = vld [vmem:[#allocation8 + $0x4] ss:$16 sps:$4 sm:$0xff]   ;;  %v5907_v9 = vcombine.high %v288_v2, %v296_v4  ;;  %v5906_v12 = vcombine.low %v288_v2, %v296_v4  ;;  %v6724_v4 = vld [vmem:[#allocation8 + $0x1cc] ss:$16 sps:$4 sm:$0xff]  }
 0x114   :  { %1206 = vmatpush1.bf16.msra.mxu0 %v5884_v61  ;;  %v280_v61 = vld [vmem:[#allocation5 + $0x378] sm:$0xff]  ;;  %v6727_v2 = vld [vmem:[#allocation8 + $0x1e4] ss:$16 sps:$4 sm:$0xff]  }
 0x115   :  { %1207 = vmatprep.subr.bf16.mxu0 %v5901_v1  ;;  %v5874_v1 = vcombine.low %v256_v51, %v264_v52  ;;  %v5891_v3 = vcombine.high %v272_v60, %v280_v61  ;;  %v5890_v8 = vcombine.low %v272_v60, %v280_v61  ;;  %v6700_v51 = vld [vmem:[#allocation8 + $0x14c] ss:$16 sps:$4 sm:$0xff]   ;;  %v6701_v52 = vld [vmem:[#allocation8 + $0x160] ss:$16 sps:$4 sm:$0xff]   ;;  %v6721_v61 = vld [vmem:[#allocation8 + $0x1c4] ss:$16 sps:$4 sm:$0xff]  }
 0x116   :  { %1249 = vmatpush1.bf16.msra.mxu1 %v5886_v11  ;;  %v6643_v11 = vld [vmem:[#allocation8 + $0x24] ss:$16 sps:$4 sm:$0xff]   ;;  %v6713_v60 = vld [vmem:[#allocation8 + $0x1a0] ss:$16 sps:$4 sm:$0xff]  }
 0x117   :  { %1250 = vmatprep.subr.bf16.mxu1 %v5903_v14  ;;  %v6641_v14 = vld [vmem:[#allocation8 + $0x20] ss:$16 sps:$4 sm:$0xff]  }
 0x118   :  { %1208 = vmatpush1.bf16.msra.mxu0 %v5900_v6  ;;  %v5904_v6 = vcombine.low %v287_v57, %v295_v58  ;;  %v6715_v57 = vld [vmem:[#allocation8 + $0x1a4] ss:$16 sps:$4 sm:$0xff]   ;;  %v6704_v58 = vld [vmem:[#allocation8 + $0x168] ss:$16 sps:$4 sm:$0xff]  }
 0x119   :  { %1279 = vmatprep.subr.bf16.mxu0 %v5793_v10  ;;  %v6635_v10 = vld [vmem:[#allocation8] ss:$16 sps:$4 sm:$0xff]  }
 0x11a   :  { %1251 = vmatpush1.bf16.msra.mxu1 %v5902_v19  ;;  %v6655_v19 = vld [vmem:[#allocation8 + $0x64] ss:$16 sps:$4 sm:$0xff]  }
 0x11b   :  { %1226 = vmatmul.mubr.bf16.vlgmr.msra.gmra.mrb[8].mxu0 %v7929_v7  ;;  %1322 = vmatprep.subr.bf16.mxu1 %v5795_v22  ;;  %v6653_v22 = vld [vmem:[#allocation8 + $0x60] ss:$16 sps:$4 sm:$0xff]  }
 0x11c   :  { %1280 = vmatpush1.bf16.msra.mxu0 %v5792_v15  ;;  %1311 = vmatprep.mubr.bf16.mxu0 %v7726_v0  ;;  %v6649_v15 = vld [vmem:[#allocation8 + $0x44] ss:$16 sps:$4 sm:$0xff]  }
 0x11d   :  { %1281 = vmatprep.subr.bf16.mxu0 %v5809_v18  ;;  %1269 = vmatmul.mubr.bf16.vlgmr.msra.gmra.mrb[8].mxu1 %v7929_v7  ;;  %v6647_v18 = vld [vmem:[#allocation8 + $0x40] ss:$16 sps:$4 sm:$0xff]  }
 0x11e   :  { %1323 = vmatpush1.bf16.msra.mxu1 %v5794_v27  ;;  %1354 = vmatprep.mubr.bf16.mxu1 %v7726_v0  ;;  %v5873_v0 = vcombine.high %v255_v40, %v263_v41  ;;  %v6667_v27 = vld [vmem:[#allocation8 + $0xa4] ss:$16 sps:$4 sm:$0xff]   ;;  %v6682_v40 = vld [vmem:[#allocation8 + $0xec] ss:$16 sps:$4 sm:$0xff]   ;;  %v6683_v41 = vld [vmem:[#allocation8 + $0x100] ss:$16 sps:$4 sm:$0xff]  }
 0x11f   :  { %1324 = vmatprep.subr.bf16.mxu1 %v5811_v30  ;;  %v6673_v30 = vld [vmem:[#allocation8 + $0xc4] ss:$16 sps:$4 sm:$0xff]  }
 0x120   :  { %1282 = vmatpush1.bf16.msra.mxu0 %v5808_v23  ;;  %v6661_v23 = vld [vmem:[#allocation8 + $0x84] ss:$16 sps:$4 sm:$0xff]  }
 0x121   :  { %1283 = vmatprep.subr.bf16.mxu0 %v5825_v26  ;;  %v6659_v26 = vld [vmem:[#allocation8 + $0x80] ss:$16 sps:$4 sm:$0xff]  }
 0x122   :  { %1325 = vmatpush1.bf16.msra.mxu1 %v5810_v35  ;;  %v6668_v35 = vld [vmem:[#allocation8 + $0xa8] ss:$16 sps:$4 sm:$0xff]  }
 0x123   :  { %1326 = vmatprep.subr.bf16.mxu1 %v5827_v38  ;;  %v6685_v38 = vld [vmem:[#allocation8 + $0x104] ss:$16 sps:$4 sm:$0xff]  }
 0x124   :  { %1284 = vmatpush1.bf16.msra.mxu0 %v5824_v31  ;;  %v6662_v31 = vld [vmem:[#allocation8 + $0x88] ss:$16 sps:$4 sm:$0xff]  }
 0x125   :  { %1285 = vmatprep.subr.bf16.mxu0 %v5841_v34  ;;  %v6679_v34 = vld [vmem:[#allocation8 + $0xe4] ss:$16 sps:$4 sm:$0xff]  }
 0x126   :  { %1327 = vmatpush1.bf16.msra.mxu1 %v5826_v43  ;;  %v6680_v43 = vld [vmem:[#allocation8 + $0xe8] ss:$16 sps:$4 sm:$0xff]  }
 0x127   :  { %1328 = vmatprep.subr.bf16.mxu1 %v5843_v46  ;;  %v6697_v46 = vld [vmem:[#allocation8 + $0x144] ss:$16 sps:$4 sm:$0xff]  }
 0x128   :  { %1286 = vmatpush1.bf16.msra.mxu0 %v5840_v39  ;;  %v6674_v39 = vld [vmem:[#allocation8 + $0xc8] ss:$16 sps:$4 sm:$0xff]  }
 0x129   :  { %1287 = vmatprep.subr.bf16.mxu0 %v5857_v42  ;;  %v6691_v42 = vld [vmem:[#allocation8 + $0x124] ss:$16 sps:$4 sm:$0xff]  }
 0x12a   :  { %1329 = vmatpush1.bf16.msra.mxu1 %v5842_v50  ;;  %v6692_v50 = vld [vmem:[#allocation8 + $0x128] ss:$16 sps:$4 sm:$0xff]  }
 0x12b   :  { %1330 = vmatprep.subr.bf16.mxu1 %v5859_v53  ;;  %v6709_v53 = vld [vmem:[#allocation8 + $0x184] ss:$16 sps:$4 sm:$0xff]  }
 0x12c   :  { %1288 = vmatpush1.bf16.msra.mxu0 %v5856_v47  ;;  %v6686_v47 = vld [vmem:[#allocation8 + $0x108] ss:$16 sps:$4 sm:$0xff]  }
 0x12d   :  { %1289 = vmatprep.subr.bf16.mxu0 %v5873_v0  ;;  %v6703_v0 = vld [vmem:[#allocation8 + $0x164] ss:$16 sps:$4 sm:$0xff]  }
 0x12e   :  { %1331 = vmatpush1.bf16.msra.mxu1 %v5858_v56  ;;  %v6707_v56 = vld [vmem:[#allocation8 + $0x180] ss:$16 sps:$4 sm:$0xff]  }
 0x12f   :  { %1332 = vmatprep.subr.bf16.mxu1 %v5875_v59  ;;  %v6712_v59 = vld [vmem:[#allocation8 + $0x18c] ss:$16 sps:$4 sm:$0xff]  }
 0x130   :  { %1290 = vmatpush1.bf16.msra.mxu0 %v5872_v54  ;;  %v6698_v54 = vld [vmem:[#allocation8 + $0x148] ss:$16 sps:$4 sm:$0xff]  }
 0x131   :  { %1291 = vmatprep.subr.bf16.mxu0 %v5889_v55  ;;  %v6706_v55 = vld [vmem:[#allocation8 + $0x16c] ss:$16 sps:$4 sm:$0xff]  }
 0x132   :  { %1333 = vmatpush1.bf16.msra.mxu1 %v5874_v1  ;;  %v6719_v1 = vld [vmem:[#allocation8 + $0x1c0] ss:$16 sps:$4 sm:$0xff]  }
 0x133   :  { %1334 = vmatprep.subr.bf16.mxu1 %v5891_v3  ;;  %v6716_v3 = vld [vmem:[#allocation8 + $0x1a8] ss:$16 sps:$4 sm:$0xff]  }
 0x134   :  { %1292 = vmatpush1.bf16.msra.mxu0 %v5888_v62  ;;  %v6710_v62 = vld [vmem:[#allocation8 + $0x188] ss:$16 sps:$4 sm:$0xff]  }
 0x135   :  { %1293 = vmatprep.subr.bf16.mxu0 %v5905_v63  ;;  %v6718_v63 = vld [vmem:[#allocation8 + $0x1ac] ss:$16 sps:$4 sm:$0xff]  }
 0x136   :  { %1335 = vmatpush1.bf16.msra.mxu1 %v5890_v8  ;;  %v6722_v8 = vld [vmem:[#allocation8 + $0x1c8] ss:$16 sps:$4 sm:$0xff]  }
 0x137   :  { %1336 = vmatprep.subr.bf16.mxu1 %v5907_v9  ;;  %v6730_v9 = vld [vmem:[#allocation8 + $0x1ec] ss:$16 sps:$4 sm:$0xff]  }
 0x138   :  { %1294 = vmatpush1.bf16.msra.mxu0 %v5904_v6  ;;  %v6733_v6 = vld [vmem:[#allocation8 + $0x204] ss:$16 sps:$4 sm:$0xff]  }
 0x139   :  { %4507 = vmatprep.subr.bf16.mxu0 %v6637_v5  ;;  %v6725_v5 = vld [vmem:[#allocation8 + $0x1e0] ss:$16 sps:$4 sm:$0xff]  }
 0x13a   :  { %1337 = vmatpush1.bf16.msra.mxu1 %v5906_v12  ;;  %v301_v12 = vlaneseq }
 0x13b   :  { %1312 = vmatmul.mubr.bf16.vlgmr.msra.gmra.mrb[12].mxu0 %v7929_v7  ;;  %4851 = vmatprep.subr.bf16.mxu1 %v6640_v13 }
 0x13c   :  { %4508 = vmatpush1.bf16.msra.mxu0 %v6635_v10  ;;  %v6728_v10 = vld [vmem:[#allocation8 + $0x1e8] ss:$16 sps:$4 sm:$0xff]   ;;  %v7945_v13 = vshrl.u32 %v301_v12, 7 }
 0x13d   :  { %4509 = vmatprep.subr.bf16.mxu0 %v6643_v11  ;;  %1355 = vmatmul.mubr.bf16.vlgmr.msra.gmra.mrb[12].mxu1 %v7929_v7  ;;  %v6664_v7 = vld [vmem:[#allocation8 + $0x8c] ss:$16 sps:$4 sm:$0xff]  }
 0x13e   :  { %4852 = vmatpush1.bf16.msra.mxu1 %v6638_v16  ;;  %v6736_v11 = vld [vmem:[#allocation8 + $0x20c] ss:$16 sps:$4 sm:$0xff]   ;;  %v7953_v16 = vsub.s32 1, %v7945_v13 }
 0x13f   :  { %4853 = vmatprep.subr.bf16.mxu1 %v6646_v17 }
 0x140   :  { %4510 = vmatpush1.bf16.msra.mxu0 %v6641_v14  ;;  %v7947_v14 = vld [vmem:[#allocation7] sm:$0xff] }
 0x141   :  { %4511 = vmatprep.subr.bf16.mxu0 %v6649_v15  ;;  %v7950_v15 = vsub.s32 0, %v7945_v13 }
 0x142   :  { %4854 = vmatpush1.bf16.msra.mxu1 %v6644_v20 }
 0x143   :  { %4855 = vmatprep.subr.bf16.mxu1 %v6652_v21  ;;  %v304_v17 = vrot.slane %v7947_v14, %v7950_v15  ;;  %v7963_v21 = vsub.s32 3, %v7945_v13 }
 0x144   :  { %4512 = vmatpush1.bf16.msra.mxu0 %v6647_v18  ;;  %v308_v18 = vrot.slane %v7947_v14, %v7953_v16 }
 0x145   :  { %4513 = vmatprep.subr.bf16.mxu0 %v6655_v19  ;;  %v7960_v19 = vsub.s32 2, %v7945_v13 }
 0x146   :  { %4856 = vmatpush1.bf16.msra.mxu1 %v6650_v24 }
 0x147   :  { %4857 = vmatprep.subr.bf16.mxu1 %v6658_v25 }
 0x148   :  { %4514 = vmatpush1.bf16.msra.mxu0 %v6653_v22 }
 0x149   :  { %4515 = vmatprep.subr.bf16.mxu0 %v6661_v23 }
 0x14a   :  { %4858 = vmatpush1.bf16.msra.mxu1 %v6656_v28  ;;  %v312_v28 = vrot.slane %v7947_v14, %v7960_v19 }
 0x14b   :  { %4859 = vmatprep.subr.bf16.mxu1 %v6664_v7 }
 0x14c   :  { %4516 = vmatpush1.bf16.msra.mxu0 %v6659_v26 }
 0x14d   :  { %4517 = vmatprep.subr.bf16.mxu0 %v6667_v27 }
 0x14e   :  { %4860 = vmatpush1.bf16.msra.mxu1 %v6662_v31 }
 0x14f   :  { %4861 = vmatprep.subr.bf16.mxu1 %v6670_v32 }
 0x150   :  { %4518 = vmatpush1.bf16.msra.mxu0 %v6665_v29  ;;  %v316_v29 = vrot.slane %v7947_v14, %v7963_v21 }
 0x151   :  { %4519 = vmatprep.subr.bf16.mxu0 %v6673_v30 }
 0x152   :  { %4862 = vmatpush1.bf16.msra.mxu1 %v6668_v35  ;;  %v6734_v35 = vld [vmem:[#allocation8 + $0x208] ss:$16 sps:$4 sm:$0xff]  }
 0x153   :  { %4863 = vmatprep.subr.bf16.mxu1 %v6676_v36 }
 0x154   :  { %4520 = vmatpush1.bf16.msra.mxu0 %v6671_v33 }
 0x155   :  { %4521 = vmatprep.subr.bf16.mxu0 %v6679_v34  ;;  %v6731_v34 = vld [vmem:[#allocation8 + $0x200] ss:$16 sps:$4 sm:$0xff]  }
 0x156   :  { %4864 = vmatpush1.bf16.msra.mxu1 %v6674_v39 }
 0x157   :  { %4865 = vmatprep.subr.bf16.mxu1 %v6682_v40 }
 0x158   :  { %4522 = vmatpush1.bf16.msra.mxu0 %v6677_v37 }
 0x159   :  { %4523 = vmatprep.subr.bf16.mxu0 %v6685_v38 }
 0x15a   :  { %4866 = vmatpush1.bf16.msra.mxu1 %v6680_v43  ;;  %v6739_v43 = vld [vmem:[#allocation8 + $0x224] ss:$16 sps:$4 sm:$0xff]  }
 0x15b   :  { %4867 = vmatprep.subr.bf16.mxu1 %v6688_v44  ;;  %v6742_v44 = vld [vmem:[#allocation8 + $0x22c] ss:$16 sps:$4 sm:$0xff]  }
 0x15c   :  { %4524 = vmatpush1.bf16.msra.mxu0 %v6683_v41 }
 0x15d   :  { %4525 = vmatprep.subr.bf16.mxu0 %v6691_v42 }
 0x15e   :  { %4868 = vmatpush1.bf16.msra.mxu1 %v6686_v47 }
 0x15f   :  { %4869 = vmatprep.subr.bf16.mxu1 %v6694_v48  ;;  %v6737_v48 = vld [vmem:[#allocation8 + $0x220] ss:$16 sps:$4 sm:$0xff]  }
 0x160   :  { %4526 = vmatpush1.bf16.msra.mxu0 %v6689_v45 }
 0x161   :  { %4527 = vmatprep.subr.bf16.mxu0 %v6697_v46 }
 0x162   :  { %4870 = vmatpush1.bf16.msra.mxu1 %v6692_v50 }
 0x163   :  { %4871 = vmatprep.subr.bf16.mxu1 %v6700_v51 }
 0x164   :  { %4528 = vmatpush1.bf16.msra.mxu0 %v6695_v49  ;;  %v6740_v49 = vld [vmem:[#allocation8 + $0x228] ss:$16 sps:$4 sm:$0xff]  }
 0x165   :  { %4529 = vmatprep.subr.bf16.mxu0 %v6703_v0 }
 0x166   :  { %4872 = vmatpush1.bf16.msra.mxu1 %v6698_v54  ;;  %v6748_v54 = vld [vmem:[#allocation8 + $0x24c] ss:$16 sps:$4 sm:$0xff]  }
 0x167   :  { %4873 = vmatprep.subr.bf16.mxu1 %v6706_v55 }
 0x168   :  { %4530 = vmatpush1.bf16.msra.mxu0 %v6701_v52 }
 0x169   :  { %4531 = vmatprep.subr.bf16.mxu0 %v6709_v53  ;;  %v6745_v53 = vld [vmem:[#allocation8 + $0x244] ss:$16 sps:$4 sm:$0xff]  }
 0x16a   :  { %4874 = vmatpush1.bf16.msra.mxu1 %v6704_v58 }
 0x16b   :  { %4875 = vmatprep.subr.bf16.mxu1 %v6712_v59  ;;  %v6751_v59 = vld [vmem:[#allocation8 + $0x264] ss:$16 sps:$4 sm:$0xff]  }
 0x16c   :  { %4532 = vmatpush1.bf16.msra.mxu0 %v6707_v56  ;;  %v6743_v56 = vld [vmem:[#allocation8 + $0x240] ss:$16 sps:$4 sm:$0xff]  }
 0x16d   :  { %4533 = vmatprep.subr.bf16.mxu0 %v6715_v57  ;;  %v6746_v57 = vld [vmem:[#allocation8 + $0x248] ss:$16 sps:$4 sm:$0xff]  }
 0x16e   :  { %4876 = vmatpush1.bf16.msra.mxu1 %v6710_v62  ;;  %v6752_v62 = vld [vmem:[#allocation8 + $0x268] ss:$16 sps:$4 sm:$0xff]  }
 0x16f   :  { %4877 = vmatprep.subr.bf16.mxu1 %v6718_v63  ;;  %v6757_v63 = vld [vmem:[#allocation8 + $0x284] ss:$16 sps:$4 sm:$0xff]  }
 0x170   :  { %4534 = vmatpush1.bf16.msra.mxu0 %v6713_v60  ;;  %v6754_v60 = vld [vmem:[#allocation8 + $0x26c] ss:$16 sps:$4 sm:$0xff]  }
 0x171   :  { %4535 = vmatprep.subr.bf16.mxu0 %v6721_v61  ;;  %v6749_v61 = vld [vmem:[#allocation8 + $0x260] ss:$16 sps:$4 sm:$0xff]  }
 0x172   :  { %4878 = vmatpush1.bf16.msra.mxu1 %v6716_v3  ;;  %v6758_v3 = vld [vmem:[#allocation8 + $0x288] ss:$16 sps:$4 sm:$0xff]  }
 0x173   :  { %4879 = vmatprep.subr.bf16.mxu1 %v6724_v4  ;;  %v319_v4 = vsub.s32 4, %v7945_v13 }
 0x174   :  { %4536 = vmatpush1.bf16.msra.mxu0 %v6719_v1  ;;  %v6760_v1 = vld [vmem:[#allocation8 + $0x28c] ss:$16 sps:$4 sm:$0xff]  }
 0x175   :  { %4537 = vmatprep.subr.bf16.mxu0 %v6727_v2  ;;  %v6755_v2 = vld [vmem:[#allocation8 + $0x280] ss:$16 sps:$4 sm:$0xff]  }
 0x176   :  { %4880 = vmatpush1.bf16.msra.mxu1 %v6722_v8  ;;  %v7972_v8 = vld [vmem:[#allocation7 + $0x8] sm:$0xff] }
 0x177   :  { %4881 = vmatprep.subr.bf16.mxu1 %v6730_v9  ;;  %v6761_v9 = vld [vmem:[#allocation8 + $0x2a0] ss:$16 sps:$4 sm:$0xff]   ;;  %v7976_v12 = vrot.slane %v7972_v8, %v319_v4 }
 0x178   :  { %4538 = vmatpush1.bf16.msra.mxu0 %v6725_v5  ;;  %v6763_v5 = vld [vmem:[#allocation8 + $0x2a4] ss:$16 sps:$4 sm:$0xff]  }
 0x179   :  { %4550 = vmatprep.subr.bf16.mxu0 %v6733_v6  ;;  %v6766_v6 = vld [vmem:[#allocation8 + $0x2ac] ss:$16 sps:$4 sm:$0xff]  }
 0x17a   :  { %4882 = vmatpush1.bf16.msra.mxu1 %v6728_v10  ;;  %v6764_v10 = vld [vmem:[#allocation8 + $0x2a8] ss:$16 sps:$4 sm:$0xff]  }
 0x17b   :  { %4894 = vmatprep.subr.bf16.mxu1 %v6736_v11  ;;  %v323_v11 = vsub.s32 5, %v7945_v13 }
 0x1ae   :  { %v1055_v20 = vpop.f32.mrb[0].mxu0  ;;  %v1098_v36 = vpop.f32.mrb[0].mxu1 }
 0x1af   :  { %v1056_v22 = vadd.f32 %v1055_v20, %v304_v17  ;;  %v1057_v23 = vpop.f32.mrb[1].mxu0  ;;  %v1099_v38 = vadd.f32 %v1098_v36, %v312_v28  ;;  %v1100_v39 = vpop.f32.mrb[1].mxu1  ;;  %v320_v20 = vrot.slane %v7947_v14, %v319_v4  ;;  %v6793_v4 = vld [vmem:[#allocation8 + $0x344] ss:$16 sps:$4 sm:$0xff]  }
 0x1b0   :  { %v1058_v24 = vadd.f32 %v1057_v23, %v308_v18  ;;  %v1059_v25 = vpop.f32.mrb[2].mxu0  ;;  %v1101_v41 = vadd.f32 %v1100_v39, %v316_v29  ;;  %v1102_v42 = vpop.f32.mrb[2].mxu1  ;;  %v6772_v23 = vld [vmem:[#allocation8 + $0x2cc] ss:$16 sps:$4 sm:$0xff]  }
 0x1b1   :  { %v1060_v26 = vadd.f32 %v1059_v25, %v304_v17  ;;  %v1061_v27 = vpop.f32.mrb[3].mxu0  ;;  %v1365_v30 = vmax.f32 %v1056_v22, 0.0  ;;  %v1367_v45 = vmax.f32 %v1099_v38, 0.0  ;;  %v1103_v46 = vadd.f32 %v1102_v42, %v312_v28  ;;  %v1104_v47 = vpop.f32.mrb[3].mxu1  ;;  %v6769_v22 = vld [vmem:[#allocation8 + $0x2c4] ss:$16 sps:$4 sm:$0xff]  }
 0x1b2   :  { %v1062_v7 = vadd.f32 %v1061_v27, %v308_v18  ;;  %v1366_v32 = vmax.f32 %v1058_v24, 0.0  ;;  %v1368_v0 = vmax.f32 %v1101_v41, 0.0  ;;  %v1105_v50 = vadd.f32 %v1104_v47, %v316_v29  ;;  %v6767_v27 = vld [vmem:[#allocation8 + $0x2c0] ss:$16 sps:$4 sm:$0xff]   ;;  %v6770_v28 = vld [vmem:[#allocation8 + $0x2c8] ss:$16 sps:$4 sm:$0xff]  }
 0x1b3   :  { %v1381_v31 = vmax.f32 %v1060_v26, 0.0  ;;  %v1383_v51 = vmax.f32 %v1103_v46, 0.0  ;;  %v327_v17 = vsub.s32 6, %v7945_v13  ;;  %v331_v18 = vsub.s32 7, %v7945_v13  ;;  %v6775_v29 = vld [vmem:[#allocation8 + $0x2e4] ss:$16 sps:$4 sm:$0xff]  }
 0x1b4   :  { %v1382_v33 = vmax.f32 %v1062_v7, 0.0  ;;  %v1384_v52 = vmax.f32 %v1105_v50, 0.0  ;;  %v7982_v24 = vrot.slane %v7972_v8, %v323_v11  ;;  %v324_v13 = vrot.slane %v7947_v14, %v323_v11  ;;  %v6779_v47 = vld [vmem:[#allocation8 + $0x300] ss:$16 sps:$4 sm:$0xff]  }
 0x1b5   :  { %v1397_v37 = vpack.c.bf16 %v1381_v31, %v1365_v30  ;;  %v7969_v55 = vpack.c.bf16 %v1383_v51, %v1367_v45  ;;  %v7985_v25 = vrot.slane %v7972_v8, %v327_v17  ;;  %v7988_v26 = vrot.slane %v7972_v8, %v331_v18  ;;  %v6778_v30 = vld [vmem:[#allocation8 + $0x2ec] ss:$16 sps:$4 sm:$0xff]  }
 0x1b6   :  { %v1398_v40 = vpack.c.bf16 %v1382_v33, %v1366_v32  ;;  %v1400_v58 = vpack.c.bf16 %v1384_v52, %v1368_v0  ;;  %v6773_v33 = vld [vmem:[#allocation8 + $0x2e0] ss:$16 sps:$4 sm:$0xff]   ;;  %v328_v39 = vrot.slane %v7947_v14, %v327_v17  ;;  %v6784_v45 = vld [vmem:[#allocation8 + $0x30c] ss:$16 sps:$4 sm:$0xff]   ;;  %v6799_v17 = vld [vmem:[#allocation8 + $0x364] ss:$16 sps:$4 sm:$0xff]  }
 0x1b8   :  { %4539 = vmatprep.mubr.bf16.mxu0 %v1398_v40  ;;  %4883 = vmatprep.mubr.bf16.mxu1 %v1398_v40 }
 0x1b9   :  { %4540 = vmatmul.mubr.bf16.vlgmr.msra.gmra.mrb[16].mxu0 %v1397_v37  ;;  %4884 = vmatmul.mubr.bf16.vlgmr.msra.gmra.mrb[16].mxu1 %v1397_v37 }
 0x1ba   :  { %4551 = vmatpush1.bf16.msra.mxu0 %v6731_v34  ;;  %4895 = vmatpush1.bf16.msra.mxu1 %v6734_v35  ;;  %v6776_v34 = vld [vmem:[#allocation8 + $0x2e8] ss:$16 sps:$4 sm:$0xff]  }
 0x1bb   :  { %4552 = vmatprep.subr.bf16.mxu0 %v6739_v43  ;;  %4896 = vmatprep.subr.bf16.mxu1 %v6742_v44  ;;  %v332_v43 = vrot.slane %v7947_v14, %v331_v18  ;;  %v6781_v44 = vld [vmem:[#allocation8 + $0x304] ss:$16 sps:$4 sm:$0xff]   ;;  %v6802_v18 = vld [vmem:[#allocation8 + $0x36c] ss:$16 sps:$4 sm:$0xff]  }
 0x1bc   :  { %4582 = vmatprep.mubr.bf16.mxu0 %v1400_v58  ;;  %4926 = vmatprep.mubr.bf16.mxu1 %v1400_v58  ;;  %v6787_v14 = vld [vmem:[#allocation8 + $0x324] ss:$16 sps:$4 sm:$0xff]  }
 0x1be   :  { %4553 = vmatpush1.bf16.msra.mxu0 %v6737_v48  ;;  %4897 = vmatpush1.bf16.msra.mxu1 %v6740_v49  ;;  %v6782_v48 = vld [vmem:[#allocation8 + $0x308] ss:$16 sps:$4 sm:$0xff]  }
 0x1bf   :  { %4554 = vmatprep.subr.bf16.mxu0 %v6745_v53  ;;  %4898 = vmatprep.subr.bf16.mxu1 %v6748_v54 }
 0x1c2   :  { %4555 = vmatpush1.bf16.msra.mxu0 %v6743_v56  ;;  %4899 = vmatpush1.bf16.msra.mxu1 %v6746_v57  ;;  %v6790_v57 = vld [vmem:[#allocation8 + $0x32c] ss:$16 sps:$4 sm:$0xff]  }
 0x1c3   :  { %4556 = vmatprep.subr.bf16.mxu0 %v6751_v59  ;;  %4900 = vmatprep.subr.bf16.mxu1 %v6754_v60 }
 0x1c6   :  { %4557 = vmatpush1.bf16.msra.mxu0 %v6749_v61  ;;  %4901 = vmatpush1.bf16.msra.mxu1 %v6752_v62  ;;  %v6785_v61 = vld [vmem:[#allocation8 + $0x320] ss:$16 sps:$4 sm:$0xff]   ;;  %v6788_v62 = vld [vmem:[#allocation8 + $0x328] ss:$16 sps:$4 sm:$0xff]  }
 0x1c7   :  { %4558 = vmatprep.subr.bf16.mxu0 %v6757_v63  ;;  %4902 = vmatprep.subr.bf16.mxu1 %v6760_v1 }
 0x1ca   :  { %4559 = vmatpush1.bf16.msra.mxu0 %v6755_v2  ;;  %4903 = vmatpush1.bf16.msra.mxu1 %v6758_v3 }
 0x1cb   :  { %4560 = vmatprep.subr.bf16.mxu0 %v6763_v5  ;;  %4904 = vmatprep.subr.bf16.mxu1 %v6766_v6  ;;  %v6796_v5 = vld [vmem:[#allocation8 + $0x34c] ss:$16 sps:$4 sm:$0xff]  }
 0x1ce   :  { %4561 = vmatpush1.bf16.msra.mxu0 %v6761_v9  ;;  %4905 = vmatpush1.bf16.msra.mxu1 %v6764_v10  ;;  %v1141_v7 = vpop.f32.mrb[4].mxu0  ;;  %v6791_v9 = vld [vmem:[#allocation8 + $0x340] ss:$16 sps:$4 sm:$0xff]   ;;  %v6794_v10 = vld [vmem:[#allocation8 + $0x348] ss:$16 sps:$4 sm:$0xff]  }
 0x1cf   :  { %4562 = vmatprep.subr.bf16.mxu0 %v6769_v22  ;;  %4906 = vmatprep.subr.bf16.mxu1 %v6772_v23  ;;  %v1142_v31 = vadd.f32 %v1141_v7, %v320_v20  ;;  %v1143_v32 = vpop.f32.mrb[5].mxu0  ;;  %v6800_v22 = vld [vmem:[#allocation8 + $0x368] ss:$16 sps:$4 sm:$0xff]   ;;  %v6805_v23 = vld [vmem:[#allocation8 + $0x384] ss:$16 sps:$4 sm:$0xff]  }
 0x1d0   :  { %v1144_v35 = vadd.f32 %v1143_v32, %v324_v13  ;;  %v1145_v36 = vpop.f32.mrb[6].mxu0  ;;  %v1184_v49 = vpop.f32.mrb[4].mxu1  ;;  %v6811_v7 = vld [vmem:[#allocation8 + $0x3a4] ss:$16 sps:$4 sm:$0xff]  }
 0x1d1   :  { %v1369_v37 = vmax.f32 %v1142_v31, 0.0  ;;  %v1146_v38 = vadd.f32 %v1145_v36, %v320_v20  ;;  %v1147_v40 = vpop.f32.mrb[7].mxu0  ;;  %v1185_v51 = vadd.f32 %v1184_v49, %v328_v39  ;;  %v1186_v52 = vpop.f32.mrb[5].mxu1  ;;  %v6797_v20 = vld [vmem:[#allocation8 + $0x360] ss:$16 sps:$4 sm:$0xff]   ;;  %v344_v49 = vrot.slane %v7972_v8, %v7960_v19 }
 0x1d2   :  { %4563 = vmatpush1.bf16.msra.mxu0 %v6767_v27  ;;  %4907 = vmatpush1.bf16.msra.mxu1 %v6770_v28  ;;  %v1370_v41 = vmax.f32 %v1144_v35, 0.0  ;;  %v1148_v42 = vadd.f32 %v1147_v40, %v324_v13  ;;  %v1187_v54 = vadd.f32 %v1186_v52, %v332_v43  ;;  %v1188_v56 = vpop.f32.mrb[6].mxu1  ;;  %v6808_v27 = vld [vmem:[#allocation8 + $0x38c] ss:$16 sps:$4 sm:$0xff]   ;;  %v6803_v28 = vld [vmem:[#allocation8 + $0x380] ss:$16 sps:$4 sm:$0xff]  }
 0x1d3   :  { %4564 = vmatprep.subr.bf16.mxu0 %v6775_v29  ;;  %4908 = vmatprep.subr.bf16.mxu1 %v6778_v30  ;;  %v1385_v46 = vmax.f32 %v1146_v38, 0.0  ;;  %v1371_v58 = vmax.f32 %v1185_v51, 0.0  ;;  %v1189_v59 = vadd.f32 %v1188_v56, %v328_v39  ;;  %v1190_v60 = vpop.f32.mrb[7].mxu1  ;;  %v6806_v13 = vld [vmem:[#allocation8 + $0x388] ss:$16 sps:$4 sm:$0xff]  }
 0x1d4   :  { %v1386_v0 = vmax.f32 %v1148_v42, 0.0  ;;  %v1372_v63 = vmax.f32 %v1187_v54, 0.0  ;;  %v1191_v1 = vadd.f32 %v1190_v60, %v332_v43  ;;  %v6814_v29 = vld [vmem:[#allocation8 + $0x3ac] ss:$16 sps:$4 sm:$0xff]   ;;  %v6809_v30 = vld [vmem:[#allocation8 + $0x3a0] ss:$16 sps:$4 sm:$0xff]   ;;  %v348_v54 = vrot.slane %v7972_v8, %v7963_v21 }
 0x1d5   :  { %v7993_v50 = vpack.c.bf16 %v1385_v46, %v1369_v37  ;;  %v1387_v2 = vmax.f32 %v1189_v59, 0.0  ;;  %v6812_v31 = vld [vmem:[#allocation8 + $0x3a8] ss:$16 sps:$4 sm:$0xff]   ;;  %v6817_v32 = vld [vmem:[#allocation8 + $0x3c4] ss:$16 sps:$4 sm:$0xff]   ;;  %v340_v37 = vrot.slane %v7972_v8, %v7953_v16 }
 0x1d6   :  { %4565 = vmatpush1.bf16.msra.mxu0 %v6773_v33  ;;  %4909 = vmatpush1.bf16.msra.mxu1 %v6776_v34  ;;  %v7995_v53 = vpack.c.bf16 %v1386_v0, %v1370_v41  ;;  %v1388_v3 = vmax.f32 %v1191_v1, 0.0  ;;  %v6820_v33 = vld [vmem:[#allocation8 + $0x3cc] ss:$16 sps:$4 sm:$0xff]   ;;  %v336_v34 = vrot.slane %v7972_v8, %v7950_v15  ;;  %v6815_v35 = vld [vmem:[#allocation8 + $0x3c0] ss:$16 sps:$4 sm:$0xff]  }
 0x1d7   :  { %4566 = vmatprep.subr.bf16.mxu0 %v6781_v44  ;;  %4910 = vmatprep.subr.bf16.mxu1 %v6784_v45  ;;  %v7997_v6 = vpack.c.bf16 %v1387_v2, %v1371_v58  ;;  %v6818_v36 = vld [vmem:[#allocation8 + $0x3c8] ss:$16 sps:$4 sm:$0xff]   ;;  %v6823_v39 = vld [vmem:[#allocation8 + $0x3e4] ss:$16 sps:$4 sm:$0xff]   ;;  %v6826_v40 = vld [vmem:[#allocation8 + $0x3ec] ss:$16 sps:$4 sm:$0xff]  }
 0x1d8   :  { %v7999_v11 = vpack.c.bf16 %v1388_v3, %v1372_v63  ;;  %v6821_v43 = vld [vmem:[#allocation8 + $0x3e0] ss:$16 sps:$4 sm:$0xff]   ;;  %v6824_v44 = vld [vmem:[#allocation8 + $0x3e8] ss:$16 sps:$4 sm:$0xff]   ;;  %v6829_v56 = vld [vmem:[#allocation8 + $0x404] ss:$16 sps:$4 sm:$0xff]  }
 0x1d9   :  { %v6827_v58 = vld [vmem:[#allocation8 + $0x400] ss:$16 sps:$4 sm:$0xff]   ;;  %v6830_v59 = vld [vmem:[#allocation8 + $0x408] ss:$16 sps:$4 sm:$0xff]   ;;  %v6838_v63 = vld [vmem:[#allocation8 + $0x42c] ss:$16 sps:$4 sm:$0xff]  }
 0x1da   :  { %4567 = vmatpush1.bf16.msra.mxu0 %v6779_v47  ;;  %4911 = vmatpush1.bf16.msra.mxu1 %v6782_v48 }
 0x1db   :  { %4568 = vmatprep.subr.bf16.mxu0 %v6787_v14  ;;  %4912 = vmatprep.subr.bf16.mxu1 %v6790_v57  ;;  %v6832_v14 = vld [vmem:[#allocation8 + $0x40c] ss:$16 sps:$4 sm:$0xff]  }
 0x1de   :  { %4569 = vmatpush1.bf16.msra.mxu0 %v6785_v61  ;;  %4913 = vmatpush1.bf16.msra.mxu1 %v6788_v62  ;;  %v6835_v62 = vld [vmem:[#allocation8 + $0x424] ss:$16 sps:$4 sm:$0xff]  }
 0x1df   :  { %4570 = vmatprep.subr.bf16.mxu0 %v6793_v4  ;;  %4914 = vmatprep.subr.bf16.mxu1 %v6796_v5 }
 0x1e2   :  { %4571 = vmatpush1.bf16.msra.mxu0 %v6791_v9  ;;  %4915 = vmatpush1.bf16.msra.mxu1 %v6794_v10 }
 0x1e3   :  { %4572 = vmatprep.subr.bf16.mxu0 %v6799_v17  ;;  %4916 = vmatprep.subr.bf16.mxu1 %v6802_v18  ;;  %v6833_v18 = vld [vmem:[#allocation8 + $0x420] ss:$16 sps:$4 sm:$0xff]  }
 0x1e6   :  { %4573 = vmatpush1.bf16.msra.mxu0 %v6797_v20  ;;  %4917 = vmatpush1.bf16.msra.mxu1 %v6800_v22  ;;  %v6836_v20 = vld [vmem:[#allocation8 + $0x428] ss:$16 sps:$4 sm:$0xff]  }
 0x1e7   :  { %4574 = vmatprep.subr.bf16.mxu0 %v6805_v23  ;;  %4918 = vmatprep.subr.bf16.mxu1 %v6808_v27  ;;  %v6841_v27 = vld [vmem:[#allocation8 + $0x444] ss:$16 sps:$4 sm:$0xff]  }
 0x1ea   :  { %4575 = vmatpush1.bf16.msra.mxu0 %v6803_v28  ;;  %4919 = vmatpush1.bf16.msra.mxu1 %v6806_v13  ;;  %v6844_v28 = vld [vmem:[#allocation8 + $0x44c] ss:$16 sps:$4 sm:$0xff]  }
 0x1eb   :  { %4576 = vmatprep.subr.bf16.mxu0 %v6811_v7  ;;  %4920 = vmatprep.subr.bf16.mxu1 %v6814_v29 }
 0x1ee   :  { %4577 = vmatpush1.bf16.msra.mxu0 %v6809_v30  ;;  %4921 = vmatpush1.bf16.msra.mxu1 %v6812_v31  ;;  %v1227_v38 = vpop.f32.mrb[8].mxu0  ;;  %v6839_v30 = vld [vmem:[#allocation8 + $0x440] ss:$16 sps:$4 sm:$0xff]  }
 0x1ef   :  { %4578 = vmatprep.subr.bf16.mxu0 %v6817_v32  ;;  %4922 = vmatprep.subr.bf16.mxu1 %v6820_v33  ;;  %v1228_v41 = vadd.f32 %v1227_v38, %v336_v34  ;;  %v1229_v42 = vpop.f32.mrb[9].mxu0  ;;  %v6842_v32 = vld [vmem:[#allocation8 + $0x448] ss:$16 sps:$4 sm:$0xff]   ;;  %v6850_v33 = vld [vmem:[#allocation8 + $0x46c] ss:$16 sps:$4 sm:$0xff]  }
 0x1f0   :  { %v1230_v45 = vadd.f32 %v1229_v42, %v340_v37  ;;  %v1231_v46 = vpop.f32.mrb[10].mxu0  ;;  %v1270_v60 = vpop.f32.mrb[8].mxu1  ;;  %v6851_v38 = vld [vmem:[#allocation8 + $0x480] ss:$16 sps:$4 sm:$0xff]   ;;  %v6860_v42 = vld [vmem:[#allocation8 + $0x4a8] ss:$16 sps:$4 sm:$0xff]  }
 0x1f1   :  { %v1373_v47 = vmax.f32 %v1228_v41, 0.0  ;;  %v1232_v48 = vadd.f32 %v1231_v46, %v336_v34  ;;  %v1233_v0 = vpop.f32.mrb[11].mxu0  ;;  %v1271_v2 = vadd.f32 %v1270_v60, %v344_v49  ;;  %v1272_v3 = vpop.f32.mrb[9].mxu1  ;;  %v6845_v34 = vld [vmem:[#allocation8 + $0x460] ss:$16 sps:$4 sm:$0xff]  }
 0x1f2   :  { %4579 = vmatpush1.bf16.msra.mxu0 %v6815_v35  ;;  %4923 = vmatpush1.bf16.msra.mxu1 %v6818_v36  ;;  %v1374_v51 = vmax.f32 %v1230_v45, 0.0  ;;  %v1234_v52 = vadd.f32 %v1233_v0, %v340_v37  ;;  %v1273_v8 = vadd.f32 %v1272_v3, %v348_v54  ;;  %v1274_v5 = vpop.f32.mrb[10].mxu1  ;;  %v6848_v35 = vld [vmem:[#allocation8 + $0x468] ss:$16 sps:$4 sm:$0xff]   ;;  %v6853_v36 = vld [vmem:[#allocation8 + $0x484] ss:$16 sps:$4 sm:$0xff]  }
 0x1f3   :  { %4580 = vmatprep.subr.bf16.mxu0 %v6823_v39  ;;  %4924 = vmatprep.subr.bf16.mxu1 %v6826_v40  ;;  %v1389_v57 = vmax.f32 %v1232_v48, 0.0  ;;  %v1375_v9 = vmax.f32 %v1271_v2, 0.0  ;;  %v1275_v10 = vadd.f32 %v1274_v5, %v344_v49  ;;  %v1276_v17 = vpop.f32.mrb[11].mxu1  ;;  %v6856_v37 = vld [vmem:[#allocation8 + $0x48c] ss:$16 sps:$4 sm:$0xff]  }
 0x1f4   :  { %v1390_v61 = vmax.f32 %v1234_v52, 0.0  ;;  %v1376_v22 = vmax.f32 %v1273_v8, 0.0  ;;  %v1277_v23 = vadd.f32 %v1276_v17, %v348_v54  ;;  %v6854_v39 = vld [vmem:[#allocation8 + $0x488] ss:$16 sps:$4 sm:$0xff]   ;;  %v6862_v40 = vld [vmem:[#allocation8 + $0x4ac] ss:$16 sps:$4 sm:$0xff]  }
 0x1f5   :  { %v8009_v1 = vpack.c.bf16 %v1389_v57, %v1373_v47  ;;  %v1391_v13 = vmax.f32 %v1275_v10, 0.0  ;;  %v6857_v41 = vld [vmem:[#allocation8 + $0x4a0] ss:$16 sps:$4 sm:$0xff]   ;;  %v6866_v46 = vld [vmem:[#allocation8 + $0x4c8] ss:$16 sps:$4 sm:$0xff]  }
 0x1f6   :  { %4581 = vmatpush1.bf16.msra.mxu0 %v6821_v43  ;;  %4925 = vmatpush1.bf16.msra.mxu1 %v6824_v44  ;;  %v8011_v4 = vpack.c.bf16 %v1390_v61, %v1374_v51  ;;  %v1392_v7 = vmax.f32 %v1277_v23, 0.0  ;;  %v6865_v43 = vld [vmem:[#allocation8 + $0x4c4] ss:$16 sps:$4 sm:$0xff]   ;;  %v6868_v44 = vld [vmem:[#allocation8 + $0x4cc] ss:$16 sps:$4 sm:$0xff]  }
 0x1f7   :  { %4593 = vmatprep.subr.bf16.mxu0 %v6829_v56  ;;  %4937 = vmatprep.subr.bf16.mxu1 %v6832_v14  ;;  %v8015_v29 = vpack.c.bf16 %v1391_v13, %v1375_v9  ;;  %v6863_v45 = vld [vmem:[#allocation8 + $0x4c0] ss:$16 sps:$4 sm:$0xff]   ;;  %v6871_v48 = vld [vmem:[#allocation8 + $0x4e4] ss:$16 sps:$4 sm:$0xff]   ;;  %v6874_v49 = vld [vmem:[#allocation8 + $0x4ec] ss:$16 sps:$4 sm:$0xff]  }
 0x1f8   :  { %v8019_v31 = vpack.c.bf16 %v1392_v7, %v1376_v22  ;;  %v6875_v10 = vld [vmem:[#allocation8 + $0x500] ss:$16 sps:$4 sm:$0xff]   ;;  %v6878_v17 = vld [vmem:[#allocation8 + $0x508] ss:$16 sps:$4 sm:$0xff]   ;;  %v6883_v22 = vld [vmem:[#allocation8 + $0x524] ss:$16 sps:$4 sm:$0xff]  }
 0x1f9   :  { %4583 = vmatmul.mubr.bf16.vlgmr.msra.gmra.mrb[16].mxu0 %v7969_v55  ;;  %4927 = vmatmul.mubr.bf16.vlgmr.msra.gmra.mrb[16].mxu1 %v7969_v55  ;;  %v6847_v55 = vld [vmem:[#allocation8 + $0x464] ss:$16 sps:$4 sm:$0xff]   ;;  %v6886_v23 = vld [vmem:[#allocation8 + $0x52c] ss:$16 sps:$4 sm:$0xff]  }
 0x1fa   :  { %4594 = vmatpush1.bf16.msra.mxu0 %v6827_v58  ;;  %4938 = vmatpush1.bf16.msra.mxu1 %v6830_v59  ;;  %v6869_v58 = vld [vmem:[#allocation8 + $0x4e0] ss:$16 sps:$4 sm:$0xff]   ;;  %v6872_v59 = vld [vmem:[#allocation8 + $0x4e8] ss:$16 sps:$4 sm:$0xff]  }
 0x1fb   :  { %4595 = vmatprep.subr.bf16.mxu0 %v6835_v62  ;;  %4939 = vmatprep.subr.bf16.mxu1 %v6838_v63  ;;  %v6877_v62 = vld [vmem:[#allocation8 + $0x504] ss:$16 sps:$4 sm:$0xff]   ;;  %v6880_v63 = vld [vmem:[#allocation8 + $0x50c] ss:$16 sps:$4 sm:$0xff]  }
 0x1fc   :  { %4625 = vmatprep.mubr.bf16.mxu0 %v7995_v53  ;;  %4969 = vmatprep.mubr.bf16.mxu1 %v7995_v53  ;;  %v6859_v53 = vld [vmem:[#allocation8 + $0x4a4] ss:$16 sps:$4 sm:$0xff]  }
 0x1fe   :  { %4596 = vmatpush1.bf16.msra.mxu0 %v6833_v18  ;;  %4940 = vmatpush1.bf16.msra.mxu1 %v6836_v20 }
 0x1ff   :  { %4597 = vmatprep.subr.bf16.mxu0 %v6841_v27  ;;  %4941 = vmatprep.subr.bf16.mxu1 %v6844_v28 }
 0x202   :  { %4598 = vmatpush1.bf16.msra.mxu0 %v6839_v30  ;;  %4942 = vmatpush1.bf16.msra.mxu1 %v6842_v32 }
 0x203   :  { %4599 = vmatprep.subr.bf16.mxu0 %v6847_v55  ;;  %4943 = vmatprep.subr.bf16.mxu1 %v6850_v33  ;;  %v6881_v55 = vld [vmem:[#allocation8 + $0x520] ss:$16 sps:$4 sm:$0xff]   ;;  %v6884_v33 = vld [vmem:[#allocation8 + $0x528] ss:$16 sps:$4 sm:$0xff]  }
 0x206   :  { %4600 = vmatpush1.bf16.msra.mxu0 %v6845_v34  ;;  %4944 = vmatpush1.bf16.msra.mxu1 %v6848_v35  ;;  %v6889_v35 = vld [vmem:[#allocation8 + $0x544] ss:$16 sps:$4 sm:$0xff]  }
 0x207   :  { %4601 = vmatprep.subr.bf16.mxu0 %v6853_v36  ;;  %4945 = vmatprep.subr.bf16.mxu1 %v6856_v37  ;;  %v6892_v36 = vld [vmem:[#allocation8 + $0x54c] ss:$16 sps:$4 sm:$0xff]  }
 0x20a   :  { %4602 = vmatpush1.bf16.msra.mxu0 %v6851_v38  ;;  %4946 = vmatpush1.bf16.msra.mxu1 %v6854_v39  ;;  %v6890_v39 = vld [vmem:[#allocation8 + $0x548] ss:$16 sps:$4 sm:$0xff]  }
 0x20b   :  { %4603 = vmatprep.subr.bf16.mxu0 %v6859_v53  ;;  %4947 = vmatprep.subr.bf16.mxu1 %v6862_v40  ;;  %v6898_v53 = vld [vmem:[#allocation8 + $0x56c] ss:$16 sps:$4 sm:$0xff]   ;;  %v6893_v40 = vld [vmem:[#allocation8 + $0x560] ss:$16 sps:$4 sm:$0xff]  }
 0x20e   :  { %4604 = vmatpush1.bf16.msra.mxu0 %v6857_v41  ;;  %4948 = vmatpush1.bf16.msra.mxu1 %v6860_v42  ;;  %v1313_v47 = vpop.f32.mrb[12].mxu0  ;;  %v6896_v41 = vld [vmem:[#allocation8 + $0x568] ss:$16 sps:$4 sm:$0xff]   ;;  %v6901_v42 = vld [vmem:[#allocation8 + $0x584] ss:$16 sps:$4 sm:$0xff]  }
 0x20f   :  { %4605 = vmatprep.subr.bf16.mxu0 %v6865_v43  ;;  %4949 = vmatprep.subr.bf16.mxu1 %v6868_v44  ;;  %v1314_v0 = vadd.f32 %v1313_v47, %v7976_v12  ;;  %v1315_v51 = vpop.f32.mrb[13].mxu0  ;;  %v6904_v43 = vld [vmem:[#allocation8 + $0x58c] ss:$16 sps:$4 sm:$0xff]   ;;  %v6899_v44 = vld [vmem:[#allocation8 + $0x580] ss:$16 sps:$4 sm:$0xff]  }
 0x210   :  { %v1316_v52 = vadd.f32 %v1315_v51, %v7982_v24  ;;  %v1317_v54 = vpop.f32.mrb[14].mxu0  ;;  %v1356_v3 = vpop.f32.mrb[12].mxu1  ;;  %v6910_v47 = vld [vmem:[#allocation8 + $0x5ac] ss:$16 sps:$4 sm:$0xff]  }
 0x211   :  { %v1377_v56 = vmax.f32 %v1314_v0, 0.0  ;;  %v1318_v14 = vadd.f32 %v1317_v54, %v7976_v12  ;;  %v1319_v57 = vpop.f32.mrb[15].mxu0  ;;  %v1357_v9 = vadd.f32 %v1356_v3, %v7985_v25  ;;  %v1358_v12 = vpop.f32.mrb[13].mxu1  ;;  %v6913_v0 = vld [vmem:[#allocation8 + $0x5c4] ss:$16 sps:$4 sm:$0xff]  }
 0x212   :  { %4606 = vmatpush1.bf16.msra.mxu0 %v6863_v45  ;;  %4950 = vmatpush1.bf16.msra.mxu1 %v6866_v46  ;;  %v1378_v60 = vmax.f32 %v1316_v52, 0.0  ;;  %v1320_v61 = vadd.f32 %v1319_v57, %v7982_v24  ;;  %v1359_v24 = vadd.f32 %v1358_v12, %v7988_v26  ;;  %v1360_v20 = vpop.f32.mrb[14].mxu1  ;;  %v6902_v45 = vld [vmem:[#allocation8 + $0x588] ss:$16 sps:$4 sm:$0xff]   ;;  %v6907_v46 = vld [vmem:[#allocation8 + $0x5a4] ss:$16 sps:$4 sm:$0xff]  }
 0x213   :  { %4607 = vmatprep.subr.bf16.mxu0 %v6871_v48  ;;  %4951 = vmatprep.subr.bf16.mxu1 %v6874_v49  ;;  %v1393_v2 = vmax.f32 %v1318_v14, 0.0  ;;  %v1379_v27 = vmax.f32 %v1357_v9, 0.0  ;;  %v1361_v28 = vadd.f32 %v1360_v20, %v7985_v25  ;;  %v1362_v13 = vpop.f32.mrb[15].mxu1  ;;  %v6887_v25 = vld [vmem:[#allocation8 + $0x540] ss:$16 sps:$4 sm:$0xff]  }
 0x214   :  { %v1394_v8 = vmax.f32 %v1320_v61, 0.0  ;;  %v1380_v7 = vmax.f32 %v1359_v24, 0.0  ;;  %v1363_v30 = vadd.f32 %v1362_v13, %v7988_v26  ;;  %v6895_v26 = vld [vmem:[#allocation8 + $0x564] ss:$16 sps:$4 sm:$0xff]   ;;  %v6905_v48 = vld [vmem:[#allocation8 + $0x5a0] ss:$16 sps:$4 sm:$0xff]  }
 0x215   :  { %v8025_v5 = vpack.c.bf16 %v1393_v2, %v1377_v56  ;;  %v1395_v32 = vmax.f32 %v1361_v28, 0.0  ;;  %v6908_v49 = vld [vmem:[#allocation8 + $0x5a8] ss:$16 sps:$4 sm:$0xff]   ;;  %v6916_v51 = vld [vmem:[#allocation8 + $0x5cc] ss:$16 sps:$4 sm:$0xff]  }
 0x216   :  { %4608 = vmatpush1.bf16.msra.mxu0 %v6869_v58  ;;  %4952 = vmatpush1.bf16.msra.mxu1 %v6872_v59  ;;  %v8028_v18 = vpack.c.bf16 %v1394_v8, %v1378_v60  ;;  %v1396_v34 = vmax.f32 %v1363_v30, 0.0  ;;  %v6911_v52 = vld [vmem:[#allocation8 + $0x5c0] ss:$16 sps:$4 sm:$0xff]   ;;  %v6914_v54 = vld [vmem:[#allocation8 + $0x5c8] ss:$16 sps:$4 sm:$0xff]  }
 0x217   :  { %4609 = vmatprep.subr.bf16.mxu0 %v6877_v62  ;;  %4953 = vmatprep.subr.bf16.mxu1 %v6880_v63  ;;  %v8033_v37 = vpack.c.bf16 %v1395_v32, %v1379_v27  ;;  %v6919_v56 = vld [vmem:[#allocation8 + $0x5e4] ss:$16 sps:$4 sm:$0xff]   ;;  %v6922_v14 = vld [vmem:[#allocation8 + $0x5ec] ss:$16 sps:$4 sm:$0xff]   ;;  %v6917_v57 = vld [vmem:[#allocation8 + $0x5e0] ss:$16 sps:$4 sm:$0xff]  }
 0x218   :  { %v8035_v38 = vpack.c.bf16 %v1396_v34, %v1380_v7  ;;  %v6920_v58 = vld [vmem:[#allocation8 + $0x5e8] ss:$16 sps:$4 sm:$0xff]   ;;  %v6925_v59 = vld [vmem:[#allocation8 + $0x604] ss:$16 sps:$4 sm:$0xff]   ;;  %v6928_v60 = vld [vmem:[#allocation8 + $0x60c] ss:$16 sps:$4 sm:$0xff]  }
 0x219   :  { %v6923_v61 = vld [vmem:[#allocation8 + $0x600] ss:$16 sps:$4 sm:$0xff]   ;;  %v6926_v62 = vld [vmem:[#allocation8 + $0x608] ss:$16 sps:$4 sm:$0xff]   ;;  %v6931_v63 = vld [vmem:[#allocation8 + $0x624] ss:$16 sps:$4 sm:$0xff]  }
 0x21a   :  { %4610 = vmatpush1.bf16.msra.mxu0 %v6875_v10  ;;  %4954 = vmatpush1.bf16.msra.mxu1 %v6878_v17  ;;  %v6934_v2 = vld [vmem:[#allocation8 + $0x62c] ss:$16 sps:$4 sm:$0xff]   ;;  %v6929_v3 = vld [vmem:[#allocation8 + $0x620] ss:$16 sps:$4 sm:$0xff]   ;;  %v6932_v8 = vld [vmem:[#allocation8 + $0x628] ss:$16 sps:$4 sm:$0xff]  }
 0x21b   :  { %4611 = vmatprep.subr.bf16.mxu0 %v6883_v22  ;;  %4955 = vmatprep.subr.bf16.mxu1 %v6886_v23  ;;  %v6937_v9 = vld [vmem:[#allocation8 + $0x644] ss:$16 sps:$4 sm:$0xff]   ;;  %v6940_v12 = vld [vmem:[#allocation8 + $0x64c] ss:$16 sps:$4 sm:$0xff]   ;;  %v6935_v10 = vld [vmem:[#allocation8 + $0x640] ss:$16 sps:$4 sm:$0xff]  }
 0x21c   :  { %v6938_v17 = vld [vmem:[#allocation8 + $0x648] ss:$16 sps:$4 sm:$0xff]   ;;  %v6943_v24 = vld [vmem:[#allocation8 + $0x664] ss:$16 sps:$4 sm:$0xff]   ;;  %v6941_v20 = vld [vmem:[#allocation8 + $0x660] ss:$16 sps:$4 sm:$0xff]  }
 0x21d   :  { %v6944_v22 = vld [vmem:[#allocation8 + $0x668] ss:$16 sps:$4 sm:$0xff]   ;;  %v6949_v23 = vld [vmem:[#allocation8 + $0x684] ss:$16 sps:$4 sm:$0xff]   ;;  %v6947_v27 = vld [vmem:[#allocation8 + $0x680] ss:$16 sps:$4 sm:$0xff]  }
 0x21e   :  { %4612 = vmatpush1.bf16.msra.mxu0 %v6881_v55  ;;  %4956 = vmatpush1.bf16.msra.mxu1 %v6884_v33  ;;  %v6950_v28 = vld [vmem:[#allocation8 + $0x688] ss:$16 sps:$4 sm:$0xff]   ;;  %v6955_v13 = vld [vmem:[#allocation8 + $0x6a4] ss:$16 sps:$4 sm:$0xff]   ;;  %v6958_v7 = vld [vmem:[#allocation8 + $0x6ac] ss:$16 sps:$4 sm:$0xff]  }
 0x21f   :  { %4613 = vmatprep.subr.bf16.mxu0 %v6889_v35  ;;  %4957 = vmatprep.subr.bf16.mxu1 %v6892_v36  ;;  %v6953_v30 = vld [vmem:[#allocation8 + $0x6a0] ss:$16 sps:$4 sm:$0xff]   ;;  %v6956_v32 = vld [vmem:[#allocation8 + $0x6a8] ss:$16 sps:$4 sm:$0xff]   ;;  %v6961_v55 = vld [vmem:[#allocation8 + $0x6c4] ss:$16 sps:$4 sm:$0xff]  }
 0x220   :  { %v6964_v33 = vld [vmem:[#allocation8 + $0x6cc] ss:$16 sps:$4 sm:$0xff]   ;;  %v6959_v34 = vld [vmem:[#allocation8 + $0x6c0] ss:$16 sps:$4 sm:$0xff]   ;;  %v6962_v35 = vld [vmem:[#allocation8 + $0x6c8] ss:$16 sps:$4 sm:$0xff]  }
 0x221   :  { %v6967_v36 = vld [vmem:[#allocation8 + $0x6e4] ss:$16 sps:$4 sm:$0xff]  }
 0x222   :  { %4614 = vmatpush1.bf16.msra.mxu0 %v6887_v25  ;;  %4958 = vmatpush1.bf16.msra.mxu1 %v6890_v39  ;;  %v6970_v25 = vld [vmem:[#allocation8 + $0x6ec] ss:$16 sps:$4 sm:$0xff]   ;;  %v6965_v39 = vld [vmem:[#allocation8 + $0x6e0] ss:$16 sps:$4 sm:$0xff]  }
 0x223   :  { %4615 = vmatprep.subr.bf16.mxu0 %v6895_v26  ;;  %4959 = vmatprep.subr.bf16.mxu1 %v6898_v53  ;;  %v6968_v26 = vld [vmem:[#allocation8 + $0x6e8] ss:$16 sps:$4 sm:$0xff]   ;;  %v6973_v53 = vld [vmem:[#allocation8 + $0x704] ss:$16 sps:$4 sm:$0xff]  }
 0x226   :  { %4616 = vmatpush1.bf16.msra.mxu0 %v6893_v40  ;;  %4960 = vmatpush1.bf16.msra.mxu1 %v6896_v41  ;;  %v6976_v40 = vld [vmem:[#allocation8 + $0x70c] ss:$16 sps:$4 sm:$0xff]   ;;  %v6971_v41 = vld [vmem:[#allocation8 + $0x700] ss:$16 sps:$4 sm:$0xff]  }
 0x227   :  { %4617 = vmatprep.subr.bf16.mxu0 %v6901_v42  ;;  %4961 = vmatprep.subr.bf16.mxu1 %v6904_v43  ;;  %v6974_v42 = vld [vmem:[#allocation8 + $0x708] ss:$16 sps:$4 sm:$0xff]   ;;  %v6979_v43 = vld [vmem:[#allocation8 + $0x724] ss:$16 sps:$4 sm:$0xff]  }
 0x22a   :  { %4618 = vmatpush1.bf16.msra.mxu0 %v6899_v44  ;;  %4962 = vmatpush1.bf16.msra.mxu1 %v6902_v45  ;;  %v6982_v44 = vld [vmem:[#allocation8 + $0x72c] ss:$16 sps:$4 sm:$0xff]   ;;  %v6977_v45 = vld [vmem:[#allocation8 + $0x720] ss:$16 sps:$4 sm:$0xff]  }
 0x22b   :  { %4619 = vmatprep.subr.bf16.mxu0 %v6907_v46  ;;  %4963 = vmatprep.subr.bf16.mxu1 %v6910_v47  ;;  %v6980_v46 = vld [vmem:[#allocation8 + $0x728] ss:$16 sps:$4 sm:$0xff]   ;;  %v6985_v47 = vld [vmem:[#allocation8 + $0x744] ss:$16 sps:$4 sm:$0xff]  }
 0x22e   :  { %4620 = vmatpush1.bf16.msra.mxu0 %v6905_v48  ;;  %4964 = vmatpush1.bf16.msra.mxu1 %v6908_v49  ;;  %v6988_v48 = vld [vmem:[#allocation8 + $0x74c] ss:$16 sps:$4 sm:$0xff]   ;;  %v6983_v49 = vld [vmem:[#allocation8 + $0x740] ss:$16 sps:$4 sm:$0xff]  }
 0x22f   :  { %4621 = vmatprep.subr.bf16.mxu0 %v6913_v0  ;;  %4965 = vmatprep.subr.bf16.mxu1 %v6916_v51  ;;  %v6986_v0 = vld [vmem:[#allocation8 + $0x748] ss:$16 sps:$4 sm:$0xff]   ;;  %v6991_v51 = vld [vmem:[#allocation8 + $0x764] ss:$16 sps:$4 sm:$0xff]  }
 0x232   :  { %4622 = vmatpush1.bf16.msra.mxu0 %v6911_v52  ;;  %4966 = vmatpush1.bf16.msra.mxu1 %v6914_v54  ;;  %v6994_v52 = vld [vmem:[#allocation8 + $0x76c] ss:$16 sps:$4 sm:$0xff]   ;;  %v6989_v54 = vld [vmem:[#allocation8 + $0x760] ss:$16 sps:$4 sm:$0xff]  }
 0x233   :  { %4623 = vmatprep.subr.bf16.mxu0 %v6919_v56  ;;  %4967 = vmatprep.subr.bf16.mxu1 %v6922_v14  ;;  %v6992_v56 = vld [vmem:[#allocation8 + $0x768] ss:$16 sps:$4 sm:$0xff]   ;;  %v6997_v14 = vld [vmem:[#allocation8 + $0x784] ss:$16 sps:$4 sm:$0xff]  }
 0x236   :  { %4624 = vmatpush1.bf16.msra.mxu0 %v6917_v57  ;;  %4968 = vmatpush1.bf16.msra.mxu1 %v6920_v58  ;;  %v7000_v57 = vld [vmem:[#allocation8 + $0x78c] ss:$16 sps:$4 sm:$0xff]   ;;  %v6995_v58 = vld [vmem:[#allocation8 + $0x780] ss:$16 sps:$4 sm:$0xff]  }
 0x237   :  { %4636 = vmatprep.subr.bf16.mxu0 %v6925_v59  ;;  %4980 = vmatprep.subr.bf16.mxu1 %v6928_v60  ;;  %v6998_v59 = vld [vmem:[#allocation8 + $0x788] ss:$16 sps:$4 sm:$0xff]   ;;  %v7003_v60 = vld [vmem:[#allocation8 + $0x7a4] ss:$16 sps:$4 sm:$0xff]  }
 0x239   :  { %4626 = vmatmul.mubr.bf16.vlgmr.msra.gmra.mrb[16].mxu0 %v7993_v50  ;;  %4970 = vmatmul.mubr.bf16.vlgmr.msra.gmra.mrb[16].mxu1 %v7993_v50  ;;  %v6946_v50 = vld [vmem:[#allocation8 + $0x66c] ss:$16 sps:$4 sm:$0xff]  }
 0x23a   :  { %4637 = vmatpush1.bf16.msra.mxu0 %v6923_v61  ;;  %4668 = vmatprep.mubr.bf16.mxu0 %v7999_v11  ;;  %v7006_v61 = vld [vmem:[#allocation8 + $0x7ac] ss:$16 sps:$4 sm:$0xff]  }
 0x23b   :  { %4981 = vmatpush1.bf16.msra.mxu1 %v6926_v62  ;;  %5012 = vmatprep.mubr.bf16.mxu1 %v7999_v11  ;;  %v6952_v11 = vld [vmem:[#allocation8 + $0x68c] ss:$16 sps:$4 sm:$0xff]   ;;  %v7001_v62 = vld [vmem:[#allocation8 + $0x7a0] ss:$16 sps:$4 sm:$0xff]  }
 0x23c   :  { %4638 = vmatprep.subr.bf16.mxu0 %v6931_v63  ;;  %4982 = vmatprep.subr.bf16.mxu1 %v6934_v2  ;;  %v7004_v63 = vld [vmem:[#allocation8 + $0x7a8] ss:$16 sps:$4 sm:$0xff]   ;;  %v7009_v2 = vld [vmem:[#allocation8 + $0x7c4] ss:$16 sps:$4 sm:$0xff]  }
 0x23e   :  { %4639 = vmatpush1.bf16.msra.mxu0 %v6929_v3  ;;  %v7012_v3 = vld [vmem:[#allocation8 + $0x7cc] ss:$16 sps:$4 sm:$0xff]  }
 0x23f   :  { %4983 = vmatpush1.bf16.msra.mxu1 %v6932_v8  ;;  %4640 = vmatprep.subr.bf16.mxu0 %v6937_v9  ;;  %v7007_v8 = vld [vmem:[#allocation8 + $0x7c0] ss:$16 sps:$4 sm:$0xff]   ;;  %v7010_v9 = vld [vmem:[#allocation8 + $0x7c8] ss:$16 sps:$4 sm:$0xff]  }
 0x240   :  { %4984 = vmatprep.subr.bf16.mxu1 %v6940_v12  ;;  %v7015_v12 = vld [vmem:[#allocation8 + $0x7e4] ss:$16 sps:$4 sm:$0xff]  }
 0x242   :  { %4641 = vmatpush1.bf16.msra.mxu0 %v6935_v10  ;;  %v7018_v10 = vld [vmem:[#allocation8 + $0x7ec] ss:$16 sps:$4 sm:$0xff]  }
 0x243   :  { %4985 = vmatpush1.bf16.msra.mxu1 %v6938_v17  ;;  %4642 = vmatprep.subr.bf16.mxu0 %v6943_v24  ;;  %v7013_v17 = vld [vmem:[#allocation8 + $0x7e0] ss:$16 sps:$4 sm:$0xff]   ;;  %v7016_v24 = vld [vmem:[#allocation8 + $0x7e8] ss:$16 sps:$4 sm:$0xff]  }
 0x244   :  { %4986 = vmatprep.subr.bf16.mxu1 %v6946_v50  ;;  %v7021_v50 = vld [vmem:[#allocation8 + $0x804] ss:$16 sps:$4 sm:$0xff]  }
 0x246   :  { %4643 = vmatpush1.bf16.msra.mxu0 %v6941_v20  ;;  %v7024_v20 = vld [vmem:[#allocation8 + $0x80c] ss:$16 sps:$4 sm:$0xff]  }
 0x247   :  { %4987 = vmatpush1.bf16.msra.mxu1 %v6944_v22  ;;  %4644 = vmatprep.subr.bf16.mxu0 %v6949_v23  ;;  %v7019_v22 = vld [vmem:[#allocation8 + $0x800] ss:$16 sps:$4 sm:$0xff]   ;;  %v7022_v23 = vld [vmem:[#allocation8 + $0x808] ss:$16 sps:$4 sm:$0xff]  }
 0x248   :  { %4988 = vmatprep.subr.bf16.mxu1 %v6952_v11  ;;  %v7027_v11 = vld [vmem:[#allocation8 + $0x824] ss:$16 sps:$4 sm:$0xff]  }
 0x24a   :  { %4645 = vmatpush1.bf16.msra.mxu0 %v6947_v27  ;;  %v7030_v27 = vld [vmem:[#allocation8 + $0x82c] ss:$16 sps:$4 sm:$0xff]  }
 0x24b   :  { %4989 = vmatpush1.bf16.msra.mxu1 %v6950_v28  ;;  %4646 = vmatprep.subr.bf16.mxu0 %v6955_v13  ;;  %v7025_v28 = vld [vmem:[#allocation8 + $0x820] ss:$16 sps:$4 sm:$0xff]   ;;  %v7028_v13 = vld [vmem:[#allocation8 + $0x828] ss:$16 sps:$4 sm:$0xff]  }
 0x24c   :  { %4990 = vmatprep.subr.bf16.mxu1 %v6958_v7  ;;  %v7033_v7 = vld [vmem:[#allocation8 + $0x844] ss:$16 sps:$4 sm:$0xff]  }
 0x24e   :  { %4647 = vmatpush1.bf16.msra.mxu0 %v6953_v30  ;;  %v7036_v30 = vld [vmem:[#allocation8 + $0x84c] ss:$16 sps:$4 sm:$0xff]  }
 0x24f   :  { %4991 = vmatpush1.bf16.msra.mxu1 %v6956_v32  ;;  %4648 = vmatprep.subr.bf16.mxu0 %v6961_v55  ;;  %v7031_v32 = vld [vmem:[#allocation8 + $0x840] ss:$16 sps:$4 sm:$0xff]   ;;  %v7034_v55 = vld [vmem:[#allocation8 + $0x848] ss:$16 sps:$4 sm:$0xff]  }
 0x250   :  { %4992 = vmatprep.subr.bf16.mxu1 %v6964_v33  ;;  %v7039_v33 = vld [vmem:[#allocation8 + $0x864] ss:$16 sps:$4 sm:$0xff]  }
 0x252   :  { %4649 = vmatpush1.bf16.msra.mxu0 %v6959_v34  ;;  %v7037_v34 = vld [vmem:[#allocation8 + $0x860] ss:$16 sps:$4 sm:$0xff]  }
 0x253   :  { %4993 = vmatpush1.bf16.msra.mxu1 %v6962_v35  ;;  %4650 = vmatprep.subr.bf16.mxu0 %v6967_v36  ;;  %v7040_v35 = vld [vmem:[#allocation8 + $0x868] ss:$16 sps:$4 sm:$0xff]   ;;  %v7045_v36 = vld [vmem:[#allocation8 + $0x884] ss:$16 sps:$4 sm:$0xff]  }
 0x254   :  { %4994 = vmatprep.subr.bf16.mxu1 %v6970_v25  ;;  %v7048_v25 = vld [vmem:[#allocation8 + $0x88c] ss:$16 sps:$4 sm:$0xff]  }
 0x256   :  { %4651 = vmatpush1.bf16.msra.mxu0 %v6965_v39  ;;  %v7046_v39 = vld [vmem:[#allocation8 + $0x888] ss:$16 sps:$4 sm:$0xff]  }
 0x257   :  { %4995 = vmatpush1.bf16.msra.mxu1 %v6968_v26  ;;  %4652 = vmatprep.subr.bf16.mxu0 %v6973_v53  ;;  %v7051_v26 = vld [vmem:[#allocation8 + $0x8a4] ss:$16 sps:$4 sm:$0xff]   ;;  %v7054_v53 = vld [vmem:[#allocation8 + $0x8ac] ss:$16 sps:$4 sm:$0xff]  }
 0x258   :  { %4996 = vmatprep.subr.bf16.mxu1 %v6976_v40  ;;  %v7049_v40 = vld [vmem:[#allocation8 + $0x8a0] ss:$16 sps:$4 sm:$0xff]  }
 0x25a   :  { %4653 = vmatpush1.bf16.msra.mxu0 %v6971_v41  ;;  %v7052_v41 = vld [vmem:[#allocation8 + $0x8a8] ss:$16 sps:$4 sm:$0xff]  }
 0x25b   :  { %4997 = vmatpush1.bf16.msra.mxu1 %v6974_v42  ;;  %4654 = vmatprep.subr.bf16.mxu0 %v6979_v43  ;;  %v7057_v42 = vld [vmem:[#allocation8 + $0x8c4] ss:$16 sps:$4 sm:$0xff]   ;;  %v7060_v43 = vld [vmem:[#allocation8 + $0x8cc] ss:$16 sps:$4 sm:$0xff]  }
 0x25c   :  { %4998 = vmatprep.subr.bf16.mxu1 %v6982_v44  ;;  %v7055_v44 = vld [vmem:[#allocation8 + $0x8c0] ss:$16 sps:$4 sm:$0xff]  }
 0x25e   :  { %4655 = vmatpush1.bf16.msra.mxu0 %v6977_v45  ;;  %v7058_v45 = vld [vmem:[#allocation8 + $0x8c8] ss:$16 sps:$4 sm:$0xff]  }
 0x25f   :  { %4999 = vmatpush1.bf16.msra.mxu1 %v6980_v46  ;;  %4656 = vmatprep.subr.bf16.mxu0 %v6985_v47  ;;  %v7063_v46 = vld [vmem:[#allocation8 + $0x8e4] ss:$16 sps:$4 sm:$0xff]   ;;  %v7066_v47 = vld [vmem:[#allocation8 + $0x8ec] ss:$16 sps:$4 sm:$0xff]  }
 0x260   :  { %5000 = vmatprep.subr.bf16.mxu1 %v6988_v48  ;;  %v7061_v48 = vld [vmem:[#allocation8 + $0x8e0] ss:$16 sps:$4 sm:$0xff]  }
 0x262   :  { %4657 = vmatpush1.bf16.msra.mxu0 %v6983_v49  ;;  %v7064_v49 = vld [vmem:[#allocation8 + $0x8e8] ss:$16 sps:$4 sm:$0xff]  }
 0x263   :  { %5001 = vmatpush1.bf16.msra.mxu1 %v6986_v0  ;;  %4658 = vmatprep.subr.bf16.mxu0 %v6991_v51  ;;  %v7069_v0 = vld [vmem:[#allocation8 + $0x904] ss:$16 sps:$4 sm:$0xff]   ;;  %v7072_v51 = vld [vmem:[#allocation8 + $0x90c] ss:$16 sps:$4 sm:$0xff]  }
 0x264   :  { %5002 = vmatprep.subr.bf16.mxu1 %v6994_v52  ;;  %v7067_v52 = vld [vmem:[#allocation8 + $0x900] ss:$16 sps:$4 sm:$0xff]  }
 0x266   :  { %4659 = vmatpush1.bf16.msra.mxu0 %v6989_v54  ;;  %v7070_v54 = vld [vmem:[#allocation8 + $0x908] ss:$16 sps:$4 sm:$0xff]  }
 0x267   :  { %5003 = vmatpush1.bf16.msra.mxu1 %v6992_v56  ;;  %4660 = vmatprep.subr.bf16.mxu0 %v6997_v14  ;;  %v7075_v56 = vld [vmem:[#allocation8 + $0x924] ss:$16 sps:$4 sm:$0xff]   ;;  %v7078_v14 = vld [vmem:[#allocation8 + $0x92c] ss:$16 sps:$4 sm:$0xff]  }
 0x268   :  { %5004 = vmatprep.subr.bf16.mxu1 %v7000_v57  ;;  %v7073_v57 = vld [vmem:[#allocation8 + $0x920] ss:$16 sps:$4 sm:$0xff]  }
 0x26a   :  { %4661 = vmatpush1.bf16.msra.mxu0 %v6995_v58  ;;  %v7076_v58 = vld [vmem:[#allocation8 + $0x928] ss:$16 sps:$4 sm:$0xff]  }
 0x26b   :  { %5005 = vmatpush1.bf16.msra.mxu1 %v6998_v59  ;;  %4662 = vmatprep.subr.bf16.mxu0 %v7003_v60  ;;  %v7081_v59 = vld [vmem:[#allocation8 + $0x944] ss:$16 sps:$4 sm:$0xff]   ;;  %v7084_v60 = vld [vmem:[#allocation8 + $0x94c] ss:$16 sps:$4 sm:$0xff]  }
 0x26c   :  { %5006 = vmatprep.subr.bf16.mxu1 %v7006_v61  ;;  %v7079_v61 = vld [vmem:[#allocation8 + $0x940] ss:$16 sps:$4 sm:$0xff]  }
 0x26e   :  { %4663 = vmatpush1.bf16.msra.mxu0 %v7001_v62  ;;  %v7082_v62 = vld [vmem:[#allocation8 + $0x948] ss:$16 sps:$4 sm:$0xff]  }
 0x26f   :  { %5007 = vmatpush1.bf16.msra.mxu1 %v7004_v63  ;;  %4664 = vmatprep.subr.bf16.mxu0 %v7009_v2  ;;  %v7087_v63 = vld [vmem:[#allocation8 + $0x964] ss:$16 sps:$4 sm:$0xff]   ;;  %v7090_v2 = vld [vmem:[#allocation8 + $0x96c] ss:$16 sps:$4 sm:$0xff]  }
 0x270   :  { %5008 = vmatprep.subr.bf16.mxu1 %v7012_v3  ;;  %v7085_v3 = vld [vmem:[#allocation8 + $0x960] ss:$16 sps:$4 sm:$0xff]  }
 0x272   :  { %4665 = vmatpush1.bf16.msra.mxu0 %v7007_v8  ;;  %v7088_v8 = vld [vmem:[#allocation8 + $0x968] ss:$16 sps:$4 sm:$0xff]  }
 0x273   :  { %5009 = vmatpush1.bf16.msra.mxu1 %v7010_v9  ;;  %4666 = vmatprep.subr.bf16.mxu0 %v7015_v12  ;;  %v7093_v9 = vld [vmem:[#allocation8 + $0x984] ss:$16 sps:$4 sm:$0xff]   ;;  %v7096_v12 = vld [vmem:[#allocation8 + $0x98c] ss:$16 sps:$4 sm:$0xff]  }
 0x274   :  { %5010 = vmatprep.subr.bf16.mxu1 %v7018_v10  ;;  %v7091_v10 = vld [vmem:[#allocation8 + $0x980] ss:$16 sps:$4 sm:$0xff]  }
 0x276   :  { %4667 = vmatpush1.bf16.msra.mxu0 %v7013_v17  ;;  %v7094_v17 = vld [vmem:[#allocation8 + $0x988] ss:$16 sps:$4 sm:$0xff]  }
 0x277   :  { %5011 = vmatpush1.bf16.msra.mxu1 %v7016_v24  ;;  %4679 = vmatprep.subr.bf16.mxu0 %v7021_v50  ;;  %v7099_v24 = vld [vmem:[#allocation8 + $0x9a4] ss:$16 sps:$4 sm:$0xff]   ;;  %v7102_v50 = vld [vmem:[#allocation8 + $0x9ac] ss:$16 sps:$4 sm:$0xff]  }
 0x278   :  { %5023 = vmatprep.subr.bf16.mxu1 %v7024_v20  ;;  %v7097_v20 = vld [vmem:[#allocation8 + $0x9a0] ss:$16 sps:$4 sm:$0xff]  }
 0x279   :  { %4669 = vmatmul.mubr.bf16.vlgmr.msra.gmra.mrb[16].mxu0 %v7997_v6 }
 0x27a   :  { %5013 = vmatmul.mubr.bf16.vlgmr.msra.gmra.mrb[16].mxu1 %v7997_v6  ;;  %4680 = vmatpush1.bf16.msra.mxu0 %v7019_v22  ;;  %v7042_v6 = vld [vmem:[#allocation8 + $0x86c] ss:$16 sps:$4 sm:$0xff]   ;;  %v7100_v22 = vld [vmem:[#allocation8 + $0x9a8] ss:$16 sps:$4 sm:$0xff]  }
 0x27b   :  { %4711 = vmatprep.mubr.bf16.mxu0 %v8011_v4  ;;  %5024 = vmatpush1.bf16.msra.mxu1 %v7022_v23  ;;  %v7105_v23 = vld [vmem:[#allocation8 + $0x9c4] ss:$16 sps:$4 sm:$0xff]  }
 0x27c   :  { %5055 = vmatprep.mubr.bf16.mxu1 %v8011_v4  ;;  %4681 = vmatprep.subr.bf16.mxu0 %v7027_v11  ;;  %v7043_v4 = vld [vmem:[#allocation8 + $0x880] ss:$16 sps:$4 sm:$0xff]   ;;  %v7108_v11 = vld [vmem:[#allocation8 + $0x9cc] ss:$16 sps:$4 sm:$0xff]  }
 0x27d   :  { %5025 = vmatprep.subr.bf16.mxu1 %v7030_v27  ;;  %v7103_v27 = vld [vmem:[#allocation8 + $0x9c0] ss:$16 sps:$4 sm:$0xff]  }
 0x27e   :  { %4682 = vmatpush1.bf16.msra.mxu0 %v7025_v28  ;;  %v7106_v28 = vld [vmem:[#allocation8 + $0x9c8] ss:$16 sps:$4 sm:$0xff]  }
 0x27f   :  { %5026 = vmatpush1.bf16.msra.mxu1 %v7028_v13  ;;  %4683 = vmatprep.subr.bf16.mxu0 %v7033_v7  ;;  %v7111_v13 = vld [vmem:[#allocation8 + $0x9e4] ss:$16 sps:$4 sm:$0xff]   ;;  %v7114_v7 = vld [vmem:[#allocation8 + $0x9ec] ss:$16 sps:$4 sm:$0xff]  }
 0x280   :  { %5027 = vmatprep.subr.bf16.mxu1 %v7036_v30  ;;  %v7109_v30 = vld [vmem:[#allocation8 + $0x9e0] ss:$16 sps:$4 sm:$0xff]  }
 0x282   :  { %4684 = vmatpush1.bf16.msra.mxu0 %v7031_v32  ;;  %v7112_v32 = vld [vmem:[#allocation8 + $0x9e8] ss:$16 sps:$4 sm:$0xff]  }
 0x283   :  { %5028 = vmatpush1.bf16.msra.mxu1 %v7034_v55  ;;  %4685 = vmatprep.subr.bf16.mxu0 %v7039_v33  ;;  %v7117_v55 = vld [vmem:[#allocation8 + $0xa04] ss:$16 sps:$4 sm:$0xff]   ;;  %v7120_v33 = vld [vmem:[#allocation8 + $0xa0c] ss:$16 sps:$4 sm:$0xff]  }
 0x284   :  { %5029 = vmatprep.subr.bf16.mxu1 %v7042_v6  ;;  %v7115_v6 = vld [vmem:[#allocation8 + $0xa00] ss:$16 sps:$4 sm:$0xff]  }
 0x286   :  { %4686 = vmatpush1.bf16.msra.mxu0 %v7037_v34  ;;  %v7118_v34 = vld [vmem:[#allocation8 + $0xa08] ss:$16 sps:$4 sm:$0xff]  }
 0x287   :  { %5030 = vmatpush1.bf16.msra.mxu1 %v7040_v35  ;;  %4687 = vmatprep.subr.bf16.mxu0 %v7045_v36  ;;  %v7123_v35 = vld [vmem:[#allocation8 + $0xa24] ss:$16 sps:$4 sm:$0xff]   ;;  %v7126_v36 = vld [vmem:[#allocation8 + $0xa2c] ss:$16 sps:$4 sm:$0xff]  }
 0x288   :  { %5031 = vmatprep.subr.bf16.mxu1 %v7048_v25  ;;  %v7121_v25 = vld [vmem:[#allocation8 + $0xa20] ss:$16 sps:$4 sm:$0xff]  }
 0x28a   :  { %4688 = vmatpush1.bf16.msra.mxu0 %v7043_v4  ;;  %v7124_v4 = vld [vmem:[#allocation8 + $0xa28] ss:$16 sps:$4 sm:$0xff]  }
 0x28b   :  { %5032 = vmatpush1.bf16.msra.mxu1 %v7046_v39  ;;  %4689 = vmatprep.subr.bf16.mxu0 %v7051_v26  ;;  %v7129_v39 = vld [vmem:[#allocation8 + $0xa44] ss:$16 sps:$4 sm:$0xff]   ;;  %v7132_v26 = vld [vmem:[#allocation8 + $0xa4c] ss:$16 sps:$4 sm:$0xff]  }
 0x28c   :  { %5033 = vmatprep.subr.bf16.mxu1 %v7054_v53  ;;  %v7127_v53 = vld [vmem:[#allocation8 + $0xa40] ss:$16 sps:$4 sm:$0xff]  }
 0x28e   :  { %4690 = vmatpush1.bf16.msra.mxu0 %v7049_v40  ;;  %v7130_v40 = vld [vmem:[#allocation8 + $0xa48] ss:$16 sps:$4 sm:$0xff]  }
 0x28f   :  { %5034 = vmatpush1.bf16.msra.mxu1 %v7052_v41  ;;  %4691 = vmatprep.subr.bf16.mxu0 %v7057_v42  ;;  %v7135_v41 = vld [vmem:[#allocation8 + $0xa64] ss:$16 sps:$4 sm:$0xff]   ;;  %v7133_v42 = vld [vmem:[#allocation8 + $0xa60] ss:$16 sps:$4 sm:$0xff]  }
 0x290   :  { %5035 = vmatprep.subr.bf16.mxu1 %v7060_v43  ;;  %v7136_v43 = vld [vmem:[#allocation8 + $0xa68] ss:$16 sps:$4 sm:$0xff]  }
 0x292   :  { %4692 = vmatpush1.bf16.msra.mxu0 %v7055_v44  ;;  %v7141_v44 = vld [vmem:[#allocation8 + $0xa84] ss:$16 sps:$4 sm:$0xff]  }
 0x293   :  { %5036 = vmatpush1.bf16.msra.mxu1 %v7058_v45  ;;  %4693 = vmatprep.subr.bf16.mxu0 %v7063_v46  ;;  %v7144_v45 = vld [vmem:[#allocation8 + $0xa8c] ss:$16 sps:$4 sm:$0xff]   ;;  %v7142_v46 = vld [vmem:[#allocation8 + $0xa88] ss:$16 sps:$4 sm:$0xff]  }
 0x294   :  { %5037 = vmatprep.subr.bf16.mxu1 %v7066_v47  ;;  %v7147_v47 = vld [vmem:[#allocation8 + $0xaa4] ss:$16 sps:$4 sm:$0xff]  }
 0x296   :  { %4694 = vmatpush1.bf16.msra.mxu0 %v7061_v48  ;;  %v7150_v48 = vld [vmem:[#allocation8 + $0xaac] ss:$16 sps:$4 sm:$0xff]  }
 0x297   :  { %5038 = vmatpush1.bf16.msra.mxu1 %v7064_v49  ;;  %4695 = vmatprep.subr.bf16.mxu0 %v7069_v0  ;;  %v7145_v49 = vld [vmem:[#allocation8 + $0xaa0] ss:$16 sps:$4 sm:$0xff]   ;;  %v7148_v0 = vld [vmem:[#allocation8 + $0xaa8] ss:$16 sps:$4 sm:$0xff]  }
 0x298   :  { %5039 = vmatprep.subr.bf16.mxu1 %v7072_v51  ;;  %v7153_v51 = vld [vmem:[#allocation8 + $0xac4] ss:$16 sps:$4 sm:$0xff]  }
 0x29a   :  { %4696 = vmatpush1.bf16.msra.mxu0 %v7067_v52  ;;  %v7156_v52 = vld [vmem:[#allocation8 + $0xacc] ss:$16 sps:$4 sm:$0xff]  }
 0x29b   :  { %5040 = vmatpush1.bf16.msra.mxu1 %v7070_v54  ;;  %4697 = vmatprep.subr.bf16.mxu0 %v7075_v56  ;;  %v7151_v54 = vld [vmem:[#allocation8 + $0xac0] ss:$16 sps:$4 sm:$0xff]   ;;  %v7154_v56 = vld [vmem:[#allocation8 + $0xac8] ss:$16 sps:$4 sm:$0xff]  }
 0x29c   :  { %5041 = vmatprep.subr.bf16.mxu1 %v7078_v14  ;;  %v7159_v14 = vld [vmem:[#allocation8 + $0xae4] ss:$16 sps:$4 sm:$0xff]  }
 0x29e   :  { %4698 = vmatpush1.bf16.msra.mxu0 %v7073_v57  ;;  %v7162_v57 = vld [vmem:[#allocation8 + $0xaec] ss:$16 sps:$4 sm:$0xff]  }
 0x29f   :  { %5042 = vmatpush1.bf16.msra.mxu1 %v7076_v58  ;;  %4699 = vmatprep.subr.bf16.mxu0 %v7081_v59  ;;  %v7157_v58 = vld [vmem:[#allocation8 + $0xae0] ss:$16 sps:$4 sm:$0xff]   ;;  %v7160_v59 = vld [vmem:[#allocation8 + $0xae8] ss:$16 sps:$4 sm:$0xff]  }
 0x2a0   :  { %5043 = vmatprep.subr.bf16.mxu1 %v7084_v60  ;;  %v7165_v60 = vld [vmem:[#allocation8 + $0xb04] ss:$16 sps:$4 sm:$0xff]  }
 0x2a2   :  { %4700 = vmatpush1.bf16.msra.mxu0 %v7079_v61  ;;  %v7168_v61 = vld [vmem:[#allocation8 + $0xb0c] ss:$16 sps:$4 sm:$0xff]  }
 0x2a3   :  { %5044 = vmatpush1.bf16.msra.mxu1 %v7082_v62  ;;  %4701 = vmatprep.subr.bf16.mxu0 %v7087_v63  ;;  %v7163_v62 = vld [vmem:[#allocation8 + $0xb00] ss:$16 sps:$4 sm:$0xff]   ;;  %v7166_v63 = vld [vmem:[#allocation8 + $0xb08] ss:$16 sps:$4 sm:$0xff]  }
 0x2a4   :  { %5045 = vmatprep.subr.bf16.mxu1 %v7090_v2  ;;  %v7171_v2 = vld [vmem:[#allocation8 + $0xb24] ss:$16 sps:$4 sm:$0xff]  }
 0x2a6   :  { %4702 = vmatpush1.bf16.msra.mxu0 %v7085_v3  ;;  %v7174_v3 = vld [vmem:[#allocation8 + $0xb2c] ss:$16 sps:$4 sm:$0xff]  }
 0x2a7   :  { %5046 = vmatpush1.bf16.msra.mxu1 %v7088_v8  ;;  %4703 = vmatprep.subr.bf16.mxu0 %v7093_v9  ;;  %v7169_v8 = vld [vmem:[#allocation8 + $0xb20] ss:$16 sps:$4 sm:$0xff]   ;;  %v7172_v9 = vld [vmem:[#allocation8 + $0xb28] ss:$16 sps:$4 sm:$0xff]  }
 0x2a8   :  { %5047 = vmatprep.subr.bf16.mxu1 %v7096_v12  ;;  %v7177_v12 = vld [vmem:[#allocation8 + $0xb44] ss:$16 sps:$4 sm:$0xff]  }
 0x2aa   :  { %4704 = vmatpush1.bf16.msra.mxu0 %v7091_v10  ;;  %v7180_v10 = vld [vmem:[#allocation8 + $0xb4c] ss:$16 sps:$4 sm:$0xff]  }
 0x2ab   :  { %5048 = vmatpush1.bf16.msra.mxu1 %v7094_v17  ;;  %4705 = vmatprep.subr.bf16.mxu0 %v7099_v24  ;;  %v7175_v17 = vld [vmem:[#allocation8 + $0xb40] ss:$16 sps:$4 sm:$0xff]   ;;  %v7178_v24 = vld [vmem:[#allocation8 + $0xb48] ss:$16 sps:$4 sm:$0xff]  }
 0x2ac   :  { %5049 = vmatprep.subr.bf16.mxu1 %v7102_v50  ;;  %v7183_v50 = vld [vmem:[#allocation8 + $0xb64] ss:$16 sps:$4 sm:$0xff]  }
 0x2ae   :  { %4706 = vmatpush1.bf16.msra.mxu0 %v7097_v20  ;;  %v7186_v20 = vld [vmem:[#allocation8 + $0xb6c] ss:$16 sps:$4 sm:$0xff]  }
 0x2af   :  { %5050 = vmatpush1.bf16.msra.mxu1 %v7100_v22  ;;  %4707 = vmatprep.subr.bf16.mxu0 %v7105_v23  ;;  %v7181_v22 = vld [vmem:[#allocation8 + $0xb60] ss:$16 sps:$4 sm:$0xff]   ;;  %v7184_v23 = vld [vmem:[#allocation8 + $0xb68] ss:$16 sps:$4 sm:$0xff]  }
 0x2b0   :  { %5051 = vmatprep.subr.bf16.mxu1 %v7108_v11  ;;  %v7189_v11 = vld [vmem:[#allocation8 + $0xb84] ss:$16 sps:$4 sm:$0xff]  }
 0x2b2   :  { %4708 = vmatpush1.bf16.msra.mxu0 %v7103_v27  ;;  %v7192_v27 = vld [vmem:[#allocation8 + $0xb8c] ss:$16 sps:$4 sm:$0xff]  }
 0x2b3   :  { %5052 = vmatpush1.bf16.msra.mxu1 %v7106_v28  ;;  %4709 = vmatprep.subr.bf16.mxu0 %v7111_v13  ;;  %v7187_v28 = vld [vmem:[#allocation8 + $0xb80] ss:$16 sps:$4 sm:$0xff]   ;;  %v7190_v13 = vld [vmem:[#allocation8 + $0xb88] ss:$16 sps:$4 sm:$0xff]  }
 0x2b4   :  { %5053 = vmatprep.subr.bf16.mxu1 %v7114_v7  ;;  %v7195_v7 = vld [vmem:[#allocation8 + $0xba4] ss:$16 sps:$4 sm:$0xff]  }
 0x2b6   :  { %4710 = vmatpush1.bf16.msra.mxu0 %v7109_v30  ;;  %v7198_v30 = vld [vmem:[#allocation8 + $0xbac] ss:$16 sps:$4 sm:$0xff]  }
 0x2b7   :  { %5054 = vmatpush1.bf16.msra.mxu1 %v7112_v32  ;;  %4722 = vmatprep.subr.bf16.mxu0 %v7117_v55  ;;  %v7193_v32 = vld [vmem:[#allocation8 + $0xba0] ss:$16 sps:$4 sm:$0xff]   ;;  %v7196_v55 = vld [vmem:[#allocation8 + $0xba8] ss:$16 sps:$4 sm:$0xff]  }
 0x2b8   :  { %5066 = vmatprep.subr.bf16.mxu1 %v7120_v33  ;;  %v7201_v33 = vld [vmem:[#allocation8 + $0xbc4] ss:$16 sps:$4 sm:$0xff]  }
 0x2b9   :  { %4712 = vmatmul.mubr.bf16.vlgmr.msra.gmra.mrb[16].mxu0 %v8009_v1 }
 0x2ba   :  { %5056 = vmatmul.mubr.bf16.vlgmr.msra.gmra.mrb[16].mxu1 %v8009_v1  ;;  %4723 = vmatpush1.bf16.msra.mxu0 %v7115_v6  ;;  %v7138_v1 = vld [vmem:[#allocation8 + $0xa6c] ss:$16 sps:$4 sm:$0xff]  }
 0x2bb   :  { %4754 = vmatprep.mubr.bf16.mxu0 %v8019_v31  ;;  %5067 = vmatpush1.bf16.msra.mxu1 %v7118_v34  ;;  %v7204_v6 = vld [vmem:[#allocation8 + $0xbcc] ss:$16 sps:$4 sm:$0xff]   ;;  %v7199_v34 = vld [vmem:[#allocation8 + $0xbc0] ss:$16 sps:$4 sm:$0xff]  }
 0x2bc   :  { %5098 = vmatprep.mubr.bf16.mxu1 %v8019_v31  ;;  %4724 = vmatprep.subr.bf16.mxu0 %v7123_v35  ;;  %v7139_v31 = vld [vmem:[#allocation8 + $0xa80] ss:$16 sps:$4 sm:$0xff]   ;;  %v7202_v35 = vld [vmem:[#allocation8 + $0xbc8] ss:$16 sps:$4 sm:$0xff]  }
 0x2bd   :  { %5068 = vmatprep.subr.bf16.mxu1 %v7126_v36  ;;  %v7207_v36 = vld [vmem:[#allocation8 + $0xbe4] ss:$16 sps:$4 sm:$0xff]  }
 0x2be   :  { %4725 = vmatpush1.bf16.msra.mxu0 %v7121_v25  ;;  %v7210_v25 = vld [vmem:[#allocation8 + $0xbec] ss:$16 sps:$4 sm:$0xff]  }
 0x2bf   :  { %5069 = vmatpush1.bf16.msra.mxu1 %v7124_v4  ;;  %4726 = vmatprep.subr.bf16.mxu0 %v7129_v39  ;;  %v7205_v4 = vld [vmem:[#allocation8 + $0xbe0] ss:$16 sps:$4 sm:$0xff]   ;;  %v7208_v39 = vld [vmem:[#allocation8 + $0xbe8] ss:$16 sps:$4 sm:$0xff]  }
 0x2c0   :  { %5070 = vmatprep.subr.bf16.mxu1 %v7132_v26  ;;  %v7213_v26 = vld [vmem:[#allocation8 + $0xc04] ss:$16 sps:$4 sm:$0xff]  }
 0x2c2   :  { %4727 = vmatpush1.bf16.msra.mxu0 %v7127_v53  ;;  %v7216_v53 = vld [vmem:[#allocation8 + $0xc0c] ss:$16 sps:$4 sm:$0xff]  }
 0x2c3   :  { %5071 = vmatpush1.bf16.msra.mxu1 %v7130_v40  ;;  %4728 = vmatprep.subr.bf16.mxu0 %v7135_v41  ;;  %v7211_v40 = vld [vmem:[#allocation8 + $0xc00] ss:$16 sps:$4 sm:$0xff]   ;;  %v7214_v41 = vld [vmem:[#allocation8 + $0xc08] ss:$16 sps:$4 sm:$0xff]  }
 0x2c4   :  { %5072 = vmatprep.subr.bf16.mxu1 %v7138_v1  ;;  %v7219_v1 = vld [vmem:[#allocation8 + $0xc24] ss:$16 sps:$4 sm:$0xff]  }
 0x2c6   :  { %4729 = vmatpush1.bf16.msra.mxu0 %v7133_v42  ;;  %v7222_v42 = vld [vmem:[#allocation8 + $0xc2c] ss:$16 sps:$4 sm:$0xff]  }
 0x2c7   :  { %5073 = vmatpush1.bf16.msra.mxu1 %v7136_v43  ;;  %4730 = vmatprep.subr.bf16.mxu0 %v7141_v44  ;;  %v7217_v43 = vld [vmem:[#allocation8 + $0xc20] ss:$16 sps:$4 sm:$0xff]   ;;  %v7220_v44 = vld [vmem:[#allocation8 + $0xc28] ss:$16 sps:$4 sm:$0xff]  }
 0x2c8   :  { %5074 = vmatprep.subr.bf16.mxu1 %v7144_v45  ;;  %v7225_v45 = vld [vmem:[#allocation8 + $0xc44] ss:$16 sps:$4 sm:$0xff]  }
 0x2ca   :  { %4731 = vmatpush1.bf16.msra.mxu0 %v7139_v31  ;;  %v7228_v31 = vld [vmem:[#allocation8 + $0xc4c] ss:$16 sps:$4 sm:$0xff]  }
 0x2cb   :  { %5075 = vmatpush1.bf16.msra.mxu1 %v7142_v46  ;;  %4732 = vmatprep.subr.bf16.mxu0 %v7147_v47  ;;  %v7223_v46 = vld [vmem:[#allocation8 + $0xc40] ss:$16 sps:$4 sm:$0xff]   ;;  %v7226_v47 = vld [vmem:[#allocation8 + $0xc48] ss:$16 sps:$4 sm:$0xff]  }
 0x2cc   :  { %5076 = vmatprep.subr.bf16.mxu1 %v7150_v48  ;;  %v7231_v48 = vld [vmem:[#allocation8 + $0xc64] ss:$16 sps:$4 sm:$0xff]  }
 0x2ce   :  { %4733 = vmatpush1.bf16.msra.mxu0 %v7145_v49  ;;  %v7229_v49 = vld [vmem:[#allocation8 + $0xc60] ss:$16 sps:$4 sm:$0xff]  }
 0x2cf   :  { %5077 = vmatpush1.bf16.msra.mxu1 %v7148_v0  ;;  %4734 = vmatprep.subr.bf16.mxu0 %v7153_v51  ;;  %v7232_v0 = vld [vmem:[#allocation8 + $0xc68] ss:$16 sps:$4 sm:$0xff]   ;;  %v7237_v51 = vld [vmem:[#allocation8 + $0xc84] ss:$16 sps:$4 sm:$0xff]  }
 0x2d0   :  { %5078 = vmatprep.subr.bf16.mxu1 %v7156_v52  ;;  %v7240_v52 = vld [vmem:[#allocation8 + $0xc8c] ss:$16 sps:$4 sm:$0xff]  }
 0x2d2   :  { %4735 = vmatpush1.bf16.msra.mxu0 %v7151_v54  ;;  %v7238_v54 = vld [vmem:[#allocation8 + $0xc88] ss:$16 sps:$4 sm:$0xff]  }
 0x2d3   :  { %5079 = vmatpush1.bf16.msra.mxu1 %v7154_v56  ;;  %4736 = vmatprep.subr.bf16.mxu0 %v7159_v14  ;;  %v7243_v56 = vld [vmem:[#allocation8 + $0xca4] ss:$16 sps:$4 sm:$0xff]   ;;  %v7246_v14 = vld [vmem:[#allocation8 + $0xcac] ss:$16 sps:$4 sm:$0xff]  }
 0x2d4   :  { %5080 = vmatprep.subr.bf16.mxu1 %v7162_v57  ;;  %v7241_v57 = vld [vmem:[#allocation8 + $0xca0] ss:$16 sps:$4 sm:$0xff]  }
 0x2d6   :  { %4737 = vmatpush1.bf16.msra.mxu0 %v7157_v58  ;;  %v7244_v58 = vld [vmem:[#allocation8 + $0xca8] ss:$16 sps:$4 sm:$0xff]  }
 0x2d7   :  { %5081 = vmatpush1.bf16.msra.mxu1 %v7160_v59  ;;  %4738 = vmatprep.subr.bf16.mxu0 %v7165_v60  ;;  %v7249_v59 = vld [vmem:[#allocation8 + $0xcc4] ss:$16 sps:$4 sm:$0xff]   ;;  %v7252_v60 = vld [vmem:[#allocation8 + $0xccc] ss:$16 sps:$4 sm:$0xff]  }
 0x2d8   :  { %5082 = vmatprep.subr.bf16.mxu1 %v7168_v61  ;;  %v7247_v61 = vld [vmem:[#allocation8 + $0xcc0] ss:$16 sps:$4 sm:$0xff]  }
 0x2da   :  { %4739 = vmatpush1.bf16.msra.mxu0 %v7163_v62  ;;  %v7250_v62 = vld [vmem:[#allocation8 + $0xcc8] ss:$16 sps:$4 sm:$0xff]  }
 0x2db   :  { %5083 = vmatpush1.bf16.msra.mxu1 %v7166_v63  ;;  %4740 = vmatprep.subr.bf16.mxu0 %v7171_v2  ;;  %v7255_v63 = vld [vmem:[#allocation8 + $0xce4] ss:$16 sps:$4 sm:$0xff]   ;;  %v7258_v2 = vld [vmem:[#allocation8 + $0xcec] ss:$16 sps:$4 sm:$0xff]  }
 0x2dc   :  { %5084 = vmatprep.subr.bf16.mxu1 %v7174_v3  ;;  %v7253_v3 = vld [vmem:[#allocation8 + $0xce0] ss:$16 sps:$4 sm:$0xff]  }
 0x2de   :  { %4741 = vmatpush1.bf16.msra.mxu0 %v7169_v8  ;;  %v7256_v8 = vld [vmem:[#allocation8 + $0xce8] ss:$16 sps:$4 sm:$0xff]  }
 0x2df   :  { %5085 = vmatpush1.bf16.msra.mxu1 %v7172_v9  ;;  %4742 = vmatprep.subr.bf16.mxu0 %v7177_v12  ;;  %v7261_v9 = vld [vmem:[#allocation8 + $0xd04] ss:$16 sps:$4 sm:$0xff]   ;;  %v7264_v12 = vld [vmem:[#allocation8 + $0xd0c] ss:$16 sps:$4 sm:$0xff]  }
 0x2e0   :  { %5086 = vmatprep.subr.bf16.mxu1 %v7180_v10  ;;  %v7259_v10 = vld [vmem:[#allocation8 + $0xd00] ss:$16 sps:$4 sm:$0xff]  }
 0x2e2   :  { %4743 = vmatpush1.bf16.msra.mxu0 %v7175_v17  ;;  %v7262_v17 = vld [vmem:[#allocation8 + $0xd08] ss:$16 sps:$4 sm:$0xff]  }
 0x2e3   :  { %5087 = vmatpush1.bf16.msra.mxu1 %v7178_v24  ;;  %4744 = vmatprep.subr.bf16.mxu0 %v7183_v50  ;;  %v7267_v24 = vld [vmem:[#allocation8 + $0xd24] ss:$16 sps:$4 sm:$0xff]   ;;  %v7270_v50 = vld [vmem:[#allocation8 + $0xd2c] ss:$16 sps:$4 sm:$0xff]  }
 0x2e4   :  { %5088 = vmatprep.subr.bf16.mxu1 %v7186_v20  ;;  %v7265_v20 = vld [vmem:[#allocation8 + $0xd20] ss:$16 sps:$4 sm:$0xff]  }
 0x2e6   :  { %4745 = vmatpush1.bf16.msra.mxu0 %v7181_v22  ;;  %v7268_v22 = vld [vmem:[#allocation8 + $0xd28] ss:$16 sps:$4 sm:$0xff]  }
 0x2e7   :  { %5089 = vmatpush1.bf16.msra.mxu1 %v7184_v23  ;;  %4746 = vmatprep.subr.bf16.mxu0 %v7189_v11  ;;  %v7273_v23 = vld [vmem:[#allocation8 + $0xd44] ss:$16 sps:$4 sm:$0xff]   ;;  %v7276_v11 = vld [vmem:[#allocation8 + $0xd4c] ss:$16 sps:$4 sm:$0xff]  }
 0x2e8   :  { %5090 = vmatprep.subr.bf16.mxu1 %v7192_v27  ;;  %v7271_v27 = vld [vmem:[#allocation8 + $0xd40] ss:$16 sps:$4 sm:$0xff]  }
 0x2ea   :  { %4747 = vmatpush1.bf16.msra.mxu0 %v7187_v28  ;;  %v7274_v28 = vld [vmem:[#allocation8 + $0xd48] ss:$16 sps:$4 sm:$0xff]  }
 0x2eb   :  { %5091 = vmatpush1.bf16.msra.mxu1 %v7190_v13  ;;  %4748 = vmatprep.subr.bf16.mxu0 %v7195_v7  ;;  %v7279_v13 = vld [vmem:[#allocation8 + $0xd64] ss:$16 sps:$4 sm:$0xff]   ;;  %v7282_v7 = vld [vmem:[#allocation8 + $0xd6c] ss:$16 sps:$4 sm:$0xff]  }
 0x2ec   :  { %5092 = vmatprep.subr.bf16.mxu1 %v7198_v30  ;;  %v7277_v30 = vld [vmem:[#allocation8 + $0xd60] ss:$16 sps:$4 sm:$0xff]  }
 0x2ee   :  { %4749 = vmatpush1.bf16.msra.mxu0 %v7193_v32  ;;  %v7280_v32 = vld [vmem:[#allocation8 + $0xd68] ss:$16 sps:$4 sm:$0xff]  }
 0x2ef   :  { %5093 = vmatpush1.bf16.msra.mxu1 %v7196_v55  ;;  %4750 = vmatprep.subr.bf16.mxu0 %v7201_v33  ;;  %v7285_v55 = vld [vmem:[#allocation8 + $0xd84] ss:$16 sps:$4 sm:$0xff]   ;;  %v7288_v33 = vld [vmem:[#allocation8 + $0xd8c] ss:$16 sps:$4 sm:$0xff]  }
 0x2f0   :  { %5094 = vmatprep.subr.bf16.mxu1 %v7204_v6  ;;  %v7283_v6 = vld [vmem:[#allocation8 + $0xd80] ss:$16 sps:$4 sm:$0xff]  }
 0x2f2   :  { %4751 = vmatpush1.bf16.msra.mxu0 %v7199_v34  ;;  %v7286_v34 = vld [vmem:[#allocation8 + $0xd88] ss:$16 sps:$4 sm:$0xff]  }
 0x2f3   :  { %5095 = vmatpush1.bf16.msra.mxu1 %v7202_v35  ;;  %4752 = vmatprep.subr.bf16.mxu0 %v7207_v36  ;;  %v7291_v35 = vld [vmem:[#allocation8 + $0xda4] ss:$16 sps:$4 sm:$0xff]   ;;  %v7294_v36 = vld [vmem:[#allocation8 + $0xdac] ss:$16 sps:$4 sm:$0xff]  }
 0x2f4   :  { %5096 = vmatprep.subr.bf16.mxu1 %v7210_v25  ;;  %v7289_v25 = vld [vmem:[#allocation8 + $0xda0] ss:$16 sps:$4 sm:$0xff]  }
 0x2f6   :  { %4753 = vmatpush1.bf16.msra.mxu0 %v7205_v4  ;;  %v7292_v4 = vld [vmem:[#allocation8 + $0xda8] ss:$16 sps:$4 sm:$0xff]  }
 0x2f7   :  { %5097 = vmatpush1.bf16.msra.mxu1 %v7208_v39  ;;  %4765 = vmatprep.subr.bf16.mxu0 %v7213_v26  ;;  %v7297_v39 = vld [vmem:[#allocation8 + $0xdc4] ss:$16 sps:$4 sm:$0xff]   ;;  %v7300_v26 = vld [vmem:[#allocation8 + $0xdcc] ss:$16 sps:$4 sm:$0xff]  }
 0x2f8   :  { %5109 = vmatprep.subr.bf16.mxu1 %v7216_v53  ;;  %v7295_v53 = vld [vmem:[#allocation8 + $0xdc0] ss:$16 sps:$4 sm:$0xff]  }
 0x2f9   :  { %4755 = vmatmul.mubr.bf16.vlgmr.msra.gmra.mrb[16].mxu0 %v8015_v29 }
 0x2fa   :  { %5099 = vmatmul.mubr.bf16.vlgmr.msra.gmra.mrb[16].mxu1 %v8015_v29  ;;  %4766 = vmatpush1.bf16.msra.mxu0 %v7211_v40  ;;  %v7234_v29 = vld [vmem:[#allocation8 + $0xc6c] ss:$16 sps:$4 sm:$0xff]   ;;  %v7298_v40 = vld [vmem:[#allocation8 + $0xdc8] ss:$16 sps:$4 sm:$0xff]  }
 0x2fb   :  { %4797 = vmatprep.mubr.bf16.mxu0 %v8028_v18  ;;  %5110 = vmatpush1.bf16.msra.mxu1 %v7214_v41  ;;  %v7303_v41 = vld [vmem:[#allocation8 + $0xde4] ss:$16 sps:$4 sm:$0xff]  }
 0x2fc   :  { %5141 = vmatprep.mubr.bf16.mxu1 %v8028_v18  ;;  %4767 = vmatprep.subr.bf16.mxu0 %v7219_v1  ;;  %v7235_v18 = vld [vmem:[#allocation8 + $0xc80] ss:$16 sps:$4 sm:$0xff]   ;;  %v7306_v1 = vld [vmem:[#allocation8 + $0xdec] ss:$16 sps:$4 sm:$0xff]  }
 0x2fd   :  { %5111 = vmatprep.subr.bf16.mxu1 %v7222_v42  ;;  %v7301_v42 = vld [vmem:[#allocation8 + $0xde0] ss:$16 sps:$4 sm:$0xff]  }
 0x2fe   :  { %4768 = vmatpush1.bf16.msra.mxu0 %v7217_v43  ;;  %v7304_v43 = vld [vmem:[#allocation8 + $0xde8] ss:$16 sps:$4 sm:$0xff]  }
 0x2ff   :  { %5112 = vmatpush1.bf16.msra.mxu1 %v7220_v44  ;;  %4769 = vmatprep.subr.bf16.mxu0 %v7225_v45  ;;  %v7309_v44 = vld [vmem:[#allocation8 + $0xe04] ss:$16 sps:$4 sm:$0xff]   ;;  %v7312_v45 = vld [vmem:[#allocation8 + $0xe0c] ss:$16 sps:$4 sm:$0xff]  }
 0x300   :  { %5113 = vmatprep.subr.bf16.mxu1 %v7228_v31  ;;  %v7307_v31 = vld [vmem:[#allocation8 + $0xe00] ss:$16 sps:$4 sm:$0xff]  }
 0x302   :  { %4770 = vmatpush1.bf16.msra.mxu0 %v7223_v46  ;;  %v7310_v46 = vld [vmem:[#allocation8 + $0xe08] ss:$16 sps:$4 sm:$0xff]  }
 0x303   :  { %5114 = vmatpush1.bf16.msra.mxu1 %v7226_v47  ;;  %4771 = vmatprep.subr.bf16.mxu0 %v7231_v48  ;;  %v7315_v47 = vld [vmem:[#allocation8 + $0xe24] ss:$16 sps:$4 sm:$0xff]   ;;  %v7318_v48 = vld [vmem:[#allocation8 + $0xe2c] ss:$16 sps:$4 sm:$0xff]  }
 0x304   :  { %5115 = vmatprep.subr.bf16.mxu1 %v7234_v29  ;;  %v7313_v29 = vld [vmem:[#allocation8 + $0xe20] ss:$16 sps:$4 sm:$0xff]  }
 0x306   :  { %4772 = vmatpush1.bf16.msra.mxu0 %v7229_v49  ;;  %v7316_v49 = vld [vmem:[#allocation8 + $0xe28] ss:$16 sps:$4 sm:$0xff]  }
 0x307   :  { %5116 = vmatpush1.bf16.msra.mxu1 %v7232_v0  ;;  %4773 = vmatprep.subr.bf16.mxu0 %v7237_v51  ;;  %v7321_v0 = vld [vmem:[#allocation8 + $0xe44] ss:$16 sps:$4 sm:$0xff]   ;;  %v7324_v51 = vld [vmem:[#allocation8 + $0xe4c] ss:$16 sps:$4 sm:$0xff]  }
 0x308   :  { %5117 = vmatprep.subr.bf16.mxu1 %v7240_v52  ;;  %v7319_v52 = vld [vmem:[#allocation8 + $0xe40] ss:$16 sps:$4 sm:$0xff]  }
 0x30a   :  { %4774 = vmatpush1.bf16.msra.mxu0 %v7235_v18  ;;  %v7322_v18 = vld [vmem:[#allocation8 + $0xe48] ss:$16 sps:$4 sm:$0xff]  }
 0x30b   :  { %5118 = vmatpush1.bf16.msra.mxu1 %v7238_v54  ;;  %4775 = vmatprep.subr.bf16.mxu0 %v7243_v56  ;;  %v7327_v54 = vld [vmem:[#allocation8 + $0xe64] ss:$16 sps:$4 sm:$0xff]   ;;  %v7325_v56 = vld [vmem:[#allocation8 + $0xe60] ss:$16 sps:$4 sm:$0xff]  }
 0x30c   :  { %5119 = vmatprep.subr.bf16.mxu1 %v7246_v14  ;;  %v7328_v14 = vld [vmem:[#allocation8 + $0xe68] ss:$16 sps:$4 sm:$0xff]  }
 0x30e   :  { %4776 = vmatpush1.bf16.msra.mxu0 %v7241_v57  ;;  %v7333_v57 = vld [vmem:[#allocation8 + $0xe84] ss:$16 sps:$4 sm:$0xff]  }
 0x30f   :  { %5120 = vmatpush1.bf16.msra.mxu1 %v7244_v58  ;;  %4777 = vmatprep.subr.bf16.mxu0 %v7249_v59  ;;  %v7336_v58 = vld [vmem:[#allocation8 + $0xe8c] ss:$16 sps:$4 sm:$0xff]   ;;  %v7334_v59 = vld [vmem:[#allocation8 + $0xe88] ss:$16 sps:$4 sm:$0xff]  }
 0x310   :  { %5121 = vmatprep.subr.bf16.mxu1 %v7252_v60  ;;  %v7339_v60 = vld [vmem:[#allocation8 + $0xea4] ss:$16 sps:$4 sm:$0xff]  }
 0x312   :  { %4778 = vmatpush1.bf16.msra.mxu0 %v7247_v61  ;;  %v7342_v61 = vld [vmem:[#allocation8 + $0xeac] ss:$16 sps:$4 sm:$0xff]  }
 0x313   :  { %5122 = vmatpush1.bf16.msra.mxu1 %v7250_v62  ;;  %4779 = vmatprep.subr.bf16.mxu0 %v7255_v63  ;;  %v7337_v62 = vld [vmem:[#allocation8 + $0xea0] ss:$16 sps:$4 sm:$0xff]   ;;  %v7340_v63 = vld [vmem:[#allocation8 + $0xea8] ss:$16 sps:$4 sm:$0xff]  }
 0x314   :  { %5123 = vmatprep.subr.bf16.mxu1 %v7258_v2  ;;  %v7345_v2 = vld [vmem:[#allocation8 + $0xec4] ss:$16 sps:$4 sm:$0xff]  }
 0x316   :  { %4780 = vmatpush1.bf16.msra.mxu0 %v7253_v3  ;;  %v7348_v3 = vld [vmem:[#allocation8 + $0xecc] ss:$16 sps:$4 sm:$0xff]  }
 0x317   :  { %5124 = vmatpush1.bf16.msra.mxu1 %v7256_v8  ;;  %4781 = vmatprep.subr.bf16.mxu0 %v7261_v9  ;;  %v7343_v8 = vld [vmem:[#allocation8 + $0xec0] ss:$16 sps:$4 sm:$0xff]   ;;  %v7346_v9 = vld [vmem:[#allocation8 + $0xec8] ss:$16 sps:$4 sm:$0xff]  }
 0x318   :  { %5125 = vmatprep.subr.bf16.mxu1 %v7264_v12  ;;  %v7351_v12 = vld [vmem:[#allocation8 + $0xee4] ss:$16 sps:$4 sm:$0xff]  }
 0x31a   :  { %4782 = vmatpush1.bf16.msra.mxu0 %v7259_v10  ;;  %v7354_v10 = vld [vmem:[#allocation8 + $0xeec] ss:$16 sps:$4 sm:$0xff]  }
 0x31b   :  { %5126 = vmatpush1.bf16.msra.mxu1 %v7262_v17  ;;  %4783 = vmatprep.subr.bf16.mxu0 %v7267_v24  ;;  %v7349_v17 = vld [vmem:[#allocation8 + $0xee0] ss:$16 sps:$4 sm:$0xff]   ;;  %v7352_v24 = vld [vmem:[#allocation8 + $0xee8] ss:$16 sps:$4 sm:$0xff]  }
 0x31c   :  { %5127 = vmatprep.subr.bf16.mxu1 %v7270_v50  ;;  %v7357_v50 = vld [vmem:[#allocation8 + $0xf04] ss:$16 sps:$4 sm:$0xff]  }
 0x31e   :  { %4784 = vmatpush1.bf16.msra.mxu0 %v7265_v20  ;;  %v7360_v20 = vld [vmem:[#allocation8 + $0xf0c] ss:$16 sps:$4 sm:$0xff]  }
 0x31f   :  { %5128 = vmatpush1.bf16.msra.mxu1 %v7268_v22  ;;  %4785 = vmatprep.subr.bf16.mxu0 %v7273_v23  ;;  %v7355_v22 = vld [vmem:[#allocation8 + $0xf00] ss:$16 sps:$4 sm:$0xff]   ;;  %v7358_v23 = vld [vmem:[#allocation8 + $0xf08] ss:$16 sps:$4 sm:$0xff]  }
 0x320   :  { %5129 = vmatprep.subr.bf16.mxu1 %v7276_v11  ;;  %v7363_v11 = vld [vmem:[#allocation8 + $0xf24] ss:$16 sps:$4 sm:$0xff]  }
 0x322   :  { %4786 = vmatpush1.bf16.msra.mxu0 %v7271_v27  ;;  %v7366_v27 = vld [vmem:[#allocation8 + $0xf2c] ss:$16 sps:$4 sm:$0xff]  }
 0x323   :  { %5130 = vmatpush1.bf16.msra.mxu1 %v7274_v28  ;;  %4787 = vmatprep.subr.bf16.mxu0 %v7279_v13  ;;  %v7361_v28 = vld [vmem:[#allocation8 + $0xf20] ss:$16 sps:$4 sm:$0xff]   ;;  %v7364_v13 = vld [vmem:[#allocation8 + $0xf28] ss:$16 sps:$4 sm:$0xff]  }
 0x324   :  { %5131 = vmatprep.subr.bf16.mxu1 %v7282_v7  ;;  %v7369_v7 = vld [vmem:[#allocation8 + $0xf44] ss:$16 sps:$4 sm:$0xff]  }
 0x326   :  { %4788 = vmatpush1.bf16.msra.mxu0 %v7277_v30  ;;  %v7372_v30 = vld [vmem:[#allocation8 + $0xf4c] ss:$16 sps:$4 sm:$0xff]  }
 0x327   :  { %5132 = vmatpush1.bf16.msra.mxu1 %v7280_v32  ;;  %4789 = vmatprep.subr.bf16.mxu0 %v7285_v55  ;;  %v7367_v32 = vld [vmem:[#allocation8 + $0xf40] ss:$16 sps:$4 sm:$0xff]   ;;  %v7370_v55 = vld [vmem:[#allocation8 + $0xf48] ss:$16 sps:$4 sm:$0xff]  }
 0x328   :  { %5133 = vmatprep.subr.bf16.mxu1 %v7288_v33  ;;  %v7375_v33 = vld [vmem:[#allocation8 + $0xf64] ss:$16 sps:$4 sm:$0xff]  }
 0x32a   :  { %4790 = vmatpush1.bf16.msra.mxu0 %v7283_v6  ;;  %v7378_v6 = vld [vmem:[#allocation8 + $0xf6c] ss:$16 sps:$4 sm:$0xff]  }
 0x32b   :  { %5134 = vmatpush1.bf16.msra.mxu1 %v7286_v34  ;;  %4791 = vmatprep.subr.bf16.mxu0 %v7291_v35  ;;  %v7373_v34 = vld [vmem:[#allocation8 + $0xf60] ss:$16 sps:$4 sm:$0xff]   ;;  %v7376_v35 = vld [vmem:[#allocation8 + $0xf68] ss:$16 sps:$4 sm:$0xff]  }
 0x32c   :  { %5135 = vmatprep.subr.bf16.mxu1 %v7294_v36  ;;  %v7381_v36 = vld [vmem:[#allocation8 + $0xf84] ss:$16 sps:$4 sm:$0xff]  }
 0x32e   :  { %4792 = vmatpush1.bf16.msra.mxu0 %v7289_v25  ;;  %v7384_v25 = vld [vmem:[#allocation8 + $0xf8c] ss:$16 sps:$4 sm:$0xff]  }
 0x32f   :  { %5136 = vmatpush1.bf16.msra.mxu1 %v7292_v4  ;;  %4793 = vmatprep.subr.bf16.mxu0 %v7297_v39  ;;  %v7379_v4 = vld [vmem:[#allocation8 + $0xf80] ss:$16 sps:$4 sm:$0xff]   ;;  %v7382_v39 = vld [vmem:[#allocation8 + $0xf88] ss:$16 sps:$4 sm:$0xff]  }
 0x330   :  { %5137 = vmatprep.subr.bf16.mxu1 %v7300_v26  ;;  %v7387_v26 = vld [vmem:[#allocation8 + $0xfa4] ss:$16 sps:$4 sm:$0xff]  }
 0x332   :  { %4794 = vmatpush1.bf16.msra.mxu0 %v7295_v53  ;;  %v7390_v53 = vld [vmem:[#allocation8 + $0xfac] ss:$16 sps:$4 sm:$0xff]  }
 0x333   :  { %5138 = vmatpush1.bf16.msra.mxu1 %v7298_v40  ;;  %4795 = vmatprep.subr.bf16.mxu0 %v7303_v41  ;;  %v7385_v40 = vld [vmem:[#allocation8 + $0xfa0] ss:$16 sps:$4 sm:$0xff]   ;;  %v7388_v41 = vld [vmem:[#allocation8 + $0xfa8] ss:$16 sps:$4 sm:$0xff]  }
 0x334   :  { %5139 = vmatprep.subr.bf16.mxu1 %v7306_v1  ;;  %v7393_v1 = vld [vmem:[#allocation8 + $0xfc4] ss:$16 sps:$4 sm:$0xff]  }
 0x336   :  { %4796 = vmatpush1.bf16.msra.mxu0 %v7301_v42  ;;  %v7396_v42 = vld [vmem:[#allocation8 + $0xfcc] ss:$16 sps:$4 sm:$0xff]  }
 0x337   :  { %5140 = vmatpush1.bf16.msra.mxu1 %v7304_v43  ;;  %4808 = vmatprep.subr.bf16.mxu0 %v7309_v44  ;;  %v7391_v43 = vld [vmem:[#allocation8 + $0xfc0] ss:$16 sps:$4 sm:$0xff]   ;;  %v7394_v44 = vld [vmem:[#allocation8 + $0xfc8] ss:$16 sps:$4 sm:$0xff]  }
 0x338   :  { %5152 = vmatprep.subr.bf16.mxu1 %v7312_v45  ;;  %v7399_v45 = vld [vmem:[#allocation8 + $0xfe4] ss:$16 sps:$4 sm:$0xff]  }
 0x339   :  { %4798 = vmatmul.mubr.bf16.vlgmr.msra.gmra.mrb[16].mxu0 %v8025_v5 }
 0x33a   :  { %5142 = vmatmul.mubr.bf16.vlgmr.msra.gmra.mrb[16].mxu1 %v8025_v5  ;;  %4809 = vmatpush1.bf16.msra.mxu0 %v7307_v31  ;;  %v7330_v5 = vld [vmem:[#allocation8 + $0xe6c] ss:$16 sps:$4 sm:$0xff]  }
 0x33b   :  { %4840 = vmatprep.mubr.bf16.mxu0 %v8035_v38  ;;  %5153 = vmatpush1.bf16.msra.mxu1 %v7310_v46  ;;  %v7402_v31 = vld [vmem:[#allocation8 + $0xfec] ss:$16 sps:$4 sm:$0xff]   ;;  %v7397_v46 = vld [vmem:[#allocation8 + $0xfe0] ss:$16 sps:$4 sm:$0xff]  }
 0x33c   :  { %5184 = vmatprep.mubr.bf16.mxu1 %v8035_v38  ;;  %4810 = vmatprep.subr.bf16.mxu0 %v7315_v47  ;;  %v7331_v38 = vld [vmem:[#allocation8 + $0xe80] ss:$16 sps:$4 sm:$0xff]   ;;  %v7400_v47 = vld [vmem:[#allocation8 + $0xfe8] ss:$16 sps:$4 sm:$0xff]  }
 0x33d   :  { %5154 = vmatprep.subr.bf16.mxu1 %v7318_v48  ;;  %v7403_v48 = vld [vmem:[#allocation11 + $0x40] sm:$0xff]  }
 0x33e   :  { %4811 = vmatpush1.bf16.msra.mxu0 %v7313_v29  ;;  %v7404_v29 = vld [vmem:[#allocation11 + $0xc0] sm:$0xff]  }
 0x33f   :  { %5155 = vmatpush1.bf16.msra.mxu1 %v7316_v49  ;;  %4812 = vmatprep.subr.bf16.mxu0 %v7321_v0  ;;  %v7405_v49 = vld [vmem:[#allocation11] sm:$0xff]  }
 0x340   :  { %5156 = vmatprep.subr.bf16.mxu1 %v7324_v51  ;;  %v7406_v0 = vld [vmem:[#allocation11 + $0x80] sm:$0xff]   ;;  %v7407_v51 = vld [vmem:[#allocation11 + $0x48] sm:$0xff]  }
 0x342   :  { %4813 = vmatpush1.bf16.msra.mxu0 %v7319_v52  ;;  %v7408_v52 = vld [vmem:[#allocation11 + $0xc8] sm:$0xff]  }
 0x343   :  { %5157 = vmatpush1.bf16.msra.mxu1 %v7322_v18  ;;  %4814 = vmatprep.subr.bf16.mxu0 %v7327_v54  ;;  %v7409_v18 = vld [vmem:[#allocation11 + $0x8] sm:$0xff]  }
 0x344   :  { %5158 = vmatprep.subr.bf16.mxu1 %v7330_v5  ;;  %v7410_v54 = vld [vmem:[#allocation11 + $0x88] sm:$0xff]   ;;  %v7411_v5 = vld [vmem:[#allocation11 + $0x50] sm:$0xff]  }
 0x346   :  { %4815 = vmatpush1.bf16.msra.mxu0 %v7325_v56  ;;  %v7412_v56 = vld [vmem:[#allocation11 + $0xd0] sm:$0xff]  }
 0x347   :  { %5159 = vmatpush1.bf16.msra.mxu1 %v7328_v14  ;;  %4816 = vmatprep.subr.bf16.mxu0 %v7333_v57  ;;  %v7413_v14 = vld [vmem:[#allocation11 + $0x10] sm:$0xff]  }
 0x348   :  { %5160 = vmatprep.subr.bf16.mxu1 %v7336_v58  ;;  %v7414_v57 = vld [vmem:[#allocation11 + $0x90] sm:$0xff]   ;;  %v7415_v58 = vld [vmem:[#allocation11 + $0x58] sm:$0xff]  }
 0x34a   :  { %4817 = vmatpush1.bf16.msra.mxu0 %v7331_v38  ;;  %v7416_v38 = vld [vmem:[#allocation11 + $0xd8] sm:$0xff]  }
 0x34b   :  { %5161 = vmatpush1.bf16.msra.mxu1 %v7334_v59  ;;  %4818 = vmatprep.subr.bf16.mxu0 %v7339_v60  ;;  %v7417_v59 = vld [vmem:[#allocation11 + $0x18] sm:$0xff]   ;;  %v7419_v60 = vld [vmem:[#allocation11 + $0x60] sm:$0xff]  }
 0x34c   :  { %5162 = vmatprep.subr.bf16.mxu1 %v7342_v61  ;;  %v7420_v61 = vld [vmem:[#allocation11 + $0xe0] sm:$0xff]  }
 0x34e   :  { %4819 = vmatpush1.bf16.msra.mxu0 %v7337_v62  ;;  %v7421_v62 = vld [vmem:[#allocation11 + $0x20] sm:$0xff]  }
 0x34f   :  { %5163 = vmatpush1.bf16.msra.mxu1 %v7340_v63  ;;  %4820 = vmatprep.subr.bf16.mxu0 %v7345_v2  ;;  %v7422_v63 = vld [vmem:[#allocation11 + $0xa0] sm:$0xff]   ;;  %v7423_v2 = vld [vmem:[#allocation11 + $0x68] sm:$0xff]  }
 0x350   :  { %5164 = vmatprep.subr.bf16.mxu1 %v7348_v3  ;;  %v7424_v3 = vld [vmem:[#allocation11 + $0xe8] sm:$0xff]  }
 0x352   :  { %4821 = vmatpush1.bf16.msra.mxu0 %v7343_v8  ;;  %v7425_v8 = vld [vmem:[#allocation11 + $0x28] sm:$0xff]  }
 0x353   :  { %5165 = vmatpush1.bf16.msra.mxu1 %v7346_v9  ;;  %4822 = vmatprep.subr.bf16.mxu0 %v7351_v12  ;;  %v7426_v9 = vld [vmem:[#allocation11 + $0xa8] sm:$0xff]   ;;  %v7427_v12 = vld [vmem:[#allocation11 + $0x70] sm:$0xff]  }
 0x354   :  { %5166 = vmatprep.subr.bf16.mxu1 %v7354_v10  ;;  %v7428_v10 = vld [vmem:[#allocation11 + $0xf0] sm:$0xff]  }
 0x356   :  { %4823 = vmatpush1.bf16.msra.mxu0 %v7349_v17  ;;  %v7429_v17 = vld [vmem:[#allocation11 + $0x30] sm:$0xff]  }
 0x357   :  { %5167 = vmatpush1.bf16.msra.mxu1 %v7352_v24  ;;  %4824 = vmatprep.subr.bf16.mxu0 %v7357_v50  ;;  %v7430_v24 = vld [vmem:[#allocation11 + $0xb0] sm:$0xff]   ;;  %v7431_v50 = vld [vmem:[#allocation11 + $0x78] sm:$0xff]  }
 0x358   :  { %5168 = vmatprep.subr.bf16.mxu1 %v7360_v20  ;;  %v7432_v20 = vld [vmem:[#allocation11 + $0xf8] sm:$0xff]  }
 0x35a   :  { %4825 = vmatpush1.bf16.msra.mxu0 %v7355_v22  ;;  %v7433_v22 = vld [vmem:[#allocation11 + $0x38] sm:$0xff]  }
 0x35b   :  { %5169 = vmatpush1.bf16.msra.mxu1 %v7358_v23  ;;  %4826 = vmatprep.subr.bf16.mxu0 %v7363_v11  ;;  %v7434_v23 = vld [vmem:[#allocation11 + $0xb8] sm:$0xff]   ;;  %v7727_v11 = vmov 0.0  }
 0x35c   :  { %5170 = vmatprep.subr.bf16.mxu1 %v7366_v27  ;;  %v1925_v27 = vld [vmem:[#allocation10] sm:$0xf] }
 0x35e   :  { %4827 = vmatpush1.bf16.msra.mxu0 %v7361_v28  ;;  %v1930_v28 = vrot.slane %v1925_v27, %v7950_v15 }
 0x35f   :  { %5171 = vmatpush1.bf16.msra.mxu1 %v7364_v13  ;;  %4828 = vmatprep.subr.bf16.mxu0 %v7369_v7  ;;  %v1938_v13 = vrot.slane %v1925_v27, %v7960_v19  ;;  %v1934_v7 = vrot.slane %v1925_v27, %v7953_v16 }
 0x360   :  { %5172 = vmatprep.subr.bf16.mxu1 %v7372_v30  ;;  %v1942_v30 = vrot.slane %v1925_v27, %v7963_v21  ;;  %v6453_v27 = vld [vmem:[#allocation14] ss:$0 sm:$0xff] }
 0x362   :  { %4829 = vmatpush1.bf16.msra.mxu0 %v7367_v32 }
 0x363   :  { %5173 = vmatpush1.bf16.msra.mxu1 %v7370_v55  ;;  %4830 = vmatprep.subr.bf16.mxu0 %v7375_v33 }
 0x364   :  { %5174 = vmatprep.subr.bf16.mxu1 %v7378_v6 }
 0x366   :  { %4831 = vmatpush1.bf16.msra.mxu0 %v7373_v34 }
 0x367   :  { %5175 = vmatpush1.bf16.msra.mxu1 %v7376_v35  ;;  %4832 = vmatprep.subr.bf16.mxu0 %v7381_v36 }
 0x368   :  { %5176 = vmatprep.subr.bf16.mxu1 %v7384_v25 }
 0x36a   :  { %4833 = vmatpush1.bf16.msra.mxu0 %v7379_v4 }
 0x36b   :  { %5177 = vmatpush1.bf16.msra.mxu1 %v7382_v39  ;;  %4834 = vmatprep.subr.bf16.mxu0 %v7387_v26 }
 0x36c   :  { %5178 = vmatprep.subr.bf16.mxu1 %v7390_v53 }
 0x36e   :  { %4835 = vmatpush1.bf16.msra.mxu0 %v7385_v40 }
 0x36f   :  { %5179 = vmatpush1.bf16.msra.mxu1 %v7388_v41  ;;  %4836 = vmatprep.subr.bf16.mxu0 %v7393_v1 }
 0x370   :  { %5180 = vmatprep.subr.bf16.mxu1 %v7396_v42 }
 0x372   :  { %4837 = vmatpush1.bf16.msra.mxu0 %v7391_v43 }
 0x373   :  { %5181 = vmatpush1.bf16.msra.mxu1 %v7394_v44  ;;  %4838 = vmatprep.subr.bf16.mxu0 %v7399_v45 }
 0x374   :  { %5182 = vmatprep.subr.bf16.mxu1 %v7402_v31 }
 0x376   :  { %4839 = vmatpush1.bf16.msra.mxu0 %v7397_v46 }
 0x377   :  { %5183 = vmatpush1.bf16.msra.mxu1 %v7400_v47  ;;  %6466 = vmatprep.subr.bf16.mxu0 %v7403_v48 }
 0x378   :  { %6488 = vmatprep.subr.bf16.mxu1 %v7404_v29  ;;  %v7435_v29 = vld [vmem:[%s8121_s7] sm:$0xff]  }
 0x379   :  { %4841 = vmatmul.mubr.bf16.vlgmr.msra.gmra.mrb[16].mxu0 %v8033_v37 }
 0x37a   :  { %5185 = vmatmul.mubr.bf16.vlgmr.msra.gmra.mrb[16].mxu1 %v8033_v37  ;;  %6467 = vmatpush3.bf16.msra.mxu0 %v7405_v49  ;;  %v7418_v37 = vld [vmem:[#allocation11 + $0x98] sm:$0xff]  }
 0x37b   :  { %6489 = vmatpush3.bf16.msra.mxu1 %v7406_v0  ;;  %6468 = vmatprep.subr.bf16.mxu0 %v7407_v51  ;;  %v7436_v0 = vld [vmem:[%s8121_s7 + $0x8] sm:$0xff]   ;;  %v7437_v51 = vld [vmem:[%s8121_s7 + $0x10] sm:$0xff]  }
 0x37c   :  { %6490 = vmatprep.subr.bf16.mxu1 %v7408_v52  ;;  %v7438_v52 = vld [vmem:[%s8121_s7 + $0x18] sm:$0xff]  }
 0x37e   :  { %6469 = vmatpush3.bf16.msra.mxu0 %v7409_v18  ;;  %v7439_v18 = vld [vmem:[%s8121_s7 + $0x20] sm:$0xff]  }
 0x37f   :  { %6491 = vmatpush3.bf16.msra.mxu1 %v7410_v54  ;;  %6470 = vmatprep.subr.bf16.mxu0 %v7411_v5  ;;  %v7440_v54 = vld [vmem:[%s8121_s7 + $0x28] sm:$0xff]   ;;  %v7441_v5 = vld [vmem:[%s8121_s7 + $0x30] sm:$0xff]  }
 0x380   :  { %6492 = vmatprep.subr.bf16.mxu1 %v7412_v56  ;;  %v7442_v56 = vld [vmem:[%s8121_s7 + $0x38] sm:$0xff]   ;;  %s7729_s7 = smov [#allocation19]  }
 0x381   :  { %s5763_s17 = sshll.u32 %s7729_s7, 4  ;;  %s5764_s17 = int_to_ptr.vmem [resolvable:$true] %s5763_s17 }
 0x382   :  { %6471 = vmatpush3.bf16.msra.mxu0 %v7413_v14  ;;  %s7673_s19 = scalar_lea.vmem %s5764_s17, 256  ;;  %p7678_p11 = scmp.lt.s32.totalorder %s5764_s17, %s5764_s17 }
 0x383   :  { %6493 = vmatpush3.bf16.msra.mxu1 %v7414_v57  ;;  %6472 = vmatprep.subr.bf16.mxu0 %v7415_v58  ;;  %v6420_v58 = vld [vmem:[#allocation13] ss:$0 sm:$0xff]  ;;  %p7674_p10 = scmp.ne.s32.totalorder %s5764_s17, %s7673_s19  ;;  %p7679_p12 = scmp.lt.s32.totalorder %s7673_s19, %s7673_s19 }
 0x384   :  { %6494 = vmatprep.subr.bf16.mxu1 %v7416_v38 }
 0x385   :  { %p7680_p13 = por %p7679_p12, %p7678_p11 }
 0x386   :  { %6473 = vmatpush3.bf16.msra.mxu0 %v7417_v59 }
 0x387   :  { %6495 = vmatpush3.bf16.msra.mxu1 %v7418_v37  ;;  %6474 = vmatprep.subr.bf16.mxu0 %v7419_v60  ;;  %p7681_p0 = pnand %p7680_p13, %p7674_p10 }
 0x388   :  { %6496 = vmatprep.subr.bf16.mxu1 %v7420_v61 }
 0x38a   :  { %6475 = vmatpush3.bf16.msra.mxu0 %v7421_v62 }
 0x38b   :  { %6497 = vmatpush3.bf16.msra.mxu1 %v7422_v63  ;;  %6476 = vmatprep.subr.bf16.mxu0 %v7423_v2 }
 0x38c   :  { %6498 = vmatprep.subr.bf16.mxu1 %v7424_v3 }
 0x38e   :  { %6477 = vmatpush3.bf16.msra.mxu0 %v7425_v8 }
 0x38f   :  { %6499 = vmatpush3.bf16.msra.mxu1 %v7426_v9  ;;  %6478 = vmatprep.subr.bf16.mxu0 %v7427_v12 }
 0x390   :  { %6500 = vmatprep.subr.bf16.mxu1 %v7428_v10 }
 0x392   :  { %6479 = vmatpush3.bf16.msra.mxu0 %v7429_v17 }
 0x393   :  { %6501 = vmatpush3.bf16.msra.mxu1 %v7430_v24  ;;  %6480 = vmatprep.subr.bf16.mxu0 %v7431_v50 }
 0x394   :  { %6502 = vmatprep.subr.bf16.mxu1 %v7432_v20 }
 0x396   :  { %6481 = vmatpush3.bf16.msra.mxu0 %v7433_v22  ;;  %v7443_v22 = vld [vmem:[#allocation16] sm:$0xff]  }
 0x397   :  { %6503 = vmatpush3.bf16.msra.mxu1 %v7434_v23  ;;  %6522 = vmatprep.subr.bf16.mxu0 %v7727_v11  ;;  %v7444_v23 = vld [vmem:[#allocation16 + $0x8] sm:$0xff]  }
 0x398   :  { %6542 = vmatprep.subr.bf16.mxu1 %v7727_v11 }
 0x44c   :  { %v4842_v32 = vpop.f32.mrb[16].mxu0 }
 0x44d   :  { %v6550_v55 = vadd.f32 %v4842_v32, %v1930_v28  ;;  %v5186_v33 = vpop.f32.mrb[16].mxu1  ;;  %v4844_v6 = vpop.f32.mrb[17].mxu0 }
 0x44e   :  { %v6554_v34 = vadd.f32 %v5186_v33, %v1938_v13  ;;  %v6551_v35 = vadd.f32 %v4844_v6, %v1934_v7  ;;  %v5188_v36 = vpop.f32.mrb[17].mxu1  ;;  %v4846_v25 = vpop.f32.mrb[18].mxu0 }
 0x44f   :  { %v6555_v4 = vadd.f32 %v5188_v36, %v1942_v30  ;;  %v6552_v39 = vadd.f32 %v4846_v25, %v1930_v28  ;;  %v5190_v26 = vpop.f32.mrb[18].mxu1  ;;  %v4848_v53 = vpop.f32.mrb[19].mxu0  ;;  %v5195_v19 = vmax.f32 %v6550_v55, 0.0 }
 0x450   :  { %v6556_v40 = vadd.f32 %v5190_v26, %v1938_v13  ;;  %v6553_v15 = vadd.f32 %v4848_v53, %v1934_v7  ;;  %v5192_v41 = vpop.f32.mrb[19].mxu1  ;;  %v5197_v42 = vmax.f32 %v6554_v34, 0.0  ;;  %v5196_v21 = vmax.f32 %v6551_v35, 0.0  ;;  %v6462_v35 = vld [vmem:[#allocation17] ss:$0 sm:$0xff] }
 0x451   :  { %v5199_v1 = vmax.f32 %v6552_v39, 0.0  ;;  %v6557_v16 = vadd.f32 %v5192_v41, %v1942_v30  ;;  %v5198_v45 = vmax.f32 %v6555_v4, 0.0 }
 0x452   :  { %v5201_v43 = vmax.f32 %v6556_v40, 0.0  ;;  %v5200_v44 = vmax.f32 %v6553_v15, 0.0 }
 0x453   :  { %v5203_v31 = vpack.c.bf16 %v5199_v1, %v5195_v19  ;;  %v5202_v46 = vmax.f32 %v6557_v16, 0.0 }
 0x454   :  { %v5205_v47 = vpack.c.bf16 %v5201_v43, %v5197_v42  ;;  %v5204_v48 = vpack.c.bf16 %v5200_v44, %v5196_v21 }
 0x455   :  { %v5206_v49 = vpack.c.bf16 %v5202_v46, %v5198_v45 }
 0x456   :  { %5502 = vmatprep.mubr.bf16.mxu0 %v5204_v48 }
 0x457   :  { %5543 = vmatprep.mubr.bf16.mxu1 %v5206_v49  ;;  %5503 = vmatmul.mubr.bf16.vlgmr.msra.gmra.mrb[20].mxu0 %v5203_v31 }
 0x458   :  { %5544 = vmatmul.mubr.bf16.vlgmr.msra.gmra.mrb[20].mxu1 %v5205_v47  ;;  %6523 = vmatpush3.bf16.msra.mxu0 %v7435_v29 }
 0x459   :  { %6524 = vmatprep.subr.bf16.mxu0 %v7727_v11  ;;  %6538 = vmatprep.mubr.msk.bf16.mxu0 %vm7728_vm0, %v7727_v11 }
 0x45a   :  { %6546 = vmatprep.mubr.msk.bf16.mxu1 %vm7728_vm0, %v7727_v11  ;;  %6543 = vmatpush3.bf16.msra.mxu1 %v7443_v22 }
 0x45b   :  { %6544 = vmatprep.subr.bf16.mxu1 %v7727_v11 }
 0x45c   :  { %6525 = vmatpush3.bf16.msra.mxu0 %v7436_v0 }
 0x45d   :  { %6526 = vmatprep.subr.bf16.mxu0 %v7727_v11 }
 0x45e   :  { %6545 = vmatpush3.bf16.msra.mxu1 %v7444_v23 }
 0x460   :  { %6527 = vmatpush3.bf16.msra.mxu0 %v7437_v51 }
 0x461   :  { %6528 = vmatprep.subr.bf16.mxu0 %v7727_v11 }
 0x464   :  { %6529 = vmatpush3.bf16.msra.mxu0 %v7438_v52 }
 0x465   :  { %6530 = vmatprep.subr.bf16.mxu0 %v7727_v11 }
 0x468   :  { %6531 = vmatpush3.bf16.msra.mxu0 %v7439_v18 }
 0x469   :  { %6532 = vmatprep.subr.bf16.mxu0 %v7727_v11 }
 0x46c   :  { %6533 = vmatpush3.bf16.msra.mxu0 %v7440_v54 }
 0x46d   :  { %6534 = vmatprep.subr.bf16.mxu0 %v7727_v11 }
 0x470   :  { %6535 = vmatpush3.bf16.msra.mxu0 %v7441_v5 }
 0x471   :  { %6536 = vmatprep.subr.bf16.mxu0 %v7727_v11 }
 0x474   :  { %6537 = vmatpush3.bf16.msra.mxu0 %v7442_v56 }
 0x52a   :  { %v6482_v14 = vpop.f32.mrb[20].mxu0 }
 0x52b   :  { %v6504_v57 = vpop.f32.mrb[20].mxu1  ;;  %v6483_v38 = vpop.f32.mrb[21].mxu0 }
 0x52c   :  { %v6484_v59 = vadd.f32 %v6483_v38, %v6482_v14  ;;  %v6505_v37 = vpop.f32.mrb[21].mxu1  ;;  %v6485_v60 = vpop.f32.mrb[22].mxu0 }
 0x52d   :  { %v6506_v61 = vadd.f32 %v6505_v37, %v6504_v57  ;;  %v6507_v62 = vpop.f32.mrb[22].mxu1  ;;  %v6486_v63 = vpop.f32.mrb[23].mxu0 }
 0x52e   :  { %v5505_v2 = vadd.f32 %v6484_v59, %v6420_v58  ;;  %v6487_v3 = vadd.f32 %v6486_v63, %v6485_v60  ;;  %v6508_v8 = vpop.f32.mrb[23].mxu1 }
 0x52f   :  { %v6509_v9 = vadd.f32 %v6508_v8, %v6507_v62 }
 0x530   :  { %v5546_v12 = vadd.f32 %v6506_v61, %v5505_v2  ;;  %v5508_v10 = vadd.f32 %v6487_v3, %v6420_v58 }
 0x532   :  { %v5549_v17 = vadd.f32 %v6509_v9, %v5508_v10  ;;  %v5552_v24 = vmax.f32 %v5546_v12, 0.0 }
 0x534   :  { %v5553_v50 = vmax.f32 %v5549_v17, 0.0 }
 0x536   :  { %v5554_v20 = vpack.c.bf16 %v5553_v50, %v5552_v24 }
 0x538   :  { %6539 = vmatmul.mubr.bf16.vlgmr.msra.gmra.mrb[24].mxu0 %v5554_v20 }
 0x60b   :  { %v5660_v28 = vpop.f32.mrb[24].mxu0 }
 0x60c   :  { %v5661_v13 = vadd.f32 %v6453_v27, %v5660_v28  ;;  %v6540_v7 = vpop.f32.mrb[25].mxu0 }
 0x60d   :  { %v5663_v30 = vpop.f32.mrb[26].mxu0 }
 0x60e   :  { %v5664_v32 = vadd.f32 %v6453_v27, %v5663_v30  ;;  %v6541_v55 = vpop.f32.mrb[27].mxu0  ;;  %v5667_v33 = vmax.f32 %v5661_v13, 0.0 }
 0x610   :  { %v5668_v6 = vmax.f32 %v5664_v32, 0.0 }
 0x612   :  { %v5669_v34 = vpack.c.bf16 %v5668_v6, %v5667_v33 }
 0x614   :  { %6547 = vmatmul.mubr.msk.bf16.vlgmr.msra.gmra.mrb[24].mxu1 %vm5693_vm1, %v5669_v34 }
 0x6e7   :  { %v5731_v36 = vpop.f32.mrb[24].mxu1 }
 0x6e8   :  { %v5732_v25 = vadd.f32 %v6462_v35, %v5731_v36  ;;  %v6548_v4 = vpop.f32.mrb[25].mxu1 }
 0x6e9   :  { %v5734_v39 = vpop.f32.mrb[26].mxu1 }
 0x6ea   :  { %5738 = vmax.xlane.f32.xlu0 %v5732_v25  ;;  %v6549_v11 = vpop.f32.mrb[27].mxu1  ;;  %v5735_v26 = vadd.f32 %v6462_v35, %v5734_v39 }
 0x6ee   :  { %5740 = vmax.xlane.f32.xlu0 %v5735_v26 }
 0x777   :  { %v5739_v53 = vpop.xlane.xlu0 %5738 }
 0x778   :  { %v5742_v40 = vsub.f32 %v5732_v25, %v5739_v53 }
 0x77a   :  { %v5744_v15 = vmul.f32 1.442695, %v5742_v40 }
 0x77b   :  { %v5741_v41 = vpop.xlane.xlu0 %5740 }
 0x77c   :  { %7445 = vpow2.f32 %v5744_v15  ;;  %v5743_v19 = vsub.f32 %v5735_v26, %v5741_v41 }
 0x77e   :  { %v5746_v1 = vmul.f32 1.442695, %v5743_v19 }
 0x780   :  { %7447 = vpow2.f32 %v5746_v1 }
 0x786   :  { %v7446_v16 = vpop.eup %7445 }
 0x787   :  { %5748 = vadd.xlane.f32.xlu1 %v7446_v16 }
 0x78a   :  { %v7448_v42 = vpop.eup %7447 }
 0x78b   :  { %5750 = vadd.xlane.f32.xlu1 %v7448_v42 }
 0x814   :  { %v5749_v21 = vpop.xlane.xlu1 %5748 }
 0x815   :  { %7449 = vrcp.f32 %v5749_v21 }
 0x818   :  { %v5751_v43 = vpop.xlane.xlu1 %5750 }
 0x819   :  { %7451 = vrcp.f32 %v5751_v43 }
 0x81f   :  { %v7450_v44 = vpop.eup %7449 }
 0x820   :  { %v5754_v45 = vmul.f32 %v7450_v44, %v7446_v16 }
 0x822   :  { %5756 = vst [vmem:[#allocation19] sm:$0xff] %v5754_v45 }
 0x823   :  { %v7452_v31 = vpop.eup %7451 }
 0x824   :  { %v5755_v46 = vmul.f32 %v7452_v31, %v7448_v42 }
 0x826   :  { %5757 = vst [vmem:[#allocation19 + $0x8] sm:$0xff] %v5755_v46 }
 0x827   :  { %7684 = shalt.err (!%p7681_p0)
}
 0x828   :  { %s7685_s3 = scalar_lea.hbm %s8125_s11, 256 }
 0x829   :  { %p7686_p1 = scmp.ne.s32.totalorder %s8125_s11, %s7685_s3  ;;  %p7689_p2 = scmp.lt.u32.totalorder %s7685_s3, %s8125_s11 }
 0x82b   :  { %p7691_p3 = pnand %p7689_p2, %p7686_p1 }
 0x82d   :  { %7694 = shalt.err (!%p7691_p3)
}
 0x82e   :  { %5769 = dma.vmem_to_hbm [thread:$0]  %s5764_s17, 256, %s8125_s11, [#allocation4], %s7719_s8, %s7719_s8, %s7720_s29  }
 0x82f   :  { %7707 = dma.done.wait [#allocation4], 256  }
 0x830   :  { %7708 = vsyncadd [#allocation4], 4294967040 }
 0x831   :  { %5773 = vsyncpa [#allocation3], 1 }
 0x832   :  { %5774 = vsyncpa [#allocation6], 1 }
 0x833   :  { %5775 = vsyncpa [#allocation9], 1 }
 0x834   :  { %5776 = vsyncpa [#allocation12], 1 }
 0x835   :  { %5777 = vsyncpa [#allocation15], 1 }
 0x836   :  { %5778 = vsyncpa [#allocation18], 1 }
 0x837   :  { %5779 = vsyncpa [#allocation4], 1 }

// kernel: tpu_custom_call.1
= control target key start
LH: loop header
LB: loop body
LE: loop exit
PB: predicated region body
PF: predicated region fallthrough
CT: control target
= control target key end

     0   :  { %16 = vsyncpa [#allocation3], 0  ;;  %s8114_s0 = inlined_call_operand.hbm [shape: f32[16,128], index: 0, kind: input, shape index: {}]   ;;  %s8115_s1 = inlined_call_operand.hbm [shape: bf16[128,2048], index: 1, kind: input, shape index: {}]   ;;  %s8116_s2 = inlined_call_operand.hbm [shape: f32[1,2048], index: 2, kind: input, shape index: {}]   ;;  %s8117_s3 = inlined_call_operand.hbm [shape: bf16[2048,512], index: 3, kind: input, shape index: {}]   ;;  %s8118_s4 = inlined_call_operand.hbm [shape: f32[1,512], index: 4, kind: input, shape index: {}]   ;;  %s8119_s5 = inlined_call_operand.hbm [shape: bf16[512,128], index: 5, kind: input, shape index: {}]   ;;  %s8120_s6 = inlined_call_operand.hbm [shape: f32[1,128], index: 6, kind: input, shape index: {}]   ;;  %s8121_s7 = inlined_call_operand.vmem [shape: bf16[128,32], index: 7, kind: input, shape index: {}]   ;;  %s8122_s8 = inlined_call_operand.hbm [shape: f32[1,32], index: 8, kind: input, shape index: {}]   ;;  %s8123_s9 = inlined_call_operand.hbm [shape: bf16[32,128], index: 9, kind: input, shape index: {}]   ;;  %s8124_s10 = inlined_call_operand.hbm [shape: f32[1,128], index: 10, kind: input, shape index: {}]   ;;  %s8125_s11 = inlined_call_operand.hbm [shape: f32[16,128], index: 11, kind: output, shape index: {}]  }
   0x1   :  { %17 = vsyncpa [#allocation6], 0 }
   0x2   :  { %18 = vsyncpa [#allocation9], 0 }
   0x3   :  { %19 = vsyncpa [#allocation12], 0 }
   0x4   :  { %20 = vsyncpa [#allocation15], 0 }
   0x5   :  { %21 = vsyncpa [#allocation18], 0 }
   0x6   :  { %22 = vsyncpa [#allocation4], 0  ;;  %s7709_s17 = smov [#allocation5]   ;;  %s7453_s21 = scalar_lea.hbm %s8115_s1, 16384 }
   0x7   :  { %s40_s18 = sshll.u32 %s7709_s17, 4  ;;  %p7454_p0 = scmp.ne.s32.totalorder %s8115_s1, %s7453_s21  ;;  %s41_s18 = int_to_ptr.vmem [resolvable:$true] %s40_s18 }
   0x8   :  { %p7457_p1 = scmp.lt.u32.totalorder %s7453_s21, %s8115_s1 }
   0xa   :  { %p7459_p2 = pnand %p7457_p1, %p7454_p0 }
   0xc   :  { %7462 = shalt.err (!%p7459_p2)
}
   0xd   :  { %s7463_s26 = scalar_lea.vmem %s41_s18, 16384  ;;  %p7468_p4 = scmp.lt.s32.totalorder %s41_s18, %s41_s18 }
   0xe   :  { %p7464_p3 = scmp.ne.s32.totalorder %s41_s18, %s7463_s26  ;;  %p7469_p5 = scmp.lt.s32.totalorder %s7463_s26, %s7463_s26 }
  0x10   :  { %p7470_p6 = por %p7469_p5, %p7468_p4 }
  0x12   :  { %p7471_p7 = pnand %p7470_p6, %p7464_p3 }
  0x14   :  { %7474 = shalt.err (!%p7471_p7)
}
  0x15   :  { %s7710_s27 = smov 1024   ;;  %s7711_s28 = smov 64  }
  0x16   :  { %46 = dma.hbm_to_vmem [thread:$0]  %s8115_s1, 16384, %s41_s18, [#allocation6], %s7710_s27, %s7710_s27, %s7711_s28  }
  0x17   :  { %s7712_s12 = smov [#allocation8]   ;;  %s7475_s16 = scalar_lea.hbm %s8117_s3, 65536 }
  0x18   :  { %s62_s13 = sshll.u32 %s7712_s12, 4  ;;  %p7476_p8 = scmp.ne.s32.totalorder %s8117_s3, %s7475_s16  ;;  %s63_s13 = int_to_ptr.vmem [resolvable:$true] %s62_s13 }
  0x19   :  { %p7479_p9 = scmp.lt.u32.totalorder %s7475_s16, %s8117_s3 }
  0x1b   :  { %p7481_p10 = pnand %p7479_p9, %p7476_p8 }
  0x1d   :  { %7484 = shalt.err (!%p7481_p10)
}
  0x1e   :  { %s7485_s22 = scalar_lea.vmem %s63_s13, 65536  ;;  %p7490_p12 = scmp.lt.s32.totalorder %s63_s13, %s63_s13 }
  0x1f   :  { %p7486_p11 = scmp.ne.s32.totalorder %s63_s13, %s7485_s22  ;;  %p7491_p13 = scmp.lt.s32.totalorder %s7485_s22, %s7485_s22 }
  0x21   :  { %p7492_p0 = por %p7491_p13, %p7490_p12 }
  0x23   :  { %p7493_p1 = pnand %p7492_p0, %p7486_p11 }
  0x25   :  { %7496 = shalt.err (!%p7493_p1)
}
  0x26   :  { %s7713_s1 = smov 256   ;;  %s7714_s18 = smov 16  }
  0x27   :  { %68 = dma.hbm_to_vmem [thread:$0]  %s8117_s3, 65536, %s63_s13, [#allocation9], %s7713_s1, %s7713_s1, %s7714_s18  }
  0x28   :  { %s7715_s25 = smov [#allocation11]   ;;  %s7716_s27 = smov [#allocation14]  }
  0x29   :  { %s84_s26 = sshll.u32 %s7715_s25, 4  ;;  %s109_s29 = sshll.u32 %s7716_s27, 4  ;;  %s85_s26 = int_to_ptr.vmem [resolvable:$true] %s84_s26  ;;  %s110_s29 = int_to_ptr.vmem [resolvable:$true] %s109_s29 }
  0x2a   :  { %s7497_s14 = scalar_lea.hbm %s8119_s5, 4096 }
  0x2b   :  { %p7498_p2 = scmp.ne.s32.totalorder %s8119_s5, %s7497_s14  ;;  %p7501_p3 = scmp.lt.u32.totalorder %s7497_s14, %s8119_s5 }
  0x2d   :  { %p7503_p4 = pnand %p7501_p3, %p7498_p2 }
  0x2f   :  { %7506 = shalt.err (!%p7503_p4)
}
  0x30   :  { %s7507_s3 = scalar_lea.vmem %s85_s26, 4096  ;;  %p7512_p6 = scmp.lt.s32.totalorder %s85_s26, %s85_s26 }
  0x31   :  { %p7508_p5 = scmp.ne.s32.totalorder %s85_s26, %s7507_s3  ;;  %p7513_p7 = scmp.lt.s32.totalorder %s7507_s3, %s7507_s3 }
  0x33   :  { %p7514_p8 = por %p7513_p7, %p7512_p6 }
  0x35   :  { %p7515_p9 = pnand %p7514_p8, %p7508_p5 }
  0x37   :  { %7518 = shalt.err (!%p7515_p9)
}
  0x38   :  { %s7717_s13 = smov 4   ;;  %s7519_s18 = scalar_lea.hbm %s8122_s8, 16 }
  0x39   :  { %90 = dma.hbm_to_vmem [thread:$0]  %s8119_s5, 4096, %s85_s26, [#allocation12], %s7711_s28, %s7711_s28, %s7717_s13  }
  0x3a   :  { %p7520_p10 = scmp.ne.s32.totalorder %s8122_s8, %s7519_s18  ;;  %p7523_p11 = scmp.lt.u32.totalorder %s7519_s18, %s8122_s8 }
  0x3c   :  { %p7525_p12 = pnand %p7523_p11, %p7520_p10 }
  0x3e   :  { %7528 = shalt.err (!%p7525_p12)
}
  0x3f   :  { %s7529_s30 = scalar_lea.vmem %s110_s29, 16  ;;  %s7533_s12 = scalar_lea.vmem %s110_s29, 32 }
  0x40   :  { %p7530_p13 = scmp.ne.s32.totalorder %s110_s29, %s7529_s30  ;;  %p7534_p0 = scmp.lt.s32.totalorder %s110_s29, %s110_s29 }
  0x41   :  { %p7535_p1 = scmp.lt.s32.totalorder %s7533_s12, %s7529_s30 }
  0x43   :  { %p7536_p2 = por %p7535_p1, %p7534_p0 }
  0x45   :  { %p7537_p3 = pnand %p7536_p2, %p7530_p13 }
  0x47   :  { %7540 = shalt.err (!%p7537_p3)
}
  0x48   :  { %112 = dma.hbm_to_vmem [thread:$0]  %s8122_s8, 16, %s110_s29, [#allocation15]  }
  0x49   :  { %s7718_s14 = smov [#allocation2]   ;;  %s7541_s19 = scalar_lea.hbm %s8114_s0, 256 }
  0x4a   :  { %s28_s15 = sshll.u32 %s7718_s14, 4  ;;  %p7542_p4 = scmp.ne.s32.totalorder %s8114_s0, %s7541_s19  ;;  %s29_s15 = int_to_ptr.vmem [resolvable:$true] %s28_s15 }
  0x4b   :  { %p7545_p5 = scmp.lt.u32.totalorder %s7541_s19, %s8114_s0 }
  0x4d   :  { %p7547_p6 = pnand %p7545_p5, %p7542_p4 }
  0x4f   :  { %7550 = shalt.err (!%p7547_p6)
}
  0x50   :  { %s7551_s1 = scalar_lea.vmem %s29_s15, 256  ;;  %p7556_p8 = scmp.lt.s32.totalorder %s29_s15, %s29_s15 }
  0x51   :  { %p7552_p7 = scmp.ne.s32.totalorder %s29_s15, %s7551_s1  ;;  %p7557_p9 = scmp.lt.s32.totalorder %s7551_s1, %s7551_s1 }
  0x53   :  { %p7558_p10 = por %p7557_p9, %p7556_p8 }
  0x55   :  { %p7559_p11 = pnand %p7558_p10, %p7552_p7 }
  0x57   :  { %7562 = shalt.err (!%p7559_p11)
}
  0x58   :  { %s7719_s8 = smov 128   ;;  %s7720_s29 = smov 8  }
  0x59   :  { %34 = dma.hbm_to_vmem [thread:$0]  %s8114_s0, 256, %s29_s15, [#allocation3], %s7719_s8, %s7719_s8, %s7720_s29  }
  0x5a   :  { %s7721_s24 = smov [#allocation7]   ;;  %s7722_s27 = smov [#allocation10]  }
  0x5b   :  { %s53_s25 = sshll.u32 %s7721_s24, 4  ;;  %s75_s30 = sshll.u32 %s7722_s27, 4  ;;  %s54_s25 = int_to_ptr.vmem [resolvable:$true] %s53_s25  ;;  %s76_s30 = int_to_ptr.vmem [resolvable:$true] %s75_s30 }
  0x5c   :  { %s7563_s26 = scalar_lea.hbm %s8116_s2, 256 }
  0x5d   :  { %p7564_p12 = scmp.ne.s32.totalorder %s8116_s2, %s7563_s26  ;;  %p7567_p13 = scmp.lt.u32.totalorder %s7563_s26, %s8116_s2 }
  0x5f   :  { %p7569_p0 = pnand %p7567_p13, %p7564_p12 }
  0x61   :  { %7572 = shalt.err (!%p7569_p0)
}
  0x62   :  { %s7573_s0 = scalar_lea.vmem %s54_s25, 256  ;;  %p7578_p2 = scmp.lt.s32.totalorder %s54_s25, %s54_s25 }
  0x63   :  { %p7574_p1 = scmp.ne.s32.totalorder %s54_s25, %s7573_s0  ;;  %p7579_p3 = scmp.lt.s32.totalorder %s7573_s0, %s7573_s0 }
  0x65   :  { %p7580_p4 = por %p7579_p3, %p7578_p2 }
  0x67   :  { %p7581_p5 = pnand %p7580_p4, %p7574_p1 }
  0x69   :  { %7584 = shalt.err (!%p7581_p5)
}
  0x6a   :  { %56 = dma.hbm_to_vmem [thread:$0]  %s8116_s2, 256, %s54_s25, [#allocation6]  }
  0x6b   :  { %s7585_s22 = scalar_lea.hbm %s8118_s4, 64 }
  0x6c   :  { %p7586_p6 = scmp.ne.s32.totalorder %s8118_s4, %s7585_s22  ;;  %p7589_p7 = scmp.lt.u32.totalorder %s7585_s22, %s8118_s4 }
  0x6e   :  { %p7591_p8 = pnand %p7589_p7, %p7586_p6 }
  0x70   :  { %7594 = shalt.err (!%p7591_p8)
}
  0x71   :  { %s7595_s27 = scalar_lea.vmem %s76_s30, 64  ;;  %p7600_p10 = scmp.lt.s32.totalorder %s76_s30, %s76_s30 }
  0x72   :  { %p7596_p9 = scmp.ne.s32.totalorder %s76_s30, %s7595_s27  ;;  %p7601_p11 = scmp.lt.s32.totalorder %s7595_s27, %s7595_s27 }
  0x74   :  { %p7602_p12 = por %p7601_p11, %p7600_p10 }
  0x76   :  { %p7603_p13 = pnand %p7602_p12, %p7596_p9 }
  0x78   :  { %7606 = shalt.err (!%p7603_p13)
}
  0x79   :  { %78 = dma.hbm_to_vmem [thread:$0]  %s8118_s4, 64, %s76_s30, [#allocation9]  }
  0x7a   :  { %s7723_s12 = smov [#allocation13]   ;;  %s7724_s26 = smov [#allocation16]  }
  0x7b   :  { %s97_s5 = sshll.u32 %s7723_s12, 4  ;;  %s118_s14 = sshll.u32 %s7724_s26, 4  ;;  %s98_s5 = int_to_ptr.vmem [resolvable:$true] %s97_s5  ;;  %s7881_s14 = int_to_ptr.vmem [resolvable:$true] %s118_s14 }
  0x7c   :  { %s7607_s19 = scalar_lea.hbm %s8120_s6, 16 }
  0x7d   :  { %p7608_p0 = scmp.ne.s32.totalorder %s8120_s6, %s7607_s19  ;;  %p7611_p1 = scmp.lt.u32.totalorder %s7607_s19, %s8120_s6 }
  0x7f   :  { %p7613_p2 = pnand %p7611_p1, %p7608_p0 }
  0x81   :  { %7616 = shalt.err (!%p7613_p2)
}
  0x82   :  { %s7617_s4 = scalar_lea.vmem %s98_s5, 16  ;;  %s7621_s30 = scalar_lea.vmem %s98_s5, 32 }
  0x83   :  { %p7618_p3 = scmp.ne.s32.totalorder %s98_s5, %s7617_s4  ;;  %p7622_p4 = scmp.lt.s32.totalorder %s98_s5, %s98_s5 }
  0x84   :  { %p7623_p5 = scmp.lt.s32.totalorder %s7621_s30, %s7617_s4 }
  0x86   :  { %p7624_p6 = por %p7623_p5, %p7622_p4 }
  0x88   :  { %p7625_p7 = pnand %p7624_p6, %p7618_p3 }
  0x8a   :  { %7628 = shalt.err (!%p7625_p7)
}
  0x8b   :  { %100 = dma.hbm_to_vmem [thread:$0]  %s8120_s6, 16, %s98_s5, [#allocation12]  }
  0x8c   :  { %s7629_s23 = scalar_lea.hbm %s8123_s9, 256 }
  0x8d   :  { %p7630_p8 = scmp.ne.s32.totalorder %s8123_s9, %s7629_s23  ;;  %p7633_p9 = scmp.lt.u32.totalorder %s7629_s23, %s8123_s9 }
  0x8f   :  { %p7635_p10 = pnand %p7633_p9, %p7630_p8 }
  0x91   :  { %7638 = shalt.err (!%p7635_p10)
}
  0x92   :  { %s7639_s12 = scalar_lea.vmem %s7881_s14, 256  ;;  %p7644_p12 = scmp.lt.s32.totalorder %s7881_s14, %s7881_s14 }
  0x93   :  { %p7640_p11 = scmp.ne.s32.totalorder %s7881_s14, %s7639_s12  ;;  %p7645_p13 = scmp.lt.s32.totalorder %s7639_s12, %s7639_s12 }
  0x95   :  { %p7646_p0 = por %p7645_p13, %p7644_p12 }
  0x97   :  { %p7647_p1 = pnand %p7646_p0, %p7640_p11 }
  0x99   :  { %7650 = shalt.err (!%p7647_p1)
}
  0x9a   :  { %124 = dma.hbm_to_vmem [thread:$0]  %s8123_s9, 256, %s7881_s14, [#allocation15], %s7711_s28, %s7711_s28, %s7717_s13  }
  0x9b   :  { %s7725_s26 = smov [#allocation17]   ;;  %s7651_s0 = scalar_lea.hbm %s8124_s10, 16 }
  0x9c   :  { %s131_s16 = sshll.u32 %s7725_s26, 4  ;;  %p7652_p2 = scmp.ne.s32.totalorder %s8124_s10, %s7651_s0  ;;  %s132_s16 = int_to_ptr.vmem [resolvable:$true] %s131_s16 }
  0x9d   :  { %p7655_p3 = scmp.lt.u32.totalorder %s7651_s0, %s8124_s10 }
  0x9f   :  { %p7657_p4 = pnand %p7655_p3, %p7652_p2 }
  0xa1   :  { %7660 = shalt.err (!%p7657_p4)
}
  0xa2   :  { %s7661_s30 = scalar_lea.vmem %s132_s16, 16  ;;  %s7665_s9 = scalar_lea.vmem %s132_s16, 32 }
  0xa3   :  { %p7662_p5 = scmp.ne.s32.totalorder %s132_s16, %s7661_s30  ;;  %p7666_p6 = scmp.lt.s32.totalorder %s132_s16, %s132_s16 }
  0xa4   :  { %p7667_p7 = scmp.lt.s32.totalorder %s7665_s9, %s7661_s30 }
  0xa6   :  { %p7668_p8 = por %p7667_p7, %p7666_p6 }
  0xa8   :  { %p7669_p9 = pnand %p7668_p8, %p7662_p5 }
  0xaa   :  { %7672 = shalt.err (!%p7669_p9)
}
  0xab   :  { %134 = dma.hbm_to_vmem [thread:$0]  %s8124_s10, 16, %s132_s16, [#allocation18]  }
  0xac   :  { %7695 = dma.done.wait [#allocation3], 256  }
  0xad   :  { %7696 = vsyncadd [#allocation3], 4294967040 }
  0xae   :  { %7697 = dma.done.wait [#allocation6], 16640  }
  0xaf   :  { %7698 = vsyncadd [#allocation6], 4294950656 }
  0xb0   :  { %7699 = dma.done.wait [#allocation9], 65600  }
  0xb1   :  { %7700 = vsyncadd [#allocation9], 4294901696 }
  0xb2   :  { %7701 = dma.done.wait [#allocation12], 4112  }
  0xb3   :  { %7702 = vsyncadd [#allocation12], 4294963184 }
  0xb4   :  { %7703 = dma.done.wait [#allocation15], 272  }
  0xb5   :  { %7704 = vsyncadd [#allocation15], 4294967024 }
  0xb6   :  { %7705 = dma.done.wait [#allocation18], 16  }
  0xb7   :  { %7706 = vsyncadd [#allocation18], 4294967280  ;;  %v7726_v0 = vmov 0   ;;  %v169_v1 = vld [vmem:[#allocation5] sm:$0xff]  ;;  %v170_v14 = vld [vmem:[#allocation5 + $0x8] sm:$0xff]  ;;  %vm7728_vm0 = vmmov 0  }
  0xb8   :  { %1053 = vmatprep.mubr.bf16.mxu0 %v7726_v0  ;;  %1096 = vmatprep.mubr.bf16.mxu1 %v7726_v0  ;;  %v177_v2 = vld [vmem:[#allocation5 + $0x40] sm:$0xff]  ;;  %v178_v15 = vld [vmem:[#allocation5 + $0x48] sm:$0xff]  ;;  %v171_v58 = vld [vmem:[#allocation5 + $0x10] sm:$0xff]  ;;  %vm5693_vm1 = vcmask 261120  }
  0xb9   :  { %v185_v3 = vld [vmem:[#allocation5 + $0x80] sm:$0xff]  ;;  %v5781_v4 = vcombine.high %v169_v1, %v177_v2  ;;  %v5780_v5 = vcombine.low %v169_v1, %v177_v2  ;;  %v186_v16 = vld [vmem:[#allocation5 + $0x88] sm:$0xff]  ;;  %v5783_v17 = vcombine.high %v170_v14, %v178_v15  ;;  %v5782_v18 = vcombine.low %v170_v14, %v178_v15  ;;  %v179_v59 = vld [vmem:[#allocation5 + $0x50] sm:$0xff] }
  0xba   :  { %v193_v6 = vld [vmem:[#allocation5 + $0xc0] sm:$0xff]  ;;  %v194_v19 = vld [vmem:[#allocation5 + $0xc8] sm:$0xff]  ;;  %v166_v60 = vld [vmem:[#allocation2] sm:$0xff] }
  0xbb   :  { %v5797_v7 = vcombine.high %v185_v3, %v193_v6  ;;  %v201_v8 = vld [vmem:[#allocation5 + $0x100] sm:$0xff]  ;;  %1021 = vmatprep.subr.bf16.mxu0 %v5781_v4  ;;  %v5796_v10 = vcombine.low %v185_v3, %v193_v6  ;;  %v5799_v21 = vcombine.high %v186_v16, %v194_v19  ;;  %v202_v22 = vld [vmem:[#allocation5 + $0x108] sm:$0xff]  ;;  %1064 = vmatprep.subr.bf16.mxu1 %v5783_v17  ;;  %v167_v63 = vld [vmem:[#allocation2 + $0x8] sm:$0xff] }
  0xbc   :  { %v209_v9 = vld [vmem:[#allocation5 + $0x140] sm:$0xff]  ;;  %1022 = vmatpush1.bf16.msra.mxu0 %v5780_v5  ;;  %v210_v23 = vld [vmem:[#allocation5 + $0x148] sm:$0xff]  ;;  %1065 = vmatpush1.bf16.msra.mxu1 %v5782_v18  ;;  %v5798_v27 = vcombine.low %v186_v16, %v194_v19  ;;  %v5785_v3 = vcombine.high %v171_v58, %v179_v59  ;;  %v187_v5 = vld [vmem:[#allocation5 + $0x90] sm:$0xff] }
  0xbd   :  { %1023 = vmatprep.subr.bf16.mxu0 %v5797_v7  ;;  %v5813_v11 = vcombine.high %v201_v8, %v209_v9  ;;  %v217_v12 = vld [vmem:[#allocation5 + $0x180] sm:$0xff]  ;;  %v5812_v20 = vcombine.low %v201_v8, %v209_v9  ;;  %1066 = vmatprep.subr.bf16.mxu1 %v5799_v21  ;;  %v5815_v28 = vcombine.high %v202_v22, %v210_v23  ;;  %v218_v30 = vld [vmem:[#allocation5 + $0x188] sm:$0xff]  ;;  %v195_v6 = vld [vmem:[#allocation5 + $0xd0] sm:$0xff] }
  0xbe   :  { %v225_v13 = vld [vmem:[#allocation5 + $0x1c0] sm:$0xff]  ;;  %v226_v31 = vld [vmem:[#allocation5 + $0x1c8] sm:$0xff]  ;;  %v5814_v35 = vcombine.low %v202_v22, %v210_v23  ;;  %v7929_v7 = vpack.c.bf16 %v167_v63, %v166_v60  ;;  %v5784_v9 = vcombine.low %v171_v58, %v179_v59  ;;  %v203_v14 = vld [vmem:[#allocation5 + $0x110] sm:$0xff]  ;;  %v5800_v17 = vcombine.low %v187_v5, %v195_v6 }
  0xbf   :  { %v5829_v24 = vcombine.high %v217_v12, %v225_v13  ;;  %v233_v25 = vld [vmem:[#allocation5 + $0x200] sm:$0xff]  ;;  %v5828_v29 = vcombine.low %v217_v12, %v225_v13  ;;  %v5831_v36 = vcombine.high %v218_v30, %v226_v31  ;;  %v234_v38 = vld [vmem:[#allocation5 + $0x208] sm:$0xff]  ;;  %v5830_v43 = vcombine.low %v218_v30, %v226_v31  ;;  %v211_v15 = vld [vmem:[#allocation5 + $0x150] sm:$0xff] }
  0xc0   :  { %1024 = vmatpush1.bf16.msra.mxu0 %v5796_v10  ;;  %v241_v26 = vld [vmem:[#allocation5 + $0x240] sm:$0xff]  ;;  %1067 = vmatpush1.bf16.msra.mxu1 %v5798_v27  ;;  %v242_v39 = vld [vmem:[#allocation5 + $0x248] sm:$0xff]  ;;  %v172_v10 = vld [vmem:[#allocation5 + $0x18] sm:$0xff]  ;;  %v5801_v12 = vcombine.high %v187_v5, %v195_v6 }
  0xc1   :  { %1025 = vmatprep.subr.bf16.mxu0 %v5813_v11  ;;  %v5845_v32 = vcombine.high %v233_v25, %v241_v26  ;;  %v249_v33 = vld [vmem:[#allocation5 + $0x280] sm:$0xff]  ;;  %1068 = vmatprep.subr.bf16.mxu1 %v5815_v28  ;;  %v5844_v37 = vcombine.low %v233_v25, %v241_v26  ;;  %v5847_v44 = vcombine.high %v234_v38, %v242_v39  ;;  %v250_v46 = vld [vmem:[#allocation5 + $0x288] sm:$0xff]  ;;  %v180_v11 = vld [vmem:[#allocation5 + $0x58] sm:$0xff] }
  0xc2   :  { %v257_v34 = vld [vmem:[#allocation5 + $0x2c0] sm:$0xff]  ;;  %v258_v47 = vld [vmem:[#allocation5 + $0x2c8] sm:$0xff]  ;;  %v5846_v51 = vcombine.low %v234_v38, %v242_v39  ;;  %v5787_v16 = vcombine.high %v172_v10, %v180_v11  ;;  %v188_v18 = vld [vmem:[#allocation5 + $0x98] sm:$0xff]  ;;  %v5786_v21 = vcombine.low %v172_v10, %v180_v11  ;;  %v5816_v25 = vcombine.low %v203_v14, %v211_v15 }
  0xc3   :  { %v5861_v40 = vcombine.high %v249_v33, %v257_v34  ;;  %v265_v41 = vld [vmem:[#allocation5 + $0x300] sm:$0xff]  ;;  %v5860_v45 = vcombine.low %v249_v33, %v257_v34  ;;  %v5863_v52 = vcombine.high %v250_v46, %v258_v47  ;;  %v266_v54 = vld [vmem:[#allocation5 + $0x308] sm:$0xff]  ;;  %v5862_v57 = vcombine.low %v250_v46, %v258_v47  ;;  %v196_v19 = vld [vmem:[#allocation5 + $0xd8] sm:$0xff] }
  0xc4   :  { %1026 = vmatpush1.bf16.msra.mxu0 %v5812_v20  ;;  %v273_v42 = vld [vmem:[#allocation5 + $0x340] sm:$0xff]  ;;  %1069 = vmatpush1.bf16.msra.mxu1 %v5814_v35  ;;  %v274_v55 = vld [vmem:[#allocation5 + $0x348] sm:$0xff]  ;;  %v5817_v20 = vcombine.high %v203_v14, %v211_v15  ;;  %v219_v22 = vld [vmem:[#allocation5 + $0x190] sm:$0xff] }
  0xc5   :  { %1027 = vmatprep.subr.bf16.mxu0 %v5829_v24  ;;  %1070 = vmatprep.subr.bf16.mxu1 %v5831_v36  ;;  %v5877_v48 = vcombine.high %v265_v41, %v273_v42  ;;  %v281_v49 = vld [vmem:[#allocation5 + $0x380] sm:$0xff]  ;;  %v5876_v53 = vcombine.low %v265_v41, %v273_v42  ;;  %v5879_v61 = vcombine.high %v266_v54, %v274_v55  ;;  %v282_v1 = vld [vmem:[#allocation5 + $0x388] sm:$0xff]  ;;  %v227_v23 = vld [vmem:[#allocation5 + $0x1d0] sm:$0xff] }
  0xc6   :  { %v289_v50 = vld [vmem:[#allocation5 + $0x3c0] sm:$0xff]  ;;  %v290_v2 = vld [vmem:[#allocation5 + $0x3c8] sm:$0xff]  ;;  %v5878_v4 = vcombine.low %v266_v54, %v274_v55  ;;  %v5803_v24 = vcombine.high %v188_v18, %v196_v19  ;;  %v204_v26 = vld [vmem:[#allocation5 + $0x118] sm:$0xff]  ;;  %v5833_v28 = vcombine.high %v219_v22, %v227_v23  ;;  %v5832_v33 = vcombine.low %v219_v22, %v227_v23 }
  0xc7   :  { %v5893_v56 = vcombine.high %v281_v49, %v289_v50  ;;  %v5892_v62 = vcombine.low %v281_v49, %v289_v50  ;;  %v5895_v8 = vcombine.high %v282_v1, %v290_v2  ;;  %v5894_v13 = vcombine.low %v282_v1, %v290_v2  ;;  %v212_v27 = vld [vmem:[#allocation5 + $0x158] sm:$0xff]  ;;  %v235_v30 = vld [vmem:[#allocation5 + $0x210] sm:$0xff]  ;;  %v181_v63 = vld [vmem:[#allocation5 + $0x60] sm:$0xff] }
  0xc8   :  { %1028 = vmatpush1.bf16.msra.mxu0 %v5828_v29  ;;  %1071 = vmatpush1.bf16.msra.mxu1 %v5830_v43  ;;  %v5802_v29 = vcombine.low %v188_v18, %v196_v19  ;;  %v243_v31 = vld [vmem:[#allocation5 + $0x250] sm:$0xff]  ;;  %v220_v34 = vld [vmem:[#allocation5 + $0x198] sm:$0xff]  ;;  %v5818_v38 = vcombine.low %v204_v26, %v212_v27  ;;  %v189_v6 = vld [vmem:[#allocation5 + $0xa0] sm:$0xff] }
  0xc9   :  { %1029 = vmatprep.subr.bf16.mxu0 %v5845_v32  ;;  %1072 = vmatprep.subr.bf16.mxu1 %v5847_v44  ;;  %v5819_v32 = vcombine.high %v204_v26, %v212_v27  ;;  %v228_v35 = vld [vmem:[#allocation5 + $0x1d8] sm:$0xff]  ;;  %v5849_v36 = vcombine.high %v235_v30, %v243_v31  ;;  %v259_v39 = vld [vmem:[#allocation5 + $0x2d0] sm:$0xff]  ;;  %v5848_v41 = vcombine.low %v235_v30, %v243_v31  ;;  %v205_v15 = vld [vmem:[#allocation5 + $0x120] sm:$0xff] }
  0xca   :  { %v236_v42 = vld [vmem:[#allocation5 + $0x218] sm:$0xff]  ;;  %v5834_v46 = vcombine.low %v220_v34, %v228_v35  ;;  %v275_v47 = vld [vmem:[#allocation5 + $0x350] sm:$0xff]  ;;  %v221_v23 = vld [vmem:[#allocation5 + $0x1a0] sm:$0xff] }
  0xcb   :  { %v244_v43 = vld [vmem:[#allocation5 + $0x258] sm:$0xff]  ;;  %v291_v55 = vld [vmem:[#allocation5 + $0x3d0] sm:$0xff]  ;;  %v237_v31 = vld [vmem:[#allocation5 + $0x220] sm:$0xff] }
  0xcc   :  { %1030 = vmatpush1.bf16.msra.mxu0 %v5844_v37  ;;  %1073 = vmatpush1.bf16.msra.mxu1 %v5846_v51  ;;  %v251_v37 = vld [vmem:[#allocation5 + $0x290] sm:$0xff]  ;;  %v252_v50 = vld [vmem:[#allocation5 + $0x298] sm:$0xff]  ;;  %v5850_v54 = vcombine.low %v236_v42, %v244_v43 }
  0xcd   :  { %1031 = vmatprep.subr.bf16.mxu0 %v5861_v40  ;;  %1074 = vmatprep.subr.bf16.mxu1 %v5863_v52  ;;  %v5835_v40 = vcombine.high %v220_v34, %v228_v35  ;;  %v5865_v44 = vcombine.high %v251_v37, %v259_v39  ;;  %v5864_v49 = vcombine.low %v251_v37, %v259_v39  ;;  %v260_v51 = vld [vmem:[#allocation5 + $0x2d8] sm:$0xff]  ;;  %v230_v37 = vld [vmem:[#allocation5 + $0x1e8] sm:$0xff]  ;;  %v253_v39 = vld [vmem:[#allocation5 + $0x2a0] sm:$0xff] }
  0xce   :  { %v268_v58 = vld [vmem:[#allocation5 + $0x318] sm:$0xff] }
  0xcf   :  { %v276_v59 = vld [vmem:[#allocation5 + $0x358] sm:$0xff] }
  0xd0   :  { %1032 = vmatpush1.bf16.msra.mxu0 %v5860_v45  ;;  %1075 = vmatpush1.bf16.msra.mxu1 %v5862_v57  ;;  %v267_v45 = vld [vmem:[#allocation5 + $0x310] sm:$0xff]  ;;  %v5883_v1 = vcombine.high %v268_v58, %v276_v59 }
  0xd1   :  { %1033 = vmatprep.subr.bf16.mxu0 %v5877_v48  ;;  %1076 = vmatprep.subr.bf16.mxu1 %v5879_v61  ;;  %v5851_v48 = vcombine.high %v236_v42, %v244_v43  ;;  %v5881_v52 = vcombine.high %v267_v45, %v275_v47  ;;  %v5880_v57 = vcombine.low %v267_v45, %v275_v47  ;;  %v173_v61 = vld [vmem:[#allocation5 + $0x20] sm:$0xff]  ;;  %v238_v43 = vld [vmem:[#allocation5 + $0x228] sm:$0xff] }
  0xd2   :  { %v5789_v5 = vcombine.high %v173_v61, %v181_v63  ;;  %v5788_v11 = vcombine.low %v173_v61, %v181_v63  ;;  %v246_v45 = vld [vmem:[#allocation5 + $0x268] sm:$0xff]  ;;  %v277_v47 = vld [vmem:[#allocation5 + $0x360] sm:$0xff]  ;;  %v183_v63 = vld [vmem:[#allocation5 + $0x70] sm:$0xff] }
  0xd4   :  { %1034 = vmatpush1.bf16.msra.mxu0 %v5876_v53  ;;  %1077 = vmatpush1.bf16.msra.mxu1 %v5878_v4  ;;  %v283_v53 = vld [vmem:[#allocation5 + $0x390] sm:$0xff]  ;;  %v292_v4 = vld [vmem:[#allocation5 + $0x3d8] sm:$0xff] }
  0xd5   :  { %1035 = vmatprep.subr.bf16.mxu0 %v5893_v56  ;;  %1078 = vmatprep.subr.bf16.mxu1 %v5895_v8  ;;  %v5867_v56 = vcombine.high %v252_v50, %v260_v51  ;;  %v5897_v60 = vcombine.high %v283_v53, %v291_v55  ;;  %v5896_v2 = vcombine.low %v283_v53, %v291_v55  ;;  %v293_v55 = vld [vmem:[#allocation5 + $0x3e0] sm:$0xff] }
  0xd6   :  { %v5882_v8 = vcombine.low %v268_v58, %v276_v59  ;;  %v270_v58 = vld [vmem:[#allocation5 + $0x328] sm:$0xff] }
  0xd7   :  { %v278_v59 = vld [vmem:[#allocation5 + $0x368] sm:$0xff] }
  0xd8   :  { %1036 = vmatpush1.bf16.msra.mxu0 %v5892_v62  ;;  %1079 = vmatpush1.bf16.msra.mxu1 %v5894_v13  ;;  %v5866_v62 = vcombine.low %v252_v50, %v260_v51  ;;  %v182_v13 = vld [vmem:[#allocation5 + $0x68] sm:$0xff] }
  0xd9   :  { %1107 = vmatprep.subr.bf16.mxu0 %v5785_v3  ;;  %1150 = vmatprep.subr.bf16.mxu1 %v5787_v16  ;;  %v284_v3 = vld [vmem:[#allocation5 + $0x398] sm:$0xff]  ;;  %v254_v50 = vld [vmem:[#allocation5 + $0x2a8] sm:$0xff] }
  0xda   :  { %v5899_v10 = vcombine.high %v284_v3, %v292_v4  ;;  %v5898_v16 = vcombine.low %v284_v3, %v292_v4  ;;  %v262_v51 = vld [vmem:[#allocation5 + $0x2e8] sm:$0xff] }
  0xdb   :  { %1054 = vmatmul.mubr.bf16.vlgmr.msra.gmra.mrb[0].mxu0 %v7929_v7  ;;  %1097 = vmatmul.mubr.bf16.vlgmr.msra.gmra.mrb[0].mxu1 %v7929_v7  ;;  %v286_v3 = vld [vmem:[#allocation5 + $0x3a8] sm:$0xff] }
  0xdc   :  { %1108 = vmatpush1.bf16.msra.mxu0 %v5784_v9  ;;  %1139 = vmatprep.mubr.bf16.mxu0 %v7726_v0  ;;  %v197_v9 = vld [vmem:[#allocation5 + $0xe0] sm:$0xff]  ;;  %v294_v4 = vld [vmem:[#allocation5 + $0x3e8] sm:$0xff] }
  0xdd   :  { %1109 = vmatprep.subr.bf16.mxu0 %v5801_v12  ;;  %1151 = vmatpush1.bf16.msra.mxu1 %v5786_v21  ;;  %v174_v12 = vld [vmem:[#allocation5 + $0x28] sm:$0xff]  ;;  %v5805_v14 = vcombine.high %v189_v6, %v197_v9  ;;  %v5804_v19 = vcombine.low %v189_v6, %v197_v9  ;;  %v199_v9 = vld [vmem:[#allocation5 + $0xf0] sm:$0xff] }
  0xde   :  { %1182 = vmatprep.mubr.bf16.mxu1 %v7726_v0  ;;  %1152 = vmatprep.subr.bf16.mxu1 %v5803_v24  ;;  %v5791_v18 = vcombine.high %v174_v12, %v182_v13  ;;  %v198_v21 = vld [vmem:[#allocation5 + $0xe8] sm:$0xff]  ;;  %v5790_v24 = vcombine.low %v174_v12, %v182_v13  ;;  %v176_v12 = vld [vmem:[#allocation5 + $0x38] sm:$0xff] }
  0xdf   :  { %v184_v13 = vld [vmem:[#allocation5 + $0x78] sm:$0xff] }
  0xe0   :  { %1110 = vmatpush1.bf16.msra.mxu0 %v5800_v17  ;;  %v213_v17 = vld [vmem:[#allocation5 + $0x160] sm:$0xff] }
  0xe1   :  { %1111 = vmatprep.subr.bf16.mxu0 %v5817_v20  ;;  %1153 = vmatpush1.bf16.msra.mxu1 %v5802_v29  ;;  %v190_v20 = vld [vmem:[#allocation5 + $0xa8] sm:$0xff]  ;;  %v5821_v22 = vcombine.high %v205_v15, %v213_v17  ;;  %v5820_v27 = vcombine.low %v205_v15, %v213_v17  ;;  %v215_v17 = vld [vmem:[#allocation5 + $0x170] sm:$0xff] }
  0xe2   :  { %1154 = vmatprep.subr.bf16.mxu1 %v5819_v32  ;;  %v5807_v26 = vcombine.high %v190_v20, %v198_v21  ;;  %v214_v29 = vld [vmem:[#allocation5 + $0x168] sm:$0xff]  ;;  %v5806_v32 = vcombine.low %v190_v20, %v198_v21  ;;  %v192_v20 = vld [vmem:[#allocation5 + $0xb8] sm:$0xff] }
  0xe3   :  { %v200_v21 = vld [vmem:[#allocation5 + $0xf8] sm:$0xff] }
  0xe4   :  { %1112 = vmatpush1.bf16.msra.mxu0 %v5816_v25  ;;  %v229_v25 = vld [vmem:[#allocation5 + $0x1e0] sm:$0xff] }
  0xe5   :  { %1113 = vmatprep.subr.bf16.mxu0 %v5833_v28  ;;  %1155 = vmatpush1.bf16.msra.mxu1 %v5818_v38  ;;  %v206_v28 = vld [vmem:[#allocation5 + $0x128] sm:$0xff]  ;;  %v5837_v30 = vcombine.high %v221_v23, %v229_v25  ;;  %v5836_v35 = vcombine.low %v221_v23, %v229_v25  ;;  %v231_v25 = vld [vmem:[#allocation5 + $0x1f0] sm:$0xff] }
  0xe6   :  { %1156 = vmatprep.subr.bf16.mxu1 %v5835_v40  ;;  %v5823_v34 = vcombine.high %v206_v28, %v214_v29  ;;  %v5822_v40 = vcombine.low %v206_v28, %v214_v29  ;;  %v208_v28 = vld [vmem:[#allocation5 + $0x138] sm:$0xff] }
  0xe7   :  { %v216_v29 = vld [vmem:[#allocation5 + $0x178] sm:$0xff] }
  0xe8   :  { %1114 = vmatpush1.bf16.msra.mxu0 %v5832_v33  ;;  %v245_v33 = vld [vmem:[#allocation5 + $0x260] sm:$0xff] }
  0xe9   :  { %1115 = vmatprep.subr.bf16.mxu0 %v5849_v36  ;;  %1157 = vmatpush1.bf16.msra.mxu1 %v5834_v46  ;;  %v222_v36 = vld [vmem:[#allocation5 + $0x1a8] sm:$0xff]  ;;  %v5853_v38 = vcombine.high %v237_v31, %v245_v33  ;;  %v269_v46 = vld [vmem:[#allocation5 + $0x320] sm:$0xff] }
  0xea   :  { %1158 = vmatprep.subr.bf16.mxu1 %v5851_v48  ;;  %v5839_v42 = vcombine.high %v222_v36, %v230_v37  ;;  %v5884_v61 = vcombine.low %v269_v46, %v277_v47 }
  0xec   :  { %1116 = vmatpush1.bf16.msra.mxu0 %v5848_v41  ;;  %v261_v41 = vld [vmem:[#allocation5 + $0x2e0] sm:$0xff] }
  0xed   :  { %1117 = vmatprep.subr.bf16.mxu0 %v5865_v44  ;;  %1159 = vmatpush1.bf16.msra.mxu1 %v5850_v54  ;;  %v5852_v44 = vcombine.low %v237_v31, %v245_v33  ;;  %v5869_v48 = vcombine.high %v253_v39, %v261_v41  ;;  %v5868_v53 = vcombine.low %v253_v39, %v261_v41  ;;  %v285_v54 = vld [vmem:[#allocation5 + $0x3a0] sm:$0xff]  ;;  %v247_v33 = vld [vmem:[#allocation5 + $0x270] sm:$0xff] }
  0xee   :  { %1160 = vmatprep.subr.bf16.mxu1 %v5867_v56  ;;  %v5885_v56 = vcombine.high %v269_v46, %v277_v47  ;;  %v5900_v6 = vcombine.low %v285_v54, %v293_v55  ;;  %v263_v41 = vld [vmem:[#allocation5 + $0x2f0] sm:$0xff] }
  0xf0   :  { %1118 = vmatpush1.bf16.msra.mxu0 %v5864_v49  ;;  %v5838_v49 = vcombine.low %v222_v36, %v230_v37  ;;  %v224_v36 = vld [vmem:[#allocation5 + $0x1b8] sm:$0xff] }
  0xf1   :  { %1119 = vmatprep.subr.bf16.mxu0 %v5881_v52  ;;  %1161 = vmatpush1.bf16.msra.mxu1 %v5866_v62  ;;  %v5855_v52 = vcombine.high %v238_v43, %v246_v45  ;;  %v175_v62 = vld [vmem:[#allocation5 + $0x30] sm:$0xff]  ;;  %v232_v37 = vld [vmem:[#allocation5 + $0x1f8] sm:$0xff] }
  0xf2   :  { %1162 = vmatprep.subr.bf16.mxu1 %v5883_v1  ;;  %v5901_v1 = vcombine.high %v285_v54, %v293_v55  ;;  %v5792_v15 = vcombine.low %v175_v62, %v183_v63  ;;  %v5843_v46 = vcombine.high %v224_v36, %v232_v37 }
  0xf4   :  { %1120 = vmatpush1.bf16.msra.mxu0 %v5880_v57  ;;  %v5854_v57 = vcombine.low %v238_v43, %v246_v45  ;;  %v5826_v43 = vcombine.low %v208_v28, %v216_v29  ;;  %v248_v45 = vld [vmem:[#allocation5 + $0x278] sm:$0xff] }
  0xf5   :  { %1121 = vmatprep.subr.bf16.mxu0 %v5897_v60  ;;  %1163 = vmatpush1.bf16.msra.mxu1 %v5882_v8  ;;  %v5871_v60 = vcombine.high %v254_v50, %v262_v51  ;;  %v191_v8 = vld [vmem:[#allocation5 + $0xb0] sm:$0xff] }
  0xf6   :  { %1164 = vmatprep.subr.bf16.mxu1 %v5899_v10  ;;  %v5793_v10 = vcombine.high %v175_v62, %v183_v63  ;;  %v5808_v23 = vcombine.low %v191_v8, %v199_v9 }
  0xf8   :  { %1122 = vmatpush1.bf16.msra.mxu0 %v5896_v2  ;;  %v5870_v2 = vcombine.low %v254_v50, %v262_v51  ;;  %v5842_v50 = vcombine.low %v224_v36, %v232_v37  ;;  %v256_v51 = vld [vmem:[#allocation5 + $0x2b8] sm:$0xff]  ;;  %v6677_v37 = vld [vmem:[#allocation8 + $0xe0] ss:$16 sps:$4 sm:$0xff]  }
  0xf9   :  { %1193 = vmatprep.subr.bf16.mxu0 %v5789_v5  ;;  %1165 = vmatpush1.bf16.msra.mxu1 %v5898_v16  ;;  %v5887_v5 = vcombine.high %v270_v58, %v278_v59  ;;  %v207_v16 = vld [vmem:[#allocation5 + $0x130] sm:$0xff]  ;;  %v6676_v36 = vld [vmem:[#allocation8 + $0xcc] ss:$16 sps:$4 sm:$0xff]  }
  0xfa   :  { %1236 = vmatprep.subr.bf16.mxu1 %v5791_v18  ;;  %v5809_v18 = vcombine.high %v191_v8, %v199_v9  ;;  %v5824_v31 = vcombine.low %v207_v16, %v215_v17 }
  0xfb   :  { %1140 = vmatmul.mubr.bf16.vlgmr.msra.gmra.mrb[4].mxu0 %v7929_v7 }
  0xfc   :  { %1194 = vmatpush1.bf16.msra.mxu0 %v5788_v11  ;;  %1225 = vmatprep.mubr.bf16.mxu0 %v7726_v0  ;;  %v5886_v11 = vcombine.low %v270_v58, %v278_v59  ;;  %v295_v58 = vld [vmem:[#allocation5 + $0x3f0] sm:$0xff] }
  0xfd   :  { %1195 = vmatprep.subr.bf16.mxu0 %v5805_v14  ;;  %1183 = vmatmul.mubr.bf16.vlgmr.msra.gmra.mrb[4].mxu1 %v7929_v7  ;;  %v5903_v14 = vcombine.high %v286_v3, %v294_v4 }
  0xfe   :  { %1237 = vmatpush1.bf16.msra.mxu1 %v5790_v24  ;;  %1268 = vmatprep.mubr.bf16.mxu1 %v7726_v0  ;;  %v223_v24 = vld [vmem:[#allocation5 + $0x1b0] sm:$0xff] }
  0xff   :  { %1238 = vmatprep.subr.bf16.mxu1 %v5807_v26  ;;  %v5825_v26 = vcombine.high %v207_v16, %v215_v17  ;;  %v5840_v39 = vcombine.low %v223_v24, %v231_v25  ;;  %v6638_v16 = vld [vmem:[#allocation8 + $0x8] ss:$16 sps:$4 sm:$0xff]   ;;  %v6646_v17 = vld [vmem:[#allocation8 + $0x2c] ss:$16 sps:$4 sm:$0xff]  }
 0x100   :  { %1196 = vmatpush1.bf16.msra.mxu0 %v5804_v19  ;;  %v5902_v19 = vcombine.low %v286_v3, %v294_v4  ;;  %v296_v4 = vld [vmem:[#allocation5 + $0x3f8] sm:$0xff] }
 0x101   :  { %1197 = vmatprep.subr.bf16.mxu0 %v5821_v22  ;;  %v5795_v22 = vcombine.high %v176_v12, %v184_v13 }
 0x102   :  { %1239 = vmatpush1.bf16.msra.mxu1 %v5806_v32  ;;  %v239_v32 = vld [vmem:[#allocation5 + $0x230] sm:$0xff] }
 0x103   :  { %1240 = vmatprep.subr.bf16.mxu1 %v5823_v34  ;;  %v5841_v34 = vcombine.high %v223_v24, %v231_v25  ;;  %v5856_v47 = vcombine.low %v239_v32, %v247_v33  ;;  %v6650_v24 = vld [vmem:[#allocation8 + $0x48] ss:$16 sps:$4 sm:$0xff]   ;;  %v6658_v25 = vld [vmem:[#allocation8 + $0x6c] ss:$16 sps:$4 sm:$0xff]  }
 0x104   :  { %1198 = vmatpush1.bf16.msra.mxu0 %v5820_v27  ;;  %v5794_v27 = vcombine.low %v176_v12, %v184_v13  ;;  %v6640_v13 = vld [vmem:[#allocation8 + $0xc] ss:$16 sps:$4 sm:$0xff]  }
 0x105   :  { %1199 = vmatprep.subr.bf16.mxu0 %v5837_v30  ;;  %v5811_v30 = vcombine.high %v192_v20, %v200_v21 }
 0x106   :  { %1241 = vmatpush1.bf16.msra.mxu1 %v5822_v40  ;;  %v255_v40 = vld [vmem:[#allocation5 + $0x2b0] sm:$0xff] }
 0x107   :  { %1242 = vmatprep.subr.bf16.mxu1 %v5839_v42  ;;  %v5857_v42 = vcombine.high %v239_v32, %v247_v33  ;;  %v5872_v54 = vcombine.low %v255_v40, %v263_v41  ;;  %v6670_v32 = vld [vmem:[#allocation8 + $0xac] ss:$16 sps:$4 sm:$0xff]   ;;  %v6671_v33 = vld [vmem:[#allocation8 + $0xc0] ss:$16 sps:$4 sm:$0xff]  }
 0x108   :  { %1200 = vmatpush1.bf16.msra.mxu0 %v5836_v35  ;;  %v5810_v35 = vcombine.low %v192_v20, %v200_v21  ;;  %v6644_v20 = vld [vmem:[#allocation8 + $0x28] ss:$16 sps:$4 sm:$0xff]   ;;  %v6652_v21 = vld [vmem:[#allocation8 + $0x4c] ss:$16 sps:$4 sm:$0xff]  }
 0x109   :  { %1201 = vmatprep.subr.bf16.mxu0 %v5853_v38  ;;  %v5827_v38 = vcombine.high %v208_v28, %v216_v29  ;;  %v6656_v28 = vld [vmem:[#allocation8 + $0x68] ss:$16 sps:$4 sm:$0xff]   ;;  %v6665_v29 = vld [vmem:[#allocation8 + $0xa0] ss:$16 sps:$4 sm:$0xff]  }
 0x10a   :  { %1243 = vmatpush1.bf16.msra.mxu1 %v5838_v49  ;;  %v279_v49 = vld [vmem:[#allocation5 + $0x370] sm:$0xff] }
 0x10b   :  { %1244 = vmatprep.subr.bf16.mxu1 %v5855_v52  ;;  %v264_v52 = vld [vmem:[#allocation5 + $0x2f8] sm:$0xff] }
 0x10c   :  { %1202 = vmatpush1.bf16.msra.mxu0 %v5852_v44  ;;  %v240_v44 = vld [vmem:[#allocation5 + $0x238] sm:$0xff]  ;;  %v5875_v59 = vcombine.high %v256_v51, %v264_v52 }
 0x10d   :  { %1203 = vmatprep.subr.bf16.mxu0 %v5869_v48  ;;  %v271_v48 = vld [vmem:[#allocation5 + $0x330] sm:$0xff] }
 0x10e   :  { %1245 = vmatpush1.bf16.msra.mxu1 %v5854_v57  ;;  %v5889_v55 = vcombine.high %v271_v48, %v279_v49  ;;  %v287_v57 = vld [vmem:[#allocation5 + $0x3b0] sm:$0xff]  ;;  %v5888_v62 = vcombine.low %v271_v48, %v279_v49  ;;  %v6694_v48 = vld [vmem:[#allocation8 + $0x12c] ss:$16 sps:$4 sm:$0xff]  }
 0x10f   :  { %1246 = vmatprep.subr.bf16.mxu1 %v5871_v60  ;;  %v272_v60 = vld [vmem:[#allocation5 + $0x338] sm:$0xff]  ;;  %v5905_v63 = vcombine.high %v287_v57, %v295_v58  ;;  %v6695_v49 = vld [vmem:[#allocation8 + $0x140] ss:$16 sps:$4 sm:$0xff]  }
 0x110   :  { %1204 = vmatpush1.bf16.msra.mxu0 %v5868_v53  ;;  %v5859_v53 = vcombine.high %v240_v44, %v248_v45 }
 0x111   :  { %1205 = vmatprep.subr.bf16.mxu0 %v5885_v56  ;;  %v5858_v56 = vcombine.low %v240_v44, %v248_v45  ;;  %v6688_v44 = vld [vmem:[#allocation8 + $0x10c] ss:$16 sps:$4 sm:$0xff]   ;;  %v6689_v45 = vld [vmem:[#allocation8 + $0x120] ss:$16 sps:$4 sm:$0xff]  }
 0x112   :  { %1247 = vmatpush1.bf16.msra.mxu1 %v5870_v2  ;;  %v288_v2 = vld [vmem:[#allocation5 + $0x3b8] sm:$0xff] }
 0x113   :  { %1248 = vmatprep.subr.bf16.mxu1 %v5887_v5  ;;  %v6637_v5 = vld [vmem:[#allocation8 + $0x4] ss:$16 sps:$4 sm:$0xff]   ;;  %v5907_v9 = vcombine.high %v288_v2, %v296_v4  ;;  %v5906_v12 = vcombine.low %v288_v2, %v296_v4  ;;  %v6724_v4 = vld [vmem:[#allocation8 + $0x1cc] ss:$16 sps:$4 sm:$0xff]  }
 0x114   :  { %1206 = vmatpush1.bf16.msra.mxu0 %v5884_v61  ;;  %v280_v61 = vld [vmem:[#allocation5 + $0x378] sm:$0xff]  ;;  %v6727_v2 = vld [vmem:[#allocation8 + $0x1e4] ss:$16 sps:$4 sm:$0xff]  }
 0x115   :  { %1207 = vmatprep.subr.bf16.mxu0 %v5901_v1  ;;  %v5874_v1 = vcombine.low %v256_v51, %v264_v52  ;;  %v5891_v3 = vcombine.high %v272_v60, %v280_v61  ;;  %v5890_v8 = vcombine.low %v272_v60, %v280_v61  ;;  %v6700_v51 = vld [vmem:[#allocation8 + $0x14c] ss:$16 sps:$4 sm:$0xff]   ;;  %v6701_v52 = vld [vmem:[#allocation8 + $0x160] ss:$16 sps:$4 sm:$0xff]   ;;  %v6721_v61 = vld [vmem:[#allocation8 + $0x1c4] ss:$16 sps:$4 sm:$0xff]  }
 0x116   :  { %1249 = vmatpush1.bf16.msra.mxu1 %v5886_v11  ;;  %v6643_v11 = vld [vmem:[#allocation8 + $0x24] ss:$16 sps:$4 sm:$0xff]   ;;  %v6713_v60 = vld [vmem:[#allocation8 + $0x1a0] ss:$16 sps:$4 sm:$0xff]  }
 0x117   :  { %1250 = vmatprep.subr.bf16.mxu1 %v5903_v14  ;;  %v6641_v14 = vld [vmem:[#allocation8 + $0x20] ss:$16 sps:$4 sm:$0xff]  }
 0x118   :  { %1208 = vmatpush1.bf16.msra.mxu0 %v5900_v6  ;;  %v5904_v6 = vcombine.low %v287_v57, %v295_v58  ;;  %v6715_v57 = vld [vmem:[#allocation8 + $0x1a4] ss:$16 sps:$4 sm:$0xff]   ;;  %v6704_v58 = vld [vmem:[#allocation8 + $0x168] ss:$16 sps:$4 sm:$0xff]  }
 0x119   :  { %1279 = vmatprep.subr.bf16.mxu0 %v5793_v10  ;;  %v6635_v10 = vld [vmem:[#allocation8] ss:$16 sps:$4 sm:$0xff]  }
 0x11a   :  { %1251 = vmatpush1.bf16.msra.mxu1 %v5902_v19  ;;  %v6655_v19 = vld [vmem:[#allocation8 + $0x64] ss:$16 sps:$4 sm:$0xff]  }
 0x11b   :  { %1226 = vmatmul.mubr.bf16.vlgmr.msra.gmra.mrb[8].mxu0 %v7929_v7  ;;  %1322 = vmatprep.subr.bf16.mxu1 %v5795_v22  ;;  %v6653_v22 = vld [vmem:[#allocation8 + $0x60] ss:$16 sps:$4 sm:$0xff]  }
 0x11c   :  { %1280 = vmatpush1.bf16.msra.mxu0 %v5792_v15  ;;  %1311 = vmatprep.mubr.bf16.mxu0 %v7726_v0  ;;  %v6649_v15 = vld [vmem:[#allocation8 + $0x44] ss:$16 sps:$4 sm:$0xff]  }
 0x11d   :  { %1281 = vmatprep.subr.bf16.mxu0 %v5809_v18  ;;  %1269 = vmatmul.mubr.bf16.vlgmr.msra.gmra.mrb[8].mxu1 %v7929_v7  ;;  %v6647_v18 = vld [vmem:[#allocation8 + $0x40] ss:$16 sps:$4 sm:$0xff]  }
 0x11e   :  { %1323 = vmatpush1.bf16.msra.mxu1 %v5794_v27  ;;  %1354 = vmatprep.mubr.bf16.mxu1 %v7726_v0  ;;  %v5873_v0 = vcombine.high %v255_v40, %v263_v41  ;;  %v6667_v27 = vld [vmem:[#allocation8 + $0xa4] ss:$16 sps:$4 sm:$0xff]   ;;  %v6682_v40 = vld [vmem:[#allocation8 + $0xec] ss:$16 sps:$4 sm:$0xff]   ;;  %v6683_v41 = vld [vmem:[#allocation8 + $0x100] ss:$16 sps:$4 sm:$0xff]  }
 0x11f   :  { %1324 = vmatprep.subr.bf16.mxu1 %v5811_v30  ;;  %v6673_v30 = vld [vmem:[#allocation8 + $0xc4] ss:$16 sps:$4 sm:$0xff]  }
 0x120   :  { %1282 = vmatpush1.bf16.msra.mxu0 %v5808_v23  ;;  %v6661_v23 = vld [vmem:[#allocation8 + $0x84] ss:$16 sps:$4 sm:$0xff]  }
 0x121   :  { %1283 = vmatprep.subr.bf16.mxu0 %v5825_v26  ;;  %v6659_v26 = vld [vmem:[#allocation8 + $0x80] ss:$16 sps:$4 sm:$0xff]  }
 0x122   :  { %1325 = vmatpush1.bf16.msra.mxu1 %v5810_v35  ;;  %v6668_v35 = vld [vmem:[#allocation8 + $0xa8] ss:$16 sps:$4 sm:$0xff]  }
 0x123   :  { %1326 = vmatprep.subr.bf16.mxu1 %v5827_v38  ;;  %v6685_v38 = vld [vmem:[#allocation8 + $0x104] ss:$16 sps:$4 sm:$0xff]  }
 0x124   :  { %1284 = vmatpush1.bf16.msra.mxu0 %v5824_v31  ;;  %v6662_v31 = vld [vmem:[#allocation8 + $0x88] ss:$16 sps:$4 sm:$0xff]  }
 0x125   :  { %1285 = vmatprep.subr.bf16.mxu0 %v5841_v34  ;;  %v6679_v34 = vld [vmem:[#allocation8 + $0xe4] ss:$16 sps:$4 sm:$0xff]  }
 0x126   :  { %1327 = vmatpush1.bf16.msra.mxu1 %v5826_v43  ;;  %v6680_v43 = vld [vmem:[#allocation8 + $0xe8] ss:$16 sps:$4 sm:$0xff]  }
 0x127   :  { %1328 = vmatprep.subr.bf16.mxu1 %v5843_v46  ;;  %v6697_v46 = vld [vmem:[#allocation8 + $0x144] ss:$16 sps:$4 sm:$0xff]  }
 0x128   :  { %1286 = vmatpush1.bf16.msra.mxu0 %v5840_v39  ;;  %v6674_v39 = vld [vmem:[#allocation8 + $0xc8] ss:$16 sps:$4 sm:$0xff]  }
 0x129   :  { %1287 = vmatprep.subr.bf16.mxu0 %v5857_v42  ;;  %v6691_v42 = vld [vmem:[#allocation8 + $0x124] ss:$16 sps:$4 sm:$0xff]  }
 0x12a   :  { %1329 = vmatpush1.bf16.msra.mxu1 %v5842_v50  ;;  %v6692_v50 = vld [vmem:[#allocation8 + $0x128] ss:$16 sps:$4 sm:$0xff]  }
 0x12b   :  { %1330 = vmatprep.subr.bf16.mxu1 %v5859_v53  ;;  %v6709_v53 = vld [vmem:[#allocation8 + $0x184] ss:$16 sps:$4 sm:$0xff]  }
 0x12c   :  { %1288 = vmatpush1.bf16.msra.mxu0 %v5856_v47  ;;  %v6686_v47 = vld [vmem:[#allocation8 + $0x108] ss:$16 sps:$4 sm:$0xff]  }
 0x12d   :  { %1289 = vmatprep.subr.bf16.mxu0 %v5873_v0  ;;  %v6703_v0 = vld [vmem:[#allocation8 + $0x164] ss:$16 sps:$4 sm:$0xff]  }
 0x12e   :  { %1331 = vmatpush1.bf16.msra.mxu1 %v5858_v56  ;;  %v6707_v56 = vld [vmem:[#allocation8 + $0x180] ss:$16 sps:$4 sm:$0xff]  }
 0x12f   :  { %1332 = vmatprep.subr.bf16.mxu1 %v5875_v59  ;;  %v6712_v59 = vld [vmem:[#allocation8 + $0x18c] ss:$16 sps:$4 sm:$0xff]  }
 0x130   :  { %1290 = vmatpush1.bf16.msra.mxu0 %v5872_v54  ;;  %v6698_v54 = vld [vmem:[#allocation8 + $0x148] ss:$16 sps:$4 sm:$0xff]  }
 0x131   :  { %1291 = vmatprep.subr.bf16.mxu0 %v5889_v55  ;;  %v6706_v55 = vld [vmem:[#allocation8 + $0x16c] ss:$16 sps:$4 sm:$0xff]  }
 0x132   :  { %1333 = vmatpush1.bf16.msra.mxu1 %v5874_v1  ;;  %v6719_v1 = vld [vmem:[#allocation8 + $0x1c0] ss:$16 sps:$4 sm:$0xff]  }
 0x133   :  { %1334 = vmatprep.subr.bf16.mxu1 %v5891_v3  ;;  %v6716_v3 = vld [vmem:[#allocation8 + $0x1a8] ss:$16 sps:$4 sm:$0xff]  }
 0x134   :  { %1292 = vmatpush1.bf16.msra.mxu0 %v5888_v62  ;;  %v6710_v62 = vld [vmem:[#allocation8 + $0x188] ss:$16 sps:$4 sm:$0xff]  }
 0x135   :  { %1293 = vmatprep.subr.bf16.mxu0 %v5905_v63  ;;  %v6718_v63 = vld [vmem:[#allocation8 + $0x1ac] ss:$16 sps:$4 sm:$0xff]  }
 0x136   :  { %1335 = vmatpush1.bf16.msra.mxu1 %v5890_v8  ;;  %v6722_v8 = vld [vmem:[#allocation8 + $0x1c8] ss:$16 sps:$4 sm:$0xff]  }
 0x137   :  { %1336 = vmatprep.subr.bf16.mxu1 %v5907_v9  ;;  %v6730_v9 = vld [vmem:[#allocation8 + $0x1ec] ss:$16 sps:$4 sm:$0xff]  }
 0x138   :  { %1294 = vmatpush1.bf16.msra.mxu0 %v5904_v6  ;;  %v6733_v6 = vld [vmem:[#allocation8 + $0x204] ss:$16 sps:$4 sm:$0xff]  }
 0x139   :  { %4507 = vmatprep.subr.bf16.mxu0 %v6637_v5  ;;  %v6725_v5 = vld [vmem:[#allocation8 + $0x1e0] ss:$16 sps:$4 sm:$0xff]  }
 0x13a   :  { %1337 = vmatpush1.bf16.msra.mxu1 %v5906_v12  ;;  %v301_v12 = vlaneseq }
 0x13b   :  { %1312 = vmatmul.mubr.bf16.vlgmr.msra.gmra.mrb[12].mxu0 %v7929_v7  ;;  %4851 = vmatprep.subr.bf16.mxu1 %v6640_v13 }
 0x13c   :  { %4508 = vmatpush1.bf16.msra.mxu0 %v6635_v10  ;;  %v6728_v10 = vld [vmem:[#allocation8 + $0x1e8] ss:$16 sps:$4 sm:$0xff]   ;;  %v7945_v13 = vshrl.u32 %v301_v12, 7 }
 0x13d   :  { %4509 = vmatprep.subr.bf16.mxu0 %v6643_v11  ;;  %1355 = vmatmul.mubr.bf16.vlgmr.msra.gmra.mrb[12].mxu1 %v7929_v7  ;;  %v6664_v7 = vld [vmem:[#allocation8 + $0x8c] ss:$16 sps:$4 sm:$0xff]  }
 0x13e   :  { %4852 = vmatpush1.bf16.msra.mxu1 %v6638_v16  ;;  %v6736_v11 = vld [vmem:[#allocation8 + $0x20c] ss:$16 sps:$4 sm:$0xff]   ;;  %v7953_v16 = vsub.s32 1, %v7945_v13 }
 0x13f   :  { %4853 = vmatprep.subr.bf16.mxu1 %v6646_v17 }
 0x140   :  { %4510 = vmatpush1.bf16.msra.mxu0 %v6641_v14  ;;  %v7947_v14 = vld [vmem:[#allocation7] sm:$0xff] }
 0x141   :  { %4511 = vmatprep.subr.bf16.mxu0 %v6649_v15  ;;  %v7950_v15 = vsub.s32 0, %v7945_v13 }
 0x142   :  { %4854 = vmatpush1.bf16.msra.mxu1 %v6644_v20 }
 0x143   :  { %4855 = vmatprep.subr.bf16.mxu1 %v6652_v21  ;;  %v304_v17 = vrot.slane %v7947_v14, %v7950_v15  ;;  %v7963_v21 = vsub.s32 3, %v7945_v13 }
 0x144   :  { %4512 = vmatpush1.bf16.msra.mxu0 %v6647_v18  ;;  %v308_v18 = vrot.slane %v7947_v14, %v7953_v16 }
 0x145   :  { %4513 = vmatprep.subr.bf16.mxu0 %v6655_v19  ;;  %v7960_v19 = vsub.s32 2, %v7945_v13 }
 0x146   :  { %4856 = vmatpush1.bf16.msra.mxu1 %v6650_v24 }
 0x147   :  { %4857 = vmatprep.subr.bf16.mxu1 %v6658_v25 }
 0x148   :  { %4514 = vmatpush1.bf16.msra.mxu0 %v6653_v22 }
 0x149   :  { %4515 = vmatprep.subr.bf16.mxu0 %v6661_v23 }
 0x14a   :  { %4858 = vmatpush1.bf16.msra.mxu1 %v6656_v28  ;;  %v312_v28 = vrot.slane %v7947_v14, %v7960_v19 }
 0x14b   :  { %4859 = vmatprep.subr.bf16.mxu1 %v6664_v7 }
 0x14c   :  { %4516 = vmatpush1.bf16.msra.mxu0 %v6659_v26 }
 0x14d   :  { %4517 = vmatprep.subr.bf16.mxu0 %v6667_v27 }
 0x14e   :  { %4860 = vmatpush1.bf16.msra.mxu1 %v6662_v31 }
 0x14f   :  { %4861 = vmatprep.subr.bf16.mxu1 %v6670_v32 }
 0x150   :  { %4518 = vmatpush1.bf16.msra.mxu0 %v6665_v29  ;;  %v316_v29 = vrot.slane %v7947_v14, %v7963_v21 }
 0x151   :  { %4519 = vmatprep.subr.bf16.mxu0 %v6673_v30 }
 0x152   :  { %4862 = vmatpush1.bf16.msra.mxu1 %v6668_v35  ;;  %v6734_v35 = vld [vmem:[#allocation8 + $0x208] ss:$16 sps:$4 sm:$0xff]  }
 0x153   :  { %4863 = vmatprep.subr.bf16.mxu1 %v6676_v36 }
 0x154   :  { %4520 = vmatpush1.bf16.msra.mxu0 %v6671_v33 }
 0x155   :  { %4521 = vmatprep.subr.bf16.mxu0 %v6679_v34  ;;  %v6731_v34 = vld [vmem:[#allocation8 + $0x200] ss:$16 sps:$4 sm:$0xff]  }
 0x156   :  { %4864 = vmatpush1.bf16.msra.mxu1 %v6674_v39 }
 0x157   :  { %4865 = vmatprep.subr.bf16.mxu1 %v6682_v40 }
 0x158   :  { %4522 = vmatpush1.bf16.msra.mxu0 %v6677_v37 }
 0x159   :  { %4523 = vmatprep.subr.bf16.mxu0 %v6685_v38 }
 0x15a   :  { %4866 = vmatpush1.bf16.msra.mxu1 %v6680_v43  ;;  %v6739_v43 = vld [vmem:[#allocation8 + $0x224] ss:$16 sps:$4 sm:$0xff]  }
 0x15b   :  { %4867 = vmatprep.subr.bf16.mxu1 %v6688_v44  ;;  %v6742_v44 = vld [vmem:[#allocation8 + $0x22c] ss:$16 sps:$4 sm:$0xff]  }
 0x15c   :  { %4524 = vmatpush1.bf16.msra.mxu0 %v6683_v41 }
 0x15d   :  { %4525 = vmatprep.subr.bf16.mxu0 %v6691_v42 }
 0x15e   :  { %4868 = vmatpush1.bf16.msra.mxu1 %v6686_v47 }
 0x15f   :  { %4869 = vmatprep.subr.bf16.mxu1 %v6694_v48  ;;  %v6737_v48 = vld [vmem:[#allocation8 + $0x220] ss:$16 sps:$4 sm:$0xff]  }
 0x160   :  { %4526 = vmatpush1.bf16.msra.mxu0 %v6689_v45 }
 0x161   :  { %4527 = vmatprep.subr.bf16.mxu0 %v6697_v46 }
 0x162   :  { %4870 = vmatpush1.bf16.msra.mxu1 %v6692_v50 }
 0x163   :  { %4871 = vmatprep.subr.bf16.mxu1 %v6700_v51 }
 0x164   :  { %4528 = vmatpush1.bf16.msra.mxu0 %v6695_v49  ;;  %v6740_v49 = vld [vmem:[#allocation8 + $0x228] ss:$16 sps:$4 sm:$0xff]  }
 0x165   :  { %4529 = vmatprep.subr.bf16.mxu0 %v6703_v0 }
 0x166   :  { %4872 = vmatpush1.bf16.msra.mxu1 %v6698_v54  ;;  %v6748_v54 = vld [vmem:[#allocation8 + $0x24c] ss:$16 sps:$4 sm:$0xff]  }
 0x167   :  { %4873 = vmatprep.subr.bf16.mxu1 %v6706_v55 }
 0x168   :  { %4530 = vmatpush1.bf16.msra.mxu0 %v6701_v52 }
 0x169   :  { %4531 = vmatprep.subr.bf16.mxu0 %v6709_v53  ;;  %v6745_v53 = vld [vmem:[#allocation8 + $0x244] ss:$16 sps:$4 sm:$0xff]  }
 0x16a   :  { %4874 = vmatpush1.bf16.msra.mxu1 %v6704_v58 }
 0x16b   :  { %4875 = vmatprep.subr.bf16.mxu1 %v6712_v59  ;;  %v6751_v59 = vld [vmem:[#allocation8 + $0x264] ss:$16 sps:$4 sm:$0xff]  }
 0x16c   :  { %4532 = vmatpush1.bf16.msra.mxu0 %v6707_v56  ;;  %v6743_v56 = vld [vmem:[#allocation8 + $0x240] ss:$16 sps:$4 sm:$0xff]  }
 0x16d   :  { %4533 = vmatprep.subr.bf16.mxu0 %v6715_v57  ;;  %v6746_v57 = vld [vmem:[#allocation8 + $0x248] ss:$16 sps:$4 sm:$0xff]  }
 0x16e   :  { %4876 = vmatpush1.bf16.msra.mxu1 %v6710_v62  ;;  %v6752_v62 = vld [vmem:[#allocation8 + $0x268] ss:$16 sps:$4 sm:$0xff]  }
 0x16f   :  { %4877 = vmatprep.subr.bf16.mxu1 %v6718_v63  ;;  %v6757_v63 = vld [vmem:[#allocation8 + $0x284] ss:$16 sps:$4 sm:$0xff]  }
 0x170   :  { %4534 = vmatpush1.bf16.msra.mxu0 %v6713_v60  ;;  %v6754_v60 = vld [vmem:[#allocation8 + $0x26c] ss:$16 sps:$4 sm:$0xff]  }
 0x171   :  { %4535 = vmatprep.subr.bf16.mxu0 %v6721_v61  ;;  %v6749_v61 = vld [vmem:[#allocation8 + $0x260] ss:$16 sps:$4 sm:$0xff]  }
 0x172   :  { %4878 = vmatpush1.bf16.msra.mxu1 %v6716_v3  ;;  %v6758_v3 = vld [vmem:[#allocation8 + $0x288] ss:$16 sps:$4 sm:$0xff]  }
 0x173   :  { %4879 = vmatprep.subr.bf16.mxu1 %v6724_v4  ;;  %v319_v4 = vsub.s32 4, %v7945_v13 }
 0x174   :  { %4536 = vmatpush1.bf16.msra.mxu0 %v6719_v1  ;;  %v6760_v1 = vld [vmem:[#allocation8 + $0x28c] ss:$16 sps:$4 sm:$0xff]  }
 0x175   :  { %4537 = vmatprep.subr.bf16.mxu0 %v6727_v2  ;;  %v6755_v2 = vld [vmem:[#allocation8 + $0x280] ss:$16 sps:$4 sm:$0xff]  }
 0x176   :  { %4880 = vmatpush1.bf16.msra.mxu1 %v6722_v8  ;;  %v7972_v8 = vld [vmem:[#allocation7 + $0x8] sm:$0xff] }
 0x177   :  { %4881 = vmatprep.subr.bf16.mxu1 %v6730_v9  ;;  %v6761_v9 = vld [vmem:[#allocation8 + $0x2a0] ss:$16 sps:$4 sm:$0xff]   ;;  %v7976_v12 = vrot.slane %v7972_v8, %v319_v4 }
 0x178   :  { %4538 = vmatpush1.bf16.msra.mxu0 %v6725_v5  ;;  %v6763_v5 = vld [vmem:[#allocation8 + $0x2a4] ss:$16 sps:$4 sm:$0xff]  }
 0x179   :  { %4550 = vmatprep.subr.bf16.mxu0 %v6733_v6  ;;  %v6766_v6 = vld [vmem:[#allocation8 + $0x2ac] ss:$16 sps:$4 sm:$0xff]  }
 0x17a   :  { %4882 = vmatpush1.bf16.msra.mxu1 %v6728_v10  ;;  %v6764_v10 = vld [vmem:[#allocation8 + $0x2a8] ss:$16 sps:$4 sm:$0xff]  }
 0x17b   :  { %4894 = vmatprep.subr.bf16.mxu1 %v6736_v11  ;;  %v323_v11 = vsub.s32 5, %v7945_v13 }
 0x1ae   :  { %v1055_v20 = vpop.f32.mrb[0].mxu0  ;;  %v1098_v36 = vpop.f32.mrb[0].mxu1 }
 0x1af   :  { %v1056_v22 = vadd.f32 %v1055_v20, %v304_v17  ;;  %v1057_v23 = vpop.f32.mrb[1].mxu0  ;;  %v1099_v38 = vadd.f32 %v1098_v36, %v312_v28  ;;  %v1100_v39 = vpop.f32.mrb[1].mxu1  ;;  %v320_v20 = vrot.slane %v7947_v14, %v319_v4  ;;  %v6793_v4 = vld [vmem:[#allocation8 + $0x344] ss:$16 sps:$4 sm:$0xff]  }
 0x1b0   :  { %v1058_v24 = vadd.f32 %v1057_v23, %v308_v18  ;;  %v1059_v25 = vpop.f32.mrb[2].mxu0  ;;  %v1101_v41 = vadd.f32 %v1100_v39, %v316_v29  ;;  %v1102_v42 = vpop.f32.mrb[2].mxu1  ;;  %v6772_v23 = vld [vmem:[#allocation8 + $0x2cc] ss:$16 sps:$4 sm:$0xff]  }
 0x1b1   :  { %v1060_v26 = vadd.f32 %v1059_v25, %v304_v17  ;;  %v1061_v27 = vpop.f32.mrb[3].mxu0  ;;  %v1365_v30 = vmax.f32 %v1056_v22, 0.0  ;;  %v1367_v45 = vmax.f32 %v1099_v38, 0.0  ;;  %v1103_v46 = vadd.f32 %v1102_v42, %v312_v28  ;;  %v1104_v47 = vpop.f32.mrb[3].mxu1  ;;  %v6769_v22 = vld [vmem:[#allocation8 + $0x2c4] ss:$16 sps:$4 sm:$0xff]  }
 0x1b2   :  { %v1062_v7 = vadd.f32 %v1061_v27, %v308_v18  ;;  %v1366_v32 = vmax.f32 %v1058_v24, 0.0  ;;  %v1368_v0 = vmax.f32 %v1101_v41, 0.0  ;;  %v1105_v50 = vadd.f32 %v1104_v47, %v316_v29  ;;  %v6767_v27 = vld [vmem:[#allocation8 + $0x2c0] ss:$16 sps:$4 sm:$0xff]   ;;  %v6770_v28 = vld [vmem:[#allocation8 + $0x2c8] ss:$16 sps:$4 sm:$0xff]  }
 0x1b3   :  { %v1381_v31 = vmax.f32 %v1060_v26, 0.0  ;;  %v1383_v51 = vmax.f32 %v1103_v46, 0.0  ;;  %v327_v17 = vsub.s32 6, %v7945_v13  ;;  %v331_v18 = vsub.s32 7, %v7945_v13  ;;  %v6775_v29 = vld [vmem:[#allocation8 + $0x2e4] ss:$16 sps:$4 sm:$0xff]  }
 0x1b4   :  { %v1382_v33 = vmax.f32 %v1062_v7, 0.0  ;;  %v1384_v52 = vmax.f32 %v1105_v50, 0.0  ;;  %v7982_v24 = vrot.slane %v7972_v8, %v323_v11  ;;  %v324_v13 = vrot.slane %v7947_v14, %v323_v11  ;;  %v6779_v47 = vld [vmem:[#allocation8 + $0x300] ss:$16 sps:$4 sm:$0xff]  }
 0x1b5   :  { %v1397_v37 = vpack.c.bf16 %v1381_v31, %v1365_v30  ;;  %v7969_v55 = vpack.c.bf16 %v1383_v51, %v1367_v45  ;;  %v7985_v25 = vrot.slane %v7972_v8, %v327_v17  ;;  %v7988_v26 = vrot.slane %v7972_v8, %v331_v18  ;;  %v6778_v30 = vld [vmem:[#allocation8 + $0x2ec] ss:$16 sps:$4 sm:$0xff]  }
 0x1b6   :  { %v1398_v40 = vpack.c.bf16 %v1382_v33, %v1366_v32  ;;  %v1400_v58 = vpack.c.bf16 %v1384_v52, %v1368_v0  ;;  %v6773_v33 = vld [vmem:[#allocation8 + $0x2e0] ss:$16 sps:$4 sm:$0xff]   ;;  %v328_v39 = vrot.slane %v7947_v14, %v327_v17  ;;  %v6784_v45 = vld [vmem:[#allocation8 + $0x30c] ss:$16 sps:$4 sm:$0xff]   ;;  %v6799_v17 = vld [vmem:[#allocation8 + $0x364] ss:$16 sps:$4 sm:$0xff]  }
 0x1b8   :  { %4539 = vmatprep.mubr.bf16.mxu0 %v1398_v40  ;;  %4883 = vmatprep.mubr.bf16.mxu1 %v1398_v40 }
 0x1b9   :  { %4540 = vmatmul.mubr.bf16.vlgmr.msra.gmra.mrb[16].mxu0 %v1397_v37  ;;  %4884 = vmatmul.mubr.bf16.vlgmr.msra.gmra.mrb[16].mxu1 %v1397_v37 }
 0x1ba   :  { %4551 = vmatpush1.bf16.msra.mxu0 %v6731_v34  ;;  %4895 = vmatpush1.bf16.msra.mxu1 %v6734_v35  ;;  %v6776_v34 = vld [vmem:[#allocation8 + $0x2e8] ss:$16 sps:$4 sm:$0xff]  }
 0x1bb   :  { %4552 = vmatprep.subr.bf16.mxu0 %v6739_v43  ;;  %4896 = vmatprep.subr.bf16.mxu1 %v6742_v44  ;;  %v332_v43 = vrot.slane %v7947_v14, %v331_v18  ;;  %v6781_v44 = vld [vmem:[#allocation8 + $0x304] ss:$16 sps:$4 sm:$0xff]   ;;  %v6802_v18 = vld [vmem:[#allocation8 + $0x36c] ss:$16 sps:$4 sm:$0xff]  }
 0x1bc   :  { %4582 = vmatprep.mubr.bf16.mxu0 %v1400_v58  ;;  %4926 = vmatprep.mubr.bf16.mxu1 %v1400_v58  ;;  %v6787_v14 = vld [vmem:[#allocation8 + $0x324] ss:$16 sps:$4 sm:$0xff]  }
 0x1be   :  { %4553 = vmatpush1.bf16.msra.mxu0 %v6737_v48  ;;  %4897 = vmatpush1.bf16.msra.mxu1 %v6740_v49  ;;  %v6782_v48 = vld [vmem:[#allocation8 + $0x308] ss:$16 sps:$4 sm:$0xff]  }
 0x1bf   :  { %4554 = vmatprep.subr.bf16.mxu0 %v6745_v53  ;;  %4898 = vmatprep.subr.bf16.mxu1 %v6748_v54 }
 0x1c2   :  { %4555 = vmatpush1.bf16.msra.mxu0 %v6743_v56  ;;  %4899 = vmatpush1.bf16.msra.mxu1 %v6746_v57  ;;  %v6790_v57 = vld [vmem:[#allocation8 + $0x32c] ss:$16 sps:$4 sm:$0xff]  }
 0x1c3   :  { %4556 = vmatprep.subr.bf16.mxu0 %v6751_v59  ;;  %4900 = vmatprep.subr.bf16.mxu1 %v6754_v60 }
 0x1c6   :  { %4557 = vmatpush1.bf16.msra.mxu0 %v6749_v61  ;;  %4901 = vmatpush1.bf16.msra.mxu1 %v6752_v62  ;;  %v6785_v61 = vld [vmem:[#allocation8 + $0x320] ss:$16 sps:$4 sm:$0xff]   ;;  %v6788_v62 = vld [vmem:[#allocation8 + $0x328] ss:$16 sps:$4 sm:$0xff]  }
 0x1c7   :  { %4558 = vmatprep.subr.bf16.mxu0 %v6757_v63  ;;  %4902 = vmatprep.subr.bf16.mxu1 %v6760_v1 }
 0x1ca   :  { %4559 = vmatpush1.bf16.msra.mxu0 %v6755_v2  ;;  %4903 = vmatpush1.bf16.msra.mxu1 %v6758_v3 }
 0x1cb   :  { %4560 = vmatprep.subr.bf16.mxu0 %v6763_v5  ;;  %4904 = vmatprep.subr.bf16.mxu1 %v6766_v6  ;;  %v6796_v5 = vld [vmem:[#allocation8 + $0x34c] ss:$16 sps:$4 sm:$0xff]  }
 0x1ce   :  { %4561 = vmatpush1.bf16.msra.mxu0 %v6761_v9  ;;  %4905 = vmatpush1.bf16.msra.mxu1 %v6764_v10  ;;  %v1141_v7 = vpop.f32.mrb[4].mxu0  ;;  %v6791_v9 = vld [vmem:[#allocation8 + $0x340] ss:$16 sps:$4 sm:$0xff]   ;;  %v6794_v10 = vld [vmem:[#allocation8 + $0x348] ss:$16 sps:$4 sm:$0xff]  }
 0x1cf   :  { %4562 = vmatprep.subr.bf16.mxu0 %v6769_v22  ;;  %4906 = vmatprep.subr.bf16.mxu1 %v6772_v23  ;;  %v1142_v31 = vadd.f32 %v1141_v7, %v320_v20  ;;  %v1143_v32 = vpop.f32.mrb[5].mxu0  ;;  %v6800_v22 = vld [vmem:[#allocation8 + $0x368] ss:$16 sps:$4 sm:$0xff]   ;;  %v6805_v23 = vld [vmem:[#allocation8 + $0x384] ss:$16 sps:$4 sm:$0xff]  }
 0x1d0   :  { %v1144_v35 = vadd.f32 %v1143_v32, %v324_v13  ;;  %v1145_v36 = vpop.f32.mrb[6].mxu0  ;;  %v1184_v49 = vpop.f32.mrb[4].mxu1  ;;  %v6811_v7 = vld [vmem:[#allocation8 + $0x3a4] ss:$16 sps:$4 sm:$0xff]  }
 0x1d1   :  { %v1369_v37 = vmax.f32 %v1142_v31, 0.0  ;;  %v1146_v38 = vadd.f32 %v1145_v36, %v320_v20  ;;  %v1147_v40 = vpop.f32.mrb[7].mxu0  ;;  %v1185_v51 = vadd.f32 %v1184_v49, %v328_v39  ;;  %v1186_v52 = vpop.f32.mrb[5].mxu1  ;;  %v6797_v20 = vld [vmem:[#allocation8 + $0x360] ss:$16 sps:$4 sm:$0xff]   ;;  %v344_v49 = vrot.slane %v7972_v8, %v7960_v19 }
 0x1d2   :  { %4563 = vmatpush1.bf16.msra.mxu0 %v6767_v27  ;;  %4907 = vmatpush1.bf16.msra.mxu1 %v6770_v28  ;;  %v1370_v41 = vmax.f32 %v1144_v35, 0.0  ;;  %v1148_v42 = vadd.f32 %v1147_v40, %v324_v13  ;;  %v1187_v54 = vadd.f32 %v1186_v52, %v332_v43  ;;  %v1188_v56 = vpop.f32.mrb[6].mxu1  ;;  %v6808_v27 = vld [vmem:[#allocation8 + $0x38c] ss:$16 sps:$4 sm:$0xff]   ;;  %v6803_v28 = vld [vmem:[#allocation8 + $0x380] ss:$16 sps:$4 sm:$0xff]  }
 0x1d3   :  { %4564 = vmatprep.subr.bf16.mxu0 %v6775_v29  ;;  %4908 = vmatprep.subr.bf16.mxu1 %v6778_v30  ;;  %v1385_v46 = vmax.f32 %v1146_v38, 0.0  ;;  %v1371_v58 = vmax.f32 %v1185_v51, 0.0  ;;  %v1189_v59 = vadd.f32 %v1188_v56, %v328_v39  ;;  %v1190_v60 = vpop.f32.mrb[7].mxu1  ;;  %v6806_v13 = vld [vmem:[#allocation8 + $0x388] ss:$16 sps:$4 sm:$0xff]  }
 0x1d4   :  { %v1386_v0 = vmax.f32 %v1148_v42, 0.0  ;;  %v1372_v63 = vmax.f32 %v1187_v54, 0.0  ;;  %v1191_v1 = vadd.f32 %v1190_v60, %v332_v43  ;;  %v6814_v29 = vld [vmem:[#allocation8 + $0x3ac] ss:$16 sps:$4 sm:$0xff]   ;;  %v6809_v30 = vld [vmem:[#allocation8 + $0x3a0] ss:$16 sps:$4 sm:$0xff]   ;;  %v348_v54 = vrot.slane %v7972_v8, %v7963_v21 }
 0x1d5   :  { %v7993_v50 = vpack.c.bf16 %v1385_v46, %v1369_v37  ;;  %v1387_v2 = vmax.f32 %v1189_v59, 0.0  ;;  %v6812_v31 = vld [vmem:[#allocation8 + $0x3a8] ss:$16 sps:$4 sm:$0xff]   ;;  %v6817_v32 = vld [vmem:[#allocation8 + $0x3c4] ss:$16 sps:$4 sm:$0xff]   ;;  %v340_v37 = vrot.slane %v7972_v8, %v7953_v16 }
 0x1d6   :  { %4565 = vmatpush1.bf16.msra.mxu0 %v6773_v33  ;;  %4909 = vmatpush1.bf16.msra.mxu1 %v6776_v34  ;;  %v7995_v53 = vpack.c.bf16 %v1386_v0, %v1370_v41  ;;  %v1388_v3 = vmax.f32 %v1191_v1, 0.0  ;;  %v6820_v33 = vld [vmem:[#allocation8 + $0x3cc] ss:$16 sps:$4 sm:$0xff]   ;;  %v336_v34 = vrot.slane %v7972_v8, %v7950_v15  ;;  %v6815_v35 = vld [vmem:[#allocation8 + $0x3c0] ss:$16 sps:$4 sm:$0xff]  }
 0x1d7   :  { %4566 = vmatprep.subr.bf16.mxu0 %v6781_v44  ;;  %4910 = vmatprep.subr.bf16.mxu1 %v6784_v45  ;;  %v7997_v6 = vpack.c.bf16 %v1387_v2, %v1371_v58  ;;  %v6818_v36 = vld [vmem:[#allocation8 + $0x3c8] ss:$16 sps:$4 sm:$0xff]   ;;  %v6823_v39 = vld [vmem:[#allocation8 + $0x3e4] ss:$16 sps:$4 sm:$0xff]   ;;  %v6826_v40 = vld [vmem:[#allocation8 + $0x3ec] ss:$16 sps:$4 sm:$0xff]  }
 0x1d8   :  { %v7999_v11 = vpack.c.bf16 %v1388_v3, %v1372_v63  ;;  %v6821_v43 = vld [vmem:[#allocation8 + $0x3e0] ss:$16 sps:$4 sm:$0xff]   ;;  %v6824_v44 = vld [vmem:[#allocation8 + $0x3e8] ss:$16 sps:$4 sm:$0xff]   ;;  %v6829_v56 = vld [vmem:[#allocation8 + $0x404] ss:$16 sps:$4 sm:$0xff]  }
 0x1d9   :  { %v6827_v58 = vld [vmem:[#allocation8 + $0x400] ss:$16 sps:$4 sm:$0xff]   ;;  %v6830_v59 = vld [vmem:[#allocation8 + $0x408] ss:$16 sps:$4 sm:$0xff]   ;;  %v6838_v63 = vld [vmem:[#allocation8 + $0x42c] ss:$16 sps:$4 sm:$0xff]  }
 0x1da   :  { %4567 = vmatpush1.bf16.msra.mxu0 %v6779_v47  ;;  %4911 = vmatpush1.bf16.msra.mxu1 %v6782_v48 }
 0x1db   :  { %4568 = vmatprep.subr.bf16.mxu0 %v6787_v14  ;;  %4912 = vmatprep.subr.bf16.mxu1 %v6790_v57  ;;  %v6832_v14 = vld [vmem:[#allocation8 + $0x40c] ss:$16 sps:$4 sm:$0xff]  }
 0x1de   :  { %4569 = vmatpush1.bf16.msra.mxu0 %v6785_v61  ;;  %4913 = vmatpush1.bf16.msra.mxu1 %v6788_v62  ;;  %v6835_v62 = vld [vmem:[#allocation8 + $0x424] ss:$16 sps:$4 sm:$0xff]  }
 0x1df   :  { %4570 = vmatprep.subr.bf16.mxu0 %v6793_v4  ;;  %4914 = vmatprep.subr.bf16.mxu1 %v6796_v5 }
 0x1e2   :  { %4571 = vmatpush1.bf16.msra.mxu0 %v6791_v9  ;;  %4915 = vmatpush1.bf16.msra.mxu1 %v6794_v10 }
 0x1e3   :  { %4572 = vmatprep.subr.bf16.mxu0 %v6799_v17  ;;  %4916 = vmatprep.subr.bf16.mxu1 %v6802_v18  ;;  %v6833_v18 = vld [vmem:[#allocation8 + $0x420] ss:$16 sps:$4 sm:$0xff]  }
 0x1e6   :  { %4573 = vmatpush1.bf16.msra.mxu0 %v6797_v20  ;;  %4917 = vmatpush1.bf16.msra.mxu1 %v6800_v22  ;;  %v6836_v20 = vld [vmem:[#allocation8 + $0x428] ss:$16 sps:$4 sm:$0xff]  }
 0x1e7   :  { %4574 = vmatprep.subr.bf16.mxu0 %v6805_v23  ;;  %4918 = vmatprep.subr.bf16.mxu1 %v6808_v27  ;;  %v6841_v27 = vld [vmem:[#allocation8 + $0x444] ss:$16 sps:$4 sm:$0xff]  }
 0x1ea   :  { %4575 = vmatpush1.bf16.msra.mxu0 %v6803_v28  ;;  %4919 = vmatpush1.bf16.msra.mxu1 %v6806_v13  ;;  %v6844_v28 = vld [vmem:[#allocation8 + $0x44c] ss:$16 sps:$4 sm:$0xff]  }
 0x1eb   :  { %4576 = vmatprep.subr.bf16.mxu0 %v6811_v7  ;;  %4920 = vmatprep.subr.bf16.mxu1 %v6814_v29 }
 0x1ee   :  { %4577 = vmatpush1.bf16.msra.mxu0 %v6809_v30  ;;  %4921 = vmatpush1.bf16.msra.mxu1 %v6812_v31  ;;  %v1227_v38 = vpop.f32.mrb[8].mxu0  ;;  %v6839_v30 = vld [vmem:[#allocation8 + $0x440] ss:$16 sps:$4 sm:$0xff]  }
 0x1ef   :  { %4578 = vmatprep.subr.bf16.mxu0 %v6817_v32  ;;  %4922 = vmatprep.subr.bf16.mxu1 %v6820_v33  ;;  %v1228_v41 = vadd.f32 %v1227_v38, %v336_v34  ;;  %v1229_v42 = vpop.f32.mrb[9].mxu0  ;;  %v6842_v32 = vld [vmem:[#allocation8 + $0x448] ss:$16 sps:$4 sm:$0xff]   ;;  %v6850_v33 = vld [vmem:[#allocation8 + $0x46c] ss:$16 sps:$4 sm:$0xff]  }
 0x1f0   :  { %v1230_v45 = vadd.f32 %v1229_v42, %v340_v37  ;;  %v1231_v46 = vpop.f32.mrb[10].mxu0  ;;  %v1270_v60 = vpop.f32.mrb[8].mxu1  ;;  %v6851_v38 = vld [vmem:[#allocation8 + $0x480] ss:$16 sps:$4 sm:$0xff]   ;;  %v6860_v42 = vld [vmem:[#allocation8 + $0x4a8] ss:$16 sps:$4 sm:$0xff]  }
 0x1f1   :  { %v1373_v47 = vmax.f32 %v1228_v41, 0.0  ;;  %v1232_v48 = vadd.f32 %v1231_v46, %v336_v34  ;;  %v1233_v0 = vpop.f32.mrb[11].mxu0  ;;  %v1271_v2 = vadd.f32 %v1270_v60, %v344_v49  ;;  %v1272_v3 = vpop.f32.mrb[9].mxu1  ;;  %v6845_v34 = vld [vmem:[#allocation8 + $0x460] ss:$16 sps:$4 sm:$0xff]  }
 0x1f2   :  { %4579 = vmatpush1.bf16.msra.mxu0 %v6815_v35  ;;  %4923 = vmatpush1.bf16.msra.mxu1 %v6818_v36  ;;  %v1374_v51 = vmax.f32 %v1230_v45, 0.0  ;;  %v1234_v52 = vadd.f32 %v1233_v0, %v340_v37  ;;  %v1273_v8 = vadd.f32 %v1272_v3, %v348_v54  ;;  %v1274_v5 = vpop.f32.mrb[10].mxu1  ;;  %v6848_v35 = vld [vmem:[#allocation8 + $0x468] ss:$16 sps:$4 sm:$0xff]   ;;  %v6853_v36 = vld [vmem:[#allocation8 + $0x484] ss:$16 sps:$4 sm:$0xff]  }
 0x1f3   :  { %4580 = vmatprep.subr.bf16.mxu0 %v6823_v39  ;;  %4924 = vmatprep.subr.bf16.mxu1 %v6826_v40  ;;  %v1389_v57 = vmax.f32 %v1232_v48, 0.0  ;;  %v1375_v9 = vmax.f32 %v1271_v2, 0.0  ;;  %v1275_v10 = vadd.f32 %v1274_v5, %v344_v49  ;;  %v1276_v17 = vpop.f32.mrb[11].mxu1  ;;  %v6856_v37 = vld [vmem:[#allocation8 + $0x48c] ss:$16 sps:$4 sm:$0xff]  }
 0x1f4   :  { %v1390_v61 = vmax.f32 %v1234_v52, 0.0  ;;  %v1376_v22 = vmax.f32 %v1273_v8, 0.0  ;;  %v1277_v23 = vadd.f32 %v1276_v17, %v348_v54  ;;  %v6854_v39 = vld [vmem:[#allocation8 + $0x488] ss:$16 sps:$4 sm:$0xff]   ;;  %v6862_v40 = vld [vmem:[#allocation8 + $0x4ac] ss:$16 sps:$4 sm:$0xff]  }
 0x1f5   :  { %v8009_v1 = vpack.c.bf16 %v1389_v57, %v1373_v47  ;;  %v1391_v13 = vmax.f32 %v1275_v10, 0.0  ;;  %v6857_v41 = vld [vmem:[#allocation8 + $0x4a0] ss:$16 sps:$4 sm:$0xff]   ;;  %v6866_v46 = vld [vmem:[#allocation8 + $0x4c8] ss:$16 sps:$4 sm:$0xff]  }
 0x1f6   :  { %4581 = vmatpush1.bf16.msra.mxu0 %v6821_v43  ;;  %4925 = vmatpush1.bf16.msra.mxu1 %v6824_v44  ;;  %v8011_v4 = vpack.c.bf16 %v1390_v61, %v1374_v51  ;;  %v1392_v7 = vmax.f32 %v1277_v23, 0.0  ;;  %v6865_v43 = vld [vmem:[#allocation8 + $0x4c4] ss:$16 sps:$4 sm:$0xff]   ;;  %v6868_v44 = vld [vmem:[#allocation8 + $0x4cc] ss:$16 sps:$4 sm:$0xff]  }
 0x1f7   :  { %4593 = vmatprep.subr.bf16.mxu0 %v6829_v56  ;;  %4937 = vmatprep.subr.bf16.mxu1 %v6832_v14  ;;  %v8015_v29 = vpack.c.bf16 %v1391_v13, %v1375_v9  ;;  %v6863_v45 = vld [vmem:[#allocation8 + $0x4c0] ss:$16 sps:$4 sm:$0xff]   ;;  %v6871_v48 = vld [vmem:[#allocation8 + $0x4e4] ss:$16 sps:$4 sm:$0xff]   ;;  %v6874_v49 = vld [vmem:[#allocation8 + $0x4ec] ss:$16 sps:$4 sm:$0xff]  }
 0x1f8   :  { %v8019_v31 = vpack.c.bf16 %v1392_v7, %v1376_v22  ;;  %v6875_v10 = vld [vmem:[#allocation8 + $0x500] ss:$16 sps:$4 sm:$0xff]   ;;  %v6878_v17 = vld [vmem:[#allocation8 + $0x508] ss:$16 sps:$4 sm:$0xff]   ;;  %v6883_v22 = vld [vmem:[#allocation8 + $0x524] ss:$16 sps:$4 sm:$0xff]  }
 0x1f9   :  { %4583 = vmatmul.mubr.bf16.vlgmr.msra.gmra.mrb[16].mxu0 %v7969_v55  ;;  %4927 = vmatmul.mubr.bf16.vlgmr.msra.gmra.mrb[16].mxu1 %v7969_v55  ;;  %v6847_v55 = vld [vmem:[#allocation8 + $0x464] ss:$16 sps:$4 sm:$0xff]   ;;  %v6886_v23 = vld [vmem:[#allocation8 + $0x52c] ss:$16 sps:$4 sm:$0xff]  }
 0x1fa   :  { %4594 = vmatpush1.bf16.msra.mxu0 %v6827_v58  ;;  %4938 = vmatpush1.bf16.msra.mxu1 %v6830_v59  ;;  %v6869_v58 = vld [vmem:[#allocation8 + $0x4e0] ss:$16 sps:$4 sm:$0xff]   ;;  %v6872_v59 = vld [vmem:[#allocation8 + $0x4e8] ss:$16 sps:$4 sm:$0xff]  }
 0x1fb   :  { %4595 = vmatprep.subr.bf16.mxu0 %v6835_v62  ;;  %4939 = vmatprep.subr.bf16.mxu1 %v6838_v63  ;;  %v6877_v62 = vld [vmem:[#allocation8 + $0x504] ss:$16 sps:$4 sm:$0xff]   ;;  %v6880_v63 = vld [vmem:[#allocation8 + $0x50c] ss:$16 sps:$4 sm:$0xff]  }
 0x1fc   :  { %4625 = vmatprep.mubr.bf16.mxu0 %v7995_v53  ;;  %4969 = vmatprep.mubr.bf16.mxu1 %v7995_v53  ;;  %v6859_v53 = vld [vmem:[#allocation8 + $0x4a4] ss:$16 sps:$4 sm:$0xff]  }
 0x1fe   :  { %4596 = vmatpush1.bf16.msra.mxu0 %v6833_v18  ;;  %4940 = vmatpush1.bf16.msra.mxu1 %v6836_v20 }
 0x1ff   :  { %4597 = vmatprep.subr.bf16.mxu0 %v6841_v27  ;;  %4941 = vmatprep.subr.bf16.mxu1 %v6844_v28 }
 0x202   :  { %4598 = vmatpush1.bf16.msra.mxu0 %v6839_v30  ;;  %4942 = vmatpush1.bf16.msra.mxu1 %v6842_v32 }
 0x203   :  { %4599 = vmatprep.subr.bf16.mxu0 %v6847_v55  ;;  %4943 = vmatprep.subr.bf16.mxu1 %v6850_v33  ;;  %v6881_v55 = vld [vmem:[#allocation8 + $0x520] ss:$16 sps:$4 sm:$0xff]   ;;  %v6884_v33 = vld [vmem:[#allocation8 + $0x528] ss:$16 sps:$4 sm:$0xff]  }
 0x206   :  { %4600 = vmatpush1.bf16.msra.mxu0 %v6845_v34  ;;  %4944 = vmatpush1.bf16.msra.mxu1 %v6848_v35  ;;  %v6889_v35 = vld [vmem:[#allocation8 + $0x544] ss:$16 sps:$4 sm:$0xff]  }
 0x207   :  { %4601 = vmatprep.subr.bf16.mxu0 %v6853_v36  ;;  %4945 = vmatprep.subr.bf16.mxu1 %v6856_v37  ;;  %v6892_v36 = vld [vmem:[#allocation8 + $0x54c] ss:$16 sps:$4 sm:$0xff]  }
 0x20a   :  { %4602 = vmatpush1.bf16.msra.mxu0 %v6851_v38  ;;  %4946 = vmatpush1.bf16.msra.mxu1 %v6854_v39  ;;  %v6890_v39 = vld [vmem:[#allocation8 + $0x548] ss:$16 sps:$4 sm:$0xff]  }
 0x20b   :  { %4603 = vmatprep.subr.bf16.mxu0 %v6859_v53  ;;  %4947 = vmatprep.subr.bf16.mxu1 %v6862_v40  ;;  %v6898_v53 = vld [vmem:[#allocation8 + $0x56c] ss:$16 sps:$4 sm:$0xff]   ;;  %v6893_v40 = vld [vmem:[#allocation8 + $0x560] ss:$16 sps:$4 sm:$0xff]  }
 0x20e   :  { %4604 = vmatpush1.bf16.msra.mxu0 %v6857_v41  ;;  %4948 = vmatpush1.bf16.msra.mxu1 %v6860_v42  ;;  %v1313_v47 = vpop.f32.mrb[12].mxu0  ;;  %v6896_v41 = vld [vmem:[#allocation8 + $0x568] ss:$16 sps:$4 sm:$0xff]   ;;  %v6901_v42 = vld [vmem:[#allocation8 + $0x584] ss:$16 sps:$4 sm:$0xff]  }
 0x20f   :  { %4605 = vmatprep.subr.bf16.mxu0 %v6865_v43  ;;  %4949 = vmatprep.subr.bf16.mxu1 %v6868_v44  ;;  %v1314_v0 = vadd.f32 %v1313_v47, %v7976_v12  ;;  %v1315_v51 = vpop.f32.mrb[13].mxu0  ;;  %v6904_v43 = vld [vmem:[#allocation8 + $0x58c] ss:$16 sps:$4 sm:$0xff]   ;;  %v6899_v44 = vld [vmem:[#allocation8 + $0x580] ss:$16 sps:$4 sm:$0xff]  }
 0x210   :  { %v1316_v52 = vadd.f32 %v1315_v51, %v7982_v24  ;;  %v1317_v54 = vpop.f32.mrb[14].mxu0  ;;  %v1356_v3 = vpop.f32.mrb[12].mxu1  ;;  %v6910_v47 = vld [vmem:[#allocation8 + $0x5ac] ss:$16 sps:$4 sm:$0xff]  }
 0x211   :  { %v1377_v56 = vmax.f32 %v1314_v0, 0.0  ;;  %v1318_v14 = vadd.f32 %v1317_v54, %v7976_v12  ;;  %v1319_v57 = vpop.f32.mrb[15].mxu0  ;;  %v1357_v9 = vadd.f32 %v1356_v3, %v7985_v25  ;;  %v1358_v12 = vpop.f32.mrb[13].mxu1  ;;  %v6913_v0 = vld [vmem:[#allocation8 + $0x5c4] ss:$16 sps:$4 sm:$0xff]  }
 0x212   :  { %4606 = vmatpush1.bf16.msra.mxu0 %v6863_v45  ;;  %4950 = vmatpush1.bf16.msra.mxu1 %v6866_v46  ;;  %v1378_v60 = vmax.f32 %v1316_v52, 0.0  ;;  %v1320_v61 = vadd.f32 %v1319_v57, %v7982_v24  ;;  %v1359_v24 = vadd.f32 %v1358_v12, %v7988_v26  ;;  %v1360_v20 = vpop.f32.mrb[14].mxu1  ;;  %v6902_v45 = vld [vmem:[#allocation8 + $0x588] ss:$16 sps:$4 sm:$0xff]   ;;  %v6907_v46 = vld [vmem:[#allocation8 + $0x5a4] ss:$16 sps:$4 sm:$0xff]  }
 0x213   :  { %4607 = vmatprep.subr.bf16.mxu0 %v6871_v48  ;;  %4951 = vmatprep.subr.bf16.mxu1 %v6874_v49  ;;  %v1393_v2 = vmax.f32 %v1318_v14, 0.0  ;;  %v1379_v27 = vmax.f32 %v1357_v9, 0.0  ;;  %v1361_v28 = vadd.f32 %v1360_v20, %v7985_v25  ;;  %v1362_v13 = vpop.f32.mrb[15].mxu1  ;;  %v6887_v25 = vld [vmem:[#allocation8 + $0x540] ss:$16 sps:$4 sm:$0xff]  }
 0x214   :  { %v1394_v8 = vmax.f32 %v1320_v61, 0.0  ;;  %v1380_v7 = vmax.f32 %v1359_v24, 0.0  ;;  %v1363_v30 = vadd.f32 %v1362_v13, %v7988_v26  ;;  %v6895_v26 = vld [vmem:[#allocation8 + $0x564] ss:$16 sps:$4 sm:$0xff]   ;;  %v6905_v48 = vld [vmem:[#allocation8 + $0x5a0] ss:$16 sps:$4 sm:$0xff]  }
 0x215   :  { %v8025_v5 = vpack.c.bf16 %v1393_v2, %v1377_v56  ;;  %v1395_v32 = vmax.f32 %v1361_v28, 0.0  ;;  %v6908_v49 = vld [vmem:[#allocation8 + $0x5a8] ss:$16 sps:$4 sm:$0xff]   ;;  %v6916_v51 = vld [vmem:[#allocation8 + $0x5cc] ss:$16 sps:$4 sm:$0xff]  }
 0x216   :  { %4608 = vmatpush1.bf16.msra.mxu0 %v6869_v58  ;;  %4952 = vmatpush1.bf16.msra.mxu1 %v6872_v59  ;;  %v8028_v18 = vpack.c.bf16 %v1394_v8, %v1378_v60  ;;  %v1396_v34 = vmax.f32 %v1363_v30, 0.0  ;;  %v6911_v52 = vld [vmem:[#allocation8 + $0x5c0] ss:$16 sps:$4 sm:$0xff]   ;;  %v6914_v54 = vld [vmem:[#allocation8 + $0x5c8] ss:$16 sps:$4 sm:$0xff]  }
 0x217   :  { %4609 = vmatprep.subr.bf16.mxu0 %v6877_v62  ;;  %4953 = vmatprep.subr.bf16.mxu1 %v6880_v63  ;;  %v8033_v37 = vpack.c.bf16 %v1395_v32, %v1379_v27  ;;  %v6919_v56 = vld [vmem:[#allocation8 + $0x5e4] ss:$16 sps:$4 sm:$0xff]   ;;  %v6922_v14 = vld [vmem:[#allocation8 + $0x5ec] ss:$16 sps:$4 sm:$0xff]   ;;  %v6917_v57 = vld [vmem:[#allocation8 + $0x5e0] ss:$16 sps:$4 sm:$0xff]  }
 0x218   :  { %v8035_v38 = vpack.c.bf16 %v1396_v34, %v1380_v7  ;;  %v6920_v58 = vld [vmem:[#allocation8 + $0x5e8] ss:$16 sps:$4 sm:$0xff]   ;;  %v6925_v59 = vld [vmem:[#allocation8 + $0x604] ss:$16 sps:$4 sm:$0xff]   ;;  %v6928_v60 = vld [vmem:[#allocation8 + $0x60c] ss:$16 sps:$4 sm:$0xff]  }
 0x219   :  { %v6923_v61 = vld [vmem:[#allocation8 + $0x600] ss:$16 sps:$4 sm:$0xff]   ;;  %v6926_v62 = vld [vmem:[#allocation8 + $0x608] ss:$16 sps:$4 sm:$0xff]   ;;  %v6931_v63 = vld [vmem:[#allocation8 + $0x624] ss:$16 sps:$4 sm:$0xff]  }
 0x21a   :  { %4610 = vmatpush1.bf16.msra.mxu0 %v6875_v10  ;;  %4954 = vmatpush1.bf16.msra.mxu1 %v6878_v17  ;;  %v6934_v2 = vld [vmem:[#allocation8 + $0x62c] ss:$16 sps:$4 sm:$0xff]   ;;  %v6929_v3 = vld [vmem:[#allocation8 + $0x620] ss:$16 sps:$4 sm:$0xff]   ;;  %v6932_v8 = vld [vmem:[#allocation8 + $0x628] ss:$16 sps:$4 sm:$0xff]  }
 0x21b   :  { %4611 = vmatprep.subr.bf16.mxu0 %v6883_v22  ;;  %4955 = vmatprep.subr.bf16.mxu1 %v6886_v23  ;;  %v6937_v9 = vld [vmem:[#allocation8 + $0x644] ss:$16 sps:$4 sm:$0xff]   ;;  %v6940_v12 = vld [vmem:[#allocation8 + $0x64c] ss:$16 sps:$4 sm:$0xff]   ;;  %v6935_v10 = vld [vmem:[#allocation8 + $0x640] ss:$16 sps:$4 sm:$0xff]  }
 0x21c   :  { %v6938_v17 = vld [vmem:[#allocation8 + $0x648] ss:$16 sps:$4 sm:$0xff]   ;;  %v6943_v24 = vld [vmem:[#allocation8 + $0x664] ss:$16 sps:$4 sm:$0xff]   ;;  %v6941_v20 = vld [vmem:[#allocation8 + $0x660] ss:$16 sps:$4 sm:$0xff]  }
 0x21d   :  { %v6944_v22 = vld [vmem:[#allocation8 + $0x668] ss:$16 sps:$4 sm:$0xff]   ;;  %v6949_v23 = vld [vmem:[#allocation8 + $0x684] ss:$16 sps:$4 sm:$0xff]   ;;  %v6947_v27 = vld [vmem:[#allocation8 + $0x680] ss:$16 sps:$4 sm:$0xff]  }
 0x21e   :  { %4612 = vmatpush1.bf16.msra.mxu0 %v6881_v55  ;;  %4956 = vmatpush1.bf16.msra.mxu1 %v6884_v33  ;;  %v6950_v28 = vld [vmem:[#allocation8 + $0x688] ss:$16 sps:$4 sm:$0xff]   ;;  %v6955_v13 = vld [vmem:[#allocation8 + $0x6a4] ss:$16 sps:$4 sm:$0xff]   ;;  %v6958_v7 = vld [vmem:[#allocation8 + $0x6ac] ss:$16 sps:$4 sm:$0xff]  }
 0x21f   :  { %4613 = vmatprep.subr.bf16.mxu0 %v6889_v35  ;;  %4957 = vmatprep.subr.bf16.mxu1 %v6892_v36  ;;  %v6953_v30 = vld [vmem:[#allocation8 + $0x6a0] ss:$16 sps:$4 sm:$0xff]   ;;  %v6956_v32 = vld [vmem:[#allocation8 + $0x6a8] ss:$16 sps:$4 sm:$0xff]   ;;  %v6961_v55 = vld [vmem:[#allocation8 + $0x6c4] ss:$16 sps:$4 sm:$0xff]  }
 0x220   :  { %v6964_v33 = vld [vmem:[#allocation8 + $0x6cc] ss:$16 sps:$4 sm:$0xff]   ;;  %v6959_v34 = vld [vmem:[#allocation8 + $0x6c0] ss:$16 sps:$4 sm:$0xff]   ;;  %v6962_v35 = vld [vmem:[#allocation8 + $0x6c8] ss:$16 sps:$4 sm:$0xff]  }
 0x221   :  { %v6967_v36 = vld [vmem:[#allocation8 + $0x6e4] ss:$16 sps:$4 sm:$0xff]  }
 0x222   :  { %4614 = vmatpush1.bf16.msra.mxu0 %v6887_v25  ;;  %4958 = vmatpush1.bf16.msra.mxu1 %v6890_v39  ;;  %v6970_v25 = vld [vmem:[#allocation8 + $0x6ec] ss:$16 sps:$4 sm:$0xff]   ;;  %v6965_v39 = vld [vmem:[#allocation8 + $0x6e0] ss:$16 sps:$4 sm:$0xff]  }
 0x223   :  { %4615 = vmatprep.subr.bf16.mxu0 %v6895_v26  ;;  %4959 = vmatprep.subr.bf16.mxu1 %v6898_v53  ;;  %v6968_v26 = vld [vmem:[#allocation8 + $0x6e8] ss:$16 sps:$4 sm:$0xff]   ;;  %v6973_v53 = vld [vmem:[#allocation8 + $0x704] ss:$16 sps:$4 sm:$0xff]  }
 0x226   :  { %4616 = vmatpush1.bf16.msra.mxu0 %v6893_v40  ;;  %4960 = vmatpush1.bf16.msra.mxu1 %v6896_v41  ;;  %v6976_v40 = vld [vmem:[#allocation8 + $0x70c] ss:$16 sps:$4 sm:$0xff]   ;;  %v6971_v41 = vld [vmem:[#allocation8 + $0x700] ss:$16 sps:$4 sm:$0xff]  }
 0x227   :  { %4617 = vmatprep.subr.bf16.mxu0 %v6901_v42  ;;  %4961 = vmatprep.subr.bf16.mxu1 %v6904_v43  ;;  %v6974_v42 = vld [vmem:[#allocation8 + $0x708] ss:$16 sps:$4 sm:$0xff]   ;;  %v6979_v43 = vld [vmem:[#allocation8 + $0x724] ss:$16 sps:$4 sm:$0xff]  }
 0x22a   :  { %4618 = vmatpush1.bf16.msra.mxu0 %v6899_v44  ;;  %4962 = vmatpush1.bf16.msra.mxu1 %v6902_v45  ;;  %v6982_v44 = vld [vmem:[#allocation8 + $0x72c] ss:$16 sps:$4 sm:$0xff]   ;;  %v6977_v45 = vld [vmem:[#allocation8 + $0x720] ss:$16 sps:$4 sm:$0xff]  }
 0x22b   :  { %4619 = vmatprep.subr.bf16.mxu0 %v6907_v46  ;;  %4963 = vmatprep.subr.bf16.mxu1 %v6910_v47  ;;  %v6980_v46 = vld [vmem:[#allocation8 + $0x728] ss:$16 sps:$4 sm:$0xff]   ;;  %v6985_v47 = vld [vmem:[#allocation8 + $0x744] ss:$16 sps:$4 sm:$0xff]  }
 0x22e   :  { %4620 = vmatpush1.bf16.msra.mxu0 %v6905_v48  ;;  %4964 = vmatpush1.bf16.msra.mxu1 %v6908_v49  ;;  %v6988_v48 = vld [vmem:[#allocation8 + $0x74c] ss:$16 sps:$4 sm:$0xff]   ;;  %v6983_v49 = vld [vmem:[#allocation8 + $0x740] ss:$16 sps:$4 sm:$0xff]  }
 0x22f   :  { %4621 = vmatprep.subr.bf16.mxu0 %v6913_v0  ;;  %4965 = vmatprep.subr.bf16.mxu1 %v6916_v51  ;;  %v6986_v0 = vld [vmem:[#allocation8 + $0x748] ss:$16 sps:$4 sm:$0xff]   ;;  %v6991_v51 = vld [vmem:[#allocation8 + $0x764] ss:$16 sps:$4 sm:$0xff]  }
 0x232   :  { %4622 = vmatpush1.bf16.msra.mxu0 %v6911_v52  ;;  %4966 = vmatpush1.bf16.msra.mxu1 %v6914_v54  ;;  %v6994_v52 = vld [vmem:[#allocation8 + $0x76c] ss:$16 sps:$4 sm:$0xff]   ;;  %v6989_v54 = vld [vmem:[#allocation8 + $0x760] ss:$16 sps:$4 sm:$0xff]  }
 0x233   :  { %4623 = vmatprep.subr.bf16.mxu0 %v6919_v56  ;;  %4967 = vmatprep.subr.bf16.mxu1 %v6922_v14  ;;  %v6992_v56 = vld [vmem:[#allocation8 + $0x768] ss:$16 sps:$4 sm:$0xff]   ;;  %v6997_v14 = vld [vmem:[#allocation8 + $0x784] ss:$16 sps:$4 sm:$0xff]  }
 0x236   :  { %4624 = vmatpush1.bf16.msra.mxu0 %v6917_v57  ;;  %4968 = vmatpush1.bf16.msra.mxu1 %v6920_v58  ;;  %v7000_v57 = vld [vmem:[#allocation8 + $0x78c] ss:$16 sps:$4 sm:$0xff]   ;;  %v6995_v58 = vld [vmem:[#allocation8 + $0x780] ss:$16 sps:$4 sm:$0xff]  }
 0x237   :  { %4636 = vmatprep.subr.bf16.mxu0 %v6925_v59  ;;  %4980 = vmatprep.subr.bf16.mxu1 %v6928_v60  ;;  %v6998_v59 = vld [vmem:[#allocation8 + $0x788] ss:$16 sps:$4 sm:$0xff]   ;;  %v7003_v60 = vld [vmem:[#allocation8 + $0x7a4] ss:$16 sps:$4 sm:$0xff]  }
 0x239   :  { %4626 = vmatmul.mubr.bf16.vlgmr.msra.gmra.mrb[16].mxu0 %v7993_v50  ;;  %4970 = vmatmul.mubr.bf16.vlgmr.msra.gmra.mrb[16].mxu1 %v7993_v50  ;;  %v6946_v50 = vld [vmem:[#allocation8 + $0x66c] ss:$16 sps:$4 sm:$0xff]  }
 0x23a   :  { %4637 = vmatpush1.bf16.msra.mxu0 %v6923_v61  ;;  %4668 = vmatprep.mubr.bf16.mxu0 %v7999_v11  ;;  %v7006_v61 = vld [vmem:[#allocation8 + $0x7ac] ss:$16 sps:$4 sm:$0xff]  }
 0x23b   :  { %4981 = vmatpush1.bf16.msra.mxu1 %v6926_v62  ;;  %5012 = vmatprep.mubr.bf16.mxu1 %v7999_v11  ;;  %v6952_v11 = vld [vmem:[#allocation8 + $0x68c] ss:$16 sps:$4 sm:$0xff]   ;;  %v7001_v62 = vld [vmem:[#allocation8 + $0x7a0] ss:$16 sps:$4 sm:$0xff]  }
 0x23c   :  { %4638 = vmatprep.subr.bf16.mxu0 %v6931_v63  ;;  %4982 = vmatprep.subr.bf16.mxu1 %v6934_v2  ;;  %v7004_v63 = vld [vmem:[#allocation8 + $0x7a8] ss:$16 sps:$4 sm:$0xff]   ;;  %v7009_v2 = vld [vmem:[#allocation8 + $0x7c4] ss:$16 sps:$4 sm:$0xff]  }
 0x23e   :  { %4639 = vmatpush1.bf16.msra.mxu0 %v6929_v3  ;;  %v7012_v3 = vld [vmem:[#allocation8 + $0x7cc] ss:$16 sps:$4 sm:$0xff]  }
 0x23f   :  { %4983 = vmatpush1.bf16.msra.mxu1 %v6932_v8  ;;  %4640 = vmatprep.subr.bf16.mxu0 %v6937_v9  ;;  %v7007_v8 = vld [vmem:[#allocation8 + $0x7c0] ss:$16 sps:$4 sm:$0xff]   ;;  %v7010_v9 = vld [vmem:[#allocation8 + $0x7c8] ss:$16 sps:$4 sm:$0xff]  }
 0x240   :  { %4984 = vmatprep.subr.bf16.mxu1 %v6940_v12  ;;  %v7015_v12 = vld [vmem:[#allocation8 + $0x7e4] ss:$16 sps:$4 sm:$0xff]  }
 0x242   :  { %4641 = vmatpush1.bf16.msra.mxu0 %v6935_v10  ;;  %v7018_v10 = vld [vmem:[#allocation8 + $0x7ec] ss:$16 sps:$4 sm:$0xff]  }
 0x243   :  { %4985 = vmatpush1.bf16.msra.mxu1 %v6938_v17  ;;  %4642 = vmatprep.subr.bf16.mxu0 %v6943_v24  ;;  %v7013_v17 = vld [vmem:[#allocation8 + $0x7e0] ss:$16 sps:$4 sm:$0xff]   ;;  %v7016_v24 = vld [vmem:[#allocation8 + $0x7e8] ss:$16 sps:$4 sm:$0xff]  }
 0x244   :  { %4986 = vmatprep.subr.bf16.mxu1 %v6946_v50  ;;  %v7021_v50 = vld [vmem:[#allocation8 + $0x804] ss:$16 sps:$4 sm:$0xff]  }
 0x246   :  { %4643 = vmatpush1.bf16.msra.mxu0 %v6941_v20  ;;  %v7024_v20 = vld [vmem:[#allocation8 + $0x80c] ss:$16 sps:$4 sm:$0xff]  }
 0x247   :  { %4987 = vmatpush1.bf16.msra.mxu1 %v6944_v22  ;;  %4644 = vmatprep.subr.bf16.mxu0 %v6949_v23  ;;  %v7019_v22 = vld [vmem:[#allocation8 + $0x800] ss:$16 sps:$4 sm:$0xff]   ;;  %v7022_v23 = vld [vmem:[#allocation8 + $0x808] ss:$16 sps:$4 sm:$0xff]  }
 0x248   :  { %4988 = vmatprep.subr.bf16.mxu1 %v6952_v11  ;;  %v7027_v11 = vld [vmem:[#allocation8 + $0x824] ss:$16 sps:$4 sm:$0xff]  }
 0x24a   :  { %4645 = vmatpush1.bf16.msra.mxu0 %v6947_v27  ;;  %v7030_v27 = vld [vmem:[#allocation8 + $0x82c] ss:$16 sps:$4 sm:$0xff]  }
 0x24b   :  { %4989 = vmatpush1.bf16.msra.mxu1 %v6950_v28  ;;  %4646 = vmatprep.subr.bf16.mxu0 %v6955_v13  ;;  %v7025_v28 = vld [vmem:[#allocation8 + $0x820] ss:$16 sps:$4 sm:$0xff]   ;;  %v7028_v13 = vld [vmem:[#allocation8 + $0x828] ss:$16 sps:$4 sm:$0xff]  }
 0x24c   :  { %4990 = vmatprep.subr.bf16.mxu1 %v6958_v7  ;;  %v7033_v7 = vld [vmem:[#allocation8 + $0x844] ss:$16 sps:$4 sm:$0xff]  }
 0x24e   :  { %4647 = vmatpush1.bf16.msra.mxu0 %v6953_v30  ;;  %v7036_v30 = vld [vmem:[#allocation8 + $0x84c] ss:$16 sps:$4 sm:$0xff]  }
 0x24f   :  { %4991 = vmatpush1.bf16.msra.mxu1 %v6956_v32  ;;  %4648 = vmatprep.subr.bf16.mxu0 %v6961_v55  ;;  %v7031_v32 = vld [vmem:[#allocation8 + $0x840] ss:$16 sps:$4 sm:$0xff]   ;;  %v7034_v55 = vld [vmem:[#allocation8 + $0x848] ss:$16 sps:$4 sm:$0xff]  }
 0x250   :  { %4992 = vmatprep.subr.bf16.mxu1 %v6964_v33  ;;  %v7039_v33 = vld [vmem:[#allocation8 + $0x864] ss:$16 sps:$4 sm:$0xff]  }
 0x252   :  { %4649 = vmatpush1.bf16.msra.mxu0 %v6959_v34  ;;  %v7037_v34 = vld [vmem:[#allocation8 + $0x860] ss:$16 sps:$4 sm:$0xff]  }
 0x253   :  { %4993 = vmatpush1.bf16.msra.mxu1 %v6962_v35  ;;  %4650 = vmatprep.subr.bf16.mxu0 %v6967_v36  ;;  %v7040_v35 = vld [vmem:[#allocation8 + $0x868] ss:$16 sps:$4 sm:$0xff]   ;;  %v7045_v36 = vld [vmem:[#allocation8 + $0x884] ss:$16 sps:$4 sm:$0xff]  }
 0x254   :  { %4994 = vmatprep.subr.bf16.mxu1 %v6970_v25  ;;  %v7048_v25 = vld [vmem:[#allocation8 + $0x88c] ss:$16 sps:$4 sm:$0xff]  }
 0x256   :  { %4651 = vmatpush1.bf16.msra.mxu0 %v6965_v39  ;;  %v7046_v39 = vld [vmem:[#allocation8 + $0x888] ss:$16 sps:$4 sm:$0xff]  }
 0x257   :  { %4995 = vmatpush1.bf16.msra.mxu1 %v6968_v26  ;;  %4652 = vmatprep.subr.bf16.mxu0 %v6973_v53  ;;  %v7051_v26 = vld [vmem:[#allocation8 + $0x8a4] ss:$16 sps:$4 sm:$0xff]   ;;  %v7054_v53 = vld [vmem:[#allocation8 + $0x8ac] ss:$16 sps:$4 sm:$0xff]  }
 0x258   :  { %4996 = vmatprep.subr.bf16.mxu1 %v6976_v40  ;;  %v7049_v40 = vld [vmem:[#allocation8 + $0x8a0] ss:$16 sps:$4 sm:$0xff]  }
 0x25a   :  { %4653 = vmatpush1.bf16.msra.mxu0 %v6971_v41  ;;  %v7052_v41 = vld [vmem:[#allocation8 + $0x8a8] ss:$16 sps:$4 sm:$0xff]  }
 0x25b   :  { %4997 = vmatpush1.bf16.msra.mxu1 %v6974_v42  ;;  %4654 = vmatprep.subr.bf16.mxu0 %v6979_v43  ;;  %v7057_v42 = vld [vmem:[#allocation8 + $0x8c4] ss:$16 sps:$4 sm:$0xff]   ;;  %v7060_v43 = vld [vmem:[#allocation8 + $0x8cc] ss:$16 sps:$4 sm:$0xff]  }
 0x25c   :  { %4998 = vmatprep.subr.bf16.mxu1 %v6982_v44  ;;  %v7055_v44 = vld [vmem:[#allocation8 + $0x8c0] ss:$16 sps:$4 sm:$0xff]  }
 0x25e   :  { %4655 = vmatpush1.bf16.msra.mxu0 %v6977_v45  ;;  %v7058_v45 = vld [vmem:[#allocation8 + $0x8c8] ss:$16 sps:$4 sm:$0xff]  }
 0x25f   :  { %4999 = vmatpush1.bf16.msra.mxu1 %v6980_v46  ;;  %4656 = vmatprep.subr.bf16.mxu0 %v6985_v47  ;;  %v7063_v46 = vld [vmem:[#allocation8 + $0x8e4] ss:$16 sps:$4 sm:$0xff]   ;;  %v7066_v47 = vld [vmem:[#allocation8 + $0x8ec] ss:$16 sps:$4 sm:$0xff]  }
 0x260   :  { %5000 = vmatprep.subr.bf16.mxu1 %v6988_v48  ;;  %v7061_v48 = vld [vmem:[#allocation8 + $0x8e0] ss:$16 sps:$4 sm:$0xff]  }
 0x262   :  { %4657 = vmatpush1.bf16.msra.mxu0 %v6983_v49  ;;  %v7064_v49 = vld [vmem:[#allocation8 + $0x8e8] ss:$16 sps:$4 sm:$0xff]  }
 0x263   :  { %5001 = vmatpush1.bf16.msra.mxu1 %v6986_v0  ;;  %4658 = vmatprep.subr.bf16.mxu0 %v6991_v51  ;;  %v7069_v0 = vld [vmem:[#allocation8 + $0x904] ss:$16 sps:$4 sm:$0xff]   ;;  %v7072_v51 = vld [vmem:[#allocation8 + $0x90c] ss:$16 sps:$4 sm:$0xff]  }
 0x264   :  { %5002 = vmatprep.subr.bf16.mxu1 %v6994_v52  ;;  %v7067_v52 = vld [vmem:[#allocation8 + $0x900] ss:$16 sps:$4 sm:$0xff]  }
 0x266   :  { %4659 = vmatpush1.bf16.msra.mxu0 %v6989_v54  ;;  %v7070_v54 = vld [vmem:[#allocation8 + $0x908] ss:$16 sps:$4 sm:$0xff]  }
 0x267   :  { %5003 = vmatpush1.bf16.msra.mxu1 %v6992_v56  ;;  %4660 = vmatprep.subr.bf16.mxu0 %v6997_v14  ;;  %v7075_v56 = vld [vmem:[#allocation8 + $0x924] ss:$16 sps:$4 sm:$0xff]   ;;  %v7078_v14 = vld [vmem:[#allocation8 + $0x92c] ss:$16 sps:$4 sm:$0xff]  }
 0x268   :  { %5004 = vmatprep.subr.bf16.mxu1 %v7000_v57  ;;  %v7073_v57 = vld [vmem:[#allocation8 + $0x920] ss:$16 sps:$4 sm:$0xff]  }
 0x26a   :  { %4661 = vmatpush1.bf16.msra.mxu0 %v6995_v58  ;;  %v7076_v58 = vld [vmem:[#allocation8 + $0x928] ss:$16 sps:$4 sm:$0xff]  }
 0x26b   :  { %5005 = vmatpush1.bf16.msra.mxu1 %v6998_v59  ;;  %4662 = vmatprep.subr.bf16.mxu0 %v7003_v60  ;;  %v7081_v59 = vld [vmem:[#allocation8 + $0x944] ss:$16 sps:$4 sm:$0xff]   ;;  %v7084_v60 = vld [vmem:[#allocation8 + $0x94c] ss:$16 sps:$4 sm:$0xff]  }
 0x26c   :  { %5006 = vmatprep.subr.bf16.mxu1 %v7006_v61  ;;  %v7079_v61 = vld [vmem:[#allocation8 + $0x940] ss:$16 sps:$4 sm:$0xff]  }
 0x26e   :  { %4663 = vmatpush1.bf16.msra.mxu0 %v7001_v62  ;;  %v7082_v62 = vld [vmem:[#allocation8 + $0x948] ss:$16 sps:$4 sm:$0xff]  }
 0x26f   :  { %5007 = vmatpush1.bf16.msra.mxu1 %v7004_v63  ;;  %4664 = vmatprep.subr.bf16.mxu0 %v7009_v2  ;;  %v7087_v63 = vld [vmem:[#allocation8 + $0x964] ss:$16 sps:$4 sm:$0xff]   ;;  %v7090_v2 = vld [vmem:[#allocation8 + $0x96c] ss:$16 sps:$4 sm:$0xff]  }
 0x270   :  { %5008 = vmatprep.subr.bf16.mxu1 %v7012_v3  ;;  %v7085_v3 = vld [vmem:[#allocation8 + $0x960] ss:$16 sps:$4 sm:$0xff]  }
 0x272   :  { %4665 = vmatpush1.bf16.msra.mxu0 %v7007_v8  ;;  %v7088_v8 = vld [vmem:[#allocation8 + $0x968] ss:$16 sps:$4 sm:$0xff]  }
 0x273   :  { %5009 = vmatpush1.bf16.msra.mxu1 %v7010_v9  ;;  %4666 = vmatprep.subr.bf16.mxu0 %v7015_v12  ;;  %v7093_v9 = vld [vmem:[#allocation8 + $0x984] ss:$16 sps:$4 sm:$0xff]   ;;  %v7096_v12 = vld [vmem:[#allocation8 + $0x98c] ss:$16 sps:$4 sm:$0xff]  }
 0x274   :  { %5010 = vmatprep.subr.bf16.mxu1 %v7018_v10  ;;  %v7091_v10 = vld [vmem:[#allocation8 + $0x980] ss:$16 sps:$4 sm:$0xff]  }
 0x276   :  { %4667 = vmatpush1.bf16.msra.mxu0 %v7013_v17  ;;  %v7094_v17 = vld [vmem:[#allocation8 + $0x988] ss:$16 sps:$4 sm:$0xff]  }
 0x277   :  { %5011 = vmatpush1.bf16.msra.mxu1 %v7016_v24  ;;  %4679 = vmatprep.subr.bf16.mxu0 %v7021_v50  ;;  %v7099_v24 = vld [vmem:[#allocation8 + $0x9a4] ss:$16 sps:$4 sm:$0xff]   ;;  %v7102_v50 = vld [vmem:[#allocation8 + $0x9ac] ss:$16 sps:$4 sm:$0xff]  }
 0x278   :  { %5023 = vmatprep.subr.bf16.mxu1 %v7024_v20  ;;  %v7097_v20 = vld [vmem:[#allocation8 + $0x9a0] ss:$16 sps:$4 sm:$0xff]  }
 0x279   :  { %4669 = vmatmul.mubr.bf16.vlgmr.msra.gmra.mrb[16].mxu0 %v7997_v6 }
 0x27a   :  { %5013 = vmatmul.mubr.bf16.vlgmr.msra.gmra.mrb[16].mxu1 %v7997_v6  ;;  %4680 = vmatpush1.bf16.msra.mxu0 %v7019_v22  ;;  %v7042_v6 = vld [vmem:[#allocation8 + $0x86c] ss:$16 sps:$4 sm:$0xff]   ;;  %v7100_v22 = vld [vmem:[#allocation8 + $0x9a8] ss:$16 sps:$4 sm:$0xff]  }
 0x27b   :  { %4711 = vmatprep.mubr.bf16.mxu0 %v8011_v4  ;;  %5024 = vmatpush1.bf16.msra.mxu1 %v7022_v23  ;;  %v7105_v23 = vld [vmem:[#allocation8 + $0x9c4] ss:$16 sps:$4 sm:$0xff]  }
 0x27c   :  { %5055 = vmatprep.mubr.bf16.mxu1 %v8011_v4  ;;  %4681 = vmatprep.subr.bf16.mxu0 %v7027_v11  ;;  %v7043_v4 = vld [vmem:[#allocation8 + $0x880] ss:$16 sps:$4 sm:$0xff]   ;;  %v7108_v11 = vld [vmem:[#allocation8 + $0x9cc] ss:$16 sps:$4 sm:$0xff]  }
 0x27d   :  { %5025 = vmatprep.subr.bf16.mxu1 %v7030_v27  ;;  %v7103_v27 = vld [vmem:[#allocation8 + $0x9c0] ss:$16 sps:$4 sm:$0xff]  }
 0x27e   :  { %4682 = vmatpush1.bf16.msra.mxu0 %v7025_v28  ;;  %v7106_v28 = vld [vmem:[#allocation8 + $0x9c8] ss:$16 sps:$4 sm:$0xff]  }
 0x27f   :  { %5026 = vmatpush1.bf16.msra.mxu1 %v7028_v13  ;;  %4683 = vmatprep.subr.bf16.mxu0 %v7033_v7  ;;  %v7111_v13 = vld [vmem:[#allocation8 + $0x9e4] ss:$16 sps:$4 sm:$0xff]   ;;  %v7114_v7 = vld [vmem:[#allocation8 + $0x9ec] ss:$16 sps:$4 sm:$0xff]  }
 0x280   :  { %5027 = vmatprep.subr.bf16.mxu1 %v7036_v30  ;;  %v7109_v30 = vld [vmem:[#allocation8 + $0x9e0] ss:$16 sps:$4 sm:$0xff]  }
 0x282   :  { %4684 = vmatpush1.bf16.msra.mxu0 %v7031_v32  ;;  %v7112_v32 = vld [vmem:[#allocation8 + $0x9e8] ss:$16 sps:$4 sm:$0xff]  }
 0x283   :  { %5028 = vmatpush1.bf16.msra.mxu1 %v7034_v55  ;;  %4685 = vmatprep.subr.bf16.mxu0 %v7039_v33  ;;  %v7117_v55 = vld [vmem:[#allocation8 + $0xa04] ss:$16 sps:$4 sm:$0xff]   ;;  %v7120_v33 = vld [vmem:[#allocation8 + $0xa0c] ss:$16 sps:$4 sm:$0xff]  }
 0x284   :  { %5029 = vmatprep.subr.bf16.mxu1 %v7042_v6  ;;  %v7115_v6 = vld [vmem:[#allocation8 + $0xa00] ss:$16 sps:$4 sm:$0xff]  }
 0x286   :  { %4686 = vmatpush1.bf16.msra.mxu0 %v7037_v34  ;;  %v7118_v34 = vld [vmem:[#allocation8 + $0xa08] ss:$16 sps:$4 sm:$0xff]  }
 0x287   :  { %5030 = vmatpush1.bf16.msra.mxu1 %v7040_v35  ;;  %4687 = vmatprep.subr.bf16.mxu0 %v7045_v36  ;;  %v7123_v35 = vld [vmem:[#allocation8 + $0xa24] ss:$16 sps:$4 sm:$0xff]   ;;  %v7126_v36 = vld [vmem:[#allocation8 + $0xa2c] ss:$16 sps:$4 sm:$0xff]  }
 0x288   :  { %5031 = vmatprep.subr.bf16.mxu1 %v7048_v25  ;;  %v7121_v25 = vld [vmem:[#allocation8 + $0xa20] ss:$16 sps:$4 sm:$0xff]  }
 0x28a   :  { %4688 = vmatpush1.bf16.msra.mxu0 %v7043_v4  ;;  %v7124_v4 = vld [vmem:[#allocation8 + $0xa28] ss:$16 sps:$4 sm:$0xff]  }
 0x28b   :  { %5032 = vmatpush1.bf16.msra.mxu1 %v7046_v39  ;;  %4689 = vmatprep.subr.bf16.mxu0 %v7051_v26  ;;  %v7129_v39 = vld [vmem:[#allocation8 + $0xa44] ss:$16 sps:$4 sm:$0xff]   ;;  %v7132_v26 = vld [vmem:[#allocation8 + $0xa4c] ss:$16 sps:$4 sm:$0xff]  }
 0x28c   :  { %5033 = vmatprep.subr.bf16.mxu1 %v7054_v53  ;;  %v7127_v53 = vld [vmem:[#allocation8 + $0xa40] ss:$16 sps:$4 sm:$0xff]  }
 0x28e   :  { %4690 = vmatpush1.bf16.msra.mxu0 %v7049_v40  ;;  %v7130_v40 = vld [vmem:[#allocation8 + $0xa48] ss:$16 sps:$4 sm:$0xff]  }
 0x28f   :  { %5034 = vmatpush1.bf16.msra.mxu1 %v7052_v41  ;;  %4691 = vmatprep.subr.bf16.mxu0 %v7057_v42  ;;  %v7135_v41 = vld [vmem:[#allocation8 + $0xa64] ss:$16 sps:$4 sm:$0xff]   ;;  %v7133_v42 = vld [vmem:[#allocation8 + $0xa60] ss:$16 sps:$4 sm:$0xff]  }
 0x290   :  { %5035 = vmatprep.subr.bf16.mxu1 %v7060_v43  ;;  %v7136_v43 = vld [vmem:[#allocation8 + $0xa68] ss:$16 sps:$4 sm:$0xff]  }
 0x292   :  { %4692 = vmatpush1.bf16.msra.mxu0 %v7055_v44  ;;  %v7141_v44 = vld [vmem:[#allocation8 + $0xa84] ss:$16 sps:$4 sm:$0xff]  }
 0x293   :  { %5036 = vmatpush1.bf16.msra.mxu1 %v7058_v45  ;;  %4693 = vmatprep.subr.bf16.mxu0 %v7063_v46  ;;  %v7144_v45 = vld [vmem:[#allocation8 + $0xa8c] ss:$16 sps:$4 sm:$0xff]   ;;  %v7142_v46 = vld [vmem:[#allocation8 + $0xa88] ss:$16 sps:$4 sm:$0xff]  }
 0x294   :  { %5037 = vmatprep.subr.bf16.mxu1 %v7066_v47  ;;  %v7147_v47 = vld [vmem:[#allocation8 + $0xaa4] ss:$16 sps:$4 sm:$0xff]  }
 0x296   :  { %4694 = vmatpush1.bf16.msra.mxu0 %v7061_v48  ;;  %v7150_v48 = vld [vmem:[#allocation8 + $0xaac] ss:$16 sps:$4 sm:$0xff]  }
 0x297   :  { %5038 = vmatpush1.bf16.msra.mxu1 %v7064_v49  ;;  %4695 = vmatprep.subr.bf16.mxu0 %v7069_v0  ;;  %v7145_v49 = vld [vmem:[#allocation8 + $0xaa0] ss:$16 sps:$4 sm:$0xff]   ;;  %v7148_v0 = vld [vmem:[#allocation8 + $0xaa8] ss:$16 sps:$4 sm:$0xff]  }
 0x298   :  { %5039 = vmatprep.subr.bf16.mxu1 %v7072_v51  ;;  %v7153_v51 = vld [vmem:[#allocation8 + $0xac4] ss:$16 sps:$4 sm:$0xff]  }
 0x29a   :  { %4696 = vmatpush1.bf16.msra.mxu0 %v7067_v52  ;;  %v7156_v52 = vld [vmem:[#allocation8 + $0xacc] ss:$16 sps:$4 sm:$0xff]  }
 0x29b   :  { %5040 = vmatpush1.bf16.msra.mxu1 %v7070_v54  ;;  %4697 = vmatprep.subr.bf16.mxu0 %v7075_v56  ;;  %v7151_v54 = vld [vmem:[#allocation8 + $0xac0] ss:$16 sps:$4 sm:$0xff]   ;;  %v7154_v56 = vld [vmem:[#allocation8 + $0xac8] ss:$16 sps:$4 sm:$0xff]  }
 0x29c   :  { %5041 = vmatprep.subr.bf16.mxu1 %v7078_v14  ;;  %v7159_v14 = vld [vmem:[#allocation8 + $0xae4] ss:$16 sps:$4 sm:$0xff]  }
 0x29e   :  { %4698 = vmatpush1.bf16.msra.mxu0 %v7073_v57  ;;  %v7162_v57 = vld [vmem:[#allocation8 + $0xaec] ss:$16 sps:$4 sm:$0xff]  }
 0x29f   :  { %5042 = vmatpush1.bf16.msra.mxu1 %v7076_v58  ;;  %4699 = vmatprep.subr.bf16.mxu0 %v7081_v59  ;;  %v7157_v58 = vld [vmem:[#allocation8 + $0xae0] ss:$16 sps:$4 sm:$0xff]   ;;  %v7160_v59 = vld [vmem:[#allocation8 + $0xae8] ss:$16 sps:$4 sm:$0xff]  }
 0x2a0   :  { %5043 = vmatprep.subr.bf16.mxu1 %v7084_v60  ;;  %v7165_v60 = vld [vmem:[#allocation8 + $0xb04] ss:$16 sps:$4 sm:$0xff]  }
 0x2a2   :  { %4700 = vmatpush1.bf16.msra.mxu0 %v7079_v61  ;;  %v7168_v61 = vld [vmem:[#allocation8 + $0xb0c] ss:$16 sps:$4 sm:$0xff]  }
 0x2a3   :  { %5044 = vmatpush1.bf16.msra.mxu1 %v7082_v62  ;;  %4701 = vmatprep.subr.bf16.mxu0 %v7087_v63  ;;  %v7163_v62 = vld [vmem:[#allocation8 + $0xb00] ss:$16 sps:$4 sm:$0xff]   ;;  %v7166_v63 = vld [vmem:[#allocation8 + $0xb08] ss:$16 sps:$4 sm:$0xff]  }
 0x2a4   :  { %5045 = vmatprep.subr.bf16.mxu1 %v7090_v2  ;;  %v7171_v2 = vld [vmem:[#allocation8 + $0xb24] ss:$16 sps:$4 sm:$0xff]  }
 0x2a6   :  { %4702 = vmatpush1.bf16.msra.mxu0 %v7085_v3  ;;  %v7174_v3 = vld [vmem:[#allocation8 + $0xb2c] ss:$16 sps:$4 sm:$0xff]  }
 0x2a7   :  { %5046 = vmatpush1.bf16.msra.mxu1 %v7088_v8  ;;  %4703 = vmatprep.subr.bf16.mxu0 %v7093_v9  ;;  %v7169_v8 = vld [vmem:[#allocation8 + $0xb20] ss:$16 sps:$4 sm:$0xff]   ;;  %v7172_v9 = vld [vmem:[#allocation8 + $0xb28] ss:$16 sps:$4 sm:$0xff]  }
 0x2a8   :  { %5047 = vmatprep.subr.bf16.mxu1 %v7096_v12  ;;  %v7177_v12 = vld [vmem:[#allocation8 + $0xb44] ss:$16 sps:$4 sm:$0xff]  }
 0x2aa   :  { %4704 = vmatpush1.bf16.msra.mxu0 %v7091_v10  ;;  %v7180_v10 = vld [vmem:[#allocation8 + $0xb4c] ss:$16 sps:$4 sm:$0xff]  }
 0x2ab   :  { %5048 = vmatpush1.bf16.msra.mxu1 %v7094_v17  ;;  %4705 = vmatprep.subr.bf16.mxu0 %v7099_v24  ;;  %v7175_v17 = vld [vmem:[#allocation8 + $0xb40] ss:$16 sps:$4 sm:$0xff]   ;;  %v7178_v24 = vld [vmem:[#allocation8 + $0xb48] ss:$16 sps:$4 sm:$0xff]  }
 0x2ac   :  { %5049 = vmatprep.subr.bf16.mxu1 %v7102_v50  ;;  %v7183_v50 = vld [vmem:[#allocation8 + $0xb64] ss:$16 sps:$4 sm:$0xff]  }
 0x2ae   :  { %4706 = vmatpush1.bf16.msra.mxu0 %v7097_v20  ;;  %v7186_v20 = vld [vmem:[#allocation8 + $0xb6c] ss:$16 sps:$4 sm:$0xff]  }
 0x2af   :  { %5050 = vmatpush1.bf16.msra.mxu1 %v7100_v22  ;;  %4707 = vmatprep.subr.bf16.mxu0 %v7105_v23  ;;  %v7181_v22 = vld [vmem:[#allocation8 + $0xb60] ss:$16 sps:$4 sm:$0xff]   ;;  %v7184_v23 = vld [vmem:[#allocation8 + $0xb68] ss:$16 sps:$4 sm:$0xff]  }
 0x2b0   :  { %5051 = vmatprep.subr.bf16.mxu1 %v7108_v11  ;;  %v7189_v11 = vld [vmem:[#allocation8 + $0xb84] ss:$16 sps:$4 sm:$0xff]  }
 0x2b2   :  { %4708 = vmatpush1.bf16.msra.mxu0 %v7103_v27  ;;  %v7192_v27 = vld [vmem:[#allocation8 + $0xb8c] ss:$16 sps:$4 sm:$0xff]  }
 0x2b3   :  { %5052 = vmatpush1.bf16.msra.mxu1 %v7106_v28  ;;  %4709 = vmatprep.subr.bf16.mxu0 %v7111_v13  ;;  %v7187_v28 = vld [vmem:[#allocation8 + $0xb80] ss:$16 sps:$4 sm:$0xff]   ;;  %v7190_v13 = vld [vmem:[#allocation8 + $0xb88] ss:$16 sps:$4 sm:$0xff]  }
 0x2b4   :  { %5053 = vmatprep.subr.bf16.mxu1 %v7114_v7  ;;  %v7195_v7 = vld [vmem:[#allocation8 + $0xba4] ss:$16 sps:$4 sm:$0xff]  }
 0x2b6   :  { %4710 = vmatpush1.bf16.msra.mxu0 %v7109_v30  ;;  %v7198_v30 = vld [vmem:[#allocation8 + $0xbac] ss:$16 sps:$4 sm:$0xff]  }
 0x2b7   :  { %5054 = vmatpush1.bf16.msra.mxu1 %v7112_v32  ;;  %4722 = vmatprep.subr.bf16.mxu0 %v7117_v55  ;;  %v7193_v32 = vld [vmem:[#allocation8 + $0xba0] ss:$16 sps:$4 sm:$0xff]   ;;  %v7196_v55 = vld [vmem:[#allocation8 + $0xba8] ss:$16 sps:$4 sm:$0xff]  }
 0x2b8   :  { %5066 = vmatprep.subr.bf16.mxu1 %v7120_v33  ;;  %v7201_v33 = vld [vmem:[#allocation8 + $0xbc4] ss:$16 sps:$4 sm:$0xff]  }
 0x2b9   :  { %4712 = vmatmul.mubr.bf16.vlgmr.msra.gmra.mrb[16].mxu0 %v8009_v1 }
 0x2ba   :  { %5056 = vmatmul.mubr.bf16.vlgmr.msra.gmra.mrb[16].mxu1 %v8009_v1  ;;  %4723 = vmatpush1.bf16.msra.mxu0 %v7115_v6  ;;  %v7138_v1 = vld [vmem:[#allocation8 + $0xa6c] ss:$16 sps:$4 sm:$0xff]  }
 0x2bb   :  { %4754 = vmatprep.mubr.bf16.mxu0 %v8019_v31  ;;  %5067 = vmatpush1.bf16.msra.mxu1 %v7118_v34  ;;  %v7204_v6 = vld [vmem:[#allocation8 + $0xbcc] ss:$16 sps:$4 sm:$0xff]   ;;  %v7199_v34 = vld [vmem:[#allocation8 + $0xbc0] ss:$16 sps:$4 sm:$0xff]  }
 0x2bc   :  { %5098 = vmatprep.mubr.bf16.mxu1 %v8019_v31  ;;  %4724 = vmatprep.subr.bf16.mxu0 %v7123_v35  ;;  %v7139_v31 = vld [vmem:[#allocation8 + $0xa80] ss:$16 sps:$4 sm:$0xff]   ;;  %v7202_v35 = vld [vmem:[#allocation8 + $0xbc8] ss:$16 sps:$4 sm:$0xff]  }
 0x2bd   :  { %5068 = vmatprep.subr.bf16.mxu1 %v7126_v36  ;;  %v7207_v36 = vld [vmem:[#allocation8 + $0xbe4] ss:$16 sps:$4 sm:$0xff]  }
 0x2be   :  { %4725 = vmatpush1.bf16.msra.mxu0 %v7121_v25  ;;  %v7210_v25 = vld [vmem:[#allocation8 + $0xbec] ss:$16 sps:$4 sm:$0xff]  }
 0x2bf   :  { %5069 = vmatpush1.bf16.msra.mxu1 %v7124_v4  ;;  %4726 = vmatprep.subr.bf16.mxu0 %v7129_v39  ;;  %v7205_v4 = vld [vmem:[#allocation8 + $0xbe0] ss:$16 sps:$4 sm:$0xff]   ;;  %v7208_v39 = vld [vmem:[#allocation8 + $0xbe8] ss:$16 sps:$4 sm:$0xff]  }
 0x2c0   :  { %5070 = vmatprep.subr.bf16.mxu1 %v7132_v26  ;;  %v7213_v26 = vld [vmem:[#allocation8 + $0xc04] ss:$16 sps:$4 sm:$0xff]  }
 0x2c2   :  { %4727 = vmatpush1.bf16.msra.mxu0 %v7127_v53  ;;  %v7216_v53 = vld [vmem:[#allocation8 + $0xc0c] ss:$16 sps:$4 sm:$0xff]  }
 0x2c3   :  { %5071 = vmatpush1.bf16.msra.mxu1 %v7130_v40  ;;  %4728 = vmatprep.subr.bf16.mxu0 %v7135_v41  ;;  %v7211_v40 = vld [vmem:[#allocation8 + $0xc00] ss:$16 sps:$4 sm:$0xff]   ;;  %v7214_v41 = vld [vmem:[#allocation8 + $0xc08] ss:$16 sps:$4 sm:$0xff]  }
 0x2c4   :  { %5072 = vmatprep.subr.bf16.mxu1 %v7138_v1  ;;  %v7219_v1 = vld [vmem:[#allocation8 + $0xc24] ss:$16 sps:$4 sm:$0xff]  }
 0x2c6   :  { %4729 = vmatpush1.bf16.msra.mxu0 %v7133_v42  ;;  %v7222_v42 = vld [vmem:[#allocation8 + $0xc2c] ss:$16 sps:$4 sm:$0xff]  }
 0x2c7   :  { %5073 = vmatpush1.bf16.msra.mxu1 %v7136_v43  ;;  %4730 = vmatprep.subr.bf16.mxu0 %v7141_v44  ;;  %v7217_v43 = vld [vmem:[#allocation8 + $0xc20] ss:$16 sps:$4 sm:$0xff]   ;;  %v7220_v44 = vld [vmem:[#allocation8 + $0xc28] ss:$16 sps:$4 sm:$0xff]  }
 0x2c8   :  { %5074 = vmatprep.subr.bf16.mxu1 %v7144_v45  ;;  %v7225_v45 = vld [vmem:[#allocation8 + $0xc44] ss:$16 sps:$4 sm:$0xff]  }
 0x2ca   :  { %4731 = vmatpush1.bf16.msra.mxu0 %v7139_v31  ;;  %v7228_v31 = vld [vmem:[#allocation8 + $0xc4c] ss:$16 sps:$4 sm:$0xff]  }
 0x2cb   :  { %5075 = vmatpush1.bf16.msra.mxu1 %v7142_v46  ;;  %4732 = vmatprep.subr.bf16.mxu0 %v7147_v47  ;;  %v7223_v46 = vld [vmem:[#allocation8 + $0xc40] ss:$16 sps:$4 sm:$0xff]   ;;  %v7226_v47 = vld [vmem:[#allocation8 + $0xc48] ss:$16 sps:$4 sm:$0xff]  }
 0x2cc   :  { %5076 = vmatprep.subr.bf16.mxu1 %v7150_v48  ;;  %v7231_v48 = vld [vmem:[#allocation8 + $0xc64] ss:$16 sps:$4 sm:$0xff]  }
 0x2ce   :  { %4733 = vmatpush1.bf16.msra.mxu0 %v7145_v49  ;;  %v7229_v49 = vld [vmem:[#allocation8 + $0xc60] ss:$16 sps:$4 sm:$0xff]  }
 0x2cf   :  { %5077 = vmatpush1.bf16.msra.mxu1 %v7148_v0  ;;  %4734 = vmatprep.subr.bf16.mxu0 %v7153_v51  ;;  %v7232_v0 = vld [vmem:[#allocation8 + $0xc68] ss:$16 sps:$4 sm:$0xff]   ;;  %v7237_v51 = vld [vmem:[#allocation8 + $0xc84] ss:$16 sps:$4 sm:$0xff]  }
 0x2d0   :  { %5078 = vmatprep.subr.bf16.mxu1 %v7156_v52  ;;  %v7240_v52 = vld [vmem:[#allocation8 + $0xc8c] ss:$16 sps:$4 sm:$0xff]  }
 0x2d2   :  { %4735 = vmatpush1.bf16.msra.mxu0 %v7151_v54  ;;  %v7238_v54 = vld [vmem:[#allocation8 + $0xc88] ss:$16 sps:$4 sm:$0xff]  }
 0x2d3   :  { %5079 = vmatpush1.bf16.msra.mxu1 %v7154_v56  ;;  %4736 = vmatprep.subr.bf16.mxu0 %v7159_v14  ;;  %v7243_v56 = vld [vmem:[#allocation8 + $0xca4] ss:$16 sps:$4 sm:$0xff]   ;;  %v7246_v14 = vld [vmem:[#allocation8 + $0xcac] ss:$16 sps:$4 sm:$0xff]  }
 0x2d4   :  { %5080 = vmatprep.subr.bf16.mxu1 %v7162_v57  ;;  %v7241_v57 = vld [vmem:[#allocation8 + $0xca0] ss:$16 sps:$4 sm:$0xff]  }
 0x2d6   :  { %4737 = vmatpush1.bf16.msra.mxu0 %v7157_v58  ;;  %v7244_v58 = vld [vmem:[#allocation8 + $0xca8] ss:$16 sps:$4 sm:$0xff]  }
 0x2d7   :  { %5081 = vmatpush1.bf16.msra.mxu1 %v7160_v59  ;;  %4738 = vmatprep.subr.bf16.mxu0 %v7165_v60  ;;  %v7249_v59 = vld [vmem:[#allocation8 + $0xcc4] ss:$16 sps:$4 sm:$0xff]   ;;  %v7252_v60 = vld [vmem:[#allocation8 + $0xccc] ss:$16 sps:$4 sm:$0xff]  }
 0x2d8   :  { %5082 = vmatprep.subr.bf16.mxu1 %v7168_v61  ;;  %v7247_v61 = vld [vmem:[#allocation8 + $0xcc0] ss:$16 sps:$4 sm:$0xff]  }
 0x2da   :  { %4739 = vmatpush1.bf16.msra.mxu0 %v7163_v62  ;;  %v7250_v62 = vld [vmem:[#allocation8 + $0xcc8] ss:$16 sps:$4 sm:$0xff]  }
 0x2db   :  { %5083 = vmatpush1.bf16.msra.mxu1 %v7166_v63  ;;  %4740 = vmatprep.subr.bf16.mxu0 %v7171_v2  ;;  %v7255_v63 = vld [vmem:[#allocation8 + $0xce4] ss:$16 sps:$4 sm:$0xff]   ;;  %v7258_v2 = vld [vmem:[#allocation8 + $0xcec] ss:$16 sps:$4 sm:$0xff]  }
 0x2dc   :  { %5084 = vmatprep.subr.bf16.mxu1 %v7174_v3  ;;  %v7253_v3 = vld [vmem:[#allocation8 + $0xce0] ss:$16 sps:$4 sm:$0xff]  }
 0x2de   :  { %4741 = vmatpush1.bf16.msra.mxu0 %v7169_v8  ;;  %v7256_v8 = vld [vmem:[#allocation8 + $0xce8] ss:$16 sps:$4 sm:$0xff]  }
 0x2df   :  { %5085 = vmatpush1.bf16.msra.mxu1 %v7172_v9  ;;  %4742 = vmatprep.subr.bf16.mxu0 %v7177_v12  ;;  %v7261_v9 = vld [vmem:[#allocation8 + $0xd04] ss:$16 sps:$4 sm:$0xff]   ;;  %v7264_v12 = vld [vmem:[#allocation8 + $0xd0c] ss:$16 sps:$4 sm:$0xff]  }
 0x2e0   :  { %5086 = vmatprep.subr.bf16.mxu1 %v7180_v10  ;;  %v7259_v10 = vld [vmem:[#allocation8 + $0xd00] ss:$16 sps:$4 sm:$0xff]  }
 0x2e2   :  { %4743 = vmatpush1.bf16.msra.mxu0 %v7175_v17  ;;  %v7262_v17 = vld [vmem:[#allocation8 + $0xd08] ss:$16 sps:$4 sm:$0xff]  }
 0x2e3   :  { %5087 = vmatpush1.bf16.msra.mxu1 %v7178_v24  ;;  %4744 = vmatprep.subr.bf16.mxu0 %v7183_v50  ;;  %v7267_v24 = vld [vmem:[#allocation8 + $0xd24] ss:$16 sps:$4 sm:$0xff]   ;;  %v7270_v50 = vld [vmem:[#allocation8 + $0xd2c] ss:$16 sps:$4 sm:$0xff]  }
 0x2e4   :  { %5088 = vmatprep.subr.bf16.mxu1 %v7186_v20  ;;  %v7265_v20 = vld [vmem:[#allocation8 + $0xd20] ss:$16 sps:$4 sm:$0xff]  }
 0x2e6   :  { %4745 = vmatpush1.bf16.msra.mxu0 %v7181_v22  ;;  %v7268_v22 = vld [vmem:[#allocation8 + $0xd28] ss:$16 sps:$4 sm:$0xff]  }
 0x2e7   :  { %5089 = vmatpush1.bf16.msra.mxu1 %v7184_v23  ;;  %4746 = vmatprep.subr.bf16.mxu0 %v7189_v11  ;;  %v7273_v23 = vld [vmem:[#allocation8 + $0xd44] ss:$16 sps:$4 sm:$0xff]   ;;  %v7276_v11 = vld [vmem:[#allocation8 + $0xd4c] ss:$16 sps:$4 sm:$0xff]  }
 0x2e8   :  { %5090 = vmatprep.subr.bf16.mxu1 %v7192_v27  ;;  %v7271_v27 = vld [vmem:[#allocation8 + $0xd40] ss:$16 sps:$4 sm:$0xff]  }
 0x2ea   :  { %4747 = vmatpush1.bf16.msra.mxu0 %v7187_v28  ;;  %v7274_v28 = vld [vmem:[#allocation8 + $0xd48] ss:$16 sps:$4 sm:$0xff]  }
 0x2eb   :  { %5091 = vmatpush1.bf16.msra.mxu1 %v7190_v13  ;;  %4748 = vmatprep.subr.bf16.mxu0 %v7195_v7  ;;  %v7279_v13 = vld [vmem:[#allocation8 + $0xd64] ss:$16 sps:$4 sm:$0xff]   ;;  %v7282_v7 = vld [vmem:[#allocation8 + $0xd6c] ss:$16 sps:$4 sm:$0xff]  }
 0x2ec   :  { %5092 = vmatprep.subr.bf16.mxu1 %v7198_v30  ;;  %v7277_v30 = vld [vmem:[#allocation8 + $0xd60] ss:$16 sps:$4 sm:$0xff]  }
 0x2ee   :  { %4749 = vmatpush1.bf16.msra.mxu0 %v7193_v32  ;;  %v7280_v32 = vld [vmem:[#allocation8 + $0xd68] ss:$16 sps:$4 sm:$0xff]  }
 0x2ef   :  { %5093 = vmatpush1.bf16.msra.mxu1 %v7196_v55  ;;  %4750 = vmatprep.subr.bf16.mxu0 %v7201_v33  ;;  %v7285_v55 = vld [vmem:[#allocation8 + $0xd84] ss:$16 sps:$4 sm:$0xff]   ;;  %v7288_v33 = vld [vmem:[#allocation8 + $0xd8c] ss:$16 sps:$4 sm:$0xff]  }
 0x2f0   :  { %5094 = vmatprep.subr.bf16.mxu1 %v7204_v6  ;;  %v7283_v6 = vld [vmem:[#allocation8 + $0xd80] ss:$16 sps:$4 sm:$0xff]  }
 0x2f2   :  { %4751 = vmatpush1.bf16.msra.mxu0 %v7199_v34  ;;  %v7286_v34 = vld [vmem:[#allocation8 + $0xd88] ss:$16 sps:$4 sm:$0xff]  }
 0x2f3   :  { %5095 = vmatpush1.bf16.msra.mxu1 %v7202_v35  ;;  %4752 = vmatprep.subr.bf16.mxu0 %v7207_v36  ;;  %v7291_v35 = vld [vmem:[#allocation8 + $0xda4] ss:$16 sps:$4 sm:$0xff]   ;;  %v7294_v36 = vld [vmem:[#allocation8 + $0xdac] ss:$16 sps:$4 sm:$0xff]  }
 0x2f4   :  { %5096 = vmatprep.subr.bf16.mxu1 %v7210_v25  ;;  %v7289_v25 = vld [vmem:[#allocation8 + $0xda0] ss:$16 sps:$4 sm:$0xff]  }
 0x2f6   :  { %4753 = vmatpush1.bf16.msra.mxu0 %v7205_v4  ;;  %v7292_v4 = vld [vmem:[#allocation8 + $0xda8] ss:$16 sps:$4 sm:$0xff]  }
 0x2f7   :  { %5097 = vmatpush1.bf16.msra.mxu1 %v7208_v39  ;;  %4765 = vmatprep.subr.bf16.mxu0 %v7213_v26  ;;  %v7297_v39 = vld [vmem:[#allocation8 + $0xdc4] ss:$16 sps:$4 sm:$0xff]   ;;  %v7300_v26 = vld [vmem:[#allocation8 + $0xdcc] ss:$16 sps:$4 sm:$0xff]  }
 0x2f8   :  { %5109 = vmatprep.subr.bf16.mxu1 %v7216_v53  ;;  %v7295_v53 = vld [vmem:[#allocation8 + $0xdc0] ss:$16 sps:$4 sm:$0xff]  }
 0x2f9   :  { %4755 = vmatmul.mubr.bf16.vlgmr.msra.gmra.mrb[16].mxu0 %v8015_v29 }
 0x2fa   :  { %5099 = vmatmul.mubr.bf16.vlgmr.msra.gmra.mrb[16].mxu1 %v8015_v29  ;;  %4766 = vmatpush1.bf16.msra.mxu0 %v7211_v40  ;;  %v7234_v29 = vld [vmem:[#allocation8 + $0xc6c] ss:$16 sps:$4 sm:$0xff]   ;;  %v7298_v40 = vld [vmem:[#allocation8 + $0xdc8] ss:$16 sps:$4 sm:$0xff]  }
 0x2fb   :  { %4797 = vmatprep.mubr.bf16.mxu0 %v8028_v18  ;;  %5110 = vmatpush1.bf16.msra.mxu1 %v7214_v41  ;;  %v7303_v41 = vld [vmem:[#allocation8 + $0xde4] ss:$16 sps:$4 sm:$0xff]  }
 0x2fc   :  { %5141 = vmatprep.mubr.bf16.mxu1 %v8028_v18  ;;  %4767 = vmatprep.subr.bf16.mxu0 %v7219_v1  ;;  %v7235_v18 = vld [vmem:[#allocation8 + $0xc80] ss:$16 sps:$4 sm:$0xff]   ;;  %v7306_v1 = vld [vmem:[#allocation8 + $0xdec] ss:$16 sps:$4 sm:$0xff]  }
 0x2fd   :  { %5111 = vmatprep.subr.bf16.mxu1 %v7222_v42  ;;  %v7301_v42 = vld [vmem:[#allocation8 + $0xde0] ss:$16 sps:$4 sm:$0xff]  }
 0x2fe   :  { %4768 = vmatpush1.bf16.msra.mxu0 %v7217_v43  ;;  %v7304_v43 = vld [vmem:[#allocation8 + $0xde8] ss:$16 sps:$4 sm:$0xff]  }
 0x2ff   :  { %5112 = vmatpush1.bf16.msra.mxu1 %v7220_v44  ;;  %4769 = vmatprep.subr.bf16.mxu0 %v7225_v45  ;;  %v7309_v44 = vld [vmem:[#allocation8 + $0xe04] ss:$16 sps:$4 sm:$0xff]   ;;  %v7312_v45 = vld [vmem:[#allocation8 + $0xe0c] ss:$16 sps:$4 sm:$0xff]  }
 0x300   :  { %5113 = vmatprep.subr.bf16.mxu1 %v7228_v31  ;;  %v7307_v31 = vld [vmem:[#allocation8 + $0xe00] ss:$16 sps:$4 sm:$0xff]  }
 0x302   :  { %4770 = vmatpush1.bf16.msra.mxu0 %v7223_v46  ;;  %v7310_v46 = vld [vmem:[#allocation8 + $0xe08] ss:$16 sps:$4 sm:$0xff]  }
 0x303   :  { %5114 = vmatpush1.bf16.msra.mxu1 %v7226_v47  ;;  %4771 = vmatprep.subr.bf16.mxu0 %v7231_v48  ;;  %v7315_v47 = vld [vmem:[#allocation8 + $0xe24] ss:$16 sps:$4 sm:$0xff]   ;;  %v7318_v48 = vld [vmem:[#allocation8 + $0xe2c] ss:$16 sps:$4 sm:$0xff]  }
 0x304   :  { %5115 = vmatprep.subr.bf16.mxu1 %v7234_v29  ;;  %v7313_v29 = vld [vmem:[#allocation8 + $0xe20] ss:$16 sps:$4 sm:$0xff]  }
 0x306   :  { %4772 = vmatpush1.bf16.msra.mxu0 %v7229_v49  ;;  %v7316_v49 = vld [vmem:[#allocation8 + $0xe28] ss:$16 sps:$4 sm:$0xff]  }
 0x307   :  { %5116 = vmatpush1.bf16.msra.mxu1 %v7232_v0  ;;  %4773 = vmatprep.subr.bf16.mxu0 %v7237_v51  ;;  %v7321_v0 = vld [vmem:[#allocation8 + $0xe44] ss:$16 sps:$4 sm:$0xff]   ;;  %v7324_v51 = vld [vmem:[#allocation8 + $0xe4c] ss:$16 sps:$4 sm:$0xff]  }
 0x308   :  { %5117 = vmatprep.subr.bf16.mxu1 %v7240_v52  ;;  %v7319_v52 = vld [vmem:[#allocation8 + $0xe40] ss:$16 sps:$4 sm:$0xff]  }
 0x30a   :  { %4774 = vmatpush1.bf16.msra.mxu0 %v7235_v18  ;;  %v7322_v18 = vld [vmem:[#allocation8 + $0xe48] ss:$16 sps:$4 sm:$0xff]  }
 0x30b   :  { %5118 = vmatpush1.bf16.msra.mxu1 %v7238_v54  ;;  %4775 = vmatprep.subr.bf16.mxu0 %v7243_v56  ;;  %v7327_v54 = vld [vmem:[#allocation8 + $0xe64] ss:$16 sps:$4 sm:$0xff]   ;;  %v7325_v56 = vld [vmem:[#allocation8 + $0xe60] ss:$16 sps:$4 sm:$0xff]  }
 0x30c   :  { %5119 = vmatprep.subr.bf16.mxu1 %v7246_v14  ;;  %v7328_v14 = vld [vmem:[#allocation8 + $0xe68] ss:$16 sps:$4 sm:$0xff]  }
 0x30e   :  { %4776 = vmatpush1.bf16.msra.mxu0 %v7241_v57  ;;  %v7333_v57 = vld [vmem:[#allocation8 + $0xe84] ss:$16 sps:$4 sm:$0xff]  }
 0x30f   :  { %5120 = vmatpush1.bf16.msra.mxu1 %v7244_v58  ;;  %4777 = vmatprep.subr.bf16.mxu0 %v7249_v59  ;;  %v7336_v58 = vld [vmem:[#allocation8 + $0xe8c] ss:$16 sps:$4 sm:$0xff]   ;;  %v7334_v59 = vld [vmem:[#allocation8 + $0xe88] ss:$16 sps:$4 sm:$0xff]  }
 0x310   :  { %5121 = vmatprep.subr.bf16.mxu1 %v7252_v60  ;;  %v7339_v60 = vld [vmem:[#allocation8 + $0xea4] ss:$16 sps:$4 sm:$0xff]  }
 0x312   :  { %4778 = vmatpush1.bf16.msra.mxu0 %v7247_v61  ;;  %v7342_v61 = vld [vmem:[#allocation8 + $0xeac] ss:$16 sps:$4 sm:$0xff]  }
 0x313   :  { %5122 = vmatpush1.bf16.msra.mxu1 %v7250_v62  ;;  %4779 = vmatprep.subr.bf16.mxu0 %v7255_v63  ;;  %v7337_v62 = vld [vmem:[#allocation8 + $0xea0] ss:$16 sps:$4 sm:$0xff]   ;;  %v7340_v63 = vld [vmem:[#allocation8 + $0xea8] ss:$16 sps:$4 sm:$0xff]  }
 0x314   :  { %5123 = vmatprep.subr.bf16.mxu1 %v7258_v2  ;;  %v7345_v2 = vld [vmem:[#allocation8 + $0xec4] ss:$16 sps:$4 sm:$0xff]  }
 0x316   :  { %4780 = vmatpush1.bf16.msra.mxu0 %v7253_v3  ;;  %v7348_v3 = vld [vmem:[#allocation8 + $0xecc] ss:$16 sps:$4 sm:$0xff]  }
 0x317   :  { %5124 = vmatpush1.bf16.msra.mxu1 %v7256_v8  ;;  %4781 = vmatprep.subr.bf16.mxu0 %v7261_v9  ;;  %v7343_v8 = vld [vmem:[#allocation8 + $0xec0] ss:$16 sps:$4 sm:$0xff]   ;;  %v7346_v9 = vld [vmem:[#allocation8 + $0xec8] ss:$16 sps:$4 sm:$0xff]  }
 0x318   :  { %5125 = vmatprep.subr.bf16.mxu1 %v7264_v12  ;;  %v7351_v12 = vld [vmem:[#allocation8 + $0xee4] ss:$16 sps:$4 sm:$0xff]  }
 0x31a   :  { %4782 = vmatpush1.bf16.msra.mxu0 %v7259_v10  ;;  %v7354_v10 = vld [vmem:[#allocation8 + $0xeec] ss:$16 sps:$4 sm:$0xff]  }
 0x31b   :  { %5126 = vmatpush1.bf16.msra.mxu1 %v7262_v17  ;;  %4783 = vmatprep.subr.bf16.mxu0 %v7267_v24  ;;  %v7349_v17 = vld [vmem:[#allocation8 + $0xee0] ss:$16 sps:$4 sm:$0xff]   ;;  %v7352_v24 = vld [vmem:[#allocation8 + $0xee8] ss:$16 sps:$4 sm:$0xff]  }
 0x31c   :  { %5127 = vmatprep.subr.bf16.mxu1 %v7270_v50  ;;  %v7357_v50 = vld [vmem:[#allocation8 + $0xf04] ss:$16 sps:$4 sm:$0xff]  }
 0x31e   :  { %4784 = vmatpush1.bf16.msra.mxu0 %v7265_v20  ;;  %v7360_v20 = vld [vmem:[#allocation8 + $0xf0c] ss:$16 sps:$4 sm:$0xff]  }
 0x31f   :  { %5128 = vmatpush1.bf16.msra.mxu1 %v7268_v22  ;;  %4785 = vmatprep.subr.bf16.mxu0 %v7273_v23  ;;  %v7355_v22 = vld [vmem:[#allocation8 + $0xf00] ss:$16 sps:$4 sm:$0xff]   ;;  %v7358_v23 = vld [vmem:[#allocation8 + $0xf08] ss:$16 sps:$4 sm:$0xff]  }
 0x320   :  { %5129 = vmatprep.subr.bf16.mxu1 %v7276_v11  ;;  %v7363_v11 = vld [vmem:[#allocation8 + $0xf24] ss:$16 sps:$4 sm:$0xff]  }
 0x322   :  { %4786 = vmatpush1.bf16.msra.mxu0 %v7271_v27  ;;  %v7366_v27 = vld [vmem:[#allocation8 + $0xf2c] ss:$16 sps:$4 sm:$0xff]  }
 0x323   :  { %5130 = vmatpush1.bf16.msra.mxu1 %v7274_v28  ;;  %4787 = vmatprep.subr.bf16.mxu0 %v7279_v13  ;;  %v7361_v28 = vld [vmem:[#allocation8 + $0xf20] ss:$16 sps:$4 sm:$0xff]   ;;  %v7364_v13 = vld [vmem:[#allocation8 + $0xf28] ss:$16 sps:$4 sm:$0xff]  }
 0x324   :  { %5131 = vmatprep.subr.bf16.mxu1 %v7282_v7  ;;  %v7369_v7 = vld [vmem:[#allocation8 + $0xf44] ss:$16 sps:$4 sm:$0xff]  }
 0x326   :  { %4788 = vmatpush1.bf16.msra.mxu0 %v7277_v30  ;;  %v7372_v30 = vld [vmem:[#allocation8 + $0xf4c] ss:$16 sps:$4 sm:$0xff]  }
 0x327   :  { %5132 = vmatpush1.bf16.msra.mxu1 %v7280_v32  ;;  %4789 = vmatprep.subr.bf16.mxu0 %v7285_v55  ;;  %v7367_v32 = vld [vmem:[#allocation8 + $0xf40] ss:$16 sps:$4 sm:$0xff]   ;;  %v7370_v55 = vld [vmem:[#allocation8 + $0xf48] ss:$16 sps:$4 sm:$0xff]  }
 0x328   :  { %5133 = vmatprep.subr.bf16.mxu1 %v7288_v33  ;;  %v7375_v33 = vld [vmem:[#allocation8 + $0xf64] ss:$16 sps:$4 sm:$0xff]  }
 0x32a   :  { %4790 = vmatpush1.bf16.msra.mxu0 %v7283_v6  ;;  %v7378_v6 = vld [vmem:[#allocation8 + $0xf6c] ss:$16 sps:$4 sm:$0xff]  }
 0x32b   :  { %5134 = vmatpush1.bf16.msra.mxu1 %v7286_v34  ;;  %4791 = vmatprep.subr.bf16.mxu0 %v7291_v35  ;;  %v7373_v34 = vld [vmem:[#allocation8 + $0xf60] ss:$16 sps:$4 sm:$0xff]   ;;  %v7376_v35 = vld [vmem:[#allocation8 + $0xf68] ss:$16 sps:$4 sm:$0xff]  }
 0x32c   :  { %5135 = vmatprep.subr.bf16.mxu1 %v7294_v36  ;;  %v7381_v36 = vld [vmem:[#allocation8 + $0xf84] ss:$16 sps:$4 sm:$0xff]  }
 0x32e   :  { %4792 = vmatpush1.bf16.msra.mxu0 %v7289_v25  ;;  %v7384_v25 = vld [vmem:[#allocation8 + $0xf8c] ss:$16 sps:$4 sm:$0xff]  }
 0x32f   :  { %5136 = vmatpush1.bf16.msra.mxu1 %v7292_v4  ;;  %4793 = vmatprep.subr.bf16.mxu0 %v7297_v39  ;;  %v7379_v4 = vld [vmem:[#allocation8 + $0xf80] ss:$16 sps:$4 sm:$0xff]   ;;  %v7382_v39 = vld [vmem:[#allocation8 + $0xf88] ss:$16 sps:$4 sm:$0xff]  }
 0x330   :  { %5137 = vmatprep.subr.bf16.mxu1 %v7300_v26  ;;  %v7387_v26 = vld [vmem:[#allocation8 + $0xfa4] ss:$16 sps:$4 sm:$0xff]  }
 0x332   :  { %4794 = vmatpush1.bf16.msra.mxu0 %v7295_v53  ;;  %v7390_v53 = vld [vmem:[#allocation8 + $0xfac] ss:$16 sps:$4 sm:$0xff]  }
 0x333   :  { %5138 = vmatpush1.bf16.msra.mxu1 %v7298_v40  ;;  %4795 = vmatprep.subr.bf16.mxu0 %v7303_v41  ;;  %v7385_v40 = vld [vmem:[#allocation8 + $0xfa0] ss:$16 sps:$4 sm:$0xff]   ;;  %v7388_v41 = vld [vmem:[#allocation8 + $0xfa8] ss:$16 sps:$4 sm:$0xff]  }
 0x334   :  { %5139 = vmatprep.subr.bf16.mxu1 %v7306_v1  ;;  %v7393_v1 = vld [vmem:[#allocation8 + $0xfc4] ss:$16 sps:$4 sm:$0xff]  }
 0x336   :  { %4796 = vmatpush1.bf16.msra.mxu0 %v7301_v42  ;;  %v7396_v42 = vld [vmem:[#allocation8 + $0xfcc] ss:$16 sps:$4 sm:$0xff]  }
 0x337   :  { %5140 = vmatpush1.bf16.msra.mxu1 %v7304_v43  ;;  %4808 = vmatprep.subr.bf16.mxu0 %v7309_v44  ;;  %v7391_v43 = vld [vmem:[#allocation8 + $0xfc0] ss:$16 sps:$4 sm:$0xff]   ;;  %v7394_v44 = vld [vmem:[#allocation8 + $0xfc8] ss:$16 sps:$4 sm:$0xff]  }
 0x338   :  { %5152 = vmatprep.subr.bf16.mxu1 %v7312_v45  ;;  %v7399_v45 = vld [vmem:[#allocation8 + $0xfe4] ss:$16 sps:$4 sm:$0xff]  }
 0x339   :  { %4798 = vmatmul.mubr.bf16.vlgmr.msra.gmra.mrb[16].mxu0 %v8025_v5 }
 0x33a   :  { %5142 = vmatmul.mubr.bf16.vlgmr.msra.gmra.mrb[16].mxu1 %v8025_v5  ;;  %4809 = vmatpush1.bf16.msra.mxu0 %v7307_v31  ;;  %v7330_v5 = vld [vmem:[#allocation8 + $0xe6c] ss:$16 sps:$4 sm:$0xff]  }
 0x33b   :  { %4840 = vmatprep.mubr.bf16.mxu0 %v8035_v38  ;;  %5153 = vmatpush1.bf16.msra.mxu1 %v7310_v46  ;;  %v7402_v31 = vld [vmem:[#allocation8 + $0xfec] ss:$16 sps:$4 sm:$0xff]   ;;  %v7397_v46 = vld [vmem:[#allocation8 + $0xfe0] ss:$16 sps:$4 sm:$0xff]  }
 0x33c   :  { %5184 = vmatprep.mubr.bf16.mxu1 %v8035_v38  ;;  %4810 = vmatprep.subr.bf16.mxu0 %v7315_v47  ;;  %v7331_v38 = vld [vmem:[#allocation8 + $0xe80] ss:$16 sps:$4 sm:$0xff]   ;;  %v7400_v47 = vld [vmem:[#allocation8 + $0xfe8] ss:$16 sps:$4 sm:$0xff]  }
 0x33d   :  { %5154 = vmatprep.subr.bf16.mxu1 %v7318_v48  ;;  %v7403_v48 = vld [vmem:[#allocation11 + $0x40] sm:$0xff]  }
 0x33e   :  { %4811 = vmatpush1.bf16.msra.mxu0 %v7313_v29  ;;  %v7404_v29 = vld [vmem:[#allocation11 + $0xc0] sm:$0xff]  }
 0x33f   :  { %5155 = vmatpush1.bf16.msra.mxu1 %v7316_v49  ;;  %4812 = vmatprep.subr.bf16.mxu0 %v7321_v0  ;;  %v7405_v49 = vld [vmem:[#allocation11] sm:$0xff]  }
 0x340   :  { %5156 = vmatprep.subr.bf16.mxu1 %v7324_v51  ;;  %v7406_v0 = vld [vmem:[#allocation11 + $0x80] sm:$0xff]   ;;  %v7407_v51 = vld [vmem:[#allocation11 + $0x48] sm:$0xff]  }
 0x342   :  { %4813 = vmatpush1.bf16.msra.mxu0 %v7319_v52  ;;  %v7408_v52 = vld [vmem:[#allocation11 + $0xc8] sm:$0xff]  }
 0x343   :  { %5157 = vmatpush1.bf16.msra.mxu1 %v7322_v18  ;;  %4814 = vmatprep.subr.bf16.mxu0 %v7327_v54  ;;  %v7409_v18 = vld [vmem:[#allocation11 + $0x8] sm:$0xff]  }
 0x344   :  { %5158 = vmatprep.subr.bf16.mxu1 %v7330_v5  ;;  %v7410_v54 = vld [vmem:[#allocation11 + $0x88] sm:$0xff]   ;;  %v7411_v5 = vld [vmem:[#allocation11 + $0x50] sm:$0xff]  }
 0x346   :  { %4815 = vmatpush1.bf16.msra.mxu0 %v7325_v56  ;;  %v7412_v56 = vld [vmem:[#allocation11 + $0xd0] sm:$0xff]  }
 0x347   :  { %5159 = vmatpush1.bf16.msra.mxu1 %v7328_v14  ;;  %4816 = vmatprep.subr.bf16.mxu0 %v7333_v57  ;;  %v7413_v14 = vld [vmem:[#allocation11 + $0x10] sm:$0xff]  }
 0x348   :  { %5160 = vmatprep.subr.bf16.mxu1 %v7336_v58  ;;  %v7414_v57 = vld [vmem:[#allocation11 + $0x90] sm:$0xff]   ;;  %v7415_v58 = vld [vmem:[#allocation11 + $0x58] sm:$0xff]  }
 0x34a   :  { %4817 = vmatpush1.bf16.msra.mxu0 %v7331_v38  ;;  %v7416_v38 = vld [vmem:[#allocation11 + $0xd8] sm:$0xff]  }
 0x34b   :  { %5161 = vmatpush1.bf16.msra.mxu1 %v7334_v59  ;;  %4818 = vmatprep.subr.bf16.mxu0 %v7339_v60  ;;  %v7417_v59 = vld [vmem:[#allocation11 + $0x18] sm:$0xff]   ;;  %v7419_v60 = vld [vmem:[#allocation11 + $0x60] sm:$0xff]  }
 0x34c   :  { %5162 = vmatprep.subr.bf16.mxu1 %v7342_v61  ;;  %v7420_v61 = vld [vmem:[#allocation11 + $0xe0] sm:$0xff]  }
 0x34e   :  { %4819 = vmatpush1.bf16.msra.mxu0 %v7337_v62  ;;  %v7421_v62 = vld [vmem:[#allocation11 + $0x20] sm:$0xff]  }
 0x34f   :  { %5163 = vmatpush1.bf16.msra.mxu1 %v7340_v63  ;;  %4820 = vmatprep.subr.bf16.mxu0 %v7345_v2  ;;  %v7422_v63 = vld [vmem:[#allocation11 + $0xa0] sm:$0xff]   ;;  %v7423_v2 = vld [vmem:[#allocation11 + $0x68] sm:$0xff]  }
 0x350   :  { %5164 = vmatprep.subr.bf16.mxu1 %v7348_v3  ;;  %v7424_v3 = vld [vmem:[#allocation11 + $0xe8] sm:$0xff]  }
 0x352   :  { %4821 = vmatpush1.bf16.msra.mxu0 %v7343_v8  ;;  %v7425_v8 = vld [vmem:[#allocation11 + $0x28] sm:$0xff]  }
 0x353   :  { %5165 = vmatpush1.bf16.msra.mxu1 %v7346_v9  ;;  %4822 = vmatprep.subr.bf16.mxu0 %v7351_v12  ;;  %v7426_v9 = vld [vmem:[#allocation11 + $0xa8] sm:$0xff]   ;;  %v7427_v12 = vld [vmem:[#allocation11 + $0x70] sm:$0xff]  }
 0x354   :  { %5166 = vmatprep.subr.bf16.mxu1 %v7354_v10  ;;  %v7428_v10 = vld [vmem:[#allocation11 + $0xf0] sm:$0xff]  }
 0x356   :  { %4823 = vmatpush1.bf16.msra.mxu0 %v7349_v17  ;;  %v7429_v17 = vld [vmem:[#allocation11 + $0x30] sm:$0xff]  }
 0x357   :  { %5167 = vmatpush1.bf16.msra.mxu1 %v7352_v24  ;;  %4824 = vmatprep.subr.bf16.mxu0 %v7357_v50  ;;  %v7430_v24 = vld [vmem:[#allocation11 + $0xb0] sm:$0xff]   ;;  %v7431_v50 = vld [vmem:[#allocation11 + $0x78] sm:$0xff]  }
 0x358   :  { %5168 = vmatprep.subr.bf16.mxu1 %v7360_v20  ;;  %v7432_v20 = vld [vmem:[#allocation11 + $0xf8] sm:$0xff]  }
 0x35a   :  { %4825 = vmatpush1.bf16.msra.mxu0 %v7355_v22  ;;  %v7433_v22 = vld [vmem:[#allocation11 + $0x38] sm:$0xff]  }
 0x35b   :  { %5169 = vmatpush1.bf16.msra.mxu1 %v7358_v23  ;;  %4826 = vmatprep.subr.bf16.mxu0 %v7363_v11  ;;  %v7434_v23 = vld [vmem:[#allocation11 + $0xb8] sm:$0xff]   ;;  %v7727_v11 = vmov 0.0  }
 0x35c   :  { %5170 = vmatprep.subr.bf16.mxu1 %v7366_v27  ;;  %v1925_v27 = vld [vmem:[#allocation10] sm:$0xf] }
 0x35e   :  { %4827 = vmatpush1.bf16.msra.mxu0 %v7361_v28  ;;  %v1930_v28 = vrot.slane %v1925_v27, %v7950_v15 }
 0x35f   :  { %5171 = vmatpush1.bf16.msra.mxu1 %v7364_v13  ;;  %4828 = vmatprep.subr.bf16.mxu0 %v7369_v7  ;;  %v1938_v13 = vrot.slane %v1925_v27, %v7960_v19  ;;  %v1934_v7 = vrot.slane %v1925_v27, %v7953_v16 }
 0x360   :  { %5172 = vmatprep.subr.bf16.mxu1 %v7372_v30  ;;  %v1942_v30 = vrot.slane %v1925_v27, %v7963_v21  ;;  %v6453_v27 = vld [vmem:[#allocation14] ss:$0 sm:$0xff] }
 0x362   :  { %4829 = vmatpush1.bf16.msra.mxu0 %v7367_v32 }
 0x363   :  { %5173 = vmatpush1.bf16.msra.mxu1 %v7370_v55  ;;  %4830 = vmatprep.subr.bf16.mxu0 %v7375_v33 }
 0x364   :  { %5174 = vmatprep.subr.bf16.mxu1 %v7378_v6 }
 0x366   :  { %4831 = vmatpush1.bf16.msra.mxu0 %v7373_v34 }
 0x367   :  { %5175 = vmatpush1.bf16.msra.mxu1 %v7376_v35  ;;  %4832 = vmatprep.subr.bf16.mxu0 %v7381_v36 }
 0x368   :  { %5176 = vmatprep.subr.bf16.mxu1 %v7384_v25 }
 0x36a   :  { %4833 = vmatpush1.bf16.msra.mxu0 %v7379_v4 }
 0x36b   :  { %5177 = vmatpush1.bf16.msra.mxu1 %v7382_v39  ;;  %4834 = vmatprep.subr.bf16.mxu0 %v7387_v26 }
 0x36c   :  { %5178 = vmatprep.subr.bf16.mxu1 %v7390_v53 }
 0x36e   :  { %4835 = vmatpush1.bf16.msra.mxu0 %v7385_v40 }
 0x36f   :  { %5179 = vmatpush1.bf16.msra.mxu1 %v7388_v41  ;;  %4836 = vmatprep.subr.bf16.mxu0 %v7393_v1 }
 0x370   :  { %5180 = vmatprep.subr.bf16.mxu1 %v7396_v42 }
 0x372   :  { %4837 = vmatpush1.bf16.msra.mxu0 %v7391_v43 }
 0x373   :  { %5181 = vmatpush1.bf16.msra.mxu1 %v7394_v44  ;;  %4838 = vmatprep.subr.bf16.mxu0 %v7399_v45 }
 0x374   :  { %5182 = vmatprep.subr.bf16.mxu1 %v7402_v31 }
 0x376   :  { %4839 = vmatpush1.bf16.msra.mxu0 %v7397_v46 }
 0x377   :  { %5183 = vmatpush1.bf16.msra.mxu1 %v7400_v47  ;;  %6466 = vmatprep.subr.bf16.mxu0 %v7403_v48 }
 0x378   :  { %6488 = vmatprep.subr.bf16.mxu1 %v7404_v29  ;;  %v7435_v29 = vld [vmem:[%s8121_s7] sm:$0xff]  }
 0x379   :  { %4841 = vmatmul.mubr.bf16.vlgmr.msra.gmra.mrb[16].mxu0 %v8033_v37 }
 0x37a   :  { %5185 = vmatmul.mubr.bf16.vlgmr.msra.gmra.mrb[16].mxu1 %v8033_v37  ;;  %6467 = vmatpush3.bf16.msra.mxu0 %v7405_v49  ;;  %v7418_v37 = vld [vmem:[#allocation11 + $0x98] sm:$0xff]  }
 0x37b   :  { %6489 = vmatpush3.bf16.msra.mxu1 %v7406_v0  ;;  %6468 = vmatprep.subr.bf16.mxu0 %v7407_v51  ;;  %v7436_v0 = vld [vmem:[%s8121_s7 + $0x8] sm:$0xff]   ;;  %v7437_v51 = vld [vmem:[%s8121_s7 + $0x10] sm:$0xff]  }
 0x37c   :  { %6490 = vmatprep.subr.bf16.mxu1 %v7408_v52  ;;  %v7438_v52 = vld [vmem:[%s8121_s7 + $0x18] sm:$0xff]  }
 0x37e   :  { %6469 = vmatpush3.bf16.msra.mxu0 %v7409_v18  ;;  %v7439_v18 = vld [vmem:[%s8121_s7 + $0x20] sm:$0xff]  }
 0x37f   :  { %6491 = vmatpush3.bf16.msra.mxu1 %v7410_v54  ;;  %6470 = vmatprep.subr.bf16.mxu0 %v7411_v5  ;;  %v7440_v54 = vld [vmem:[%s8121_s7 + $0x28] sm:$0xff]   ;;  %v7441_v5 = vld [vmem:[%s8121_s7 + $0x30] sm:$0xff]  }
 0x380   :  { %6492 = vmatprep.subr.bf16.mxu1 %v7412_v56  ;;  %v7442_v56 = vld [vmem:[%s8121_s7 + $0x38] sm:$0xff]   ;;  %s7729_s7 = smov [#allocation19]  }
 0x381   :  { %s5763_s17 = sshll.u32 %s7729_s7, 4  ;;  %s5764_s17 = int_to_ptr.vmem [resolvable:$true] %s5763_s17 }
 0x382   :  { %6471 = vmatpush3.bf16.msra.mxu0 %v7413_v14  ;;  %s7673_s19 = scalar_lea.vmem %s5764_s17, 256  ;;  %p7678_p11 = scmp.lt.s32.totalorder %s5764_s17, %s5764_s17 }
 0x383   :  { %6493 = vmatpush3.bf16.msra.mxu1 %v7414_v57  ;;  %6472 = vmatprep.subr.bf16.mxu0 %v7415_v58  ;;  %v6420_v58 = vld [vmem:[#allocation13] ss:$0 sm:$0xff]  ;;  %p7674_p10 = scmp.ne.s32.totalorder %s5764_s17, %s7673_s19  ;;  %p7679_p12 = scmp.lt.s32.totalorder %s7673_s19, %s7673_s19 }
 0x384   :  { %6494 = vmatprep.subr.bf16.mxu1 %v7416_v38 }
 0x385   :  { %p7680_p13 = por %p7679_p12, %p7678_p11 }
 0x386   :  { %6473 = vmatpush3.bf16.msra.mxu0 %v7417_v59 }
 0x387   :  { %6495 = vmatpush3.bf16.msra.mxu1 %v7418_v37  ;;  %6474 = vmatprep.subr.bf16.mxu0 %v7419_v60  ;;  %p7681_p0 = pnand %p7680_p13, %p7674_p10 }
 0x388   :  { %6496 = vmatprep.subr.bf16.mxu1 %v7420_v61 }
 0x38a   :  { %6475 = vmatpush3.bf16.msra.mxu0 %v7421_v62 }
 0x38b   :  { %6497 = vmatpush3.bf16.msra.mxu1 %v7422_v63  ;;  %6476 = vmatprep.subr.bf16.mxu0 %v7423_v2 }
 0x38c   :  { %6498 = vmatprep.subr.bf16.mxu1 %v7424_v3 }
 0x38e   :  { %6477 = vmatpush3.bf16.msra.mxu0 %v7425_v8 }
 0x38f   :  { %6499 = vmatpush3.bf16.msra.mxu1 %v7426_v9  ;;  %6478 = vmatprep.subr.bf16.mxu0 %v7427_v12 }
 0x390   :  { %6500 = vmatprep.subr.bf16.mxu1 %v7428_v10 }
 0x392   :  { %6479 = vmatpush3.bf16.msra.mxu0 %v7429_v17 }
 0x393   :  { %6501 = vmatpush3.bf16.msra.mxu1 %v7430_v24  ;;  %6480 = vmatprep.subr.bf16.mxu0 %v7431_v50 }
 0x394   :  { %6502 = vmatprep.subr.bf16.mxu1 %v7432_v20 }
 0x396   :  { %6481 = vmatpush3.bf16.msra.mxu0 %v7433_v22  ;;  %v7443_v22 = vld [vmem:[#allocation16] sm:$0xff]  }
 0x397   :  { %6503 = vmatpush3.bf16.msra.mxu1 %v7434_v23  ;;  %6522 = vmatprep.subr.bf16.mxu0 %v7727_v11  ;;  %v7444_v23 = vld [vmem:[#allocation16 + $0x8] sm:$0xff]  }
 0x398   :  { %6542 = vmatprep.subr.bf16.mxu1 %v7727_v11 }
 0x44c   :  { %v4842_v32 = vpop.f32.mrb[16].mxu0 }
 0x44d   :  { %v6550_v55 = vadd.f32 %v4842_v32, %v1930_v28  ;;  %v5186_v33 = vpop.f32.mrb[16].mxu1  ;;  %v4844_v6 = vpop.f32.mrb[17].mxu0 }
 0x44e   :  { %v6554_v34 = vadd.f32 %v5186_v33, %v1938_v13  ;;  %v6551_v35 = vadd.f32 %v4844_v6, %v1934_v7  ;;  %v5188_v36 = vpop.f32.mrb[17].mxu1  ;;  %v4846_v25 = vpop.f32.mrb[18].mxu0 }
 0x44f   :  { %v6555_v4 = vadd.f32 %v5188_v36, %v1942_v30  ;;  %v6552_v39 = vadd.f32 %v4846_v25, %v1930_v28  ;;  %v5190_v26 = vpop.f32.mrb[18].mxu1  ;;  %v4848_v53 = vpop.f32.mrb[19].mxu0  ;;  %v5195_v19 = vmax.f32 %v6550_v55, 0.0 }
 0x450   :  { %v6556_v40 = vadd.f32 %v5190_v26, %v1938_v13  ;;  %v6553_v15 = vadd.f32 %v4848_v53, %v1934_v7  ;;  %v5192_v41 = vpop.f32.mrb[19].mxu1  ;;  %v5197_v42 = vmax.f32 %v6554_v34, 0.0  ;;  %v5196_v21 = vmax.f32 %v6551_v35, 0.0  ;;  %v6462_v35 = vld [vmem:[#allocation17] ss:$0 sm:$0xff] }
 0x451   :  { %v5199_v1 = vmax.f32 %v6552_v39, 0.0  ;;  %v6557_v16 = vadd.f32 %v5192_v41, %v1942_v30  ;;  %v5198_v45 = vmax.f32 %v6555_v4, 0.0 }
 0x452   :  { %v5201_v43 = vmax.f32 %v6556_v40, 0.0  ;;  %v5200_v44 = vmax.f32 %v6553_v15, 0.0 }
 0x453   :  { %v5203_v31 = vpack.c.bf16 %v5199_v1, %v5195_v19  ;;  %v5202_v46 = vmax.f32 %v6557_v16, 0.0 }
 0x454   :  { %v5205_v47 = vpack.c.bf16 %v5201_v43, %v5197_v42  ;;  %v5204_v48 = vpack.c.bf16 %v5200_v44, %v5196_v21 }
 0x455   :  { %v5206_v49 = vpack.c.bf16 %v5202_v46, %v5198_v45 }
 0x456   :  { %5502 = vmatprep.mubr.bf16.mxu0 %v5204_v48 }
 0x457   :  { %5543 = vmatprep.mubr.bf16.mxu1 %v5206_v49  ;;  %5503 = vmatmul.mubr.bf16.vlgmr.msra.gmra.mrb[20].mxu0 %v5203_v31 }
 0x458   :  { %5544 = vmatmul.mubr.bf16.vlgmr.msra.gmra.mrb[20].mxu1 %v5205_v47  ;;  %6523 = vmatpush3.bf16.msra.mxu0 %v7435_v29 }
 0x459   :  { %6524 = vmatprep.subr.bf16.mxu0 %v7727_v11  ;;  %6538 = vmatprep.mubr.msk.bf16.mxu0 %vm7728_vm0, %v7727_v11 }
 0x45a   :  { %6546 = vmatprep.mubr.msk.bf16.mxu1 %vm7728_vm0, %v7727_v11  ;;  %6543 = vmatpush3.bf16.msra.mxu1 %v7443_v22 }
 0x45b   :  { %6544 = vmatprep.subr.bf16.mxu1 %v7727_v11 }
 0x45c   :  { %6525 = vmatpush3.bf16.msra.mxu0 %v7436_v0 }
 0x45d   :  { %6526 = vmatprep.subr.bf16.mxu0 %v7727_v11 }
 0x45e   :  { %6545 = vmatpush3.bf16.msra.mxu1 %v7444_v23 }
 0x460   :  { %6527 = vmatpush3.bf16.msra.mxu0 %v7437_v51 }
 0x461   :  { %6528 = vmatprep.subr.bf16.mxu0 %v7727_v11 }
 0x464   :  { %6529 = vmatpush3.bf16.msra.mxu0 %v7438_v52 }
 0x465   :  { %6530 = vmatprep.subr.bf16.mxu0 %v7727_v11 }
 0x468   :  { %6531 = vmatpush3.bf16.msra.mxu0 %v7439_v18 }
 0x469   :  { %6532 = vmatprep.subr.bf16.mxu0 %v7727_v11 }
 0x46c   :  { %6533 = vmatpush3.bf16.msra.mxu0 %v7440_v54 }
 0x46d   :  { %6534 = vmatprep.subr.bf16.mxu0 %v7727_v11 }
 0x470   :  { %6535 = vmatpush3.bf16.msra.mxu0 %v7441_v5 }
 0x471   :  { %6536 = vmatprep.subr.bf16.mxu0 %v7727_v11 }
 0x474   :  { %6537 = vmatpush3.bf16.msra.mxu0 %v7442_v56 }
 0x52a   :  { %v6482_v14 = vpop.f32.mrb[20].mxu0 }
 0x52b   :  { %v6504_v57 = vpop.f32.mrb[20].mxu1  ;;  %v6483_v38 = vpop.f32.mrb[21].mxu0 }
 0x52c   :  { %v6484_v59 = vadd.f32 %v6483_v38, %v6482_v14  ;;  %v6505_v37 = vpop.f32.mrb[21].mxu1  ;;  %v6485_v60 = vpop.f32.mrb[22].mxu0 }
 0x52d   :  { %v6506_v61 = vadd.f32 %v6505_v37, %v6504_v57  ;;  %v6507_v62 = vpop.f32.mrb[22].mxu1  ;;  %v6486_v63 = vpop.f32.mrb[23].mxu0 }
 0x52e   :  { %v5505_v2 = vadd.f32 %v6484_v59, %v6420_v58  ;;  %v6487_v3 = vadd.f32 %v6486_v63, %v6485_v60  ;;  %v6508_v8 = vpop.f32.mrb[23].mxu1 }
 0x52f   :  { %v6509_v9 = vadd.f32 %v6508_v8, %v6507_v62 }
 0x530   :  { %v5546_v12 = vadd.f32 %v6506_v61, %v5505_v2  ;;  %v5508_v10 = vadd.f32 %v6487_v3, %v6420_v58 }
 0x532   :  { %v5549_v17 = vadd.f32 %v6509_v9, %v5508_v10  ;;  %v5552_v24 = vmax.f32 %v5546_v12, 0.0 }
 0x534   :  { %v5553_v50 = vmax.f32 %v5549_v17, 0.0 }
 0x536   :  { %v5554_v20 = vpack.c.bf16 %v5553_v50, %v5552_v24 }
 0x538   :  { %6539 = vmatmul.mubr.bf16.vlgmr.msra.gmra.mrb[24].mxu0 %v5554_v20 }
 0x60b   :  { %v5660_v28 = vpop.f32.mrb[24].mxu0 }
 0x60c   :  { %v5661_v13 = vadd.f32 %v6453_v27, %v5660_v28  ;;  %v6540_v7 = vpop.f32.mrb[25].mxu0 }
 0x60d   :  { %v5663_v30 = vpop.f32.mrb[26].mxu0 }
 0x60e   :  { %v5664_v32 = vadd.f32 %v6453_v27, %v5663_v30  ;;  %v6541_v55 = vpop.f32.mrb[27].mxu0  ;;  %v5667_v33 = vmax.f32 %v5661_v13, 0.0 }
 0x610   :  { %v5668_v6 = vmax.f32 %v5664_v32, 0.0 }
 0x612   :  { %v5669_v34 = vpack.c.bf16 %v5668_v6, %v5667_v33 }
 0x614   :  { %6547 = vmatmul.mubr.msk.bf16.vlgmr.msra.gmra.mrb[24].mxu1 %vm5693_vm1, %v5669_v34 }
 0x6e7   :  { %v5731_v36 = vpop.f32.mrb[24].mxu1 }
 0x6e8   :  { %v5732_v25 = vadd.f32 %v6462_v35, %v5731_v36  ;;  %v6548_v4 = vpop.f32.mrb[25].mxu1 }
 0x6e9   :  { %v5734_v39 = vpop.f32.mrb[26].mxu1 }
 0x6ea   :  { %5738 = vmax.xlane.f32.xlu0 %v5732_v25  ;;  %v6549_v11 = vpop.f32.mrb[27].mxu1  ;;  %v5735_v26 = vadd.f32 %v6462_v35, %v5734_v39 }
 0x6ee   :  { %5740 = vmax.xlane.f32.xlu0 %v5735_v26 }
 0x777   :  { %v5739_v53 = vpop.xlane.xlu0 %5738 }
 0x778   :  { %v5742_v40 = vsub.f32 %v5732_v25, %v5739_v53 }
 0x77a   :  { %v5744_v15 = vmul.f32 1.442695, %v5742_v40 }
 0x77b   :  { %v5741_v41 = vpop.xlane.xlu0 %5740 }
 0x77c   :  { %7445 = vpow2.f32 %v5744_v15  ;;  %v5743_v19 = vsub.f32 %v5735_v26, %v5741_v41 }
 0x77e   :  { %v5746_v1 = vmul.f32 1.442695, %v5743_v19 }
 0x780   :  { %7447 = vpow2.f32 %v5746_v1 }
 0x786   :  { %v7446_v16 = vpop.eup %7445 }
 0x787   :  { %5748 = vadd.xlane.f32.xlu1 %v7446_v16 }
 0x78a   :  { %v7448_v42 = vpop.eup %7447 }
 0x78b   :  { %5750 = vadd.xlane.f32.xlu1 %v7448_v42 }
 0x814   :  { %v5749_v21 = vpop.xlane.xlu1 %5748 }
 0x815   :  { %7449 = vrcp.f32 %v5749_v21 }
 0x818   :  { %v5751_v43 = vpop.xlane.xlu1 %5750 }
 0x819   :  { %7451 = vrcp.f32 %v5751_v43 }
 0x81f   :  { %v7450_v44 = vpop.eup %7449 }
 0x820   :  { %v5754_v45 = vmul.f32 %v7450_v44, %v7446_v16 }
 0x822   :  { %5756 = vst [vmem:[#allocation19] sm:$0xff] %v5754_v45 }
 0x823   :  { %v7452_v31 = vpop.eup %7451 }
 0x824   :  { %v5755_v46 = vmul.f32 %v7452_v31, %v7448_v42 }
 0x826   :  { %5757 = vst [vmem:[#allocation19 + $0x8] sm:$0xff] %v5755_v46 }
 0x827   :  { %7684 = shalt.err (!%p7681_p0)
}
 0x828   :  { %s7685_s3 = scalar_lea.hbm %s8125_s11, 256 }
 0x829   :  { %p7686_p1 = scmp.ne.s32.totalorder %s8125_s11, %s7685_s3  ;;  %p7689_p2 = scmp.lt.u32.totalorder %s7685_s3, %s8125_s11 }
 0x82b   :  { %p7691_p3 = pnand %p7689_p2, %p7686_p1 }
 0x82d   :  { %7694 = shalt.err (!%p7691_p3)
}
 0x82e   :  { %5769 = dma.vmem_to_hbm [thread:$0]  %s5764_s17, 256, %s8125_s11, [#allocation4], %s7719_s8, %s7719_s8, %s7720_s29  }
 0x82f   :  { %7707 = dma.done.wait [#allocation4], 256  }
 0x830   :  { %7708 = vsyncadd [#allocation4], 4294967040 }
 0x831   :  { %5773 = vsyncpa [#allocation3], 1 }
 0x832   :  { %5774 = vsyncpa [#allocation6], 1 }
 0x833   :  { %5775 = vsyncpa [#allocation9], 1 }
 0x834   :  { %5776 = vsyncpa [#allocation12], 1 }
 0x835   :  { %5777 = vsyncpa [#allocation15], 1 }
 0x836   :  { %5778 = vsyncpa [#allocation18], 1 }
 0x837   :  { %5779 = vsyncpa [#allocation4], 1 }

</bundles_post_ra>
